<compile_context>
chip_gen: v7x
topology: tpu7x:2x2x1
jax: 0.10.0
libtpu: 0.0.40
codegen_flags: <defaults>
</compile_context>

<pallas_src>
import jax
import jax.numpy as jnp
from jax.experimental import pallas as pl
from jax.experimental.pallas import tpu as pltpu


# ----------------------------- model config ---------------------------------------------------

IMG = 32                          # image H = W
PATCH = 8                         # patch size -> 16 patches
C_IN = 3
PDIM = C_IN * PATCH * PATCH       # 192
N_PATCH = (IMG // PATCH) ** 2     # 16
N_TOK = N_PATCH + 1               # 17 real tokens (cls + patches)
S_PAD = 24                        # padded token count (multiple of 8 sublanes)
EMB = 64                          # encoder hidden / feat_dim
HEADS = 4
DH = EMB // HEADS                 # 16
BLOCKS = 2                        # num_blocks (kept small)
MLP = 4 * EMB
HIDDEN = 32                       # decoder hidden_dim (kept small)
N_ITER = 3
NUM_JOINTS = 24
POSE_DIM = NUM_JOINTS * 6         # 144
NUM_VERTS = 432
NUM_KP = 24

STATE_DIM = POSE_DIM + 10 + 3     # 157 = pose | shape | cam
ROT_DIM = 9 * NUM_JOINTS          # 216
BLEND_IN = 10 + ROT_DIM           # 226 = shape ++ (R - I) entries
V3 = 3 * NUM_VERTS                # 1296 (coord-major lanes)
KP3 = 3 * NUM_KP                  # 72

F_TARGET = 16                     # frames packed per grid step (16*24 = 384 MXU rows)


# ----------------------------- fused MAED kernel ----------------------------------------------

def _maed_kernel(patches_ref,
                 # encoder consts
                 add_ref, mask_ref, pw_ref,
                 ln1_ref, wqkv_ref, bqkv_ref, wproj_ref, bproj_ref,
                 ln2_ref, w1_ref, b1_ref, w2_ref, b2_ref, lnf_ref,
                 # decoder consts
                 wf_ref, wpsc_ref, b1d_ref, w2d_ref, b2d_ref, wd_ref, bd_ref, init_ref,
                 # synthetic SMPL consts
                 vt_ref, blend_ref, jreg_ref,
                 # outputs
                 state_o, rot_o, verts_o, kp_o):
    """F frames per grid step: patch embed -> transformer blocks -> cls -> KTD regressor -> SMPL."""
    f32 = jnp.float32
    bf16 = jnp.bfloat16
    F = patches_ref.shape[1]
    S = S_PAD
    E = EMB
    scale = 1.0 / float(DH) ** 0.5

    def layernorm(x, gb):                                  # x (..., EMB) f32, gb (2, EMB) f32
        g, b = gb[0:1, :], gb[1:2, :]
        mu = jnp.mean(x, axis=-1, keepdims=True)
        var = jnp.mean(jnp.square(x - mu), axis=-1, keepdims=True)
        return (x - mu) * jax.lax.rsqrt(var + 1e-6) * g + b

    mask = mask_ref[...]                                   # (1, S): 0 real, -1e30 pads

    # ---- encoder: patch embedding (one (F*S, PDIM) matmul), cls/pos add -----------------------
    p2 = patches_ref[0].reshape(F * S, PDIM)               # bf16, padded/cast in the wrapper
    tok = (jnp.dot(p2, pw_ref[...], preferred_element_type=f32)
           .reshape(F, S, E) + add_ref[...])               # (F, S, E) f32

    for blk in range(BLOCKS):
        # --- attention: fused QKV matmul, per-head batched score/PV, fused output projection ---
        h = layernorm(tok, ln1_ref[blk])
        hb = h.reshape(F * S, E).astype(bf16)
        qkv = (jnp.dot(hb, wqkv_ref[blk], preferred_element_type=f32)
               + bqkv_ref[blk]).reshape(F, S, 3 * E)       # [Q | K | V], heads in DH slices
        heads = []
        for hd in range(HEADS):
            q = qkv[:, :, hd * DH:(hd + 1) * DH]
            k = qkv[:, :, E + hd * DH:E + (hd + 1) * DH]
            v = qkv[:, :, 2 * E + hd * DH:2 * E + (hd + 1) * DH]
            s = jnp.einsum('fsd,ftd->fst', q, k,
                           preferred_element_type=f32) * scale + mask
            s = s - jnp.max(s, axis=-1, keepdims=True)
            p = jnp.exp(s)
            p = p * pl.reciprocal(jnp.sum(p, axis=-1, keepdims=True), approx=True)
            heads.append(jnp.einsum('fst,ftd->fsd', p, v, preferred_element_type=f32))
        o = jnp.concatenate(heads, axis=-1).reshape(F * S, E).astype(bf16)
        attn = jnp.dot(o, wproj_ref[blk], preferred_element_type=f32) + bproj_ref[blk]
        tok = tok + attn.reshape(F, S, E)

        # --- MLP (tanh gelu -> EUP slot) ---
        h2 = layernorm(tok, ln2_ref[blk]).reshape(F * S, E).astype(bf16)
        m = jnp.dot(h2, w1_ref[blk], preferred_element_type=f32) + b1_ref[blk]
        m = jax.nn.gelu(m, approximate=True)
        mlp = jnp.dot(m.astype(bf16), w2_ref[blk], preferred_element_type=f32) + b2_ref[blk]
        tok = tok + mlp.reshape(F, S, E)

    feat = layernorm(tok[:, 0, :], lnf_ref[...])           # (F, E) cls features

    # ---- decoder: KTD iterative regressor on packed (pose|shape|cam) state --------------------
    hf = jnp.dot(feat, wf_ref[...], preferred_element_type=f32)        # loop-invariant, hoisted
    state = jnp.broadcast_to(init_ref[...], (F, STATE_DIM))
    for _ in range(N_ITER):
        h = hf + jnp.dot(state, wpsc_ref[...], preferred_element_type=f32) + b1d_ref[...]
        h = jnp.maximum(h, 0.0)
        h = jnp.dot(h, w2d_ref[...], preferred_element_type=f32) + b2d_ref[...]
        h = jnp.maximum(h, 0.0)
        state = state + jnp.dot(h, wd_ref[...], preferred_element_type=f32) + bd_ref[...]
    state_o[0] = state                                     # (F, 157) lane-dense store

    # ---- rot6d (planar layout) -> rotation matrices (Gram-Schmidt) ----------------------------
    J = NUM_JOINTS
    pose = state[:, :POSE_DIM]
    shp = state[:, POSE_DIM:POSE_DIM + 10]
    a1x, a2x = pose[:, 0 * J:1 * J], pose[:, 1 * J:2 * J]
    a1y, a2y = pose[:, 2 * J:3 * J], pose[:, 3 * J:4 * J]
    a1z, a2z = pose[:, 4 * J:5 * J], pose[:, 5 * J:6 * J]
    n1 = jnp.sqrt(a1x * a1x + a1y * a1y + a1z * a1z) + 1e-8
    b1x, b1y, b1z = a1x / n1, a1y / n1, a1z / n1
    dd = b1x * a2x + b1y * a2y + b1z * a2z
    c2x, c2y, c2z = a2x - dd * b1x, a2y - dd * b1y, a2z - dd * b1z
    n2 = jnp.sqrt(c2x * c2x + c2y * c2y + c2z * c2z) + 1e-8
    b2x, b2y, b2z = c2x / n2, c2y / n2, c2z / n2
    b3x = b1y * b2z - b1z * b2y
    b3y = b1z * b2x - b1x * b2z
    b3z = b1x * b2y - b1y * b2x
    rentries = (b1x, b2x, b3x, b1y, b2y, b3y, b1z, b2z, b3z)     # entry e = 3*row + col
    ident = (1.0, 0.0, 0.0, 0.0, 1.0, 0.0, 0.0, 0.0, 1.0)
    rot_o[0] = jnp.concatenate(rentries, axis=-1)                # (F, 216) lane-dense store

    # ---- synthetic SMPL-like blend: single (F,226)@(226,1296) matmul, coords on lanes ----------
    rdelta = jnp.concatenate([rentries[e] - ident[e] for e in range(9)], axis=-1)   # (F, 216)
    op = jnp.concatenate([shp, rdelta], axis=-1)                                    # (F, 226)
    vflat = vt_ref[...] + jnp.dot(op, blend_ref[...], preferred_element_type=f32)   # (F, 1296)
    verts_o[0] = vflat
    kp_o[0] = jnp.dot(vflat, jreg_ref[...], preferred_element_type=f32)             # (F, 72)


# ----------------------------- wrapper ---------------------------------------------------------

def _full_spec(a):
    nd = a.ndim
    return pl.BlockSpec(a.shape, lambda g, _nd=nd: (0,) * _nd)


def _pick_frames_per_step(n):
    if n >= 2 * F_TARGET:
        return F_TARGET
    if n <= 1:
        return 1
    return (n + 1) // 2            # keep grid length >= 2 for the two v7x TensorCores


def maed_forward(x, params):
    """x: (batch, seqlen, 3, H, W) NCHW frames (the reference forward forces seqlen = 1)."""
    batch_size, seqlen = x.shape[:2]
    seqlen = 1  # matches MAED.forward in the reference
    x = x.reshape(-1, x.shape[-3], x.shape[-2], x.shape[-1])
    N, C, H, W = x.shape
    gh, gw = H // PATCH, W // PATCH

    # patchify; row 0 is the cls slot, rows 17..23 are sublane padding -> all-zero pixels; bf16
    patches = x.reshape(N, C, gh, PATCH, gw, PATCH)
    patches = patches.transpose(0, 2, 4, 1, 3, 5).reshape(N, gh * gw, PDIM)
    patches = jnp.pad(patches, ((0, 0), (1, S_PAD - 1 - gh * gw), (0, 0)))

    F = _pick_frames_per_step(N)
    G = -(-N // F)
    n_pad = G * F
    patches = jnp.pad(patches, ((0, n_pad - N), (0, 0), (0, 0)))
    patches = patches.reshape(G, F, S_PAD, PDIM).astype(jnp.bfloat16)

    enc, dec, smpl = params["enc"], params["dec"], params["smpl"]
    consts = (enc["add"], enc["mask"], enc["patch_w"],
              enc["ln1"], enc["wqkv"], enc["bqkv"], enc["wproj"], enc["bproj"],
              enc["ln2"], enc["w1"], enc["b1"], enc["w2"], enc["b2"], enc["lnf"],
              dec["wf"], dec["wpsc"], dec["b1"], dec["w2"], dec["b2"],
              dec["wd"], dec["bd"], dec["init_state"],
              smpl["v_template"], smpl["blend_w"], smpl["J_reg_big"])

    out_shapes = (
        jax.ShapeDtypeStruct((G, F, STATE_DIM), jnp.float32),
        jax.ShapeDtypeStruct((G, F, ROT_DIM), jnp.float32),
        jax.ShapeDtypeStruct((G, F, V3), jnp.float32),
        jax.ShapeDtypeStruct((G, F, KP3), jnp.float32),
    )

    def out_spec(d):
        return pl.BlockSpec((1, F, d), lambda g: (g, 0, 0))

    state, rotflat, vflat, kpflat = pl.pallas_call(
        _maed_kernel,
        out_shape=out_shapes,
        grid=(G,),
        in_specs=[pl.BlockSpec((1, F, S_PAD, PDIM), lambda g: (g, 0, 0, 0))]
                 + [_full_spec(a) for a in consts],
        out_specs=(out_spec(STATE_DIM), out_spec(ROT_DIM), out_spec(V3), out_spec(KP3)),
        compiler_params=pltpu.CompilerParams(dimension_semantics=("parallel",)),
    )(patches, *consts)

    state = state.reshape(n_pad, STATE_DIM)[:N]
    rotflat = rotflat.reshape(n_pad, ROT_DIM)[:N]
    vflat = vflat.reshape(n_pad, V3)[:N]
    kpflat = kpflat.reshape(n_pad, KP3)[:N]

    pose_p = state[:, :POSE_DIM]
    shp = state[:, POSE_DIM:POSE_DIM + 10]
    cam = state[:, POSE_DIM + 10:]
    # planar rot6d -> per-joint [a1x, a2x, a1y, a2y, a1z, a2z] layout for theta
    pose = pose_p.reshape(N, 6, NUM_JOINTS).transpose(0, 2, 1).reshape(N, POSE_DIM)
    theta = jnp.concatenate([cam, pose, shp], axis=-1)
    rotmat = rotflat.reshape(N, 9, NUM_JOINTS).transpose(0, 2, 1).reshape(N, NUM_JOINTS, 3, 3)
    verts = vflat.reshape(N, 3, NUM_VERTS).transpose(0, 2, 1)        # (N, V, 3)
    kp_3d = kpflat.reshape(N, 3, NUM_KP).transpose(0, 2, 1)          # (N, KP, 3)
    kp_2d = cam[:, 0:1, None] * (kp_3d[..., :2] + cam[:, None, 1:3])

    out = {"theta": theta, "verts": verts, "kp_2d": kp_2d, "kp_3d": kp_3d, "rotmat": rotmat}
    out["theta"] = out["theta"].reshape(batch_size, seqlen, -1)
    out["verts"] = out["verts"].reshape(batch_size, seqlen, -1, 3)
    out["kp_2d"] = out["kp_2d"].reshape(batch_size, seqlen, -1, 2)
    out["kp_3d"] = out["kp_3d"].reshape(batch_size, seqlen, -1, 3)
    out["rotmat"] = out["rotmat"].reshape(batch_size, seqlen, -1, 3, 3)
    return out


# ----------------------------- params ----------------------------------------------------------

def init_params(key):
    ks = iter(jax.random.split(key, 32))
    s = 0.02
    f32 = jnp.float32
    bf16 = jnp.bfloat16

    def nrm(shape):
        return s * jax.random.normal(next(ks), shape, f32)

    # ---- encoder (ViT-style STE); fused-kernel layouts, bf16 MXU operands ----
    cls = nrm((EMB,))
    pos = nrm((N_TOK, EMB))
    patch_b = jnp.zeros((EMB,), f32)
    add = jnp.zeros((S_PAD, EMB), f32)
    add = add.at[0].set(cls + pos[0])                       # cls token + pos
    add = add.at[1:N_TOK].set(patch_b[None, :] + pos[1:])   # patch bias + pos
    mask = jnp.where(jnp.arange(S_PAD) < N_TOK, 0.0, -1e30).astype(f32).reshape(1, S_PAD)

    ln_pack = jnp.stack([jnp.ones((BLOCKS, EMB), f32), jnp.zeros((BLOCKS, EMB), f32)], axis=1)
    enc = {
        "add": add,
        "mask": mask,
        "patch_w": nrm((PDIM, EMB)).astype(bf16),
        "ln1": ln_pack,
        "wqkv": nrm((BLOCKS, EMB, 3 * EMB)).astype(bf16),   # fused [Wq|Wk|Wv], heads in DH slices
        "bqkv": jnp.zeros((BLOCKS, 1, 3 * EMB), f32),
        "wproj": nrm((BLOCKS, EMB, EMB)).astype(bf16),      # fused output projection
        "bproj": jnp.zeros((BLOCKS, 1, EMB), f32),
        "ln2": ln_pack,
        "w1": nrm((BLOCKS, EMB, MLP)).astype(bf16),
        "b1": jnp.zeros((BLOCKS, 1, MLP), f32),
        "w2": nrm((BLOCKS, MLP, EMB)).astype(bf16),
        "b2": jnp.zeros((BLOCKS, 1, EMB), f32),
        "lnf": jnp.stack([jnp.ones((EMB,), f32), jnp.zeros((EMB,), f32)], axis=0),
    }

    # ---- decoder (KTD-style iterative regressor) on packed state = [pose(planar)|shape|cam].
    #      planar rot6d: [a1x(24)|a2x(24)|a1y(24)|a2y(24)|a1z(24)|a2z(24)];
    #      identity rot6d -> a1=(1,0,0), a2=(0,1,0): ones at a1x and a2y.
    J = NUM_JOINTS
    ones_j, zeros_j = jnp.ones((J,), f32), jnp.zeros((J,), f32)
    init_pose = jnp.concatenate([ones_j, zeros_j, zeros_j, ones_j, zeros_j, zeros_j])
    init_state = jnp.concatenate([init_pose, jnp.zeros((10,), f32),
                                  jnp.array([0.9, 0.0, 0.0], f32)])[None, :]
    dec = {
        "wf": nrm((EMB, HIDDEN)),
        "wpsc": nrm((STATE_DIM, HIDDEN)),                   # fused pose|shape|cam -> hidden
        "b1": jnp.zeros((1, HIDDEN), f32),
        "w2": nrm((HIDDEN, HIDDEN)), "b2": jnp.zeros((1, HIDDEN), f32),
        "wd": nrm((HIDDEN, STATE_DIM)),                     # fused delta for pose|shape|cam
        "bd": jnp.zeros((1, STATE_DIM), f32),
        "init_state": init_state,
    }

    # ---- synthetic SMPL-like linear blend model, coord-major lanes [x(432)|y(432)|z(432)] ----
    jregT = jax.nn.softmax(
        jax.random.normal(next(ks), (NUM_KP, NUM_VERTS), f32), axis=-1).T     # (V, KP)
    smpl = {
        "v_template": 0.3 * jax.random.normal(next(ks), (1, V3), f32),
        "blend_w": nrm((BLEND_IN, V3)),                     # [shapedirs ++ posedirs] fused
        "J_reg_big": jax.scipy.linalg.block_diag(jregT, jregT, jregT),        # (3V, 3KP)
    }
    return {"enc": enc, "dec": dec, "smpl": smpl}


# ----------------------------- main -------------------------------------------------------------

if __name__ == "__main__":
    key = jax.random.PRNGKey(0)
    pkey, xkey = jax.random.split(key)
    params = init_params(pkey)
    x = jax.random.normal(xkey, (2, 1, C_IN, IMG, IMG), jnp.float32)

    fwd = jax.jit(maed_forward)
    out = fwd(x, params)
    out = jax.tree_util.tree_map(jax.block_until_ready, out)

    assert out["theta"].shape == (2, 1, 3 + POSE_DIM + 10)
    assert out["verts"].shape == (2, 1, NUM_VERTS, 3)
    assert out["kp_2d"].shape == (2, 1, NUM_KP, 2)
    assert out["kp_3d"].shape == (2, 1, NUM_KP, 3)
    assert out["rotmat"].shape == (2, 1, NUM_JOINTS, 3, 3)
    assert all(bool(jnp.all(jnp.isfinite(v))) for v in out.values())
    print("KERNEL_OK")
</pallas_src>

<mosaic_0001>
module attributes {stable_mosaic.version = 11 : i64} {
  func.func @_maed_kernel(%arg0: i32, %arg1: memref<1x1x24x192xbf16, #tpu.memory_space<vmem>>, %arg2: memref<24x64xf32, #tpu.memory_space<vmem>>, %arg3: memref<1x24xf32, #tpu.memory_space<vmem>>, %arg4: memref<192x64xbf16, #tpu.memory_space<vmem>>, %arg5: memref<2x2x64xf32, #tpu.memory_space<vmem>>, %arg6: memref<2x64x192xbf16, #tpu.memory_space<vmem>>, %arg7: memref<2x1x192xf32, #tpu.memory_space<vmem>>, %arg8: memref<2x64x64xbf16, #tpu.memory_space<vmem>>, %arg9: memref<2x1x64xf32, #tpu.memory_space<vmem>>, %arg10: memref<2x2x64xf32, #tpu.memory_space<vmem>>, %arg11: memref<2x64x256xbf16, #tpu.memory_space<vmem>>, %arg12: memref<2x1x256xf32, #tpu.memory_space<vmem>>, %arg13: memref<2x256x64xbf16, #tpu.memory_space<vmem>>, %arg14: memref<2x1x64xf32, #tpu.memory_space<vmem>>, %arg15: memref<2x64xf32, #tpu.memory_space<vmem>>, %arg16: memref<64x32xf32, #tpu.memory_space<vmem>>, %arg17: memref<157x32xf32, #tpu.memory_space<vmem>>, %arg18: memref<1x32xf32, #tpu.memory_space<vmem>>, %arg19: memref<32x32xf32, #tpu.memory_space<vmem>>, %arg20: memref<1x32xf32, #tpu.memory_space<vmem>>, %arg21: memref<32x157xf32, #tpu.memory_space<vmem>>, %arg22: memref<1x157xf32, #tpu.memory_space<vmem>>, %arg23: memref<1x157xf32, #tpu.memory_space<vmem>>, %arg24: memref<1x1296xf32, #tpu.memory_space<vmem>>, %arg25: memref<226x1296xf32, #tpu.memory_space<vmem>>, %arg26: memref<1296x72xf32, #tpu.memory_space<vmem>>, %arg27: memref<1x1x157xf32, #tpu.memory_space<vmem>>, %arg28: memref<1x1x216xf32, #tpu.memory_space<vmem>>, %arg29: memref<1x1x1296xf32, #tpu.memory_space<vmem>>, %arg30: memref<1x1x72xf32, #tpu.memory_space<vmem>>) attributes {dimension_semantics = [#tpu.dimension_semantics<parallel>], iteration_bounds = array<i64: 2>, scalar_prefetch = 0 : i64, scratch_operands = 0 : i64, tpu.core_type = #tpu.core_type<tc>, window_params = [{transform_indices = @transform_0, window_bounds = array<i64: 1, 1, 24, 192>}, {pipeline_mode = #tpu.pipeline_mode<synchronous>, transform_indices = @transform_1, window_bounds = array<i64: 24, 64>}, {pipeline_mode = #tpu.pipeline_mode<synchronous>, transform_indices = @transform_2, window_bounds = array<i64: 1, 24>}, {pipeline_mode = #tpu.pipeline_mode<synchronous>, transform_indices = @transform_3, window_bounds = array<i64: 192, 64>}, {pipeline_mode = #tpu.pipeline_mode<synchronous>, transform_indices = @transform_4, window_bounds = array<i64: 2, 2, 64>}, {pipeline_mode = #tpu.pipeline_mode<synchronous>, transform_indices = @transform_5, window_bounds = array<i64: 2, 64, 192>}, {pipeline_mode = #tpu.pipeline_mode<synchronous>, transform_indices = @transform_6, window_bounds = array<i64: 2, 1, 192>}, {pipeline_mode = #tpu.pipeline_mode<synchronous>, transform_indices = @transform_7, window_bounds = array<i64: 2, 64, 64>}, {pipeline_mode = #tpu.pipeline_mode<synchronous>, transform_indices = @transform_8, window_bounds = array<i64: 2, 1, 64>}, {pipeline_mode = #tpu.pipeline_mode<synchronous>, transform_indices = @transform_9, window_bounds = array<i64: 2, 2, 64>}, {pipeline_mode = #tpu.pipeline_mode<synchronous>, transform_indices = @transform_10, window_bounds = array<i64: 2, 64, 256>}, {pipeline_mode = #tpu.pipeline_mode<synchronous>, transform_indices = @transform_11, window_bounds = array<i64: 2, 1, 256>}, {pipeline_mode = #tpu.pipeline_mode<synchronous>, transform_indices = @transform_12, window_bounds = array<i64: 2, 256, 64>}, {pipeline_mode = #tpu.pipeline_mode<synchronous>, transform_indices = @transform_13, window_bounds = array<i64: 2, 1, 64>}, {pipeline_mode = #tpu.pipeline_mode<synchronous>, transform_indices = @transform_14, window_bounds = array<i64: 2, 64>}, {pipeline_mode = #tpu.pipeline_mode<synchronous>, transform_indices = @transform_15, window_bounds = array<i64: 64, 32>}, {pipeline_mode = #tpu.pipeline_mode<synchronous>, transform_indices = @transform_16, window_bounds = array<i64: 157, 32>}, {pipeline_mode = #tpu.pipeline_mode<synchronous>, transform_indices = @transform_17, window_bounds = array<i64: 1, 32>}, {pipeline_mode = #tpu.pipeline_mode<synchronous>, transform_indices = @transform_18, window_bounds = array<i64: 32, 32>}, {pipeline_mode = #tpu.pipeline_mode<synchronous>, transform_indices = @transform_19, window_bounds = array<i64: 1, 32>}, {pipeline_mode = #tpu.pipeline_mode<synchronous>, transform_indices = @transform_20, window_bounds = array<i64: 32, 157>}, {pipeline_mode = #tpu.pipeline_mode<synchronous>, transform_indices = @transform_21, window_bounds = array<i64: 1, 157>}, {pipeline_mode = #tpu.pipeline_mode<synchronous>, transform_indices = @transform_22, window_bounds = array<i64: 1, 157>}, {pipeline_mode = #tpu.pipeline_mode<synchronous>, transform_indices = @transform_23, window_bounds = array<i64: 1, 1296>}, {pipeline_mode = #tpu.pipeline_mode<synchronous>, transform_indices = @transform_24, window_bounds = array<i64: 226, 1296>}, {pipeline_mode = #tpu.pipeline_mode<synchronous>, transform_indices = @transform_25, window_bounds = array<i64: 1296, 72>}, {transform_indices = @transform_26, window_bounds = array<i64: 1, 1, 157>}, {transform_indices = @transform_27, window_bounds = array<i64: 1, 1, 216>}, {transform_indices = @transform_28, window_bounds = array<i64: 1, 1, 1296>}, {transform_indices = @transform_29, window_bounds = array<i64: 1, 1, 72>}]} {
    %c0 = arith.constant 0 : index
    %c0_0 = arith.constant 0 : index
    %0 = vector.load %arg3[%c0, %c0_0] : memref<1x24xf32, #tpu.memory_space<vmem>>, vector<1x24xf32>
    %c0_1 = arith.constant 0 : index
    %c0_2 = arith.constant 0 : index
    %c0_3 = arith.constant 0 : index
    %c0_4 = arith.constant 0 : index
    %1 = vector.load %arg1[%c0_1, %c0_2, %c0_3, %c0_4] : memref<1x1x24x192xbf16, #tpu.memory_space<vmem>>, vector<1x1x24x192xbf16>
    %2 = vector.shape_cast %1 : vector<1x1x24x192xbf16> to vector<1x24x192xbf16>
    %3 = vector.shape_cast %2 : vector<1x24x192xbf16> to vector<24x192xbf16>
    %c0_5 = arith.constant 0 : index
    %c0_6 = arith.constant 0 : index
    %4 = vector.load %arg4[%c0_5, %c0_6] : memref<192x64xbf16, #tpu.memory_space<vmem>>, vector<192x64xbf16>
    %cst = arith.constant dense<0.000000e+00> : vector<24x64xf32>
    %5 = tpu.matmul %3, %4, %cst {dimension_numbers = #tpu.dot_dimension_numbers<[1], [0], [0], [1], [0, 0, 1, 1], [], []>} : vector<24x192xbf16>, vector<192x64xbf16>, vector<24x64xf32> -> vector<24x64xf32>
    %6 = vector.shape_cast %5 : vector<24x64xf32> to vector<1x24x64xf32>
    %c0_7 = arith.constant 0 : index
    %c0_8 = arith.constant 0 : index
    %7 = vector.load %arg2[%c0_7, %c0_8] : memref<24x64xf32, #tpu.memory_space<vmem>>, vector<24x64xf32>
    %8 = vector.shape_cast %7 : vector<24x64xf32> to vector<1x24x64xf32>
    %9 = arith.addf %6, %8 : vector<1x24x64xf32>
    %c0_9 = arith.constant 0 : index
    %c0_10 = arith.constant 0 : index
    %c0_11 = arith.constant 0 : index
    %10 = vector.load %arg5[%c0_9, %c0_10, %c0_11] : memref<2x2x64xf32, #tpu.memory_space<vmem>>, vector<1x2x64xf32>
    %11 = vector.shape_cast %10 : vector<1x2x64xf32> to vector<2x64xf32>
    %12 = vector.extract_strided_slice %11 {offsets = [0, 0], sizes = [1, 64], strides = [1, 1]} : vector<2x64xf32> to vector<1x64xf32>
    %13 = vector.extract_strided_slice %11 {offsets = [1, 0], sizes = [1, 64], strides = [1, 1]} : vector<2x64xf32> to vector<1x64xf32>
    %cst_12 = arith.constant dense<0.000000e+00> : vector<1x24xf32>
    %14 = vector.multi_reduction <add>, %9, %cst_12 [2] : vector<1x24x64xf32> to vector<1x24xf32>
    %15 = vector.shape_cast %14 : vector<1x24xf32> to vector<1x24x1xf32>
    %cst_13 = arith.constant 6.400000e+01 : f32
    %16 = vector.broadcast %cst_13 : f32 to vector<1x24x1xf32>
    %17 = arith.divf %15, %16 : vector<1x24x1xf32>
    %18 = vector.broadcast %17 : vector<1x24x1xf32> to vector<1x24x64xf32>
    %19 = arith.subf %9, %18 : vector<1x24x64xf32>
    %20 = arith.mulf %19, %19 : vector<1x24x64xf32>
    %cst_14 = arith.constant dense<0.000000e+00> : vector<1x24xf32>
    %21 = vector.multi_reduction <add>, %20, %cst_14 [2] : vector<1x24x64xf32> to vector<1x24xf32>
    %22 = vector.shape_cast %21 : vector<1x24xf32> to vector<1x24x1xf32>
    %cst_15 = arith.constant 6.400000e+01 : f32
    %23 = vector.broadcast %cst_15 : f32 to vector<1x24x1xf32>
    %24 = arith.divf %22, %23 : vector<1x24x1xf32>
    %25 = vector.broadcast %17 : vector<1x24x1xf32> to vector<1x24x64xf32>
    %26 = arith.subf %9, %25 : vector<1x24x64xf32>
    %cst_16 = arith.constant 9.99999997E-7 : f32
    %27 = vector.broadcast %cst_16 : f32 to vector<1x24x1xf32>
    %28 = arith.addf %24, %27 : vector<1x24x1xf32>
    %29 = math.rsqrt %28 : vector<1x24x1xf32>
    %30 = vector.broadcast %29 : vector<1x24x1xf32> to vector<1x24x64xf32>
    %31 = arith.mulf %26, %30 : vector<1x24x64xf32>
    %32 = vector.shape_cast %12 : vector<1x64xf32> to vector<1x1x64xf32>
    %33 = vector.broadcast %32 : vector<1x1x64xf32> to vector<1x24x64xf32>
    %34 = arith.mulf %31, %33 : vector<1x24x64xf32>
    %35 = vector.shape_cast %13 : vector<1x64xf32> to vector<1x1x64xf32>
    %36 = vector.broadcast %35 : vector<1x1x64xf32> to vector<1x24x64xf32>
    %37 = arith.addf %34, %36 : vector<1x24x64xf32>
    %38 = vector.shape_cast %37 : vector<1x24x64xf32> to vector<24x64xf32>
    %39 = arith.truncf %38 : vector<24x64xf32> to vector<24x64xbf16>
    %c0_17 = arith.constant 0 : index
    %c0_18 = arith.constant 0 : index
    %c0_19 = arith.constant 0 : index
    %40 = vector.load %arg6[%c0_17, %c0_18, %c0_19] : memref<2x64x192xbf16, #tpu.memory_space<vmem>>, vector<1x64x192xbf16>
    %41 = vector.shape_cast %40 : vector<1x64x192xbf16> to vector<64x192xbf16>
    %cst_20 = arith.constant dense<0.000000e+00> : vector<24x192xf32>
    %42 = tpu.matmul %39, %41, %cst_20 {dimension_numbers = #tpu.dot_dimension_numbers<[1], [0], [0], [1], [0, 0, 1, 1], [], []>} : vector<24x64xbf16>, vector<64x192xbf16>, vector<24x192xf32> -> vector<24x192xf32>
    %c0_21 = arith.constant 0 : index
    %c0_22 = arith.constant 0 : index
    %c0_23 = arith.constant 0 : index
    %43 = vector.load %arg7[%c0_21, %c0_22, %c0_23] : memref<2x1x192xf32, #tpu.memory_space<vmem>>, vector<1x1x192xf32>
    %44 = vector.shape_cast %43 : vector<1x1x192xf32> to vector<1x192xf32>
    %45 = vector.broadcast %44 : vector<1x192xf32> to vector<24x192xf32>
    %46 = arith.addf %42, %45 : vector<24x192xf32>
    %47 = vector.shape_cast %46 : vector<24x192xf32> to vector<1x24x192xf32>
    %48 = vector.extract_strided_slice %47 {offsets = [0, 0, 0], sizes = [1, 24, 16], strides = [1, 1, 1]} : vector<1x24x192xf32> to vector<1x24x16xf32>
    %49 = vector.extract_strided_slice %47 {offsets = [0, 0, 64], sizes = [1, 24, 16], strides = [1, 1, 1]} : vector<1x24x192xf32> to vector<1x24x16xf32>
    %50 = vector.extract_strided_slice %47 {offsets = [0, 0, 128], sizes = [1, 24, 16], strides = [1, 1, 1]} : vector<1x24x192xf32> to vector<1x24x16xf32>
    "tpu.trace_start"() <{level = 10 : i32, message = "fsd,ftd->fst"}> : () -> ()
    %cst_24 = arith.constant dense<0.000000e+00> : vector<1x24x24xf32>
    %51 = tpu.matmul %48, %49, %cst_24 {dimension_numbers = #tpu.dot_dimension_numbers<[2], [2], [1], [1], [0, 0, 0, 1, 1, 1], [0], [0]>} : vector<1x24x16xf32>, vector<1x24x16xf32>, vector<1x24x24xf32> -> vector<1x24x24xf32>
    "tpu.trace_stop"() : () -> ()
    %cst_25 = arith.constant 2.500000e-01 : f32
    %52 = vector.broadcast %cst_25 : f32 to vector<1x24x24xf32>
    %53 = arith.mulf %51, %52 : vector<1x24x24xf32>
    %54 = vector.shape_cast %0 : vector<1x24xf32> to vector<1x1x24xf32>
    %55 = vector.broadcast %54 : vector<1x1x24xf32> to vector<1x24x24xf32>
    %56 = arith.addf %53, %55 : vector<1x24x24xf32>
    %cst_26 = arith.constant dense<0xFF800000> : vector<1x24xf32>
    %57 = vector.multi_reduction <maximumf>, %56, %cst_26 [2] : vector<1x24x24xf32> to vector<1x24xf32>
    %58 = vector.shape_cast %57 : vector<1x24xf32> to vector<1x24x1xf32>
    %59 = vector.broadcast %58 : vector<1x24x1xf32> to vector<1x24x24xf32>
    %60 = arith.subf %56, %59 : vector<1x24x24xf32>
    %61 = math.exp %60 : vector<1x24x24xf32>
    %cst_27 = arith.constant dense<0.000000e+00> : vector<1x24xf32>
    %62 = vector.multi_reduction <add>, %61, %cst_27 [2] : vector<1x24x24xf32> to vector<1x24xf32>
    %63 = vector.shape_cast %62 : vector<1x24xf32> to vector<1x24x1xf32>
    %64 = tpu.reciprocal %63 {approx = true} : vector<1x24x1xf32> -> vector<1x24x1xf32>
    %65 = vector.broadcast %64 : vector<1x24x1xf32> to vector<1x24x24xf32>
    %66 = arith.mulf %61, %65 : vector<1x24x24xf32>
    "tpu.trace_start"() <{level = 10 : i32, message = "fst,ftd->fsd"}> : () -> ()
    %cst_28 = arith.constant dense<0.000000e+00> : vector<1x24x16xf32>
    %67 = tpu.matmul %66, %50, %cst_28 {dimension_numbers = #tpu.dot_dimension_numbers<[2], [1], [1], [2], [0, 0, 0, 1, 1, 2], [0], [0]>} : vector<1x24x24xf32>, vector<1x24x16xf32>, vector<1x24x16xf32> -> vector<1x24x16xf32>
    "tpu.trace_stop"() : () -> ()
    %68 = vector.extract_strided_slice %47 {offsets = [0, 0, 16], sizes = [1, 24, 16], strides = [1, 1, 1]} : vector<1x24x192xf32> to vector<1x24x16xf32>
    %69 = vector.extract_strided_slice %47 {offsets = [0, 0, 80], sizes = [1, 24, 16], strides = [1, 1, 1]} : vector<1x24x192xf32> to vector<1x24x16xf32>
    %70 = vector.extract_strided_slice %47 {offsets = [0, 0, 144], sizes = [1, 24, 16], strides = [1, 1, 1]} : vector<1x24x192xf32> to vector<1x24x16xf32>
    "tpu.trace_start"() <{level = 10 : i32, message = "fsd,ftd->fst"}> : () -> ()
    %cst_29 = arith.constant dense<0.000000e+00> : vector<1x24x24xf32>
    %71 = tpu.matmul %68, %69, %cst_29 {dimension_numbers = #tpu.dot_dimension_numbers<[2], [2], [1], [1], [0, 0, 0, 1, 1, 1], [0], [0]>} : vector<1x24x16xf32>, vector<1x24x16xf32>, vector<1x24x24xf32> -> vector<1x24x24xf32>
    "tpu.trace_stop"() : () -> ()
    %cst_30 = arith.constant 2.500000e-01 : f32
    %72 = vector.broadcast %cst_30 : f32 to vector<1x24x24xf32>
    %73 = arith.mulf %71, %72 : vector<1x24x24xf32>
    %74 = vector.shape_cast %0 : vector<1x24xf32> to vector<1x1x24xf32>
    %75 = vector.broadcast %74 : vector<1x1x24xf32> to vector<1x24x24xf32>
    %76 = arith.addf %73, %75 : vector<1x24x24xf32>
    %cst_31 = arith.constant dense<0xFF800000> : vector<1x24xf32>
    %77 = vector.multi_reduction <maximumf>, %76, %cst_31 [2] : vector<1x24x24xf32> to vector<1x24xf32>
    %78 = vector.shape_cast %77 : vector<1x24xf32> to vector<1x24x1xf32>
    %79 = vector.broadcast %78 : vector<1x24x1xf32> to vector<1x24x24xf32>
    %80 = arith.subf %76, %79 : vector<1x24x24xf32>
    %81 = math.exp %80 : vector<1x24x24xf32>
    %cst_32 = arith.constant dense<0.000000e+00> : vector<1x24xf32>
    %82 = vector.multi_reduction <add>, %81, %cst_32 [2] : vector<1x24x24xf32> to vector<1x24xf32>
    %83 = vector.shape_cast %82 : vector<1x24xf32> to vector<1x24x1xf32>
    %84 = tpu.reciprocal %83 {approx = true} : vector<1x24x1xf32> -> vector<1x24x1xf32>
    %85 = vector.broadcast %84 : vector<1x24x1xf32> to vector<1x24x24xf32>
    %86 = arith.mulf %81, %85 : vector<1x24x24xf32>
    "tpu.trace_start"() <{level = 10 : i32, message = "fst,ftd->fsd"}> : () -> ()
    %cst_33 = arith.constant dense<0.000000e+00> : vector<1x24x16xf32>
    %87 = tpu.matmul %86, %70, %cst_33 {dimension_numbers = #tpu.dot_dimension_numbers<[2], [1], [1], [2], [0, 0, 0, 1, 1, 2], [0], [0]>} : vector<1x24x24xf32>, vector<1x24x16xf32>, vector<1x24x16xf32> -> vector<1x24x16xf32>
    "tpu.trace_stop"() : () -> ()
    %88 = vector.extract_strided_slice %47 {offsets = [0, 0, 32], sizes = [1, 24, 16], strides = [1, 1, 1]} : vector<1x24x192xf32> to vector<1x24x16xf32>
    %89 = vector.extract_strided_slice %47 {offsets = [0, 0, 96], sizes = [1, 24, 16], strides = [1, 1, 1]} : vector<1x24x192xf32> to vector<1x24x16xf32>
    %90 = vector.extract_strided_slice %47 {offsets = [0, 0, 160], sizes = [1, 24, 16], strides = [1, 1, 1]} : vector<1x24x192xf32> to vector<1x24x16xf32>
    "tpu.trace_start"() <{level = 10 : i32, message = "fsd,ftd->fst"}> : () -> ()
    %cst_34 = arith.constant dense<0.000000e+00> : vector<1x24x24xf32>
    %91 = tpu.matmul %88, %89, %cst_34 {dimension_numbers = #tpu.dot_dimension_numbers<[2], [2], [1], [1], [0, 0, 0, 1, 1, 1], [0], [0]>} : vector<1x24x16xf32>, vector<1x24x16xf32>, vector<1x24x24xf32> -> vector<1x24x24xf32>
    "tpu.trace_stop"() : () -> ()
    %cst_35 = arith.constant 2.500000e-01 : f32
    %92 = vector.broadcast %cst_35 : f32 to vector<1x24x24xf32>
    %93 = arith.mulf %91, %92 : vector<1x24x24xf32>
    %94 = vector.shape_cast %0 : vector<1x24xf32> to vector<1x1x24xf32>
    %95 = vector.broadcast %94 : vector<1x1x24xf32> to vector<1x24x24xf32>
    %96 = arith.addf %93, %95 : vector<1x24x24xf32>
    %cst_36 = arith.constant dense<0xFF800000> : vector<1x24xf32>
    %97 = vector.multi_reduction <maximumf>, %96, %cst_36 [2] : vector<1x24x24xf32> to vector<1x24xf32>
    %98 = vector.shape_cast %97 : vector<1x24xf32> to vector<1x24x1xf32>
    %99 = vector.broadcast %98 : vector<1x24x1xf32> to vector<1x24x24xf32>
    %100 = arith.subf %96, %99 : vector<1x24x24xf32>
    %101 = math.exp %100 : vector<1x24x24xf32>
    %cst_37 = arith.constant dense<0.000000e+00> : vector<1x24xf32>
    %102 = vector.multi_reduction <add>, %101, %cst_37 [2] : vector<1x24x24xf32> to vector<1x24xf32>
    %103 = vector.shape_cast %102 : vector<1x24xf32> to vector<1x24x1xf32>
    %104 = tpu.reciprocal %103 {approx = true} : vector<1x24x1xf32> -> vector<1x24x1xf32>
    %105 = vector.broadcast %104 : vector<1x24x1xf32> to vector<1x24x24xf32>
    %106 = arith.mulf %101, %105 : vector<1x24x24xf32>
    "tpu.trace_start"() <{level = 10 : i32, message = "fst,ftd->fsd"}> : () -> ()
    %cst_38 = arith.constant dense<0.000000e+00> : vector<1x24x16xf32>
    %107 = tpu.matmul %106, %90, %cst_38 {dimension_numbers = #tpu.dot_dimension_numbers<[2], [1], [1], [2], [0, 0, 0, 1, 1, 2], [0], [0]>} : vector<1x24x24xf32>, vector<1x24x16xf32>, vector<1x24x16xf32> -> vector<1x24x16xf32>
    "tpu.trace_stop"() : () -> ()
    %108 = vector.extract_strided_slice %47 {offsets = [0, 0, 48], sizes = [1, 24, 16], strides = [1, 1, 1]} : vector<1x24x192xf32> to vector<1x24x16xf32>
    %109 = vector.extract_strided_slice %47 {offsets = [0, 0, 112], sizes = [1, 24, 16], strides = [1, 1, 1]} : vector<1x24x192xf32> to vector<1x24x16xf32>
    %110 = vector.extract_strided_slice %47 {offsets = [0, 0, 176], sizes = [1, 24, 16], strides = [1, 1, 1]} : vector<1x24x192xf32> to vector<1x24x16xf32>
    "tpu.trace_start"() <{level = 10 : i32, message = "fsd,ftd->fst"}> : () -> ()
    %cst_39 = arith.constant dense<0.000000e+00> : vector<1x24x24xf32>
    %111 = tpu.matmul %108, %109, %cst_39 {dimension_numbers = #tpu.dot_dimension_numbers<[2], [2], [1], [1], [0, 0, 0, 1, 1, 1], [0], [0]>} : vector<1x24x16xf32>, vector<1x24x16xf32>, vector<1x24x24xf32> -> vector<1x24x24xf32>
    "tpu.trace_stop"() : () -> ()
    %cst_40 = arith.constant 2.500000e-01 : f32
    %112 = vector.broadcast %cst_40 : f32 to vector<1x24x24xf32>
    %113 = arith.mulf %111, %112 : vector<1x24x24xf32>
    %114 = vector.shape_cast %0 : vector<1x24xf32> to vector<1x1x24xf32>
    %115 = vector.broadcast %114 : vector<1x1x24xf32> to vector<1x24x24xf32>
    %116 = arith.addf %113, %115 : vector<1x24x24xf32>
    %cst_41 = arith.constant dense<0xFF800000> : vector<1x24xf32>
    %117 = vector.multi_reduction <maximumf>, %116, %cst_41 [2] : vector<1x24x24xf32> to vector<1x24xf32>
    %118 = vector.shape_cast %117 : vector<1x24xf32> to vector<1x24x1xf32>
    %119 = vector.broadcast %118 : vector<1x24x1xf32> to vector<1x24x24xf32>
    %120 = arith.subf %116, %119 : vector<1x24x24xf32>
    %121 = math.exp %120 : vector<1x24x24xf32>
    %cst_42 = arith.constant dense<0.000000e+00> : vector<1x24xf32>
    %122 = vector.multi_reduction <add>, %121, %cst_42 [2] : vector<1x24x24xf32> to vector<1x24xf32>
    %123 = vector.shape_cast %122 : vector<1x24xf32> to vector<1x24x1xf32>
    %124 = tpu.reciprocal %123 {approx = true} : vector<1x24x1xf32> -> vector<1x24x1xf32>
    %125 = vector.broadcast %124 : vector<1x24x1xf32> to vector<1x24x24xf32>
    %126 = arith.mulf %121, %125 : vector<1x24x24xf32>
    "tpu.trace_start"() <{level = 10 : i32, message = "fst,ftd->fsd"}> : () -> ()
    %cst_43 = arith.constant dense<0.000000e+00> : vector<1x24x16xf32>
    %127 = tpu.matmul %126, %110, %cst_43 {dimension_numbers = #tpu.dot_dimension_numbers<[2], [1], [1], [2], [0, 0, 0, 1, 1, 2], [0], [0]>} : vector<1x24x24xf32>, vector<1x24x16xf32>, vector<1x24x16xf32> -> vector<1x24x16xf32>
    "tpu.trace_stop"() : () -> ()
    %128 = tpu.concatenate %67, %87, %107, %127 in 2 : vector<1x24x16xf32>, vector<1x24x16xf32>, vector<1x24x16xf32>, vector<1x24x16xf32> -> vector<1x24x64xf32>
    %129 = vector.shape_cast %128 : vector<1x24x64xf32> to vector<24x64xf32>
    %130 = arith.truncf %129 : vector<24x64xf32> to vector<24x64xbf16>
    %c0_44 = arith.constant 0 : index
    %c0_45 = arith.constant 0 : index
    %c0_46 = arith.constant 0 : index
    %131 = vector.load %arg8[%c0_44, %c0_45, %c0_46] : memref<2x64x64xbf16, #tpu.memory_space<vmem>>, vector<1x64x64xbf16>
    %132 = vector.shape_cast %131 : vector<1x64x64xbf16> to vector<64x64xbf16>
    %cst_47 = arith.constant dense<0.000000e+00> : vector<24x64xf32>
    %133 = tpu.matmul %130, %132, %cst_47 {dimension_numbers = #tpu.dot_dimension_numbers<[1], [0], [0], [1], [0, 0, 1, 1], [], []>} : vector<24x64xbf16>, vector<64x64xbf16>, vector<24x64xf32> -> vector<24x64xf32>
    %c0_48 = arith.constant 0 : index
    %c0_49 = arith.constant 0 : index
    %c0_50 = arith.constant 0 : index
    %134 = vector.load %arg9[%c0_48, %c0_49, %c0_50] : memref<2x1x64xf32, #tpu.memory_space<vmem>>, vector<1x1x64xf32>
    %135 = vector.shape_cast %134 : vector<1x1x64xf32> to vector<1x64xf32>
    %136 = vector.broadcast %135 : vector<1x64xf32> to vector<24x64xf32>
    %137 = arith.addf %133, %136 : vector<24x64xf32>
    %138 = vector.shape_cast %137 : vector<24x64xf32> to vector<1x24x64xf32>
    %139 = arith.addf %9, %138 : vector<1x24x64xf32>
    %c0_51 = arith.constant 0 : index
    %c0_52 = arith.constant 0 : index
    %c0_53 = arith.constant 0 : index
    %140 = vector.load %arg10[%c0_51, %c0_52, %c0_53] : memref<2x2x64xf32, #tpu.memory_space<vmem>>, vector<1x2x64xf32>
    %141 = vector.shape_cast %140 : vector<1x2x64xf32> to vector<2x64xf32>
    %142 = vector.extract_strided_slice %141 {offsets = [0, 0], sizes = [1, 64], strides = [1, 1]} : vector<2x64xf32> to vector<1x64xf32>
    %143 = vector.extract_strided_slice %141 {offsets = [1, 0], sizes = [1, 64], strides = [1, 1]} : vector<2x64xf32> to vector<1x64xf32>
    %cst_54 = arith.constant dense<0.000000e+00> : vector<1x24xf32>
    %144 = vector.multi_reduction <add>, %139, %cst_54 [2] : vector<1x24x64xf32> to vector<1x24xf32>
    %145 = vector.shape_cast %144 : vector<1x24xf32> to vector<1x24x1xf32>
    %cst_55 = arith.constant 6.400000e+01 : f32
    %146 = vector.broadcast %cst_55 : f32 to vector<1x24x1xf32>
    %147 = arith.divf %145, %146 : vector<1x24x1xf32>
    %148 = vector.broadcast %147 : vector<1x24x1xf32> to vector<1x24x64xf32>
    %149 = arith.subf %139, %148 : vector<1x24x64xf32>
    %150 = arith.mulf %149, %149 : vector<1x24x64xf32>
    %cst_56 = arith.constant dense<0.000000e+00> : vector<1x24xf32>
    %151 = vector.multi_reduction <add>, %150, %cst_56 [2] : vector<1x24x64xf32> to vector<1x24xf32>
    %152 = vector.shape_cast %151 : vector<1x24xf32> to vector<1x24x1xf32>
    %cst_57 = arith.constant 6.400000e+01 : f32
    %153 = vector.broadcast %cst_57 : f32 to vector<1x24x1xf32>
    %154 = arith.divf %152, %153 : vector<1x24x1xf32>
    %155 = vector.broadcast %147 : vector<1x24x1xf32> to vector<1x24x64xf32>
    %156 = arith.subf %139, %155 : vector<1x24x64xf32>
    %cst_58 = arith.constant 9.99999997E-7 : f32
    %157 = vector.broadcast %cst_58 : f32 to vector<1x24x1xf32>
    %158 = arith.addf %154, %157 : vector<1x24x1xf32>
    %159 = math.rsqrt %158 : vector<1x24x1xf32>
    %160 = vector.broadcast %159 : vector<1x24x1xf32> to vector<1x24x64xf32>
    %161 = arith.mulf %156, %160 : vector<1x24x64xf32>
    %162 = vector.shape_cast %142 : vector<1x64xf32> to vector<1x1x64xf32>
    %163 = vector.broadcast %162 : vector<1x1x64xf32> to vector<1x24x64xf32>
    %164 = arith.mulf %161, %163 : vector<1x24x64xf32>
    %165 = vector.shape_cast %143 : vector<1x64xf32> to vector<1x1x64xf32>
    %166 = vector.broadcast %165 : vector<1x1x64xf32> to vector<1x24x64xf32>
    %167 = arith.addf %164, %166 : vector<1x24x64xf32>
    %168 = vector.shape_cast %167 : vector<1x24x64xf32> to vector<24x64xf32>
    %169 = arith.truncf %168 : vector<24x64xf32> to vector<24x64xbf16>
    %c0_59 = arith.constant 0 : index
    %c0_60 = arith.constant 0 : index
    %c0_61 = arith.constant 0 : index
    %170 = vector.load %arg11[%c0_59, %c0_60, %c0_61] : memref<2x64x256xbf16, #tpu.memory_space<vmem>>, vector<1x64x256xbf16>
    %171 = vector.shape_cast %170 : vector<1x64x256xbf16> to vector<64x256xbf16>
    %cst_62 = arith.constant dense<0.000000e+00> : vector<24x256xf32>
    %172 = tpu.matmul %169, %171, %cst_62 {dimension_numbers = #tpu.dot_dimension_numbers<[1], [0], [0], [1], [0, 0, 1, 1], [], []>} : vector<24x64xbf16>, vector<64x256xbf16>, vector<24x256xf32> -> vector<24x256xf32>
    %c0_63 = arith.constant 0 : index
    %c0_64 = arith.constant 0 : index
    %c0_65 = arith.constant 0 : index
    %173 = vector.load %arg12[%c0_63, %c0_64, %c0_65] : memref<2x1x256xf32, #tpu.memory_space<vmem>>, vector<1x1x256xf32>
    %174 = vector.shape_cast %173 : vector<1x1x256xf32> to vector<1x256xf32>
    %175 = vector.broadcast %174 : vector<1x256xf32> to vector<24x256xf32>
    %176 = arith.addf %172, %175 : vector<24x256xf32>
    %177 = arith.mulf %176, %176 : vector<24x256xf32>
    %178 = arith.mulf %176, %177 : vector<24x256xf32>
    %cst_66 = arith.constant 4.471500e-02 : f32
    %179 = vector.broadcast %cst_66 : f32 to vector<24x256xf32>
    %180 = arith.mulf %179, %178 : vector<24x256xf32>
    %181 = arith.addf %176, %180 : vector<24x256xf32>
    %cst_67 = arith.constant 0.797884583 : f32
    %182 = vector.broadcast %cst_67 : f32 to vector<24x256xf32>
    %183 = arith.mulf %182, %181 : vector<24x256xf32>
    %184 = math.tanh %183 : vector<24x256xf32>
    %cst_68 = arith.constant 1.000000e+00 : f32
    %185 = vector.broadcast %cst_68 : f32 to vector<24x256xf32>
    %186 = arith.addf %185, %184 : vector<24x256xf32>
    %cst_69 = arith.constant 5.000000e-01 : f32
    %187 = vector.broadcast %cst_69 : f32 to vector<24x256xf32>
    %188 = arith.mulf %187, %186 : vector<24x256xf32>
    %189 = arith.mulf %176, %188 : vector<24x256xf32>
    %190 = arith.truncf %189 : vector<24x256xf32> to vector<24x256xbf16>
    %c0_70 = arith.constant 0 : index
    %c0_71 = arith.constant 0 : index
    %c0_72 = arith.constant 0 : index
    %191 = vector.load %arg13[%c0_70, %c0_71, %c0_72] : memref<2x256x64xbf16, #tpu.memory_space<vmem>>, vector<1x256x64xbf16>
    %192 = vector.shape_cast %191 : vector<1x256x64xbf16> to vector<256x64xbf16>
    %cst_73 = arith.constant dense<0.000000e+00> : vector<24x64xf32>
    %193 = tpu.matmul %190, %192, %cst_73 {dimension_numbers = #tpu.dot_dimension_numbers<[1], [0], [0], [1], [0, 0, 1, 1], [], []>} : vector<24x256xbf16>, vector<256x64xbf16>, vector<24x64xf32> -> vector<24x64xf32>
    %c0_74 = arith.constant 0 : index
    %c0_75 = arith.constant 0 : index
    %c0_76 = arith.constant 0 : index
    %194 = vector.load %arg14[%c0_74, %c0_75, %c0_76] : memref<2x1x64xf32, #tpu.memory_space<vmem>>, vector<1x1x64xf32>
    %195 = vector.shape_cast %194 : vector<1x1x64xf32> to vector<1x64xf32>
    %196 = vector.broadcast %195 : vector<1x64xf32> to vector<24x64xf32>
    %197 = arith.addf %193, %196 : vector<24x64xf32>
    %198 = vector.shape_cast %197 : vector<24x64xf32> to vector<1x24x64xf32>
    %199 = arith.addf %139, %198 : vector<1x24x64xf32>
    %c1 = arith.constant 1 : index
    %c0_77 = arith.constant 0 : index
    %c0_78 = arith.constant 0 : index
    %200 = vector.load %arg5[%c1, %c0_77, %c0_78] : memref<2x2x64xf32, #tpu.memory_space<vmem>>, vector<1x2x64xf32>
    %201 = vector.shape_cast %200 : vector<1x2x64xf32> to vector<2x64xf32>
    %202 = vector.extract_strided_slice %201 {offsets = [0, 0], sizes = [1, 64], strides = [1, 1]} : vector<2x64xf32> to vector<1x64xf32>
    %203 = vector.extract_strided_slice %201 {offsets = [1, 0], sizes = [1, 64], strides = [1, 1]} : vector<2x64xf32> to vector<1x64xf32>
    %cst_79 = arith.constant dense<0.000000e+00> : vector<1x24xf32>
    %204 = vector.multi_reduction <add>, %199, %cst_79 [2] : vector<1x24x64xf32> to vector<1x24xf32>
    %205 = vector.shape_cast %204 : vector<1x24xf32> to vector<1x24x1xf32>
    %cst_80 = arith.constant 6.400000e+01 : f32
    %206 = vector.broadcast %cst_80 : f32 to vector<1x24x1xf32>
    %207 = arith.divf %205, %206 : vector<1x24x1xf32>
    %208 = vector.broadcast %207 : vector<1x24x1xf32> to vector<1x24x64xf32>
    %209 = arith.subf %199, %208 : vector<1x24x64xf32>
    %210 = arith.mulf %209, %209 : vector<1x24x64xf32>
    %cst_81 = arith.constant dense<0.000000e+00> : vector<1x24xf32>
    %211 = vector.multi_reduction <add>, %210, %cst_81 [2] : vector<1x24x64xf32> to vector<1x24xf32>
    %212 = vector.shape_cast %211 : vector<1x24xf32> to vector<1x24x1xf32>
    %cst_82 = arith.constant 6.400000e+01 : f32
    %213 = vector.broadcast %cst_82 : f32 to vector<1x24x1xf32>
    %214 = arith.divf %212, %213 : vector<1x24x1xf32>
    %215 = vector.broadcast %207 : vector<1x24x1xf32> to vector<1x24x64xf32>
    %216 = arith.subf %199, %215 : vector<1x24x64xf32>
    %cst_83 = arith.constant 9.99999997E-7 : f32
    %217 = vector.broadcast %cst_83 : f32 to vector<1x24x1xf32>
    %218 = arith.addf %214, %217 : vector<1x24x1xf32>
    %219 = math.rsqrt %218 : vector<1x24x1xf32>
    %220 = vector.broadcast %219 : vector<1x24x1xf32> to vector<1x24x64xf32>
    %221 = arith.mulf %216, %220 : vector<1x24x64xf32>
    %222 = vector.shape_cast %202 : vector<1x64xf32> to vector<1x1x64xf32>
    %223 = vector.broadcast %222 : vector<1x1x64xf32> to vector<1x24x64xf32>
    %224 = arith.mulf %221, %223 : vector<1x24x64xf32>
    %225 = vector.shape_cast %203 : vector<1x64xf32> to vector<1x1x64xf32>
    %226 = vector.broadcast %225 : vector<1x1x64xf32> to vector<1x24x64xf32>
    %227 = arith.addf %224, %226 : vector<1x24x64xf32>
    %228 = vector.shape_cast %227 : vector<1x24x64xf32> to vector<24x64xf32>
    %229 = arith.truncf %228 : vector<24x64xf32> to vector<24x64xbf16>
    %c1_84 = arith.constant 1 : index
    %c0_85 = arith.constant 0 : index
    %c0_86 = arith.constant 0 : index
    %230 = vector.load %arg6[%c1_84, %c0_85, %c0_86] : memref<2x64x192xbf16, #tpu.memory_space<vmem>>, vector<1x64x192xbf16>
    %231 = vector.shape_cast %230 : vector<1x64x192xbf16> to vector<64x192xbf16>
    %cst_87 = arith.constant dense<0.000000e+00> : vector<24x192xf32>
    %232 = tpu.matmul %229, %231, %cst_87 {dimension_numbers = #tpu.dot_dimension_numbers<[1], [0], [0], [1], [0, 0, 1, 1], [], []>} : vector<24x64xbf16>, vector<64x192xbf16>, vector<24x192xf32> -> vector<24x192xf32>
    %c1_88 = arith.constant 1 : index
    %c0_89 = arith.constant 0 : index
    %c0_90 = arith.constant 0 : index
    %233 = vector.load %arg7[%c1_88, %c0_89, %c0_90] : memref<2x1x192xf32, #tpu.memory_space<vmem>>, vector<1x1x192xf32>
    %234 = vector.shape_cast %233 : vector<1x1x192xf32> to vector<1x192xf32>
    %235 = vector.broadcast %234 : vector<1x192xf32> to vector<24x192xf32>
    %236 = arith.addf %232, %235 : vector<24x192xf32>
    %237 = vector.shape_cast %236 : vector<24x192xf32> to vector<1x24x192xf32>
    %238 = vector.extract_strided_slice %237 {offsets = [0, 0, 0], sizes = [1, 24, 16], strides = [1, 1, 1]} : vector<1x24x192xf32> to vector<1x24x16xf32>
    %239 = vector.extract_strided_slice %237 {offsets = [0, 0, 64], sizes = [1, 24, 16], strides = [1, 1, 1]} : vector<1x24x192xf32> to vector<1x24x16xf32>
    %240 = vector.extract_strided_slice %237 {offsets = [0, 0, 128], sizes = [1, 24, 16], strides = [1, 1, 1]} : vector<1x24x192xf32> to vector<1x24x16xf32>
    "tpu.trace_start"() <{level = 10 : i32, message = "fsd,ftd->fst"}> : () -> ()
    %cst_91 = arith.constant dense<0.000000e+00> : vector<1x24x24xf32>
    %241 = tpu.matmul %238, %239, %cst_91 {dimension_numbers = #tpu.dot_dimension_numbers<[2], [2], [1], [1], [0, 0, 0, 1, 1, 1], [0], [0]>} : vector<1x24x16xf32>, vector<1x24x16xf32>, vector<1x24x24xf32> -> vector<1x24x24xf32>
    "tpu.trace_stop"() : () -> ()
    %cst_92 = arith.constant 2.500000e-01 : f32
    %242 = vector.broadcast %cst_92 : f32 to vector<1x24x24xf32>
    %243 = arith.mulf %241, %242 : vector<1x24x24xf32>
    %244 = vector.shape_cast %0 : vector<1x24xf32> to vector<1x1x24xf32>
    %245 = vector.broadcast %244 : vector<1x1x24xf32> to vector<1x24x24xf32>
    %246 = arith.addf %243, %245 : vector<1x24x24xf32>
    %cst_93 = arith.constant dense<0xFF800000> : vector<1x24xf32>
    %247 = vector.multi_reduction <maximumf>, %246, %cst_93 [2] : vector<1x24x24xf32> to vector<1x24xf32>
    %248 = vector.shape_cast %247 : vector<1x24xf32> to vector<1x24x1xf32>
    %249 = vector.broadcast %248 : vector<1x24x1xf32> to vector<1x24x24xf32>
    %250 = arith.subf %246, %249 : vector<1x24x24xf32>
    %251 = math.exp %250 : vector<1x24x24xf32>
    %cst_94 = arith.constant dense<0.000000e+00> : vector<1x24xf32>
    %252 = vector.multi_reduction <add>, %251, %cst_94 [2] : vector<1x24x24xf32> to vector<1x24xf32>
    %253 = vector.shape_cast %252 : vector<1x24xf32> to vector<1x24x1xf32>
    %254 = tpu.reciprocal %253 {approx = true} : vector<1x24x1xf32> -> vector<1x24x1xf32>
    %255 = vector.broadcast %254 : vector<1x24x1xf32> to vector<1x24x24xf32>
    %256 = arith.mulf %251, %255 : vector<1x24x24xf32>
    "tpu.trace_start"() <{level = 10 : i32, message = "fst,ftd->fsd"}> : () -> ()
    %cst_95 = arith.constant dense<0.000000e+00> : vector<1x24x16xf32>
    %257 = tpu.matmul %256, %240, %cst_95 {dimension_numbers = #tpu.dot_dimension_numbers<[2], [1], [1], [2], [0, 0, 0, 1, 1, 2], [0], [0]>} : vector<1x24x24xf32>, vector<1x24x16xf32>, vector<1x24x16xf32> -> vector<1x24x16xf32>
    "tpu.trace_stop"() : () -> ()
    %258 = vector.extract_strided_slice %237 {offsets = [0, 0, 16], sizes = [1, 24, 16], strides = [1, 1, 1]} : vector<1x24x192xf32> to vector<1x24x16xf32>
    %259 = vector.extract_strided_slice %237 {offsets = [0, 0, 80], sizes = [1, 24, 16], strides = [1, 1, 1]} : vector<1x24x192xf32> to vector<1x24x16xf32>
    %260 = vector.extract_strided_slice %237 {offsets = [0, 0, 144], sizes = [1, 24, 16], strides = [1, 1, 1]} : vector<1x24x192xf32> to vector<1x24x16xf32>
    "tpu.trace_start"() <{level = 10 : i32, message = "fsd,ftd->fst"}> : () -> ()
    %cst_96 = arith.constant dense<0.000000e+00> : vector<1x24x24xf32>
    %261 = tpu.matmul %258, %259, %cst_96 {dimension_numbers = #tpu.dot_dimension_numbers<[2], [2], [1], [1], [0, 0, 0, 1, 1, 1], [0], [0]>} : vector<1x24x16xf32>, vector<1x24x16xf32>, vector<1x24x24xf32> -> vector<1x24x24xf32>
    "tpu.trace_stop"() : () -> ()
    %cst_97 = arith.constant 2.500000e-01 : f32
    %262 = vector.broadcast %cst_97 : f32 to vector<1x24x24xf32>
    %263 = arith.mulf %261, %262 : vector<1x24x24xf32>
    %264 = vector.shape_cast %0 : vector<1x24xf32> to vector<1x1x24xf32>
    %265 = vector.broadcast %264 : vector<1x1x24xf32> to vector<1x24x24xf32>
    %266 = arith.addf %263, %265 : vector<1x24x24xf32>
    %cst_98 = arith.constant dense<0xFF800000> : vector<1x24xf32>
    %267 = vector.multi_reduction <maximumf>, %266, %cst_98 [2] : vector<1x24x24xf32> to vector<1x24xf32>
    %268 = vector.shape_cast %267 : vector<1x24xf32> to vector<1x24x1xf32>
    %269 = vector.broadcast %268 : vector<1x24x1xf32> to vector<1x24x24xf32>
    %270 = arith.subf %266, %269 : vector<1x24x24xf32>
    %271 = math.exp %270 : vector<1x24x24xf32>
    %cst_99 = arith.constant dense<0.000000e+00> : vector<1x24xf32>
    %272 = vector.multi_reduction <add>, %271, %cst_99 [2] : vector<1x24x24xf32> to vector<1x24xf32>
    %273 = vector.shape_cast %272 : vector<1x24xf32> to vector<1x24x1xf32>
    %274 = tpu.reciprocal %273 {approx = true} : vector<1x24x1xf32> -> vector<1x24x1xf32>
    %275 = vector.broadcast %274 : vector<1x24x1xf32> to vector<1x24x24xf32>
    %276 = arith.mulf %271, %275 : vector<1x24x24xf32>
    "tpu.trace_start"() <{level = 10 : i32, message = "fst,ftd->fsd"}> : () -> ()
    %cst_100 = arith.constant dense<0.000000e+00> : vector<1x24x16xf32>
    %277 = tpu.matmul %276, %260, %cst_100 {dimension_numbers = #tpu.dot_dimension_numbers<[2], [1], [1], [2], [0, 0, 0, 1, 1, 2], [0], [0]>} : vector<1x24x24xf32>, vector<1x24x16xf32>, vector<1x24x16xf32> -> vector<1x24x16xf32>
    "tpu.trace_stop"() : () -> ()
    %278 = vector.extract_strided_slice %237 {offsets = [0, 0, 32], sizes = [1, 24, 16], strides = [1, 1, 1]} : vector<1x24x192xf32> to vector<1x24x16xf32>
    %279 = vector.extract_strided_slice %237 {offsets = [0, 0, 96], sizes = [1, 24, 16], strides = [1, 1, 1]} : vector<1x24x192xf32> to vector<1x24x16xf32>
    %280 = vector.extract_strided_slice %237 {offsets = [0, 0, 160], sizes = [1, 24, 16], strides = [1, 1, 1]} : vector<1x24x192xf32> to vector<1x24x16xf32>
    "tpu.trace_start"() <{level = 10 : i32, message = "fsd,ftd->fst"}> : () -> ()
    %cst_101 = arith.constant dense<0.000000e+00> : vector<1x24x24xf32>
    %281 = tpu.matmul %278, %279, %cst_101 {dimension_numbers = #tpu.dot_dimension_numbers<[2], [2], [1], [1], [0, 0, 0, 1, 1, 1], [0], [0]>} : vector<1x24x16xf32>, vector<1x24x16xf32>, vector<1x24x24xf32> -> vector<1x24x24xf32>
    "tpu.trace_stop"() : () -> ()
    %cst_102 = arith.constant 2.500000e-01 : f32
    %282 = vector.broadcast %cst_102 : f32 to vector<1x24x24xf32>
    %283 = arith.mulf %281, %282 : vector<1x24x24xf32>
    %284 = vector.shape_cast %0 : vector<1x24xf32> to vector<1x1x24xf32>
    %285 = vector.broadcast %284 : vector<1x1x24xf32> to vector<1x24x24xf32>
    %286 = arith.addf %283, %285 : vector<1x24x24xf32>
    %cst_103 = arith.constant dense<0xFF800000> : vector<1x24xf32>
    %287 = vector.multi_reduction <maximumf>, %286, %cst_103 [2] : vector<1x24x24xf32> to vector<1x24xf32>
    %288 = vector.shape_cast %287 : vector<1x24xf32> to vector<1x24x1xf32>
    %289 = vector.broadcast %288 : vector<1x24x1xf32> to vector<1x24x24xf32>
    %290 = arith.subf %286, %289 : vector<1x24x24xf32>
    %291 = math.exp %290 : vector<1x24x24xf32>
    %cst_104 = arith.constant dense<0.000000e+00> : vector<1x24xf32>
    %292 = vector.multi_reduction <add>, %291, %cst_104 [2] : vector<1x24x24xf32> to vector<1x24xf32>
    %293 = vector.shape_cast %292 : vector<1x24xf32> to vector<1x24x1xf32>
    %294 = tpu.reciprocal %293 {approx = true} : vector<1x24x1xf32> -> vector<1x24x1xf32>
    %295 = vector.broadcast %294 : vector<1x24x1xf32> to vector<1x24x24xf32>
    %296 = arith.mulf %291, %295 : vector<1x24x24xf32>
    "tpu.trace_start"() <{level = 10 : i32, message = "fst,ftd->fsd"}> : () -> ()
    %cst_105 = arith.constant dense<0.000000e+00> : vector<1x24x16xf32>
    %297 = tpu.matmul %296, %280, %cst_105 {dimension_numbers = #tpu.dot_dimension_numbers<[2], [1], [1], [2], [0, 0, 0, 1, 1, 2], [0], [0]>} : vector<1x24x24xf32>, vector<1x24x16xf32>, vector<1x24x16xf32> -> vector<1x24x16xf32>
    "tpu.trace_stop"() : () -> ()
    %298 = vector.extract_strided_slice %237 {offsets = [0, 0, 48], sizes = [1, 24, 16], strides = [1, 1, 1]} : vector<1x24x192xf32> to vector<1x24x16xf32>
    %299 = vector.extract_strided_slice %237 {offsets = [0, 0, 112], sizes = [1, 24, 16], strides = [1, 1, 1]} : vector<1x24x192xf32> to vector<1x24x16xf32>
    %300 = vector.extract_strided_slice %237 {offsets = [0, 0, 176], sizes = [1, 24, 16], strides = [1, 1, 1]} : vector<1x24x192xf32> to vector<1x24x16xf32>
    "tpu.trace_start"() <{level = 10 : i32, message = "fsd,ftd->fst"}> : () -> ()
    %cst_106 = arith.constant dense<0.000000e+00> : vector<1x24x24xf32>
    %301 = tpu.matmul %298, %299, %cst_106 {dimension_numbers = #tpu.dot_dimension_numbers<[2], [2], [1], [1], [0, 0, 0, 1, 1, 1], [0], [0]>} : vector<1x24x16xf32>, vector<1x24x16xf32>, vector<1x24x24xf32> -> vector<1x24x24xf32>
    "tpu.trace_stop"() : () -> ()
    %cst_107 = arith.constant 2.500000e-01 : f32
    %302 = vector.broadcast %cst_107 : f32 to vector<1x24x24xf32>
    %303 = arith.mulf %301, %302 : vector<1x24x24xf32>
    %304 = vector.shape_cast %0 : vector<1x24xf32> to vector<1x1x24xf32>
    %305 = vector.broadcast %304 : vector<1x1x24xf32> to vector<1x24x24xf32>
    %306 = arith.addf %303, %305 : vector<1x24x24xf32>
    %cst_108 = arith.constant dense<0xFF800000> : vector<1x24xf32>
    %307 = vector.multi_reduction <maximumf>, %306, %cst_108 [2] : vector<1x24x24xf32> to vector<1x24xf32>
    %308 = vector.shape_cast %307 : vector<1x24xf32> to vector<1x24x1xf32>
    %309 = vector.broadcast %308 : vector<1x24x1xf32> to vector<1x24x24xf32>
    %310 = arith.subf %306, %309 : vector<1x24x24xf32>
    %311 = math.exp %310 : vector<1x24x24xf32>
    %cst_109 = arith.constant dense<0.000000e+00> : vector<1x24xf32>
    %312 = vector.multi_reduction <add>, %311, %cst_109 [2] : vector<1x24x24xf32> to vector<1x24xf32>
    %313 = vector.shape_cast %312 : vector<1x24xf32> to vector<1x24x1xf32>
    %314 = tpu.reciprocal %313 {approx = true} : vector<1x24x1xf32> -> vector<1x24x1xf32>
    %315 = vector.broadcast %314 : vector<1x24x1xf32> to vector<1x24x24xf32>
    %316 = arith.mulf %311, %315 : vector<1x24x24xf32>
    "tpu.trace_start"() <{level = 10 : i32, message = "fst,ftd->fsd"}> : () -> ()
    %cst_110 = arith.constant dense<0.000000e+00> : vector<1x24x16xf32>
    %317 = tpu.matmul %316, %300, %cst_110 {dimension_numbers = #tpu.dot_dimension_numbers<[2], [1], [1], [2], [0, 0, 0, 1, 1, 2], [0], [0]>} : vector<1x24x24xf32>, vector<1x24x16xf32>, vector<1x24x16xf32> -> vector<1x24x16xf32>
    "tpu.trace_stop"() : () -> ()
    %318 = tpu.concatenate %257, %277, %297, %317 in 2 : vector<1x24x16xf32>, vector<1x24x16xf32>, vector<1x24x16xf32>, vector<1x24x16xf32> -> vector<1x24x64xf32>
    %319 = vector.shape_cast %318 : vector<1x24x64xf32> to vector<24x64xf32>
    %320 = arith.truncf %319 : vector<24x64xf32> to vector<24x64xbf16>
    %c1_111 = arith.constant 1 : index
    %c0_112 = arith.constant 0 : index
    %c0_113 = arith.constant 0 : index
    %321 = vector.load %arg8[%c1_111, %c0_112, %c0_113] : memref<2x64x64xbf16, #tpu.memory_space<vmem>>, vector<1x64x64xbf16>
    %322 = vector.shape_cast %321 : vector<1x64x64xbf16> to vector<64x64xbf16>
    %cst_114 = arith.constant dense<0.000000e+00> : vector<24x64xf32>
    %323 = tpu.matmul %320, %322, %cst_114 {dimension_numbers = #tpu.dot_dimension_numbers<[1], [0], [0], [1], [0, 0, 1, 1], [], []>} : vector<24x64xbf16>, vector<64x64xbf16>, vector<24x64xf32> -> vector<24x64xf32>
    %c1_115 = arith.constant 1 : index
    %c0_116 = arith.constant 0 : index
    %c0_117 = arith.constant 0 : index
    %324 = vector.load %arg9[%c1_115, %c0_116, %c0_117] : memref<2x1x64xf32, #tpu.memory_space<vmem>>, vector<1x1x64xf32>
    %325 = vector.shape_cast %324 : vector<1x1x64xf32> to vector<1x64xf32>
    %326 = vector.broadcast %325 : vector<1x64xf32> to vector<24x64xf32>
    %327 = arith.addf %323, %326 : vector<24x64xf32>
    %328 = vector.shape_cast %327 : vector<24x64xf32> to vector<1x24x64xf32>
    %329 = arith.addf %199, %328 : vector<1x24x64xf32>
    %c1_118 = arith.constant 1 : index
    %c0_119 = arith.constant 0 : index
    %c0_120 = arith.constant 0 : index
    %330 = vector.load %arg10[%c1_118, %c0_119, %c0_120] : memref<2x2x64xf32, #tpu.memory_space<vmem>>, vector<1x2x64xf32>
    %331 = vector.shape_cast %330 : vector<1x2x64xf32> to vector<2x64xf32>
    %332 = vector.extract_strided_slice %331 {offsets = [0, 0], sizes = [1, 64], strides = [1, 1]} : vector<2x64xf32> to vector<1x64xf32>
    %333 = vector.extract_strided_slice %331 {offsets = [1, 0], sizes = [1, 64], strides = [1, 1]} : vector<2x64xf32> to vector<1x64xf32>
    %cst_121 = arith.constant dense<0.000000e+00> : vector<1x24xf32>
    %334 = vector.multi_reduction <add>, %329, %cst_121 [2] : vector<1x24x64xf32> to vector<1x24xf32>
    %335 = vector.shape_cast %334 : vector<1x24xf32> to vector<1x24x1xf32>
    %cst_122 = arith.constant 6.400000e+01 : f32
    %336 = vector.broadcast %cst_122 : f32 to vector<1x24x1xf32>
    %337 = arith.divf %335, %336 : vector<1x24x1xf32>
    %338 = vector.broadcast %337 : vector<1x24x1xf32> to vector<1x24x64xf32>
    %339 = arith.subf %329, %338 : vector<1x24x64xf32>
    %340 = arith.mulf %339, %339 : vector<1x24x64xf32>
    %cst_123 = arith.constant dense<0.000000e+00> : vector<1x24xf32>
    %341 = vector.multi_reduction <add>, %340, %cst_123 [2] : vector<1x24x64xf32> to vector<1x24xf32>
    %342 = vector.shape_cast %341 : vector<1x24xf32> to vector<1x24x1xf32>
    %cst_124 = arith.constant 6.400000e+01 : f32
    %343 = vector.broadcast %cst_124 : f32 to vector<1x24x1xf32>
    %344 = arith.divf %342, %343 : vector<1x24x1xf32>
    %345 = vector.broadcast %337 : vector<1x24x1xf32> to vector<1x24x64xf32>
    %346 = arith.subf %329, %345 : vector<1x24x64xf32>
    %cst_125 = arith.constant 9.99999997E-7 : f32
    %347 = vector.broadcast %cst_125 : f32 to vector<1x24x1xf32>
    %348 = arith.addf %344, %347 : vector<1x24x1xf32>
    %349 = math.rsqrt %348 : vector<1x24x1xf32>
    %350 = vector.broadcast %349 : vector<1x24x1xf32> to vector<1x24x64xf32>
    %351 = arith.mulf %346, %350 : vector<1x24x64xf32>
    %352 = vector.shape_cast %332 : vector<1x64xf32> to vector<1x1x64xf32>
    %353 = vector.broadcast %352 : vector<1x1x64xf32> to vector<1x24x64xf32>
    %354 = arith.mulf %351, %353 : vector<1x24x64xf32>
    %355 = vector.shape_cast %333 : vector<1x64xf32> to vector<1x1x64xf32>
    %356 = vector.broadcast %355 : vector<1x1x64xf32> to vector<1x24x64xf32>
    %357 = arith.addf %354, %356 : vector<1x24x64xf32>
    %358 = vector.shape_cast %357 : vector<1x24x64xf32> to vector<24x64xf32>
    %359 = arith.truncf %358 : vector<24x64xf32> to vector<24x64xbf16>
    %c1_126 = arith.constant 1 : index
    %c0_127 = arith.constant 0 : index
    %c0_128 = arith.constant 0 : index
    %360 = vector.load %arg11[%c1_126, %c0_127, %c0_128] : memref<2x64x256xbf16, #tpu.memory_space<vmem>>, vector<1x64x256xbf16>
    %361 = vector.shape_cast %360 : vector<1x64x256xbf16> to vector<64x256xbf16>
    %cst_129 = arith.constant dense<0.000000e+00> : vector<24x256xf32>
    %362 = tpu.matmul %359, %361, %cst_129 {dimension_numbers = #tpu.dot_dimension_numbers<[1], [0], [0], [1], [0, 0, 1, 1], [], []>} : vector<24x64xbf16>, vector<64x256xbf16>, vector<24x256xf32> -> vector<24x256xf32>
    %c1_130 = arith.constant 1 : index
    %c0_131 = arith.constant 0 : index
    %c0_132 = arith.constant 0 : index
    %363 = vector.load %arg12[%c1_130, %c0_131, %c0_132] : memref<2x1x256xf32, #tpu.memory_space<vmem>>, vector<1x1x256xf32>
    %364 = vector.shape_cast %363 : vector<1x1x256xf32> to vector<1x256xf32>
    %365 = vector.broadcast %364 : vector<1x256xf32> to vector<24x256xf32>
    %366 = arith.addf %362, %365 : vector<24x256xf32>
    %367 = arith.mulf %366, %366 : vector<24x256xf32>
    %368 = arith.mulf %366, %367 : vector<24x256xf32>
    %cst_133 = arith.constant 4.471500e-02 : f32
    %369 = vector.broadcast %cst_133 : f32 to vector<24x256xf32>
    %370 = arith.mulf %369, %368 : vector<24x256xf32>
    %371 = arith.addf %366, %370 : vector<24x256xf32>
    %cst_134 = arith.constant 0.797884583 : f32
    %372 = vector.broadcast %cst_134 : f32 to vector<24x256xf32>
    %373 = arith.mulf %372, %371 : vector<24x256xf32>
    %374 = math.tanh %373 : vector<24x256xf32>
    %cst_135 = arith.constant 1.000000e+00 : f32
    %375 = vector.broadcast %cst_135 : f32 to vector<24x256xf32>
    %376 = arith.addf %375, %374 : vector<24x256xf32>
    %cst_136 = arith.constant 5.000000e-01 : f32
    %377 = vector.broadcast %cst_136 : f32 to vector<24x256xf32>
    %378 = arith.mulf %377, %376 : vector<24x256xf32>
    %379 = arith.mulf %366, %378 : vector<24x256xf32>
    %380 = arith.truncf %379 : vector<24x256xf32> to vector<24x256xbf16>
    %c1_137 = arith.constant 1 : index
    %c0_138 = arith.constant 0 : index
    %c0_139 = arith.constant 0 : index
    %381 = vector.load %arg13[%c1_137, %c0_138, %c0_139] : memref<2x256x64xbf16, #tpu.memory_space<vmem>>, vector<1x256x64xbf16>
    %382 = vector.shape_cast %381 : vector<1x256x64xbf16> to vector<256x64xbf16>
    %cst_140 = arith.constant dense<0.000000e+00> : vector<24x64xf32>
    %383 = tpu.matmul %380, %382, %cst_140 {dimension_numbers = #tpu.dot_dimension_numbers<[1], [0], [0], [1], [0, 0, 1, 1], [], []>} : vector<24x256xbf16>, vector<256x64xbf16>, vector<24x64xf32> -> vector<24x64xf32>
    %c1_141 = arith.constant 1 : index
    %c0_142 = arith.constant 0 : index
    %c0_143 = arith.constant 0 : index
    %384 = vector.load %arg14[%c1_141, %c0_142, %c0_143] : memref<2x1x64xf32, #tpu.memory_space<vmem>>, vector<1x1x64xf32>
    %385 = vector.shape_cast %384 : vector<1x1x64xf32> to vector<1x64xf32>
    %386 = vector.broadcast %385 : vector<1x64xf32> to vector<24x64xf32>
    %387 = arith.addf %383, %386 : vector<24x64xf32>
    %388 = vector.shape_cast %387 : vector<24x64xf32> to vector<1x24x64xf32>
    %389 = arith.addf %329, %388 : vector<1x24x64xf32>
    %390 = vector.extract_strided_slice %389 {offsets = [0, 0, 0], sizes = [1, 1, 64], strides = [1, 1, 1]} : vector<1x24x64xf32> to vector<1x1x64xf32>
    %391 = vector.shape_cast %390 : vector<1x1x64xf32> to vector<1x64xf32>
    %c0_144 = arith.constant 0 : index
    %c0_145 = arith.constant 0 : index
    %392 = vector.load %arg15[%c0_144, %c0_145] : memref<2x64xf32, #tpu.memory_space<vmem>>, vector<2x64xf32>
    %393 = vector.extract_strided_slice %392 {offsets = [0, 0], sizes = [1, 64], strides = [1, 1]} : vector<2x64xf32> to vector<1x64xf32>
    %394 = vector.extract_strided_slice %392 {offsets = [1, 0], sizes = [1, 64], strides = [1, 1]} : vector<2x64xf32> to vector<1x64xf32>
    %cst_146 = arith.constant dense<0.000000e+00> : vector<1xf32>
    %395 = vector.multi_reduction <add>, %391, %cst_146 [1] : vector<1x64xf32> to vector<1xf32>
    %396 = vector.shape_cast %395 : vector<1xf32> to vector<1x1xf32>
    %cst_147 = arith.constant 6.400000e+01 : f32
    %397 = vector.broadcast %cst_147 : f32 to vector<1x1xf32>
    %398 = arith.divf %396, %397 : vector<1x1xf32>
    %399 = vector.broadcast %398 : vector<1x1xf32> to vector<1x64xf32>
    %400 = arith.subf %391, %399 : vector<1x64xf32>
    %401 = arith.mulf %400, %400 : vector<1x64xf32>
    %cst_148 = arith.constant dense<0.000000e+00> : vector<1xf32>
    %402 = vector.multi_reduction <add>, %401, %cst_148 [1] : vector<1x64xf32> to vector<1xf32>
    %403 = vector.shape_cast %402 : vector<1xf32> to vector<1x1xf32>
    %cst_149 = arith.constant 6.400000e+01 : f32
    %404 = vector.broadcast %cst_149 : f32 to vector<1x1xf32>
    %405 = arith.divf %403, %404 : vector<1x1xf32>
    %406 = vector.broadcast %398 : vector<1x1xf32> to vector<1x64xf32>
    %407 = arith.subf %391, %406 : vector<1x64xf32>
    %cst_150 = arith.constant 9.99999997E-7 : f32
    %408 = vector.broadcast %cst_150 : f32 to vector<1x1xf32>
    %409 = arith.addf %405, %408 : vector<1x1xf32>
    %410 = math.rsqrt %409 : vector<1x1xf32>
    %411 = vector.broadcast %410 : vector<1x1xf32> to vector<1x64xf32>
    %412 = arith.mulf %407, %411 : vector<1x64xf32>
    %413 = arith.mulf %412, %393 : vector<1x64xf32>
    %414 = arith.addf %413, %394 : vector<1x64xf32>
    %c0_151 = arith.constant 0 : index
    %c0_152 = arith.constant 0 : index
    %415 = vector.load %arg16[%c0_151, %c0_152] : memref<64x32xf32, #tpu.memory_space<vmem>>, vector<64x32xf32>
    %cst_153 = arith.constant dense<0.000000e+00> : vector<1x32xf32>
    %416 = tpu.matmul %414, %415, %cst_153 {dimension_numbers = #tpu.dot_dimension_numbers<[1], [0], [0], [1], [0, 0, 1, 1], [], []>} : vector<1x64xf32>, vector<64x32xf32>, vector<1x32xf32> -> vector<1x32xf32>
    %c0_154 = arith.constant 0 : index
    %c0_155 = arith.constant 0 : index
    %417 = vector.load %arg23[%c0_154, %c0_155] : memref<1x157xf32, #tpu.memory_space<vmem>>, vector<1x157xf32>
    %c0_156 = arith.constant 0 : index
    %c0_157 = arith.constant 0 : index
    %418 = vector.load %arg17[%c0_156, %c0_157] : memref<157x32xf32, #tpu.memory_space<vmem>>, vector<157x32xf32>
    %cst_158 = arith.constant dense<0.000000e+00> : vector<1x32xf32>
    %419 = tpu.matmul %417, %418, %cst_158 {dimension_numbers = #tpu.dot_dimension_numbers<[1], [0], [0], [1], [0, 0, 1, 1], [], []>} : vector<1x157xf32>, vector<157x32xf32>, vector<1x32xf32> -> vector<1x32xf32>
    %420 = arith.addf %416, %419 : vector<1x32xf32>
    %c0_159 = arith.constant 0 : index
    %c0_160 = arith.constant 0 : index
    %421 = vector.load %arg18[%c0_159, %c0_160] : memref<1x32xf32, #tpu.memory_space<vmem>>, vector<1x32xf32>
    %422 = arith.addf %420, %421 : vector<1x32xf32>
    %cst_161 = arith.constant 0.000000e+00 : f32
    %423 = vector.broadcast %cst_161 : f32 to vector<1x32xf32>
    %424 = arith.maximumf %422, %423 : vector<1x32xf32>
    %c0_162 = arith.constant 0 : index
    %c0_163 = arith.constant 0 : index
    %425 = vector.load %arg19[%c0_162, %c0_163] : memref<32x32xf32, #tpu.memory_space<vmem>>, vector<32x32xf32>
    %cst_164 = arith.constant dense<0.000000e+00> : vector<1x32xf32>
    %426 = tpu.matmul %424, %425, %cst_164 {dimension_numbers = #tpu.dot_dimension_numbers<[1], [0], [0], [1], [0, 0, 1, 1], [], []>} : vector<1x32xf32>, vector<32x32xf32>, vector<1x32xf32> -> vector<1x32xf32>
    %c0_165 = arith.constant 0 : index
    %c0_166 = arith.constant 0 : index
    %427 = vector.load %arg20[%c0_165, %c0_166] : memref<1x32xf32, #tpu.memory_space<vmem>>, vector<1x32xf32>
    %428 = arith.addf %426, %427 : vector<1x32xf32>
    %cst_167 = arith.constant 0.000000e+00 : f32
    %429 = vector.broadcast %cst_167 : f32 to vector<1x32xf32>
    %430 = arith.maximumf %428, %429 : vector<1x32xf32>
    %c0_168 = arith.constant 0 : index
    %c0_169 = arith.constant 0 : index
    %431 = vector.load %arg21[%c0_168, %c0_169] : memref<32x157xf32, #tpu.memory_space<vmem>>, vector<32x157xf32>
    %cst_170 = arith.constant dense<0.000000e+00> : vector<1x157xf32>
    %432 = tpu.matmul %430, %431, %cst_170 {dimension_numbers = #tpu.dot_dimension_numbers<[1], [0], [0], [1], [0, 0, 1, 1], [], []>} : vector<1x32xf32>, vector<32x157xf32>, vector<1x157xf32> -> vector<1x157xf32>
    %433 = arith.addf %417, %432 : vector<1x157xf32>
    %c0_171 = arith.constant 0 : index
    %c0_172 = arith.constant 0 : index
    %434 = vector.load %arg22[%c0_171, %c0_172] : memref<1x157xf32, #tpu.memory_space<vmem>>, vector<1x157xf32>
    %435 = arith.addf %433, %434 : vector<1x157xf32>
    %c0_173 = arith.constant 0 : index
    %c0_174 = arith.constant 0 : index
    %436 = vector.load %arg17[%c0_173, %c0_174] : memref<157x32xf32, #tpu.memory_space<vmem>>, vector<157x32xf32>
    %cst_175 = arith.constant dense<0.000000e+00> : vector<1x32xf32>
    %437 = tpu.matmul %435, %436, %cst_175 {dimension_numbers = #tpu.dot_dimension_numbers<[1], [0], [0], [1], [0, 0, 1, 1], [], []>} : vector<1x157xf32>, vector<157x32xf32>, vector<1x32xf32> -> vector<1x32xf32>
    %438 = arith.addf %416, %437 : vector<1x32xf32>
    %c0_176 = arith.constant 0 : index
    %c0_177 = arith.constant 0 : index
    %439 = vector.load %arg18[%c0_176, %c0_177] : memref<1x32xf32, #tpu.memory_space<vmem>>, vector<1x32xf32>
    %440 = arith.addf %438, %439 : vector<1x32xf32>
    %cst_178 = arith.constant 0.000000e+00 : f32
    %441 = vector.broadcast %cst_178 : f32 to vector<1x32xf32>
    %442 = arith.maximumf %440, %441 : vector<1x32xf32>
    %c0_179 = arith.constant 0 : index
    %c0_180 = arith.constant 0 : index
    %443 = vector.load %arg19[%c0_179, %c0_180] : memref<32x32xf32, #tpu.memory_space<vmem>>, vector<32x32xf32>
    %cst_181 = arith.constant dense<0.000000e+00> : vector<1x32xf32>
    %444 = tpu.matmul %442, %443, %cst_181 {dimension_numbers = #tpu.dot_dimension_numbers<[1], [0], [0], [1], [0, 0, 1, 1], [], []>} : vector<1x32xf32>, vector<32x32xf32>, vector<1x32xf32> -> vector<1x32xf32>
    %c0_182 = arith.constant 0 : index
    %c0_183 = arith.constant 0 : index
    %445 = vector.load %arg20[%c0_182, %c0_183] : memref<1x32xf32, #tpu.memory_space<vmem>>, vector<1x32xf32>
    %446 = arith.addf %444, %445 : vector<1x32xf32>
    %cst_184 = arith.constant 0.000000e+00 : f32
    %447 = vector.broadcast %cst_184 : f32 to vector<1x32xf32>
    %448 = arith.maximumf %446, %447 : vector<1x32xf32>
    %c0_185 = arith.constant 0 : index
    %c0_186 = arith.constant 0 : index
    %449 = vector.load %arg21[%c0_185, %c0_186] : memref<32x157xf32, #tpu.memory_space<vmem>>, vector<32x157xf32>
    %cst_187 = arith.constant dense<0.000000e+00> : vector<1x157xf32>
    %450 = tpu.matmul %448, %449, %cst_187 {dimension_numbers = #tpu.dot_dimension_numbers<[1], [0], [0], [1], [0, 0, 1, 1], [], []>} : vector<1x32xf32>, vector<32x157xf32>, vector<1x157xf32> -> vector<1x157xf32>
    %451 = arith.addf %435, %450 : vector<1x157xf32>
    %c0_188 = arith.constant 0 : index
    %c0_189 = arith.constant 0 : index
    %452 = vector.load %arg22[%c0_188, %c0_189] : memref<1x157xf32, #tpu.memory_space<vmem>>, vector<1x157xf32>
    %453 = arith.addf %451, %452 : vector<1x157xf32>
    %c0_190 = arith.constant 0 : index
    %c0_191 = arith.constant 0 : index
    %454 = vector.load %arg17[%c0_190, %c0_191] : memref<157x32xf32, #tpu.memory_space<vmem>>, vector<157x32xf32>
    %cst_192 = arith.constant dense<0.000000e+00> : vector<1x32xf32>
    %455 = tpu.matmul %453, %454, %cst_192 {dimension_numbers = #tpu.dot_dimension_numbers<[1], [0], [0], [1], [0, 0, 1, 1], [], []>} : vector<1x157xf32>, vector<157x32xf32>, vector<1x32xf32> -> vector<1x32xf32>
    %456 = arith.addf %416, %455 : vector<1x32xf32>
    %c0_193 = arith.constant 0 : index
    %c0_194 = arith.constant 0 : index
    %457 = vector.load %arg18[%c0_193, %c0_194] : memref<1x32xf32, #tpu.memory_space<vmem>>, vector<1x32xf32>
    %458 = arith.addf %456, %457 : vector<1x32xf32>
    %cst_195 = arith.constant 0.000000e+00 : f32
    %459 = vector.broadcast %cst_195 : f32 to vector<1x32xf32>
    %460 = arith.maximumf %458, %459 : vector<1x32xf32>
    %c0_196 = arith.constant 0 : index
    %c0_197 = arith.constant 0 : index
    %461 = vector.load %arg19[%c0_196, %c0_197] : memref<32x32xf32, #tpu.memory_space<vmem>>, vector<32x32xf32>
    %cst_198 = arith.constant dense<0.000000e+00> : vector<1x32xf32>
    %462 = tpu.matmul %460, %461, %cst_198 {dimension_numbers = #tpu.dot_dimension_numbers<[1], [0], [0], [1], [0, 0, 1, 1], [], []>} : vector<1x32xf32>, vector<32x32xf32>, vector<1x32xf32> -> vector<1x32xf32>
    %c0_199 = arith.constant 0 : index
    %c0_200 = arith.constant 0 : index
    %463 = vector.load %arg20[%c0_199, %c0_200] : memref<1x32xf32, #tpu.memory_space<vmem>>, vector<1x32xf32>
    %464 = arith.addf %462, %463 : vector<1x32xf32>
    %cst_201 = arith.constant 0.000000e+00 : f32
    %465 = vector.broadcast %cst_201 : f32 to vector<1x32xf32>
    %466 = arith.maximumf %464, %465 : vector<1x32xf32>
    %c0_202 = arith.constant 0 : index
    %c0_203 = arith.constant 0 : index
    %467 = vector.load %arg21[%c0_202, %c0_203] : memref<32x157xf32, #tpu.memory_space<vmem>>, vector<32x157xf32>
    %cst_204 = arith.constant dense<0.000000e+00> : vector<1x157xf32>
    %468 = tpu.matmul %466, %467, %cst_204 {dimension_numbers = #tpu.dot_dimension_numbers<[1], [0], [0], [1], [0, 0, 1, 1], [], []>} : vector<1x32xf32>, vector<32x157xf32>, vector<1x157xf32> -> vector<1x157xf32>
    %469 = arith.addf %453, %468 : vector<1x157xf32>
    %c0_205 = arith.constant 0 : index
    %c0_206 = arith.constant 0 : index
    %470 = vector.load %arg22[%c0_205, %c0_206] : memref<1x157xf32, #tpu.memory_space<vmem>>, vector<1x157xf32>
    %471 = arith.addf %469, %470 : vector<1x157xf32>
    %c0_207 = arith.constant 0 : index
    %c0_208 = arith.constant 0 : index
    %c0_209 = arith.constant 0 : index
    %472 = vector.load %arg27[%c0_207, %c0_208, %c0_209] : memref<1x1x157xf32, #tpu.memory_space<vmem>>, vector<1x1x157xf32>
    %473 = vector.shape_cast %472 : vector<1x1x157xf32> to vector<1x157xf32>
    %474 = vector.shape_cast %471 : vector<1x157xf32> to vector<1x1x157xf32>
    tpu.vector_store %arg27[%c0_207, %c0_208, %c0_209], %474 {strides = array<i32>} : memref<1x1x157xf32, #tpu.memory_space<vmem>>, vector<1x1x157xf32>,
    %475 = vector.extract_strided_slice %471 {offsets = [0, 0], sizes = [1, 144], strides = [1, 1]} : vector<1x157xf32> to vector<1x144xf32>
    %476 = vector.extract_strided_slice %471 {offsets = [0, 144], sizes = [1, 10], strides = [1, 1]} : vector<1x157xf32> to vector<1x10xf32>
    %477 = vector.extract_strided_slice %475 {offsets = [0, 0], sizes = [1, 24], strides = [1, 1]} : vector<1x144xf32> to vector<1x24xf32>
    %478 = vector.extract_strided_slice %475 {offsets = [0, 24], sizes = [1, 24], strides = [1, 1]} : vector<1x144xf32> to vector<1x24xf32>
    %479 = vector.extract_strided_slice %475 {offsets = [0, 48], sizes = [1, 24], strides = [1, 1]} : vector<1x144xf32> to vector<1x24xf32>
    %480 = vector.extract_strided_slice %475 {offsets = [0, 72], sizes = [1, 24], strides = [1, 1]} : vector<1x144xf32> to vector<1x24xf32>
    %481 = vector.extract_strided_slice %475 {offsets = [0, 96], sizes = [1, 24], strides = [1, 1]} : vector<1x144xf32> to vector<1x24xf32>
    %482 = vector.extract_strided_slice %475 {offsets = [0, 120], sizes = [1, 24], strides = [1, 1]} : vector<1x144xf32> to vector<1x24xf32>
    %483 = arith.mulf %477, %477 : vector<1x24xf32>
    %484 = arith.mulf %479, %479 : vector<1x24xf32>
    %485 = arith.addf %483, %484 : vector<1x24xf32>
    %486 = arith.mulf %481, %481 : vector<1x24xf32>
    %487 = arith.addf %485, %486 : vector<1x24xf32>
    %488 = math.sqrt %487 : vector<1x24xf32>
    %cst_210 = arith.constant 9.99999993E-9 : f32
    %489 = vector.broadcast %cst_210 : f32 to vector<1x24xf32>
    %490 = arith.addf %488, %489 : vector<1x24xf32>
    %491 = arith.divf %477, %490 : vector<1x24xf32>
    %492 = arith.divf %479, %490 : vector<1x24xf32>
    %493 = arith.divf %481, %490 : vector<1x24xf32>
    %494 = arith.mulf %491, %478 : vector<1x24xf32>
    %495 = arith.mulf %492, %480 : vector<1x24xf32>
    %496 = arith.addf %494, %495 : vector<1x24xf32>
    %497 = arith.mulf %493, %482 : vector<1x24xf32>
    %498 = arith.addf %496, %497 : vector<1x24xf32>
    %499 = arith.mulf %498, %491 : vector<1x24xf32>
    %500 = arith.subf %478, %499 : vector<1x24xf32>
    %501 = arith.mulf %498, %492 : vector<1x24xf32>
    %502 = arith.subf %480, %501 : vector<1x24xf32>
    %503 = arith.mulf %498, %493 : vector<1x24xf32>
    %504 = arith.subf %482, %503 : vector<1x24xf32>
    %505 = arith.mulf %500, %500 : vector<1x24xf32>
    %506 = arith.mulf %502, %502 : vector<1x24xf32>
    %507 = arith.addf %505, %506 : vector<1x24xf32>
    %508 = arith.mulf %504, %504 : vector<1x24xf32>
    %509 = arith.addf %507, %508 : vector<1x24xf32>
    %510 = math.sqrt %509 : vector<1x24xf32>
    %cst_211 = arith.constant 9.99999993E-9 : f32
    %511 = vector.broadcast %cst_211 : f32 to vector<1x24xf32>
    %512 = arith.addf %510, %511 : vector<1x24xf32>
    %513 = arith.divf %500, %512 : vector<1x24xf32>
    %514 = arith.divf %502, %512 : vector<1x24xf32>
    %515 = arith.divf %504, %512 : vector<1x24xf32>
    %516 = arith.mulf %492, %515 : vector<1x24xf32>
    %517 = arith.mulf %493, %514 : vector<1x24xf32>
    %518 = arith.subf %516, %517 : vector<1x24xf32>
    %519 = arith.mulf %493, %513 : vector<1x24xf32>
    %520 = arith.mulf %491, %515 : vector<1x24xf32>
    %521 = arith.subf %519, %520 : vector<1x24xf32>
    %522 = arith.mulf %491, %514 : vector<1x24xf32>
    %523 = arith.mulf %492, %513 : vector<1x24xf32>
    %524 = arith.subf %522, %523 : vector<1x24xf32>
    %525 = tpu.concatenate %491, %513, %518, %492, %514, %521, %493, %515, %524 in 1 : vector<1x24xf32>, vector<1x24xf32>, vector<1x24xf32>, vector<1x24xf32>, vector<1x24xf32>, vector<1x24xf32>, vector<1x24xf32>, vector<1x24xf32>, vector<1x24xf32> -> vector<1x216xf32>
    %c0_212 = arith.constant 0 : index
    %c0_213 = arith.constant 0 : index
    %c0_214 = arith.constant 0 : index
    %526 = vector.load %arg28[%c0_212, %c0_213, %c0_214] : memref<1x1x216xf32, #tpu.memory_space<vmem>>, vector<1x1x216xf32>
    %527 = vector.shape_cast %526 : vector<1x1x216xf32> to vector<1x216xf32>
    %528 = vector.shape_cast %525 : vector<1x216xf32> to vector<1x1x216xf32>
    tpu.vector_store %arg28[%c0_212, %c0_213, %c0_214], %528 {strides = array<i32>} : memref<1x1x216xf32, #tpu.memory_space<vmem>>, vector<1x1x216xf32>,
    %cst_215 = arith.constant 1.000000e+00 : f32
    %529 = vector.broadcast %cst_215 : f32 to vector<1x24xf32>
    %530 = arith.subf %491, %529 : vector<1x24xf32>
    %cst_216 = arith.constant 0.000000e+00 : f32
    %531 = vector.broadcast %cst_216 : f32 to vector<1x24xf32>
    %532 = arith.subf %513, %531 : vector<1x24xf32>
    %cst_217 = arith.constant 0.000000e+00 : f32
    %533 = vector.broadcast %cst_217 : f32 to vector<1x24xf32>
    %534 = arith.subf %518, %533 : vector<1x24xf32>
    %cst_218 = arith.constant 0.000000e+00 : f32
    %535 = vector.broadcast %cst_218 : f32 to vector<1x24xf32>
    %536 = arith.subf %492, %535 : vector<1x24xf32>
    %cst_219 = arith.constant 1.000000e+00 : f32
    %537 = vector.broadcast %cst_219 : f32 to vector<1x24xf32>
    %538 = arith.subf %514, %537 : vector<1x24xf32>
    %cst_220 = arith.constant 0.000000e+00 : f32
    %539 = vector.broadcast %cst_220 : f32 to vector<1x24xf32>
    %540 = arith.subf %521, %539 : vector<1x24xf32>
    %cst_221 = arith.constant 0.000000e+00 : f32
    %541 = vector.broadcast %cst_221 : f32 to vector<1x24xf32>
    %542 = arith.subf %493, %541 : vector<1x24xf32>
    %cst_222 = arith.constant 0.000000e+00 : f32
    %543 = vector.broadcast %cst_222 : f32 to vector<1x24xf32>
    %544 = arith.subf %515, %543 : vector<1x24xf32>
    %cst_223 = arith.constant 1.000000e+00 : f32
    %545 = vector.broadcast %cst_223 : f32 to vector<1x24xf32>
    %546 = arith.subf %524, %545 : vector<1x24xf32>
    %547 = tpu.concatenate %530, %532, %534, %536, %538, %540, %542, %544, %546 in 1 : vector<1x24xf32>, vector<1x24xf32>, vector<1x24xf32>, vector<1x24xf32>, vector<1x24xf32>, vector<1x24xf32>, vector<1x24xf32>, vector<1x24xf32>, vector<1x24xf32> -> vector<1x216xf32>
    %548 = tpu.concatenate %476, %547 in 1 : vector<1x10xf32>, vector<1x216xf32> -> vector<1x226xf32>
    %c0_224 = arith.constant 0 : index
    %c0_225 = arith.constant 0 : index
    %549 = vector.load %arg24[%c0_224, %c0_225] : memref<1x1296xf32, #tpu.memory_space<vmem>>, vector<1x1296xf32>
    %c0_226 = arith.constant 0 : index
    %c0_227 = arith.constant 0 : index
    %550 = vector.load %arg25[%c0_226, %c0_227] : memref<226x1296xf32, #tpu.memory_space<vmem>>, vector<226x1296xf32>
    %cst_228 = arith.constant dense<0.000000e+00> : vector<1x1296xf32>
    %551 = tpu.matmul %548, %550, %cst_228 {dimension_numbers = #tpu.dot_dimension_numbers<[1], [0], [0], [1], [0, 0, 1, 1], [], []>} : vector<1x226xf32>, vector<226x1296xf32>, vector<1x1296xf32> -> vector<1x1296xf32>
    %552 = arith.addf %549, %551 : vector<1x1296xf32>
    %c0_229 = arith.constant 0 : index
    %c0_230 = arith.constant 0 : index
    %c0_231 = arith.constant 0 : index
    %553 = vector.load %arg29[%c0_229, %c0_230, %c0_231] : memref<1x1x1296xf32, #tpu.memory_space<vmem>>, vector<1x1x1296xf32>
    %554 = vector.shape_cast %553 : vector<1x1x1296xf32> to vector<1x1296xf32>
    %555 = vector.shape_cast %552 : vector<1x1296xf32> to vector<1x1x1296xf32>
    tpu.vector_store %arg29[%c0_229, %c0_230, %c0_231], %555 {strides = array<i32>} : memref<1x1x1296xf32, #tpu.memory_space<vmem>>, vector<1x1x1296xf32>,
    %c0_232 = arith.constant 0 : index
    %c0_233 = arith.constant 0 : index
    %556 = vector.load %arg26[%c0_232, %c0_233] : memref<1296x72xf32, #tpu.memory_space<vmem>>, vector<1296x72xf32>
    %cst_234 = arith.constant dense<0.000000e+00> : vector<1x72xf32>
    %557 = tpu.matmul %552, %556, %cst_234 {dimension_numbers = #tpu.dot_dimension_numbers<[1], [0], [0], [1], [0, 0, 1, 1], [], []>} : vector<1x1296xf32>, vector<1296x72xf32>, vector<1x72xf32> -> vector<1x72xf32>
    %c0_235 = arith.constant 0 : index
    %c0_236 = arith.constant 0 : index
    %c0_237 = arith.constant 0 : index
    %558 = vector.load %arg30[%c0_235, %c0_236, %c0_237] : memref<1x1x72xf32, #tpu.memory_space<vmem>>, vector<1x1x72xf32>
    %559 = vector.shape_cast %558 : vector<1x1x72xf32> to vector<1x72xf32>
    %560 = vector.shape_cast %557 : vector<1x72xf32> to vector<1x1x72xf32>
    tpu.vector_store %arg30[%c0_235, %c0_236, %c0_237], %560 {strides = array<i32>} : memref<1x1x72xf32, #tpu.memory_space<vmem>>, vector<1x1x72xf32>,
    return
  }
  func.func @transform_0(%arg0: i32) -> (i32, i32, i32, i32) {
    %c0_i32 = arith.constant 0 : i32
    %c0_i32_0 = arith.constant 0 : i32
    %c0_i32_1 = arith.constant 0 : i32
    %c0_i32_2 = arith.constant 0 : i32
    return %arg0, %c0_i32, %c0_i32_0, %c0_i32_1 : i32, i32, i32, i32
  }
  func.func @transform_1(%arg0: i32) -> (i32, i32) {
    %c0_i32 = arith.constant 0 : i32
    %c0_i32_0 = arith.constant 0 : i32
    %c0_i32_1 = arith.constant 0 : i32
    return %c0_i32, %c0_i32_0 : i32, i32
  }
  func.func @transform_2(%arg0: i32) -> (i32, i32) {
    %c0_i32 = arith.constant 0 : i32
    %c0_i32_0 = arith.constant 0 : i32
    %c0_i32_1 = arith.constant 0 : i32
    return %c0_i32, %c0_i32_0 : i32, i32
  }
  func.func @transform_3(%arg0: i32) -> (i32, i32) {
    %c0_i32 = arith.constant 0 : i32
    %c0_i32_0 = arith.constant 0 : i32
    %c0_i32_1 = arith.constant 0 : i32
    return %c0_i32, %c0_i32_0 : i32, i32
  }
  func.func @transform_4(%arg0: i32) -> (i32, i32, i32) {
    %c0_i32 = arith.constant 0 : i32
    %c0_i32_0 = arith.constant 0 : i32
    %c0_i32_1 = arith.constant 0 : i32
    %c0_i32_2 = arith.constant 0 : i32
    return %c0_i32, %c0_i32_0, %c0_i32_1 : i32, i32, i32
  }
  func.func @transform_5(%arg0: i32) -> (i32, i32, i32) {
    %c0_i32 = arith.constant 0 : i32
    %c0_i32_0 = arith.constant 0 : i32
    %c0_i32_1 = arith.constant 0 : i32
    %c0_i32_2 = arith.constant 0 : i32
    return %c0_i32, %c0_i32_0, %c0_i32_1 : i32, i32, i32
  }
  func.func @transform_6(%arg0: i32) -> (i32, i32, i32) {
    %c0_i32 = arith.constant 0 : i32
    %c0_i32_0 = arith.constant 0 : i32
    %c0_i32_1 = arith.constant 0 : i32
    %c0_i32_2 = arith.constant 0 : i32
    return %c0_i32, %c0_i32_0, %c0_i32_1 : i32, i32, i32
  }
  func.func @transform_7(%arg0: i32) -> (i32, i32, i32) {
    %c0_i32 = arith.constant 0 : i32
    %c0_i32_0 = arith.constant 0 : i32
    %c0_i32_1 = arith.constant 0 : i32
    %c0_i32_2 = arith.constant 0 : i32
    return %c0_i32, %c0_i32_0, %c0_i32_1 : i32, i32, i32
  }
  func.func @transform_8(%arg0: i32) -> (i32, i32, i32) {
    %c0_i32 = arith.constant 0 : i32
    %c0_i32_0 = arith.constant 0 : i32
    %c0_i32_1 = arith.constant 0 : i32
    %c0_i32_2 = arith.constant 0 : i32
    return %c0_i32, %c0_i32_0, %c0_i32_1 : i32, i32, i32
  }
  func.func @transform_9(%arg0: i32) -> (i32, i32, i32) {
    %c0_i32 = arith.constant 0 : i32
    %c0_i32_0 = arith.constant 0 : i32
    %c0_i32_1 = arith.constant 0 : i32
    %c0_i32_2 = arith.constant 0 : i32
    return %c0_i32, %c0_i32_0, %c0_i32_1 : i32, i32, i32
  }
  func.func @transform_10(%arg0: i32) -> (i32, i32, i32) {
    %c0_i32 = arith.constant 0 : i32
    %c0_i32_0 = arith.constant 0 : i32
    %c0_i32_1 = arith.constant 0 : i32
    %c0_i32_2 = arith.constant 0 : i32
    return %c0_i32, %c0_i32_0, %c0_i32_1 : i32, i32, i32
  }
  func.func @transform_11(%arg0: i32) -> (i32, i32, i32) {
    %c0_i32 = arith.constant 0 : i32
    %c0_i32_0 = arith.constant 0 : i32
    %c0_i32_1 = arith.constant 0 : i32
    %c0_i32_2 = arith.constant 0 : i32
    return %c0_i32, %c0_i32_0, %c0_i32_1 : i32, i32, i32
  }
  func.func @transform_12(%arg0: i32) -> (i32, i32, i32) {
    %c0_i32 = arith.constant 0 : i32
    %c0_i32_0 = arith.constant 0 : i32
    %c0_i32_1 = arith.constant 0 : i32
    %c0_i32_2 = arith.constant 0 : i32
    return %c0_i32, %c0_i32_0, %c0_i32_1 : i32, i32, i32
  }
  func.func @transform_13(%arg0: i32) -> (i32, i32, i32) {
    %c0_i32 = arith.constant 0 : i32
    %c0_i32_0 = arith.constant 0 : i32
    %c0_i32_1 = arith.constant 0 : i32
    %c0_i32_2 = arith.constant 0 : i32
    return %c0_i32, %c0_i32_0, %c0_i32_1 : i32, i32, i32
  }
  func.func @transform_14(%arg0: i32) -> (i32, i32) {
    %c0_i32 = arith.constant 0 : i32
    %c0_i32_0 = arith.constant 0 : i32
    %c0_i32_1 = arith.constant 0 : i32
    return %c0_i32, %c0_i32_0 : i32, i32
  }
  func.func @transform_15(%arg0: i32) -> (i32, i32) {
    %c0_i32 = arith.constant 0 : i32
    %c0_i32_0 = arith.constant 0 : i32
    %c0_i32_1 = arith.constant 0 : i32
    return %c0_i32, %c0_i32_0 : i32, i32
  }
  func.func @transform_16(%arg0: i32) -> (i32, i32) {
    %c0_i32 = arith.constant 0 : i32
    %c0_i32_0 = arith.constant 0 : i32
    %c0_i32_1 = arith.constant 0 : i32
    return %c0_i32, %c0_i32_0 : i32, i32
  }
  func.func @transform_17(%arg0: i32) -> (i32, i32) {
    %c0_i32 = arith.constant 0 : i32
    %c0_i32_0 = arith.constant 0 : i32
    %c0_i32_1 = arith.constant 0 : i32
    return %c0_i32, %c0_i32_0 : i32, i32
  }
  func.func @transform_18(%arg0: i32) -> (i32, i32) {
    %c0_i32 = arith.constant 0 : i32
    %c0_i32_0 = arith.constant 0 : i32
    %c0_i32_1 = arith.constant 0 : i32
    return %c0_i32, %c0_i32_0 : i32, i32
  }
  func.func @transform_19(%arg0: i32) -> (i32, i32) {
    %c0_i32 = arith.constant 0 : i32
    %c0_i32_0 = arith.constant 0 : i32
    %c0_i32_1 = arith.constant 0 : i32
    return %c0_i32, %c0_i32_0 : i32, i32
  }
  func.func @transform_20(%arg0: i32) -> (i32, i32) {
    %c0_i32 = arith.constant 0 : i32
    %c0_i32_0 = arith.constant 0 : i32
    %c0_i32_1 = arith.constant 0 : i32
    return %c0_i32, %c0_i32_0 : i32, i32
  }
  func.func @transform_21(%arg0: i32) -> (i32, i32) {
    %c0_i32 = arith.constant 0 : i32
    %c0_i32_0 = arith.constant 0 : i32
    %c0_i32_1 = arith.constant 0 : i32
    return %c0_i32, %c0_i32_0 : i32, i32
  }
  func.func @transform_22(%arg0: i32) -> (i32, i32) {
    %c0_i32 = arith.constant 0 : i32
    %c0_i32_0 = arith.constant 0 : i32
    %c0_i32_1 = arith.constant 0 : i32
    return %c0_i32, %c0_i32_0 : i32, i32
  }
  func.func @transform_23(%arg0: i32) -> (i32, i32) {
    %c0_i32 = arith.constant 0 : i32
    %c0_i32_0 = arith.constant 0 : i32
    %c0_i32_1 = arith.constant 0 : i32
    return %c0_i32, %c0_i32_0 : i32, i32
  }
  func.func @transform_24(%arg0: i32) -> (i32, i32) {
    %c0_i32 = arith.constant 0 : i32
    %c0_i32_0 = arith.constant 0 : i32
    %c0_i32_1 = arith.constant 0 : i32
    return %c0_i32, %c0_i32_0 : i32, i32
  }
  func.func @transform_25(%arg0: i32) -> (i32, i32) {
    %c0_i32 = arith.constant 0 : i32
    %c0_i32_0 = arith.constant 0 : i32
    %c0_i32_1 = arith.constant 0 : i32
    return %c0_i32, %c0_i32_0 : i32, i32
  }
  func.func @transform_26(%arg0: i32) -> (i32, i32, i32) {
    %c0_i32 = arith.constant 0 : i32
    %c0_i32_0 = arith.constant 0 : i32
    %c0_i32_1 = arith.constant 0 : i32
    return %arg0, %c0_i32, %c0_i32_0 : i32, i32, i32
  }
  func.func @transform_27(%arg0: i32) -> (i32, i32, i32) {
    %c0_i32 = arith.constant 0 : i32
    %c0_i32_0 = arith.constant 0 : i32
    %c0_i32_1 = arith.constant 0 : i32
    return %arg0, %c0_i32, %c0_i32_0 : i32, i32, i32
  }
  func.func @transform_28(%arg0: i32) -> (i32, i32, i32) {
    %c0_i32 = arith.constant 0 : i32
    %c0_i32_0 = arith.constant 0 : i32
    %c0_i32_1 = arith.constant 0 : i32
    return %arg0, %c0_i32, %c0_i32_0 : i32, i32, i32
  }
  func.func @transform_29(%arg0: i32) -> (i32, i32, i32) {
    %c0_i32 = arith.constant 0 : i32
    %c0_i32_0 = arith.constant 0 : i32
    %c0_i32_1 = arith.constant 0 : i32
    return %arg0, %c0_i32, %c0_i32_0 : i32, i32, i32
  }
}

</mosaic_0001>

<bundles_post_ra>
// kernel: maed_forward.1
= control target key start
LH: loop header
LB: loop body
LE: loop exit
PB: predicated region body
PF: predicated region fallthrough
CT: control target
= control target key end

     0   :  { %s9480_s6 = smov 1   ;;  %s9481_s10 = smov 2   ;;  %s11415_s0 = inlined_call_operand.smem [shape: u32[30], index: -1, kind: input, shape index: {}] }
   0x1   :  { %s9537_s5 = sld [smem:[%s11415_s0]]   ;;  %s9482_s14 = smov 3  }
   0x2   :  { %s9542_s9 = sld [smem:[%s11415_s0 + %s9480_s6]]   ;;  %s9483_s18 = smov 4  }
   0x3   :  { %s9547_s13 = sld [smem:[%s11415_s0 + %s9481_s10]]   ;;  %s9484_s22 = smov 5  }
   0x4   :  { %s9552_s17 = sld [smem:[%s11415_s0 + %s9482_s14]]   ;;  %s9485_s26 = smov 6  }
   0x5   :  { %s9557_s21 = sld [smem:[%s11415_s0 + %s9483_s18]]   ;;  %s9486_s30 = smov 7  }
   0x6   :  { %s9562_s25 = sld [smem:[%s11415_s0 + %s9484_s22]]   ;;  %s9487_s4 = smov 8  }
   0x7   :  { %s9567_s29 = sld [smem:[%s11415_s0 + %s9485_s26]]   ;;  %s9488_s10 = smov 9  }
   0x8   :  { %s9572_s3 = sld [smem:[%s11415_s0 + %s9486_s30]]   ;;  %s9489_s15 = smov 10  }
   0x9   :  { %s9577_s8 = sld [smem:[%s11415_s0 + %s9487_s4]]   ;;  %s9490_s20 = smov 11  }
   0xa   :  { %s9582_s14 = sld [smem:[%s11415_s0 + %s9488_s10]]   ;;  %s9491_s26 = smov 12  }
   0xb   :  { %s9587_s19 = sld [smem:[%s11415_s0 + %s9489_s15]]   ;;  %s9492_s1 = smov 13  }
   0xc   :  { %s9592_s24 = sld [smem:[%s11415_s0 + %s9490_s20]]   ;;  %s9493_s7 = smov 14  }
   0xd   :  { %s9597_s30 = sld [smem:[%s11415_s0 + %s9491_s26]]   ;;  %s9494_s15 = smov 15  }
   0xe   :  { %s9602_s6 = sld [smem:[%s11415_s0 + %s9492_s1]]   ;;  %s9495_s22 = smov 16  }
   0xf   :  { %s9607_s12 = sld [smem:[%s11415_s0 + %s9493_s7]]   ;;  %s9496_s28 = smov 17  }
  0x10   :  { %s9612_s20 = sld [smem:[%s11415_s0 + %s9494_s15]]   ;;  %s9497_s7 = smov 18  }
  0x11   :  { %s9617_s27 = sld [smem:[%s11415_s0 + %s9495_s22]]   ;;  %s9498_s15 = smov 19  }
  0x12   :  { %s9622_s4 = sld [smem:[%s11415_s0 + %s9496_s28]]   ;;  %s9499_s22 = smov 20  }
  0x13   :  { %s9500_s28 = smov 21  }
  0x15   :  { %11427 = sst [smem:[#allocation2_spill]] %s9607_s12 }
  0x16   :  { %11428 = sst [smem:[#allocation3_spill]] %s9612_s20 }
  0x17   :  { %11429 = sst [smem:[#allocation4_spill]] %s9617_s27 }
  0x18   :  { %11430 = sst [smem:[#allocation5_spill]] %s9622_s4 }
  0x19   :  { %s9627_s12 = sld [smem:[%s11415_s0 + %s9497_s7]]   ;;  %s9501_s7 = smov 22  }
  0x1a   :  { %s9632_s20 = sld [smem:[%s11415_s0 + %s9498_s15]]   ;;  %s9502_s15 = smov 23  }
  0x1b   :  { %s9637_s27 = sld [smem:[%s11415_s0 + %s9499_s22]]   ;;  %s9503_s22 = smov 24  }
  0x1c   :  { %s9642_s4 = sld [smem:[%s11415_s0 + %s9500_s28]]   ;;  %s9504_s28 = smov 25  }
  0x1f   :  { %11431 = sst [smem:[#allocation6_spill]] %s9627_s12 }
  0x20   :  { %11432 = sst [smem:[#allocation7_spill]] %s9632_s20 }
  0x21   :  { %11433 = sst [smem:[#allocation8_spill]] %s9637_s27 }
  0x22   :  { %11434 = sst [smem:[#allocation9_spill]] %s9642_s4 }
  0x23   :  { %s9647_s12 = sld [smem:[%s11415_s0 + %s9501_s7]]   ;;  %s9505_s7 = smov 26  }
  0x24   :  { %s9652_s20 = sld [smem:[%s11415_s0 + %s9502_s15]]   ;;  %s9506_s15 = smov 27  }
  0x25   :  { %s9657_s27 = sld [smem:[%s11415_s0 + %s9503_s22]]   ;;  %s9507_s22 = smov 28  }
  0x26   :  { %s9662_s4 = sld [smem:[%s11415_s0 + %s9504_s28]]   ;;  %s9508_s28 = smov 29  }
  0x29   :  { %11435 = sst [smem:[#allocation10_spill]] %s9647_s12 }
  0x2a   :  { %11436 = sst [smem:[#allocation11_spill]] %s9652_s20 }
  0x2b   :  { %11437 = sst [smem:[#allocation12_spill]] %s9657_s27 }
  0x2c   :  { %11438 = sst [smem:[#allocation13_spill]] %s9662_s4 }
  0x2d   :  { %s9667_s12 = sld [smem:[%s11415_s0 + %s9505_s7]]   ;;  %s9684_s7 = smov 0  }
  0x2e   :  { %s9672_s20 = sld [smem:[%s11415_s0 + %s9506_s15]]  }
  0x2f   :  { %s9677_s27 = sld [smem:[%s11415_s0 + %s9507_s22]]  }
  0x30   :  { %s9682_s4 = sld [smem:[%s11415_s0 + %s9508_s28]]  }
  0x31 LB: > { %s7383_s10 = sadd.s32 4294967295, %s9478_s7   ;;  %p7387_p0 = scmp.ge.s32.totalorder %s9478_s7, 1  ;;  %s9478_s7 = sphi %s9684_s7, %s70_s7  }
  0x32   : > { %p824_p1 = scmp.lt.s32.totalorder %s9478_s7, 3 }
  0x34   : > { %p825_p2 = pnand %p7387_p0, %p824_p1 }
  0x35   : > { %v9204_v0 = vld [vmem:[%s9552_s17] sm:$0xff] (!%p825_p2)   ;;  %v9509_v1 = vmov (!%p825_p2), 0   ;;  %p910_p3 = scmp.lt.s32.totalorder (!%p825_p2), %s7383_s10, 1  ;;  %v9205_v2 = vld [vmem:[%s9552_s17 + $0x8] sm:$0xff] (!%p825_p2)   ;;  %v9206_v3 = vld [vmem:[%s9552_s17 + $0x10] sm:$0xff] (!%p825_p2)   ;;  %vm1046_vm0 = vcmask (!%p825_p2), 523264   ;;  %v1148_v62 = vlaneseq (!%p825_p2) }
  0x36   : > { %828 = sbr.rel (%p825_p2) target bundleno = 10836 (0x2a54), region = 124  ;;  %1053 = vmatprep.subr.bf16.mxu0 (!%p825_p2), %v9509_v1  ;;  %1262 = vmatprep.mubr.bf16.mxu1 (!%p825_p2), %v9509_v1  ;;  %v9207_v4 = vld [vmem:[%s9552_s17 + $0x18] sm:$0xff] (!%p825_p2)   ;;  %v9208_v5 = vld [vmem:[%s9552_s17 + $0x20] sm:$0xff] (!%p825_p2)   ;;  %v9209_v7 = vld [vmem:[%s9552_s17 + $0x28] sm:$0xff] (!%p825_p2)   ;;  %s11424_s15 = smov (!%p825_p2), 64   ;;  %vm9512_vm1 = vmmov (!%p825_p2), 0  }
  0x37   : > { %1054 = vmatpush1.bf16.msra.mxu0 (!%p825_p2), %v9204_v0  ;;  %v9210_v8 = vld [vmem:[%s9552_s17 + $0x30] sm:$0xff] (!%p825_p2)   ;;  %v9211_v9 = vld [vmem:[%s9552_s17 + $0x38] sm:$0xff] (!%p825_p2)   ;;  %v9212_v10 = vld [vmem:[%s9552_s17 + $0x40] sm:$0xff] (!%p825_p2)   ;;  %vm1290_vm2 = vcmask (!%p825_p2), 130048   ;;  %vm1395_vm4 = vcmask (!%p825_p2), 195584   ;;  %s9514_s16 = smov (!%p825_p2), 48  }
  0x38   : > { %1055 = vmatprep.subr.bf16.mxu0 (!%p825_p2), %v9509_v1  ;;  %v9213_v11 = vld [vmem:[%s9552_s17 + $0x48] sm:$0xff] (!%p825_p2)   ;;  %v9214_v12 = vld [vmem:[%s9552_s17 + $0x50] sm:$0xff] (!%p825_p2)   ;;  %v9215_v13 = vld [vmem:[%s9552_s17 + $0x58] sm:$0xff] (!%p825_p2)   ;;  %s11423_s18 = smov (!%p825_p2), 112   ;;  %s9516_s22 = smov (!%p825_p2), 32   ;;  %vm2283_vm5 = vcmask (!%p825_p2), 261120  }
  0x39   : > { %v1101_v18 = vld [vmem:[%s9542_s9] sm:$0xff] (!%p825_p2)  ;;  %v1102_v20 = vld [vmem:[%s9542_s9 + $0x8] sm:$0xff] (!%p825_p2)  ;;  %v1103_v27 = vld [vmem:[%s9542_s9 + $0x10] sm:$0xff] (!%p825_p2)  ;;  %s9517_s23 = smov (!%p825_p2), 16   ;;  %s9518_s26 = smov (!%p825_p2), 96   ;;  %vm2287_vm6 = vcmask (!%p825_p2), 392192  }
  0x3a   : > { %v9221_v50 = vld [vmem:[%s9562_s25 + $0x4] ss:$8 sps:$4 sm:$0xff] (!%p825_p2)   ;;  %v9223_v51 = vld [vmem:[%s9562_s25] ss:$8 sps:$4 sm:$0xff] (!%p825_p2)   ;;  %v9224_v52 = vld [vmem:[%s9562_s25 + $0x14] ss:$8 sps:$4 sm:$0xff] (!%p825_p2)  }
  0x3b   : > { %1056 = vmatpush1.bf16.msra.mxu0 (!%p825_p2), %v9205_v2  ;;  %1230 = vmatprep.subr.bf16.mxu1 (!%p825_p2), %v9221_v50  ;;  %v9226_v53 = vld [vmem:[%s9562_s25 + $0x10] ss:$8 sps:$4 sm:$0xff] (!%p825_p2)   ;;  %v9227_v54 = vld [vmem:[%s9562_s25 + $0x24] ss:$8 sps:$4 sm:$0xff] (!%p825_p2)   ;;  %v9229_v55 = vld [vmem:[%s9562_s25 + $0x20] ss:$8 sps:$4 sm:$0xff] (!%p825_p2)  }
  0x3c   : > { %1057 = vmatprep.subr.bf16.mxu0 (!%p825_p2), %v9509_v1  ;;  %1231 = vmatpush1.bf16.msra.mxu1 (!%p825_p2), %v9223_v51  ;;  %v9230_v56 = vld [vmem:[%s9562_s25 + $0x34] ss:$8 sps:$4 sm:$0xff] (!%p825_p2)   ;;  %v9232_v57 = vld [vmem:[%s9562_s25 + $0x30] ss:$8 sps:$4 sm:$0xff] (!%p825_p2)   ;;  %vm9794_vm3 = vmpackc.low (!%p825_p2), %vm1290_vm2, %vm1290_vm2  ;;  %s9519_s28 = smov (!%p825_p2), 80   ;;  %s11441_s1 = sld [smem:[#allocation3_spill]] (!%p825_p2) }
  0x3d   : > { %s11459_s10 = smov (!%p910_p3, %s7383_s10), 1  ;;  %1232 = vmatprep.subr.bf16.mxu1 %v9224_v52  ;;  %vm4501_vm7 = vcmask 516096   ;;  %s11442_s2 = sld [smem:[#allocation2_spill]]  ;;  %vm4632_vm8 = vcmask 236544   ;;  %vm4635_vm9 = vcmask 1044480   ;;  %vm9520_vm10 = vmmov 1  }
  0x3e   : > { %s9045_s0 = smul.u32 24, %s11459_s10  ;;  %vm10541_vm11 = vmpackc.low %vm4635_vm9, %vm9520_vm10  ;;  %vm5403_vm12 = vcmp.lt.s32.totalorder %v1148_v62, 157  ;;  %vm5449_vm15 = vcmask 850944   ;;  %vm5552_vm9 = vcmask 64512   ;;  %vm5530_vm10 = vcmask 457728  }
  0x3f   : > { %1058 = vmatpush1.bf16.msra.mxu0 %v9206_v3  ;;  %v9753_v3 = vshrl.u32 %v1148_v62, 7 }
  0x40   : > { %s914_s11 = scalar_lea.vmem %s9537_s5, %s9045_s0  ;;  %1059 = vmatprep.subr.bf16.mxu0 %v9509_v1  ;;  %1233 = vmatpush1.bf16.msra.mxu1 %v9226_v53  ;;  %s11443_s0 = sld [smem:[#allocation4_spill]] }
  0x41   : > { %v9218_v6 = vld [vmem:[%s914_s11 + $0x4] ss:$8 sps:$4 sm:$0xff]   ;;  %v934_v14 = vld [vmem:[%s914_s11 + $0x10] sm:$0xff]  ;;  %v9216_v15 = vld [vmem:[%s914_s11] ss:$8 sps:$4 sm:$0xff]   ;;  %1234 = vmatprep.subr.bf16.mxu1 %v9227_v54  ;;  %s11444_s11 = sld [smem:[#allocation10_spill]] }
  0x42   : > { %7407 = vmatprep.mubr.msk.bf16.mxu0 %vm1046_vm0, %v9218_v6  ;;  %v7394_v16 = vcombine.high %v934_v14, %v934_v14  ;;  %v7393_v17 = vcombine.low %v934_v14, %v934_v14  ;;  %v9756_v6 = vsub.s32 0, %v9753_v3 }
  0x43   : > { %1060 = vmatpush1.bf16.msra.mxu0 %v9207_v4 }
  0x44   : > { %1061 = vmatprep.subr.bf16.mxu0 %v9509_v1  ;;  %1235 = vmatpush1.bf16.msra.mxu1 %v9229_v55 }
  0x45   : > { %1236 = vmatprep.subr.bf16.mxu1 %v9230_v56 }
  0x47   : > { %1062 = vmatpush1.bf16.msra.mxu0 %v9208_v5 }
  0x48   : > { %1063 = vmatprep.subr.bf16.mxu0 %v9509_v1  ;;  %1237 = vmatpush1.bf16.msra.mxu1 %v9232_v57  ;;  %v9821_v57 = vld [vmem:[%s9547_s13] ss:$0 sm:$0xff] }
  0x4b   : > { %1064 = vmatpush1.bf16.msra.mxu0 %v9209_v7  ;;  %v1107_v7 = vld [vmem:[%s9557_s21] sm:$0x3] }
  0x4c   : > { %1065 = vmatprep.subr.bf16.mxu0 %v9509_v1 }
  0x4f   : > { %1066 = vmatpush1.bf16.msra.mxu0 %v9210_v8 }
  0x50   : > { %1067 = vmatprep.subr.bf16.mxu0 %v9509_v1 }
  0x53   : > { %1068 = vmatpush1.bf16.msra.mxu0 %v9211_v9 }
  0x54   : > { %1069 = vmatprep.subr.bf16.mxu0 %v9509_v1 }
  0x57   : > { %1070 = vmatpush1.bf16.msra.mxu0 %v9212_v10  ;;  %v1151_v10 = vrot.slane %v1107_v7, %v9756_v6 }
  0x58   : > { %1071 = vmatprep.subr.bf16.mxu0 %v9509_v1 }
  0x5b   : > { %1072 = vmatpush1.bf16.msra.mxu0 %v9213_v11  ;;  %v9761_v11 = vsub.s32 1, %v9753_v3 }
  0x5c   : > { %1073 = vmatprep.subr.bf16.mxu0 %v9509_v1 }
  0x5f   : > { %1074 = vmatpush1.bf16.msra.mxu0 %v9214_v12 }
  0x60   : > { %1075 = vmatprep.subr.bf16.mxu0 %v9509_v1 }
  0x63   : > { %1076 = vmatpush1.bf16.msra.mxu0 %v9215_v13 }
  0x66   : > { %1086 = vmatmul.mubr.bf16.vlgmr.msra.gmra.mrb[0].mxu0 %v9216_v15  ;;  %v1158_v15 = vrot.slane %v1107_v7, %v9761_v11 }
  0x67   : > { %7408 = vmatprep.mubr.msk.bf16.mxu0 %vm1046_vm0, %v7394_v16 }
  0x6e   : > { %1094 = vmatmul.mubr.bf16.gmra.mrb[4].mxu0 %v7393_v17 }
 0x139   : > { %v1087_v19 = vpop.f32.mrb[0].mxu0 }
 0x13a   : > { %v9725_v21 = vadd.f32 %v1101_v18, %v1087_v19  ;;  %v1089_v22 = vpop.f32.mrb[1].mxu0 }
 0x13b   : > { %v1090_v23 = vpop.f32.mrb[2].mxu0 }
 0x13c   : > { %v9727_v24 = vadd.f32 %v1102_v20, %v1090_v23  ;;  %v1092_v25 = vpop.f32.mrb[3].mxu0  ;;  %v1108_v26 = vsel %vm1046_vm0, %v9725_v21, 0.0 }
 0x13d   : > { %1109 = vadd.xlane.f32.xlu0 %v1108_v26 }
 0x13e   : > { %v1111_v28 = vsel %vm1046_vm0, %v9727_v24, 0.0 }
 0x141   : > { %1112 = vadd.xlane.f32.xlu0 %v1111_v28  ;;  %v1095_v29 = vpop.f32.mrb[4].mxu0  ;;  %v9510_v28 = vmov 0.0|0.0  }
 0x142   : > { %v9734_v30 = vadd.f32 %v1103_v27, %v1095_v29  ;;  %v1097_v31 = vpop.f32.mrb[5].mxu0  ;;  %v1172_v27 = vld [vmem:[%s9567_s29] sm:$0x3]  ;;  %8357 = vmatprep.subr.bf16.mxu1 %v9510_v28  ;;  %8375 = vmatprep.subr.bf16.mxu0 %v9510_v28 }
 0x143   : > { %v1098_v32 = vpop.f32.mrb[6].mxu0  ;;  %v1177_v29 = vrot.slane %v1172_v27, %v9756_v6 }
 0x144   : > { %v1114_v33 = vsel %vm1046_vm0, %v9734_v30, 0.0  ;;  %v1099_v34 = vpop.f32.mrb[7].mxu0  ;;  %v1181_v32 = vrot.slane %v1172_v27, %v9761_v11 }
 0x145   : > { %1115 = vadd.xlane.f32.xlu1 %v1114_v33 }
 0x1ca   : > { %v1110_v35 = vpop.xlane.xlu0 %1109 }
 0x1cb   : > { %v1118_v36 = vmul.f32 0.015625, %v1110_v35 }
 0x1cd   : > { %v1121_v37 = vsub.f32 %v9725_v21, %v1118_v36 }
 0x1ce   : > { %v1113_v38 = vpop.xlane.xlu0 %1112 }
 0x1cf   : > { %v1119_v39 = vmul.f32 0.015625, %v1113_v38  ;;  %v1124_v40 = vmul.f32 %v1121_v37, %v1121_v37 }
 0x1d1   : > { %v1122_v41 = vsub.f32 %v9727_v24, %v1119_v39  ;;  %v1127_v42 = vsel %vm1046_vm0, %v1124_v40, 0.0 }
 0x1d2   : > { %1128 = vadd.xlane.f32.xlu1 %v1127_v42  ;;  %v1116_v43 = vpop.xlane.xlu1 %1115 }
 0x1d3   : > { %v1120_v44 = vmul.f32 0.015625, %v1116_v43  ;;  %v1125_v45 = vmul.f32 %v1122_v41, %v1122_v41  ;;  %v9513_v43 = vmov 0.0  }
 0x1d4   : > { %8115 = vmatprep.mubr.msk.f32.mxu0 %vm9512_vm1, %v9513_v43 }
 0x1d5   : > { %v1123_v46 = vsub.f32 %v9734_v30, %v1120_v44  ;;  %v1130_v47 = vsel %vm1046_vm0, %v1125_v45, 0.0 }
 0x1d6   : > { %1131 = vadd.xlane.f32.xlu0 %v1130_v47 }
 0x1d7   : > { %v1126_v48 = vmul.f32 %v1123_v46, %v1123_v46 }
 0x1d9   : > { %v1133_v49 = vsel %vm1046_vm0, %v1126_v48, 0.0 }
 0x1da   : > { %1134 = vadd.xlane.f32.xlu1 %v1133_v49 }
 0x25f   : > { %v1129_v58 = vpop.xlane.xlu1 %1128 }
 0x260   : > { %v1136_v59 = vmul.f32 0.015625, %v1129_v58 }
 0x262   : > { %v1139_v60 = vadd.f32 1e-06, %v1136_v59 }
 0x263   : > { %v1132_v61 = vpop.xlane.xlu0 %1131 }
 0x264   : > { %9309 = vrsqrt.f32 %v1139_v60  ;;  %v1137_v63 = vmul.f32 0.015625, %v1132_v61 }
 0x266   : > { %v1140_v0 = vadd.f32 1e-06, %v1137_v63 }
 0x267   : > { %v1135_v2 = vpop.xlane.xlu1 %1134 }
 0x268   : > { %9311 = vrsqrt.f32 %v1140_v0  ;;  %v1138_v4 = vmul.f32 0.015625, %v1135_v2 }
 0x26a   : > { %v1141_v5 = vadd.f32 1e-06, %v1138_v4 }
 0x26c   : > { %9313 = vrsqrt.f32 %v1141_v5 }
 0x26e   : > { %v9310_v8 = vpop.eup %9309 }
 0x26f   : > { %v1145_v9 = vmul.f32 %v9310_v8, %v1121_v37 }
 0x271   : > { %v1152_v14 = vmul.f32 %v1151_v10, %v1145_v9 }
 0x272   : > { %v9312_v12 = vpop.eup %9311 }
 0x273   : > { %v1146_v13 = vmul.f32 %v9312_v12, %v1122_v41  ;;  %v1159_v18 = vadd.f32 %v1158_v15, %v1152_v14 }
 0x275   : > { %v1153_v16 = vmul.f32 %v1151_v10, %v1146_v13 }
 0x276   : > { %v9314_v17 = vpop.eup %9313 }
 0x277   : > { %v1160_v19 = vadd.f32 %v1158_v15, %v1153_v16  ;;  %v1147_v20 = vmul.f32 %v9314_v17, %v1123_v46 }
 0x279   : > { %v1162_v22 = vpack.c.bf16 %v1160_v19, %v1159_v18  ;;  %v1154_v23 = vmul.f32 %v1151_v10, %v1147_v20 }
 0x27b   : > { %7417 = vmatmul.mubr.msk.bf16.vlgmr.msra.gmra.mrb[0].mxu1 %vm1046_vm0, %v1162_v22  ;;  %v1161_v25 = vadd.f32 %v1158_v15, %v1154_v23 }
 0x27c   : > { %1272 = vmatprep.mubr.bf16.mxu1 %v9509_v1 }
 0x27d   : > { %v1163_v26 = vpack.c.bf16 %v1161_v25, %v1161_v25 }
 0x283   : > { %7418 = vmatmul.mubr.msk.bf16.gmra.mrb[4].mxu1 %vm1046_vm0, %v1163_v26 }
 0x284   : > { %8040 = vmatprep.mubr.msk.f32.mxu1 %vm9512_vm1, %v9513_v43 }
 0x34e   : > { %v1264_v31 = vpop.f32.mrb[0].mxu1 }
 0x34f   : > { %v1266_v33 = vpop.f32.mrb[1].mxu1  ;;  %v9772_v35 = vadd.f32 %v1264_v31, %v1177_v29 }
 0x350   : > { %v1268_v34 = vpop.f32.mrb[2].mxu1  ;;  %v1267_v38 = vadd.f32 %v1266_v33, %v1181_v32 }
 0x351   : > { %v9774_v36 = vadd.f32 %v1268_v34, %v1177_v29  ;;  %v1270_v37 = vpop.f32.mrb[3].mxu1 }
 0x352   : > { %v1271_v39 = vadd.f32 %v1270_v37, %v1181_v32 }
 0x353   : > { %v9778_v40 = vpack.i.bf16 %v9774_v36, %v9772_v35 }
 0x354   : > { %v8362_v41 = vpack.c.bf16 %v1271_v39, %v1267_v38  ;;  %v9780_v42 = vpack.i.bf16 %v1271_v39, %v1267_v38 }
 0x355   : > { %9105 = vrot.lane.b32.xlu0 %v9778_v40, %s11424_s15 }
 0x356   : > { %v1274_v44 = vpop.f32.mrb[4].mxu1 }
 0x357   : > { %v9788_v45 = vadd.f32 %v1274_v44, %v1177_v29  ;;  %v1276_v46 = vpop.f32.mrb[5].mxu1 }
 0x358   : > { %v1278_v47 = vpop.f32.mrb[6].mxu1  ;;  %v9808_v55 = vadd.f32 %v1276_v46, %v1181_v32 }
 0x359   : > { %v1279_v48 = vpop.f32.mrb[7].mxu1  ;;  %1288 = vrot.lane.b32.xlu1 %v9788_v45, %s11424_s15 }
 0x3c7   : > { %v9106_v49 = vpop.permute.xlu0 %9105 }
 0x3c8   : > { %v9108_v50 = vunpack.i.h.bf16 %v9106_v49  ;;  %v9107_v51 = vunpack.i.l.bf16 %v9106_v49 }
 0x3ca   : > { %v8358_v53 = vpack.c.bf16 %v9108_v50, %v9107_v51 }
 0x3cb   : > { %v1289_v54 = vpop.permute.xlu1 %1288 }
 0x3cc   : > { %8360 = vmatpush3.bf16.xpose.msk.msra.mxu1 %vm9794_vm3, %v8358_v53 }
 0x3cd   : > { %8038 = vmatprep.subr.mxu1 %v9513_v43 }
 0x3d4   : > { %8039 = vmatpush3.xpose.msk.msra.mxu1 %vm1290_vm2, %v1289_v54 }
 0x3d5   : > { %8361 = vmatprep.subr.bf16.mxu1 %v9510_v28 }
 0x3d7   : > { %8041 = vmatmul.mubr.msk.f32.vlgmr.msra.gmra.mrb[8].mxu1 %vm1290_vm2, %v9772_v35 }
 0x3d8   : > { %8363 = vmatpush3.bf16.msra.mxu1 %v8362_v41  ;;  %8043 = vmatprep.mubr.msk.f32.mxu1 %vm9512_vm1, %v9513_v43 }
 0x3d9   : > { %8053 = vmatprep.subr.mxu1 %v9513_v43 }
 0x3db   : > { %8044 = vmatmul.mubr.msk.f32.gmra.mrb[10].mxu1 %vm1290_vm2, %v9774_v36 }
 0x3dc   : > { %8054 = vmatpush3.msra.mxu1 %v9808_v55  ;;  %8046 = vmatprep.mubr.msk.f32.mxu1 %vm9512_vm1, %v9513_v43 }
 0x3dd   : > { %8364 = vmatprep.subr.bf16.mxu1 %v9510_v28 }
 0x3df   : > { %8047 = vmatmul.mubr.msk.f32.gmra.mrb[12].mxu1 %vm1290_vm2, %v9788_v45 }
 0x3e0   : > { %8055 = vmatprep.mubr.msk.f32.mxu1 %vm9512_vm1, %v9513_v43 }
 0x4aa   : > { %v1369_v56 = vpop.f32.mrb[8].mxu1 }
 0x4ab   : > { %v1383_v58 = vmul.f32 0.25, %v1369_v56  ;;  %v8042_v59 = vpop.f32.mrb[9].mxu1 }
 0x4ad   : > { %v1392_v60 = vadd.f32 %v9821_v57, %v1383_v58 }
 0x4ae   : > { %v1374_v61 = vpop.f32.mrb[10].mxu1 }
 0x4af   : > { %v1384_v63 = vmul.f32 0.25, %v1374_v61  ;;  %v8045_v0 = vpop.f32.mrb[11].mxu1  ;;  %v1396_v2 = vsel %vm1395_vm4, %v1392_v60, -inf }
 0x4b0   : > { %1397 = vmax.xlane.f32.xlu1 %v1396_v2 }
 0x4b1   : > { %v1393_v4 = vadd.f32 %v9821_v57, %v1384_v63 }
 0x4b2   : > { %v1379_v5 = vpop.f32.mrb[12].mxu1 }
 0x4b3   : > { %v1385_v7 = vmul.f32 0.25, %v1379_v5  ;;  %v8048_v8 = vpop.f32.mrb[13].mxu1  ;;  %v1399_v9 = vsel %vm1395_vm4, %v1393_v4, -inf }
 0x4b4   : > { %1400 = vmax.xlane.f32.xlu0 %v1399_v9 }
 0x4b5   : > { %v1394_v10 = vadd.f32 %v9821_v57, %v1385_v7 }
 0x4b7   : > { %v1402_v12 = vsel %vm1395_vm4, %v1394_v10, -inf }
 0x4b8   : > { %1403 = vmax.xlane.f32.xlu0 %v1402_v12 }
 0x53d   : > { %v1398_v13 = vpop.xlane.xlu1 %1397 }
 0x53e   : > { %v1405_v14 = vsub.f32 %v1392_v60, %v1398_v13 }
 0x540   : > { %v1408_v15 = vmul.f32 1.442695, %v1405_v14 }
 0x541   : > { %v1401_v16 = vpop.xlane.xlu0 %1400 }
 0x542   : > { %9315 = vpow2.f32 %v1408_v15  ;;  %v1406_v17 = vsub.f32 %v1393_v4, %v1401_v16 }
 0x544   : > { %v1410_v18 = vmul.f32 1.442695, %v1406_v17 }
 0x545   : > { %v1404_v25 = vpop.xlane.xlu0 %1403 }
 0x546   : > { %9317 = vpow2.f32 %v1410_v18  ;;  %v1407_v26 = vsub.f32 %v1394_v10, %v1404_v25 }
 0x548   : > { %v1412_v27 = vmul.f32 1.442695, %v1407_v26 }
 0x54a   : > { %9319 = vpow2.f32 %v1412_v27 }
 0x54c   : > { %v9316_v19 = vpop.eup %9315 }
 0x54d   : > { %v1414_v20 = vsel %vm1395_vm4, %v9316_v19, 0.0 }
 0x54e   : > { %1415 = vadd.xlane.f32.xlu1 %v1414_v20 }
 0x550   : > { %v9318_v22 = vpop.eup %9317 }
 0x551   : > { %v1417_v23 = vsel %vm1395_vm4, %v9318_v22, 0.0 }
 0x552   : > { %1418 = vadd.xlane.f32.xlu0 %v1417_v23 }
 0x554   : > { %v9320_v29 = vpop.eup %9319 }
 0x555   : > { %v1420_v31 = vsel %vm1395_vm4, %v9320_v29, 0.0 }
 0x55f   : > { %1528 = vrot.lane.b32.xlu1 %v9788_v45, %s9514_s16 }
 0x563   : > { %1518 = vrot.lane.b32.xlu1 %v9772_v35, %s11423_s18 }
 0x568   : > { %9110 = vrot.lane.b32.xlu0 %v9778_v40, %s9514_s16 }
 0x56c   : > { %1522 = vrot.lane.b32.xlu0 %v9788_v45, %s11423_s18 }
 0x587   : > { %1421 = vadd.xlane.f32.xlu1 %v1420_v31 }
 0x598   : > { %1520 = vrot.lane.b32.xlu1 %v9774_v36, %s11423_s18 }
 0x5db   : > { %v1416_v32 = vpop.xlane.xlu1 %1415 }
 0x5dc   : > { %9321 = vrcp.f32 %v1416_v32 }
 0x5df   : > { %v1419_v33 = vpop.xlane.xlu0 %1418  ;;  %v1529_v48 = vpop.permute.xlu1 %1528 }
 0x5e0   : > { %9323 = vrcp.f32 %v1419_v33 }
 0x5e3   : > { %v9111_v34 = vpop.permute.xlu0 %9110  ;;  %v1519_v49 = vpop.permute.xlu1 %1518 }
 0x5e4   : > { %v9113_v37 = vunpack.i.h.bf16 %v9111_v34  ;;  %v9112_v38 = vunpack.i.l.bf16 %v9111_v34 }
 0x5e6   : > { %v9322_v39 = vpop.eup %9321  ;;  %v8365_v41 = vpack.c.bf16 %v9113_v37, %v9112_v38 }
 0x5e7   : > { %v1426_v44 = vmul.f32 %v9322_v39, %v9316_v19  ;;  %v1523_v56 = vpop.permute.xlu0 %1522 }
 0x5e9   : > { %8056 = vmatmul.mubr.msk.f32.vlgmr.msra.gmra.mrb[14].mxu1 %vm1395_vm4, %v1426_v44 }
 0x5ea   : > { %v9324_v46 = vpop.eup %9323  ;;  %8367 = vmatpush3.bf16.xpose.msk.msra.mxu1 %vm9794_vm3, %v8365_v41  ;;  %8058 = vmatprep.mubr.msk.f32.mxu1 %vm9512_vm1, %v9513_v43 }
 0x5eb   : > { %v1427_v47 = vmul.f32 %v9324_v46, %v9318_v22  ;;  %8068 = vmatprep.subr.mxu1 %v9513_v43 }
 0x5ed   : > { %8059 = vmatmul.mubr.msk.f32.gmra.mrb[16].mxu1 %vm1395_vm4, %v1427_v47 }
 0x5ee   : > { %8061 = vmatprep.mubr.msk.f32.mxu1 %vm9512_vm1, %v9513_v43 }
 0x5f2   : > { %8069 = vmatpush3.xpose.msk.msra.mxu1 %vm1290_vm2, %v1529_v48 }
 0x5f3   : > { %8368 = vmatprep.subr.bf16.mxu1 %v9510_v28 }
 0x614   : > { %v1422_v50 = vpop.xlane.xlu1 %1421 }
 0x615   : > { %9325 = vrcp.f32 %v1422_v50 }
 0x618   : > { %v1521_v54 = vpop.permute.xlu1 %1520 }
 0x61f   : > { %v9326_v51 = vpop.eup %9325 }
 0x620   : > { %v1428_v53 = vmul.f32 %v9326_v51, %v9320_v29 }
 0x622   : > { %8062 = vmatmul.mubr.msk.f32.gmra.mrb[18].mxu1 %vm1395_vm4, %v1428_v53 }
 0x623   : > { %8070 = vmatprep.mubr.msk.f32.mxu1 %vm9512_vm1, %v9513_v43 }
 0x626   : > { %8071 = vmatmul.mubr.msk.f32.vlgmr.msra.gmra.mrb[20].mxu1 %vm1290_vm2, %v1519_v49 }
 0x627   : > { %8073 = vmatprep.mubr.msk.f32.mxu1 %vm9512_vm1, %v9513_v43 }
 0x62a   : > { %8074 = vmatmul.mubr.msk.f32.gmra.mrb[22].mxu1 %vm1290_vm2, %v1521_v54 }
 0x62b   : > { %8076 = vmatprep.mubr.msk.f32.mxu1 %vm9512_vm1, %v9513_v43 }
 0x62e   : > { %8077 = vmatmul.mubr.msk.f32.gmra.mrb[24].mxu1 %vm1290_vm2, %v1523_v56 }
 0x62f   : > { %8085 = vmatprep.mubr.msk.f32.mxu1 %vm9512_vm1, %v9513_v43 }
 0x6bc   : > { %v9865_v58 = vpop.f32.mrb[14].mxu1 }
 0x6bd   : > { %v8057_v59 = vpop.f32.mrb[15].mxu1 }
 0x6c0   : > { %v9867_v60 = vpop.f32.mrb[16].mxu1 }
 0x6c1   : > { %v8060_v61 = vpop.f32.mrb[17].mxu1 }
 0x6f5   : > { %v9869_v63 = vpop.f32.mrb[18].mxu1 }
 0x6f6   : > { %v8063_v0 = vpop.f32.mrb[19].mxu1 }
 0x6f9   : > { %v1608_v2 = vpop.f32.mrb[20].mxu1 }
 0x6fa   : > { %v1622_v4 = vmul.f32 0.25, %v1608_v2  ;;  %v8072_v5 = vpop.f32.mrb[21].mxu1 }
 0x6fc   : > { %v1625_v7 = vadd.f32 %v9821_v57, %v1622_v4 }
 0x6fd   : > { %v1613_v8 = vpop.f32.mrb[22].mxu1 }
 0x6fe   : > { %v1623_v9 = vmul.f32 0.25, %v1613_v8  ;;  %v8075_v10 = vpop.f32.mrb[23].mxu1  ;;  %v1628_v12 = vsel %vm1395_vm4, %v1625_v7, -inf }
 0x6ff   : > { %1629 = vmax.xlane.f32.xlu1 %v1628_v12 }
 0x700   : > { %v1626_v13 = vadd.f32 %v9821_v57, %v1623_v9 }
 0x701   : > { %v1618_v14 = vpop.f32.mrb[24].mxu1 }
 0x702   : > { %v1624_v15 = vmul.f32 0.25, %v1618_v14  ;;  %v8078_v16 = vpop.f32.mrb[25].mxu1  ;;  %v1631_v17 = vsel %vm1395_vm4, %v1626_v13, -inf }
 0x703   : > { %1632 = vmax.xlane.f32.xlu0 %v1631_v17 }
 0x704   : > { %v1627_v18 = vadd.f32 %v9821_v57, %v1624_v15 }
 0x706   : > { %v1634_v19 = vsel %vm1395_vm4, %v1627_v18, -inf }
 0x707   : > { %1635 = vmax.xlane.f32.xlu0 %v1634_v19 }
 0x710   : > { %9115 = vrot.lane.b32.xlu1 %v9780_v42, %s11423_s18 }
 0x714   : > { %9120 = vrot.lane.b32.xlu1 %v9778_v40, %s9516_s22 }
 0x718   : > { %1772 = vrot.lane.b32.xlu1 %v9788_v45, %s9516_s22 }
 0x78c   : > { %v1630_v20 = vpop.xlane.xlu1 %1629 }
 0x78d   : > { %v1637_v22 = vsub.f32 %v1625_v7, %v1630_v20 }
 0x78f   : > { %v1640_v23 = vmul.f32 1.442695, %v1637_v22 }
 0x790   : > { %v9116_v25 = vpop.permute.xlu1 %9115  ;;  %v1633_v26 = vpop.xlane.xlu0 %1632 }
 0x791   : > { %9327 = vpow2.f32 %v1640_v23  ;;  %v9118_v27 = vunpack.i.h.bf16 %v9116_v25  ;;  %v9117_v29 = vunpack.i.l.bf16 %v9116_v25  ;;  %v1638_v31 = vsub.f32 %v1626_v13, %v1633_v26 }
 0x793   : > { %v8369_v32 = vpack.c.bf16 %v9118_v27, %v9117_v29  ;;  %v1642_v33 = vmul.f32 1.442695, %v1638_v31 }
 0x794   : > { %v1636_v41 = vpop.xlane.xlu0 %1635  ;;  %v9121_v48 = vpop.permute.xlu1 %9120 }
 0x795   : > { %9329 = vpow2.f32 %v1642_v33  ;;  %8370 = vmatpush3.bf16.msra.mxu1 %v8369_v32  ;;  %v1639_v44 = vsub.f32 %v1627_v18, %v1636_v41  ;;  %v9123_v53 = vunpack.i.h.bf16 %v9121_v48  ;;  %v9122_v54 = vunpack.i.l.bf16 %v9121_v48 }
 0x796   : > { %8083 = vmatprep.subr.mxu1 %v9513_v43 }
 0x797   : > { %v1644_v46 = vmul.f32 1.442695, %v1639_v44  ;;  %v8372_v61 = vpack.c.bf16 %v9123_v53, %v9122_v54 }
 0x799   : > { %9331 = vpow2.f32 %v1644_v46 }
 0x79b   : > { %v9328_v34 = vpop.eup %9327 }
 0x79c   : > { %v1646_v37 = vsel %vm1395_vm4, %v9328_v34, 0.0 }
 0x79d   : > { %1647 = vadd.xlane.f32.xlu0 %v1646_v37 }
 0x79f   : > { %v9330_v38 = vpop.eup %9329 }
 0x7a0   : > { %v1649_v39 = vsel %vm1395_vm4, %v9330_v38, 0.0 }
 0x7a1   : > { %1650 = vadd.xlane.f32.xlu1 %v1649_v39 }
 0x7a3   : > { %v9332_v47 = vpop.eup %9331 }
 0x7b2   : > { %9125 = vrot.lane.b32.xlu1 %v9778_v40, %s9517_s23  ;;  %v1652_v40 = vsel %vm1395_vm4, %v9332_v47, 0.0 }
 0x7b3   : > { %1668 = vrot.lane.b32.xlu0 %v9808_v55, %s11423_s18 }
 0x7b6   : > { %1764 = vrot.lane.b32.xlu1 %v9774_v36, %s9518_s26 }
 0x7ba   : > { %2013 = vrot.lane.b32.xlu1 %v9788_v45, %s9517_s23 }
 0x7be   : > { %2005 = vrot.lane.b32.xlu1 %v9774_v36, %s9519_s28  ;;  %v1773_v36 = vpop.permute.xlu1 %1772 }
 0x7d2   : > { %1653 = vadd.xlane.f32.xlu0 %v1652_v40 }
 0x7e8   : > { %1762 = vrot.lane.b32.xlu0 %v9772_v35, %s9518_s26 }
 0x7ec   : > { %1766 = vrot.lane.b32.xlu0 %v9788_v45, %s9518_s26 }
 0x7f0   : > { %2003 = vrot.lane.b32.xlu0 %v9772_v35, %s9519_s28 }
 0x7f4   : > { %2007 = vrot.lane.b32.xlu0 %v9788_v45, %s9519_s28 }
 0x82a   : > { %v1648_v49 = vpop.xlane.xlu0 %1647 }
 0x82b   : > { %9333 = vrcp.f32 %v1648_v49 }
 0x82e   : > { %v1651_v50 = vpop.xlane.xlu1 %1650  ;;  %v1669_v51 = vpop.permute.xlu0 %1668 }
 0x82f   : > { %9335 = vrcp.f32 %v1651_v50  ;;  %8084 = vmatpush3.msra.mxu1 %v1669_v51 }
 0x830   : > { %8371 = vmatprep.subr.bf16.mxu1 %v9510_v28 }
 0x832   : > { %v9126_v2 = vpop.permute.xlu1 %9125 }
 0x833   : > { %v9128_v7 = vunpack.i.h.bf16 %v9126_v2  ;;  %v9127_v8 = vunpack.i.l.bf16 %v9126_v2 }
 0x835   : > { %v9334_v56 = vpop.eup %9333  ;;  %v8379_v9 = vpack.c.bf16 %v9128_v7, %v9127_v8 }
 0x836   : > { %v1658_v59 = vmul.f32 %v9334_v56, %v9328_v34  ;;  %v1765_v12 = vpop.permute.xlu1 %1764 }
 0x838   : > { %8086 = vmatmul.mubr.msk.f32.vlgmr.msra.gmra.mrb[26].mxu1 %vm1395_vm4, %v1658_v59 }
 0x839   : > { %v9336_v35 = vpop.eup %9335  ;;  %8374 = vmatpush3.bf16.xpose.msk.msra.mxu1 %vm9794_vm3, %v8372_v61  ;;  %8088 = vmatprep.mubr.msk.f32.mxu1 %vm9512_vm1, %v9513_v43 }
 0x83a   : > { %v1659_v45 = vmul.f32 %v9336_v35, %v9330_v38  ;;  %8098 = vmatprep.subr.mxu1 %v9513_v43  ;;  %v2014_v14 = vpop.permute.xlu1 %2013 }
 0x83c   : > { %8089 = vmatmul.mubr.msk.f32.gmra.mrb[28].mxu1 %vm1395_vm4, %v1659_v45 }
 0x83d   : > { %8091 = vmatprep.mubr.msk.f32.mxu1 %vm9512_vm1, %v9513_v43 }
 0x83e   : > { %v2006_v16 = vpop.permute.xlu1 %2005 }
 0x841   : > { %8099 = vmatpush3.xpose.msk.msra.mxu1 %vm1290_vm2, %v1773_v36 }
 0x842   : > { %8378 = vmatprep.subr.bf16.mxu1 %v9510_v28 }
 0x85f   : > { %v1654_v0 = vpop.xlane.xlu0 %1653 }
 0x860   : > { %9337 = vrcp.f32 %v1654_v0 }
 0x863   : > { %v1763_v10 = vpop.permute.xlu0 %1762 }
 0x867   : > { %v1767_v13 = vpop.permute.xlu0 %1766 }
 0x86a   : > { %v9338_v4 = vpop.eup %9337 }
 0x86b   : > { %v1660_v5 = vmul.f32 %v9338_v4, %v9332_v47  ;;  %v2004_v15 = vpop.permute.xlu0 %2003 }
 0x86d   : > { %8092 = vmatmul.mubr.msk.f32.gmra.mrb[30].mxu1 %vm1395_vm4, %v1660_v5 }
 0x86e   : > { %8100 = vmatprep.mubr.msk.f32.mxu1 %vm9512_vm1, %v9513_v43 }
 0x86f   : > { %v2008_v17 = vpop.permute.xlu0 %2007 }
 0x871   : > { %8101 = vmatmul.mubr.msk.f32.vlgmr.msra.gmra.mrb[32].mxu1 %vm1290_vm2, %v1763_v10 }
 0x872   : > { %8381 = vmatpush3.bf16.xpose.msk.msra.mxu1 %vm9794_vm3, %v8379_v9  ;;  %8103 = vmatprep.mubr.msk.f32.mxu1 %vm9512_vm1, %v9513_v43 }
 0x873   : > { %8128 = vmatprep.subr.mxu1 %v9513_v43 }
 0x875   : > { %8104 = vmatmul.mubr.msk.f32.gmra.mrb[34].mxu1 %vm1290_vm2, %v1765_v12 }
 0x876   : > { %8106 = vmatprep.mubr.msk.f32.mxu1 %vm9512_vm1, %v9513_v43 }
 0x879   : > { %8107 = vmatmul.mubr.msk.f32.gmra.mrb[36].mxu1 %vm1290_vm2, %v1767_v13 }
 0x87a   : > { %8129 = vmatpush3.xpose.msk.msra.mxu1 %vm1290_vm2, %v2014_v14  ;;  %8130 = vmatprep.mubr.msk.f32.mxu1 %vm9512_vm1, %v9513_v43 }
 0x87d   : > { %8131 = vmatmul.mubr.msk.f32.vlgmr.msra.gmra.mrb[38].mxu1 %vm1290_vm2, %v2004_v15 }
 0x87e   : > { %8133 = vmatprep.mubr.msk.f32.mxu1 %vm9512_vm1, %v9513_v43 }
 0x881   : > { %8134 = vmatmul.mubr.msk.f32.gmra.mrb[40].mxu1 %vm1290_vm2, %v2006_v16 }
 0x882   : > { %8136 = vmatprep.mubr.msk.f32.mxu1 %vm9512_vm1, %v9513_v43 }
 0x885   : > { %8137 = vmatmul.mubr.msk.f32.gmra.mrb[42].mxu1 %vm1290_vm2, %v2008_v17 }
 0x90b   : > { %v9940_v18 = vpop.f32.mrb[26].mxu1 }
 0x90c   : > { %v8087_v19 = vpop.f32.mrb[27].mxu1 }
 0x90f   : > { %v9942_v20 = vpop.f32.mrb[28].mxu1 }
 0x910   : > { %v9139_v22 = vpack.i.bf16 %v9942_v20, %v9940_v18  ;;  %v8090_v23 = vpop.f32.mrb[29].mxu1 }
 0x940   : > { %v9946_v25 = vpop.f32.mrb[30].mxu1 }
 0x941   : > { %v8093_v26 = vpop.f32.mrb[31].mxu1 }
 0x944   : > { %v1852_v27 = vpop.f32.mrb[32].mxu1 }
 0x945   : > { %v1866_v29 = vmul.f32 0.25, %v1852_v27  ;;  %v8102_v31 = vpop.f32.mrb[33].mxu1 }
 0x947   : > { %v1869_v32 = vadd.f32 %v9821_v57, %v1866_v29 }
 0x948   : > { %v1857_v33 = vpop.f32.mrb[34].mxu1 }
 0x949   : > { %v1867_v34 = vmul.f32 0.25, %v1857_v33  ;;  %v8105_v37 = vpop.f32.mrb[35].mxu1  ;;  %v1872_v38 = vsel %vm1395_vm4, %v1869_v32, -inf }
 0x94a   : > { %1873 = vmax.xlane.f32.xlu1 %v1872_v38 }
 0x94b   : > { %v1870_v39 = vadd.f32 %v9821_v57, %v1867_v34 }
 0x94c   : > { %v1862_v41 = vpop.f32.mrb[36].mxu1 }
 0x94d   : > { %v1868_v44 = vmul.f32 0.25, %v1862_v41  ;;  %v8108_v46 = vpop.f32.mrb[37].mxu1  ;;  %v1875_v47 = vsel %vm1395_vm4, %v1870_v39, -inf }
 0x94e   : > { %1876 = vmax.xlane.f32.xlu0 %v1875_v47 }
 0x94f   : > { %v1871_v40 = vadd.f32 %v9821_v57, %v1868_v44 }
 0x950   : > { %v2093_v48 = vpop.f32.mrb[38].mxu1 }
 0x951   : > { %v2107_v36 = vmul.f32 0.25, %v2093_v48  ;;  %v8132_v49 = vpop.f32.mrb[39].mxu1  ;;  %v1878_v50 = vsel %vm1395_vm4, %v1871_v40, -inf }
 0x952   : > { %1879 = vmax.xlane.f32.xlu0 %v1878_v50 }
 0x953   : > { %v2110_v51 = vadd.f32 %v9821_v57, %v2107_v36 }
 0x954   : > { %v2098_v53 = vpop.f32.mrb[40].mxu1 }
 0x955   : > { %v2108_v54 = vmul.f32 0.25, %v2098_v53  ;;  %v8135_v56 = vpop.f32.mrb[41].mxu1  ;;  %v2113_v59 = vsel %vm1395_vm4, %v2110_v51, -inf }
 0x956   : > { %2114 = vmax.xlane.f32.xlu0 %v2113_v59 }
 0x957   : > { %v2111_v61 = vadd.f32 %v9821_v57, %v2108_v54 }
 0x958   : > { %v2103_v35 = vpop.f32.mrb[42].mxu1 }
 0x959   : > { %v2109_v45 = vmul.f32 0.25, %v2103_v35  ;;  %v8138_v0 = vpop.f32.mrb[43].mxu1  ;;  %v2116_v2 = vsel %vm1395_vm4, %v2111_v61, -inf }
 0x95a   : > { %2117 = vmax.xlane.f32.xlu1 %v2116_v2 }
 0x95b   : > { %v2112_v4 = vadd.f32 %v9821_v57, %v2109_v45 }
 0x95d   : > { %v2119_v5 = vsel %vm1395_vm4, %v2112_v4, -inf }
 0x95e   : > { %2120 = vmax.xlane.f32.xlu0 %v2119_v5 }
 0x96b   : > { %1909 = vrot.lane.b32.xlu1 %v9808_v55, %s9518_s26 }
 0x974   : > { %9130 = vrot.lane.b32.xlu0 %v9780_v42, %s9518_s26 }
 0x9d7   : > { %v1874_v7 = vpop.xlane.xlu1 %1873 }
 0x9d8   : > { %v1881_v8 = vsub.f32 %v1869_v32, %v1874_v7 }
 0x9da   : > { %v1884_v9 = vmul.f32 1.442695, %v1881_v8 }
 0x9db   : > { %v1877_v10 = vpop.xlane.xlu0 %1876 }
 0x9dc   : > { %9339 = vpow2.f32 %v1884_v9  ;;  %v1882_v12 = vsub.f32 %v1870_v39, %v1877_v10 }
 0x9de   : > { %v1886_v13 = vmul.f32 1.442695, %v1882_v12 }
 0x9df   : > { %v1880_v14 = vpop.xlane.xlu0 %1879 }
 0x9e0   : > { %9341 = vpow2.f32 %v1886_v13  ;;  %v1883_v15 = vsub.f32 %v1871_v40, %v1880_v14 }
 0x9e2   : > { %v1888_v57 = vmul.f32 1.442695, %v1883_v15 }
 0x9e3   : > { %v2115_v16 = vpop.xlane.xlu0 %2114 }
 0x9e4   : > { %9343 = vpow2.f32 %v1888_v57  ;;  %v2122_v17 = vsub.f32 %v2110_v51, %v2115_v16  ;;  %v9233_v57 = vld [vmem:[%s9572_s3] sm:$0xff]   ;;  %v9234_v16 = vld [vmem:[%s9572_s3 + $0x8] sm:$0xff]  }
 0x9e5   : > { %8154 = vmatprep.subr.bf16.mxu1 %v9233_v57 }
 0x9e6   : > { %v9340_v19 = vpop.eup %9339  ;;  %v2125_v23 = vmul.f32 1.442695, %v2122_v17  ;;  %8155 = vmatpush3.bf16.msra.mxu1 %v9233_v57 }
 0x9e7   : > { %v2118_v26 = vpop.xlane.xlu1 %2117  ;;  %v1890_v27 = vsel %vm1395_vm4, %v9340_v19, 0.0  ;;  %8156 = vmatprep.subr.bf16.mxu1 %v9234_v16 }
 0x9e8   : > { %9345 = vpow2.f32 %v2125_v23  ;;  %v2123_v29 = vsub.f32 %v2111_v61, %v2118_v26  ;;  %1891 = vadd.xlane.f32.xlu1 %v1890_v27 }
 0x9ea   : > { %v9342_v31 = vpop.eup %9341  ;;  %v2127_v32 = vmul.f32 1.442695, %v2123_v29  ;;  %8157 = vmatpush3.bf16.msra.mxu1 %v9234_v16 }
 0x9eb   : > { %v2121_v33 = vpop.xlane.xlu0 %2120  ;;  %v1893_v34 = vsel %vm1395_vm4, %v9342_v31, 0.0  ;;  %v1910_v50 = vpop.permute.xlu1 %1909 }
 0x9ec   : > { %9347 = vpow2.f32 %v2127_v32  ;;  %v2124_v37 = vsub.f32 %v2112_v4, %v2121_v33  ;;  %1894 = vadd.xlane.f32.xlu0 %v1893_v34  ;;  %v9236_v33 = vld [vmem:[%s9572_s3 + $0x18] sm:$0xff]  }
 0x9ee   : > { %v9344_v38 = vpop.eup %9343  ;;  %v2129_v39 = vmul.f32 1.442695, %v2124_v37 }
 0x9ef   : > { %v9131_v41 = vpop.permute.xlu0 %9130  ;;  %v1896_v44 = vsel %vm1395_vm4, %v9344_v38, 0.0 }
 0x9f0   : > { %9349 = vpow2.f32 %v2129_v39  ;;  %v9133_v46 = vunpack.i.h.bf16 %v9131_v41  ;;  %v9132_v47 = vunpack.i.l.bf16 %v9131_v41  ;;  %1897 = vadd.xlane.f32.xlu1 %v1896_v44 }
 0x9f2   : > { %v9346_v40 = vpop.eup %9345  ;;  %v8376_v48 = vpack.c.bf16 %v9133_v46, %v9132_v47 }
 0x9f3   : > { %v2131_v36 = vsel %vm1395_vm4, %v9346_v40, 0.0 }
 0x9f4   : > { %2132 = vadd.xlane.f32.xlu0 %v2131_v36  ;;  %8377 = vmatpush3.bf16.msra.mxu0 %v8376_v48 }
 0x9f5   : > { %8113 = vmatprep.subr.mxu0 %v9513_v43 }
 0x9f6   : > { %v9348_v49 = vpop.eup %9347 }
 0x9f7   : > { %v2134_v51 = vsel %vm1395_vm4, %v9348_v49, 0.0 }
 0x9f8   : > { %2135 = vadd.xlane.f32.xlu1 %v2134_v51  ;;  %8114 = vmatpush3.msra.mxu0 %v1910_v50 }
 0x9f9   : > { %8382 = vmatprep.subr.bf16.mxu0 %v9510_v28 }
 0x9fa   : > { %v9350_v53 = vpop.eup %9349 }
 0x9fb   : > { %v2137_v54 = vsel %vm1395_vm4, %v9350_v53, 0.0 }
 0x9fc   : > { %2138 = vadd.xlane.f32.xlu1 %v2137_v54 }
 0xa0a   : > { %2150 = vrot.lane.b32.xlu0 %v9808_v55, %s9519_s28 }
 0xa0d   : > { %9135 = vrot.lane.b32.xlu1 %v9780_v42, %s9519_s28 }
 0xa0e   : > { %2251 = vrot.lane.b32.xlu0 %v9946_v25, %s9517_s23 }
 0xa11   : > { %9140 = vrot.lane.b32.xlu1 %v9139_v22, %s9517_s23 }
 0xa75   : > { %v1892_v56 = vpop.xlane.xlu1 %1891 }
 0xa76   : > { %9351 = vrcp.f32 %v1892_v56 }
 0xa79   : > { %v1895_v59 = vpop.xlane.xlu0 %1894 }
 0xa7a   : > { %9353 = vrcp.f32 %v1895_v59 }
 0xa7d   : > { %v1898_v61 = vpop.xlane.xlu1 %1897 }
 0xa7e   : > { %9355 = vrcp.f32 %v1898_v61 }
 0xa80   : > { %v9352_v35 = vpop.eup %9351 }
 0xa81   : > { %v1902_v45 = vmul.f32 %v9352_v35, %v9340_v19  ;;  %v2133_v42 = vpop.xlane.xlu0 %2132  ;;  %v9235_v19 = vld [vmem:[%s9572_s3 + $0x10] sm:$0xff]  }
 0xa82   : > { %9357 = vrcp.f32 %v2133_v42  ;;  %8158 = vmatprep.subr.bf16.mxu1 %v9235_v19 }
 0xa83   : > { %8116 = vmatmul.mubr.msk.f32.vlgmr.msra.gmra.mrb[8].mxu0 %vm1395_vm4, %v1902_v45  ;;  %8159 = vmatpush3.bf16.msra.mxu1 %v9235_v19 }
 0xa84   : > { %v9354_v55 = vpop.eup %9353  ;;  %8118 = vmatprep.mubr.msk.f32.mxu0 %vm9512_vm1, %v9513_v43  ;;  %8160 = vmatprep.subr.bf16.mxu1 %v9236_v33 }
 0xa85   : > { %v2136_v25 = vpop.xlane.xlu1 %2135  ;;  %v1903_v0 = vmul.f32 %v9354_v55, %v9342_v31  ;;  %v2151_v10 = vpop.permute.xlu0 %2150 }
 0xa86   : > { %9359 = vrcp.f32 %v2136_v25 }
 0xa87   : > { %8119 = vmatmul.mubr.msk.f32.gmra.mrb[10].mxu0 %vm1395_vm4, %v1903_v0  ;;  %8161 = vmatpush3.bf16.msra.mxu1 %v9236_v33 }
 0xa88   : > { %v9356_v18 = vpop.eup %9355  ;;  %8121 = vmatprep.mubr.msk.f32.mxu0 %vm9512_vm1, %v9513_v43 }
 0xa89   : > { %v2139_v20 = vpop.xlane.xlu1 %2138  ;;  %v1904_v22 = vmul.f32 %v9356_v18, %v9344_v38 }
 0xa8a   : > { %9361 = vrcp.f32 %v2139_v20 }
 0xa8b   : > { %8122 = vmatmul.mubr.msk.f32.gmra.mrb[12].mxu0 %vm1395_vm4, %v1904_v22 }
 0xa8c   : > { %8145 = vmatprep.mubr.msk.f32.mxu0 %vm9512_vm1, %v9513_v43  ;;  %v9358_v8 = vpop.eup %9357 }
 0xa8d   : > { %v9136_v2 = vpop.permute.xlu1 %9135  ;;  %v2143_v9 = vmul.f32 %v9358_v8, %v9346_v40  ;;  %v2252_v40 = vpop.permute.xlu0 %2251 }
 0xa8e   : > { %v9138_v4 = vunpack.i.h.bf16 %v9136_v2  ;;  %v9137_v5 = vunpack.i.l.bf16 %v9136_v2  ;;  %v2282_v54 = vsel %vm1290_vm2, %v9869_v63, %v2252_v40  ;;  %v9243_v40 = vld [vmem:[%s9587_s19 + $0x20] ss:$8 sps:$4 sm:$0xff]  }
 0xa90   : > { %v8383_v7 = vpack.c.bf16 %v9138_v4, %v9137_v5  ;;  %v9360_v12 = vpop.eup %9359 }
 0xa91   : > { %v2144_v13 = vmul.f32 %v9360_v12, %v9348_v49  ;;  %v9141_v47 = vpop.permute.xlu1 %9140 }
 0xa92   : > { %8384 = vmatpush3.bf16.msra.mxu0 %v8383_v7  ;;  %v9143_v36 = vunpack.i.h.bf16 %v9141_v47  ;;  %v9142_v49 = vunpack.i.l.bf16 %v9141_v47  ;;  %v9245_v47 = vld [vmem:[%s9587_s19 + $0x24] ss:$8 sps:$4 sm:$0xff]  }
 0xa93   : > { %8143 = vmatprep.subr.mxu0 %v9513_v43 }
 0xa94   : > { %v9362_v14 = vpop.eup %9361  ;;  %v2281_v59 = vsel %vm1290_vm2, %v9867_v60, %v9143_v36  ;;  %v2280_v61 = vsel %vm1290_vm2, %v9865_v58, %v9142_v49  ;;  %v7456_v58 = vld [vmem:[%s9577_s8] ss:$0 sm:$0xff]  ;;  %v9246_v36 = vld [vmem:[%s9587_s19 + $0x30] ss:$8 sps:$4 sm:$0xff]  }
 0xa95   : > { %v2145_v15 = vmul.f32 %v9362_v14, %v9350_v53 }
 0xa96   : > { %8144 = vmatpush3.msra.mxu0 %v2151_v10 }
 0xa97   : > { %8146 = vmatmul.mubr.msk.f32.vlgmr.msra.gmra.mrb[14].mxu0 %vm1395_vm4, %v2143_v9 }
 0xa98   : > { %8148 = vmatprep.mubr.msk.f32.mxu0 %vm9512_vm1, %v9513_v43 }
 0xa9b   : > { %8149 = vmatmul.mubr.msk.f32.gmra.mrb[16].mxu0 %vm1395_vm4, %v2144_v13 }
 0xa9c   : > { %8151 = vmatprep.mubr.msk.f32.mxu0 %vm9512_vm1, %v9513_v43 }
 0xa9f   : > { %8152 = vmatmul.mubr.msk.f32.gmra.mrb[18].mxu0 %vm1395_vm4, %v2145_v15 }
 0xaa0   : > { %2543 = vmatprep.mubr.bf16.mxu0 %v9509_v1 }
 0xb56   : > { %v1989_v17 = vpop.f32.mrb[8].mxu0 }
 0xb57   : > { %v8117_v23 = vpop.f32.mrb[9].mxu0 }
 0xb5a   : > { %v1994_v26 = vpop.f32.mrb[10].mxu0 }
 0xb5b   : > { %v9144_v27 = vpack.i.bf16 %v1994_v26, %v1989_v17  ;;  %v8120_v29 = vpop.f32.mrb[11].mxu0 }
 0xb5d   : > { %9145 = vrot.lane.b32.xlu1 %v9144_v27, %s9516_s22 }
 0xb5e   : > { %v1999_v31 = vpop.f32.mrb[12].mxu0 }
 0xb5f   : > { %2263 = vrot.lane.b32.xlu0 %v1999_v31, %s9516_s22  ;;  %v8123_v32 = vpop.f32.mrb[13].mxu0 }
 0xb6a   : > { %v2230_v34 = vpop.f32.mrb[14].mxu0 }
 0xb6b   : > { %v8147_v37 = vpop.f32.mrb[15].mxu0 }
 0xb6e   : > { %v2235_v38 = vpop.f32.mrb[16].mxu0 }
 0xb6f   : > { %v9149_v39 = vpack.i.bf16 %v2235_v38, %v2230_v34  ;;  %v8150_v41 = vpop.f32.mrb[17].mxu0 }
 0xb70   : > { %v9237_v41 = vld [vmem:[%s9587_s19] ss:$8 sps:$4 sm:$0xff]  }
 0xb71   : > { %9150 = vrot.lane.b32.xlu1 %v9149_v39, %s9514_s16  ;;  %v9239_v39 = vld [vmem:[%s9587_s19 + $0x4] ss:$8 sps:$4 sm:$0xff]  }
 0xb72   : > { %v2240_v44 = vpop.f32.mrb[18].mxu0  ;;  %2511 = vmatprep.subr.bf16.mxu0 %v9239_v39 }
 0xb73   : > { %2275 = vrot.lane.b32.xlu0 %v2240_v44, %s9514_s16  ;;  %v8153_v46 = vpop.f32.mrb[19].mxu0  ;;  %2512 = vmatpush1.bf16.msra.mxu0 %v9237_v41  ;;  %v9242_v44 = vld [vmem:[%s9587_s19 + $0x14] ss:$8 sps:$4 sm:$0xff]  }
 0xb74   : > { %v9240_v46 = vld [vmem:[%s9587_s19 + $0x10] ss:$8 sps:$4 sm:$0xff]   ;;  %2513 = vmatprep.subr.bf16.mxu0 %v9242_v44 }
 0xb77   : > { %2514 = vmatpush1.bf16.msra.mxu0 %v9240_v46 }
 0xb78   : > { %2515 = vmatprep.subr.bf16.mxu0 %v9245_v47 }
 0xb7b   : > { %2516 = vmatpush1.bf16.msra.mxu0 %v9243_v40 }
 0xbcf   : > { %v9146_v48 = vpop.permute.xlu1 %9145 }
 0xbd0   : > { %v9148_v50 = vunpack.i.h.bf16 %v9146_v48  ;;  %v9147_v51 = vunpack.i.l.bf16 %v9146_v48  ;;  %v9248_v48 = vld [vmem:[%s9587_s19 + $0x34] ss:$8 sps:$4 sm:$0xff]  }
 0xbd1   : > { %v2264_v53 = vpop.permute.xlu0 %2263  ;;  %2517 = vmatprep.subr.bf16.mxu0 %v9248_v48 }
 0xbd2   : > { %v2285_v55 = vsel %vm2283_vm5, %v2281_v59, %v9148_v50  ;;  %v2284_v42 = vsel %vm2283_vm5, %v2280_v61, %v9147_v51  ;;  %v2286_v25 = vsel %vm2283_vm5, %v2282_v54, %v2264_v53  ;;  %2518 = vmatpush1.bf16.msra.mxu0 %v9246_v36 }
 0xbe3   : > { %v9151_v56 = vpop.permute.xlu1 %9150 }
 0xbe4   : > { %v9153_v35 = vunpack.i.h.bf16 %v9151_v56  ;;  %v9152_v45 = vunpack.i.l.bf16 %v9151_v56 }
 0xbe5   : > { %v2276_v0 = vpop.permute.xlu0 %2275 }
 0xbe6   : > { %v2289_v63 = vsel %vm2287_vm6, %v2285_v55, %v9153_v35  ;;  %v2288_v18 = vsel %vm2287_vm6, %v2284_v42, %v9152_v45  ;;  %v2290_v20 = vsel %vm2287_vm6, %v2286_v25, %v2276_v0  ;;  %v2389_v45 = vld [vmem:[%s9582_s14] sm:$0x3] }
 0xbe7   : > { %v2292_v22 = vpack.c.bf16 %v2290_v20, %v2290_v20  ;;  %v2291_v60 = vpack.c.bf16 %v2289_v63, %v2288_v18  ;;  %v2432_v55 = vrot.slane %v2389_v45, %v9756_v6  ;;  %v2439_v63 = vrot.slane %v2389_v45, %v9761_v11 }
 0xbe9   : > { %8162 = vmatprep.mubr.msk.bf16.mxu1 %vm1046_vm0, %v2291_v60 }
 0xbea   : > { %8163 = vmatmul.mubr.msk.bf16.vlgmr.msra.gmra.mrb[44].mxu1 %vm1046_vm0, %v2292_v22 }
 0xcbd   : > { %v8164_v2 = vpop.f32.mrb[44].mxu1 }
 0xcbe   : > { %v2372_v4 = vpop.f32.mrb[45].mxu1  ;;  %v2381_v9 = vadd.f32 %v8164_v2, %v7456_v58 }
 0xcbf   : > { %v2373_v5 = vadd.f32 %v7456_v58, %v2372_v4  ;;  %v8165_v7 = vpop.f32.mrb[46].mxu1 }
 0xcc0   : > { %v2375_v8 = vpop.f32.mrb[47].mxu1  ;;  %v10032_v15 = vadd.f32 %v2381_v9, %v9734_v30 }
 0xcc1   : > { %v10024_v10 = vadd.f32 %v2373_v5, %v9725_v21  ;;  %v2376_v12 = vadd.f32 %v7456_v58, %v2375_v8 }
 0xcc2   : > { %v2396_v16 = vsel %vm1046_vm0, %v10032_v15, 0.0 }
 0xcc3   : > { %v10027_v13 = vadd.f32 %v2376_v12, %v9727_v24  ;;  %v2390_v14 = vsel %vm1046_vm0, %v10024_v10, 0.0  ;;  %v9249_v12 = vld [vmem:[%s9597_s30 + $0x40] sm:$0xff]  }
 0xcc4   : > { %2391 = vadd.xlane.f32.xlu1 %v2390_v14  ;;  %v9250_v14 = vld [vmem:[%s9597_s30] sm:$0xff]   ;;  %7722 = vmatprep.subr.bf16.mxu1 %v9249_v12 }
 0xcc5   : > { %v2393_v57 = vsel %vm1046_vm0, %v10027_v13, 0.0  ;;  %7723 = vmatpush3.bf16.msra.mxu1 %v9250_v14 }
 0xcc6   : > { %2394 = vadd.xlane.f32.xlu0 %v2393_v57  ;;  %v9251_v57 = vld [vmem:[%s9597_s30 + $0x48] sm:$0xff]  }
 0xcc7   : > { %7724 = vmatprep.subr.bf16.mxu1 %v9251_v57 }
 0xcca   : > { %2397 = vadd.xlane.f32.xlu0 %v2396_v16  ;;  %v9252_v16 = vld [vmem:[%s9597_s30 + $0x8] sm:$0xff]  }
 0xccb   : > { %7725 = vmatpush3.bf16.msra.mxu1 %v9252_v16 }
 0xd51   : > { %v2392_v21 = vpop.xlane.xlu1 %2391 }
 0xd52   : > { %v2399_v17 = vmul.f32 0.015625, %v2392_v21  ;;  %v9253_v21 = vld [vmem:[%s9597_s30 + $0x50] sm:$0xff]  }
 0xd53   : > { %v2395_v19 = vpop.xlane.xlu0 %2394  ;;  %7726 = vmatprep.subr.bf16.mxu1 %v9253_v21 }
 0xd54   : > { %v2402_v24 = vsub.f32 %v10024_v10, %v2399_v17  ;;  %v2400_v23 = vmul.f32 0.015625, %v2395_v19  ;;  %v9254_v17 = vld [vmem:[%s9597_s30 + $0x10] sm:$0xff]   ;;  %v9255_v19 = vld [vmem:[%s9597_s30 + $0x58] sm:$0xff]  }
 0xd55   : > { %7727 = vmatpush3.bf16.msra.mxu1 %v9254_v17 }
 0xd56   : > { %v2403_v26 = vsub.f32 %v10027_v13, %v2400_v23  ;;  %v2405_v30 = vmul.f32 %v2402_v24, %v2402_v24  ;;  %7728 = vmatprep.subr.bf16.mxu1 %v9255_v19  ;;  %v9257_v23 = vld [vmem:[%s9597_s30 + $0x60] sm:$0xff]  }
 0xd57   : > { %v2398_v27 = vpop.xlane.xlu0 %2397 }
 0xd58   : > { %v2401_v29 = vmul.f32 0.015625, %v2398_v27  ;;  %v2408_v31 = vsel %vm1046_vm0, %v2405_v30, 0.0  ;;  %v2406_v32 = vmul.f32 %v2403_v26, %v2403_v26  ;;  %v9259_v30 = vld [vmem:[%s9597_s30 + $0x68] sm:$0xff]  }
 0xd59   : > { %2409 = vadd.xlane.f32.xlu0 %v2408_v31  ;;  %v9260_v27 = vld [vmem:[%s9597_s30 + $0x28] sm:$0xff]   ;;  %v9262_v31 = vld [vmem:[%s9597_s30 + $0x30] sm:$0xff]  }
 0xd5a   : > { %v2404_v33 = vsub.f32 %v10032_v15, %v2401_v29  ;;  %v2411_v34 = vsel %vm1046_vm0, %v2406_v32, 0.0  ;;  %v9261_v29 = vld [vmem:[%s9597_s30 + $0x70] sm:$0xff]   ;;  %v9263_v32 = vld [vmem:[%s9597_s30 + $0x78] sm:$0xff]  }
 0xd5b   : > { %2412 = vadd.xlane.f32.xlu1 %v2411_v34  ;;  %v2453_v34 = vld [vmem:[%s9592_s24] sm:$0x3] }
 0xd5c   : > { %v2407_v37 = vmul.f32 %v2404_v33, %v2404_v33 }
 0xd5e   : > { %v2414_v38 = vsel %vm1046_vm0, %v2407_v37, 0.0  ;;  %v2458_v37 = vrot.slane %v2453_v34, %v9756_v6 }
 0xd5f   : > { %2415 = vadd.xlane.f32.xlu0 %v2414_v38  ;;  %v2462_v38 = vrot.slane %v2453_v34, %v9761_v11 }
 0xde6   : > { %v2410_v49 = vpop.xlane.xlu0 %2409 }
 0xde7   : > { %v2417_v50 = vmul.f32 0.015625, %v2410_v49 }
 0xde8   : > { %v2413_v51 = vpop.xlane.xlu1 %2412 }
 0xde9   : > { %v2420_v53 = vadd.f32 1e-06, %v2417_v50  ;;  %v2418_v54 = vmul.f32 0.015625, %v2413_v51 }
 0xdeb   : > { %9363 = vrsqrt.f32 %v2420_v53  ;;  %v2421_v56 = vadd.f32 1e-06, %v2418_v54 }
 0xdec   : > { %v2416_v59 = vpop.xlane.xlu0 %2415 }
 0xded   : > { %9365 = vrsqrt.f32 %v2421_v56  ;;  %v2419_v61 = vmul.f32 0.015625, %v2416_v59 }
 0xdef   : > { %v2422_v35 = vadd.f32 1e-06, %v2419_v61 }
 0xdf1   : > { %9367 = vrsqrt.f32 %v2422_v35 }
 0xdf5   : > { %v9364_v42 = vpop.eup %9363 }
 0xdf6   : > { %v2426_v25 = vmul.f32 %v9364_v42, %v2402_v24  ;;  %v9256_v24 = vld [vmem:[%s9597_s30 + $0x18] sm:$0xff]  }
 0xdf7   : > { %v9366_v0 = vpop.eup %9365  ;;  %7729 = vmatpush3.bf16.msra.mxu1 %v9256_v24 }
 0xdf8   : > { %v2433_v18 = vmul.f32 %v2432_v55, %v2426_v25  ;;  %v2427_v20 = vmul.f32 %v9366_v0, %v2403_v26  ;;  %v9258_v26 = vld [vmem:[%s9597_s30 + $0x20] sm:$0xff]   ;;  %7730 = vmatprep.subr.bf16.mxu1 %v9257_v23 }
 0xdfa   : > { %v2434_v22 = vmul.f32 %v2432_v55, %v2427_v20  ;;  %v2440_v58 = vadd.f32 %v2439_v63, %v2433_v18 }
 0xdfb   : > { %v9368_v60 = vpop.eup %9367  ;;  %7731 = vmatpush3.bf16.msra.mxu1 %v9258_v26 }
 0xdfc   : > { %v2441_v2 = vadd.f32 %v2439_v63, %v2434_v22  ;;  %v2428_v4 = vmul.f32 %v9368_v60, %v2404_v33  ;;  %7732 = vmatprep.subr.bf16.mxu1 %v9259_v30  ;;  %v9264_v33 = vld [vmem:[%s9597_s30 + $0x38] sm:$0xff]  }
 0xdfe   : > { %v2443_v5 = vpack.c.bf16 %v2441_v2, %v2440_v58  ;;  %v2435_v7 = vmul.f32 %v2432_v55, %v2428_v4 }
 0xdff   : > { %7733 = vmatpush3.bf16.msra.mxu1 %v9260_v27 }
 0xe00   : > { %7471 = vmatmul.mubr.msk.bf16.vlgmr.msra.gmra.mrb[20].mxu0 %vm1046_vm0, %v2443_v5  ;;  %v2442_v8 = vadd.f32 %v2439_v63, %v2435_v7  ;;  %7734 = vmatprep.subr.bf16.mxu1 %v9261_v29 }
 0xe01   : > { %2553 = vmatprep.mubr.bf16.mxu0 %v9509_v1 }
 0xe02   : > { %v2444_v9 = vpack.c.bf16 %v2442_v8, %v2442_v8 }
 0xe03   : > { %7735 = vmatpush3.bf16.msra.mxu1 %v9262_v31 }
 0xe04   : > { %7736 = vmatprep.subr.bf16.mxu1 %v9263_v32 }
 0xe07   : > { %7737 = vmatpush3.bf16.msra.mxu1 %v9264_v33 }
 0xe08   : > { %7472 = vmatmul.mubr.msk.bf16.gmra.mrb[24].mxu0 %vm1046_vm0, %v2444_v9  ;;  %8389 = vmatprep.subr.bf16.mxu1 %v9510_v28 }
 0xe09   : > { %2963 = vmatprep.mubr.bf16.mxu0 %v9509_v1 }
 0xed3   : > { %v2545_v39 = vpop.f32.mrb[20].mxu0 }
 0xed4   : > { %v2546_v41 = vadd.f32 %v2545_v39, %v2458_v37  ;;  %v2547_v44 = vpop.f32.mrb[21].mxu0 }
 0xed5   : > { %v2548_v46 = vadd.f32 %v2547_v44, %v2462_v38  ;;  %v2549_v47 = vpop.f32.mrb[22].mxu0 }
 0xed6   : > { %v2562_v40 = vmul.f32 %v2546_v41, %v2546_v41  ;;  %v2550_v48 = vadd.f32 %v2549_v47, %v2458_v37  ;;  %v2551_v36 = vpop.f32.mrb[23].mxu0 }
 0xed7   : > { %v2563_v49 = vmul.f32 %v2548_v46, %v2548_v46  ;;  %v2552_v50 = vadd.f32 %v2551_v36, %v2462_v38 }
 0xed8   : > { %v2568_v51 = vmul.f32 %v2562_v40, %v2546_v41  ;;  %v2564_v53 = vmul.f32 %v2550_v48, %v2550_v48 }
 0xed9   : > { %v2569_v54 = vmul.f32 %v2563_v49, %v2548_v46  ;;  %v2565_v56 = vmul.f32 %v2552_v50, %v2552_v50 }
 0xeda   : > { %v2574_v59 = vmul.f32 0.044715, %v2568_v51  ;;  %v2570_v61 = vmul.f32 %v2564_v53, %v2550_v48 }
 0xedb   : > { %v2575_v35 = vmul.f32 0.044715, %v2569_v54  ;;  %v2571_v45 = vmul.f32 %v2565_v56, %v2552_v50  ;;  %v2555_v55 = vpop.f32.mrb[24].mxu0 }
 0xedc   : > { %v2580_v42 = vadd.f32 %v2574_v59, %v2546_v41  ;;  %v2576_v25 = vmul.f32 0.044715, %v2570_v61  ;;  %v2556_v0 = vadd.f32 %v2555_v55, %v2458_v37  ;;  %v2557_v63 = vpop.f32.mrb[25].mxu0 }
 0xedd   : > { %v2581_v18 = vadd.f32 %v2575_v35, %v2548_v46  ;;  %v2577_v20 = vmul.f32 0.044715, %v2571_v45  ;;  %v2558_v22 = vadd.f32 %v2557_v63, %v2462_v38  ;;  %v2559_v60 = vpop.f32.mrb[26].mxu0 }
 0xede   : > { %v2586_v58 = vmul.f32 0.7978846, %v2580_v42  ;;  %v2582_v2 = vadd.f32 %v2576_v25, %v2550_v48  ;;  %v2566_v4 = vmul.f32 %v2556_v0, %v2556_v0  ;;  %v2560_v5 = vpop.f32.mrb[27].mxu0 }
 0xedf   : > { %v2587_v7 = vmul.f32 0.7978846, %v2581_v18  ;;  %v2583_v8 = vadd.f32 %v2577_v20, %v2552_v50  ;;  %v2567_v9 = vmul.f32 %v2558_v22, %v2558_v22 }
 0xee0   : > { %9369 = vtanh.f32 %v2586_v58  ;;  %v2588_v12 = vmul.f32 0.7978846, %v2582_v2  ;;  %v2572_v14 = vmul.f32 %v2566_v4, %v2556_v0 }
 0xee1   : > { %9371 = vtanh.f32 %v2587_v7  ;;  %v2589_v57 = vmul.f32 0.7978846, %v2583_v8  ;;  %v2573_v16 = vmul.f32 %v2567_v9, %v2558_v22 }
 0xee2   : > { %9373 = vtanh.f32 %v2588_v12  ;;  %v2578_v21 = vmul.f32 0.044715, %v2572_v14 }
 0xee3   : > { %9375 = vtanh.f32 %v2589_v57  ;;  %v2579_v17 = vmul.f32 0.044715, %v2573_v16 }
 0xee4   : > { %v2584_v19 = vadd.f32 %v2578_v21, %v2556_v0 }
 0xee5   : > { %v2585_v24 = vadd.f32 %v2579_v17, %v2558_v22 }
 0xee6   : > { %v2590_v23 = vmul.f32 0.7978846, %v2584_v19 }
 0xee7   : > { %v2591_v26 = vmul.f32 0.7978846, %v2585_v24 }
 0xee8   : > { %9377 = vtanh.f32 %v2590_v23 }
 0xee9   : > { %9379 = vtanh.f32 %v2591_v26 }
 0xeea   : > { %v9370_v30 = vpop.eup %9369 }
 0xeeb   : > { %v9372_v27 = vpop.eup %9371  ;;  %v2598_v29 = vadd.f32 1.0, %v9370_v30 }
 0xeec   : > { %v9374_v31 = vpop.eup %9373  ;;  %v2599_v32 = vadd.f32 1.0, %v9372_v27 }
 0xeed   : > { %v9376_v33 = vpop.eup %9375  ;;  %v2604_v34 = vmul.f32 0.5, %v2598_v29  ;;  %v2600_v37 = vadd.f32 1.0, %v9374_v31 }
 0xeee   : > { %v2601_v38 = vadd.f32 1.0, %v9376_v33  ;;  %v2605_v39 = vmul.f32 0.5, %v2599_v32 }
 0xeef   : > { %v2606_v44 = vmul.f32 0.5, %v2600_v37  ;;  %v2610_v40 = vmul.f32 %v2604_v34, %v2546_v41 }
 0xef0   : > { %v2607_v47 = vmul.f32 0.5, %v2601_v38  ;;  %v2611_v51 = vmul.f32 %v2605_v39, %v2548_v46  ;;  %v7473_v46 = vld [vmem:[%s9602_s6] ss:$0 sm:$0xff]  ;;  %v9267_v38 = vld [vmem:[%s9562_s25 + $0x44] ss:$8 sps:$4 sm:$0xff]  }
 0xef1   : > { %v2612_v36 = vmul.f32 %v2606_v44, %v2550_v48  ;;  %v9265_v39 = vld [vmem:[%s9562_s25 + $0x40] ss:$8 sps:$4 sm:$0xff]   ;;  %2931 = vmatprep.subr.bf16.mxu0 %v9267_v38  ;;  %v9270_v44 = vld [vmem:[%s9562_s25 + $0x54] ss:$8 sps:$4 sm:$0xff]  }
 0xef2   : > { %v9378_v49 = vpop.eup %9377  ;;  %v2613_v53 = vmul.f32 %v2607_v47, %v2552_v50  ;;  %2932 = vmatpush1.bf16.msra.mxu0 %v9265_v39  ;;  %v9268_v47 = vld [vmem:[%s9562_s25 + $0x50] ss:$8 sps:$4 sm:$0xff]  }
 0xef3   : > { %v9380_v54 = vpop.eup %9379  ;;  %v2616_v56 = vpack.c.bf16 %v2612_v36, %v2610_v40  ;;  %v2602_v59 = vadd.f32 1.0, %v9378_v49  ;;  %2933 = vmatprep.subr.bf16.mxu0 %v9270_v44  ;;  %v9273_v40 = vld [vmem:[%s9562_s25 + $0x64] ss:$8 sps:$4 sm:$0xff]   ;;  %v9271_v36 = vld [vmem:[%s9562_s25 + $0x60] ss:$8 sps:$4 sm:$0xff]  }
 0xef4   : > { %v2617_v61 = vpack.c.bf16 %v2613_v53, %v2611_v51  ;;  %v2603_v35 = vadd.f32 1.0, %v9380_v54  ;;  %v9276_v49 = vld [vmem:[%s9562_s25 + $0x74] ss:$8 sps:$4 sm:$0xff]   ;;  %v9274_v51 = vld [vmem:[%s9562_s25 + $0x70] ss:$8 sps:$4 sm:$0xff]  }
 0xef5   : > { %v2608_v45 = vmul.f32 0.5, %v2602_v59 }
 0xef6   : > { %2787 = vmatprep.mubr.bf16.mxu1 %v2617_v61  ;;  %v2609_v55 = vmul.f32 0.5, %v2603_v35  ;;  %2934 = vmatpush1.bf16.msra.mxu0 %v9268_v47 }
 0xef7   : > { %2788 = vmatmul.mubr.bf16.vlgmr.msra.gmra.mrb[48].mxu1 %v2616_v56  ;;  %v2614_v25 = vmul.f32 %v2608_v45, %v2556_v0  ;;  %2935 = vmatprep.subr.bf16.mxu0 %v9273_v40 }
 0xef8   : > { %v2615_v42 = vmul.f32 %v2609_v55, %v2558_v22 }
 0xef9   : > { %v2618_v18 = vpack.c.bf16 %v2614_v25, %v2614_v25 }
 0xefa   : > { %v2619_v63 = vpack.c.bf16 %v2615_v42, %v2615_v42  ;;  %2936 = vmatpush1.bf16.msra.mxu0 %v9271_v36  ;;  %v7490_v42 = vld [vmem:[%s9557_s21 + $0x2] sm:$0x3] }
 0xefb   : > { %2937 = vmatprep.subr.bf16.mxu0 %v9276_v49 }
 0xefc   : > { %2795 = vmatprep.mubr.bf16.mxu1 %v2619_v63  ;;  %v2850_v63 = vrot.slane %v7490_v42, %v9756_v6 }
 0xefe   : > { %2938 = vmatpush1.bf16.msra.mxu0 %v9274_v51 }
 0xeff   : > { %2796 = vmatmul.mubr.bf16.gmra.mrb[52].mxu1 %v2618_v18  ;;  %8385 = vmatprep.subr.bf16.mxu0 %v9510_v28 }
 0xf00   : > { %8187 = vmatprep.mubr.msk.f32.mxu1 %vm9512_vm1, %v9513_v43 }
 0xfca   : > { %v7738_v41 = vpop.f32.mrb[48].mxu1 }
 0xfcb   : > { %v7739_v48 = vpop.f32.mrb[49].mxu1 }
 0xfcc   : > { %v7740_v50 = vadd.f32 %v7739_v48, %v7738_v41  ;;  %v7741_v20 = vpop.f32.mrb[50].mxu1  ;;  %v2857_v48 = vrot.slane %v7490_v42, %v9761_v11 }
 0xfcd   : > { %v7742_v60 = vpop.f32.mrb[51].mxu1 }
 0xfce   : > { %v2790_v58 = vadd.f32 %v7740_v50, %v7473_v46  ;;  %v7743_v2 = vadd.f32 %v7742_v60, %v7741_v20 }
 0xfd0   : > { %v10083_v4 = vadd.f32 %v2790_v58, %v10024_v10  ;;  %v2793_v22 = vadd.f32 %v7743_v2, %v7473_v46 }
 0xfd2   : > { %v10086_v0 = vadd.f32 %v2793_v22, %v10027_v13  ;;  %v7744_v5 = vpop.f32.mrb[52].mxu1  ;;  %v2808_v7 = vsel %vm1046_vm0, %v10083_v4, 0.0 }
 0xfd3   : > { %v7745_v8 = vpop.f32.mrb[53].mxu1  ;;  %2809 = vadd.xlane.f32.xlu1 %v2808_v7 }
 0xfd4   : > { %v7746_v9 = vadd.f32 %v7745_v8, %v7744_v5  ;;  %v7747_v12 = vpop.f32.mrb[54].mxu1  ;;  %v2811_v14 = vsel %vm1046_vm0, %v10086_v0, 0.0 }
 0xfd5   : > { %v7748_v57 = vpop.f32.mrb[55].mxu1  ;;  %2812 = vadd.xlane.f32.xlu0 %v2811_v14  ;;  %v7499_v14 = vld [vmem:[%s9567_s29 + $0x2] sm:$0x3] }
 0xfd6   : > { %v2798_v16 = vadd.f32 %v7746_v9, %v7473_v46  ;;  %v2878_v57 = vrot.slane %v7499_v14, %v9756_v6 }
 0xfd8   : > { %v10093_v10 = vadd.f32 %v2798_v16, %v10032_v15 }
 0xfda   : > { %v2814_v13 = vsel %vm1046_vm0, %v10093_v10, 0.0 }
 0xfdb   : > { %2815 = vadd.xlane.f32.xlu1 %v2814_v13  ;;  %v2882_v13 = vrot.slane %v7499_v14, %v9761_v11 }
0x1060   : > { %v2810_v21 = vpop.xlane.xlu1 %2809 }
0x1061   : > { %v2817_v17 = vmul.f32 0.015625, %v2810_v21 }
0x1062   : > { %v2813_v19 = vpop.xlane.xlu0 %2812 }
0x1063   : > { %v2820_v24 = vsub.f32 %v10083_v4, %v2817_v17  ;;  %v2818_v23 = vmul.f32 0.015625, %v2813_v19 }
0x1065   : > { %v2821_v26 = vsub.f32 %v10086_v0, %v2818_v23  ;;  %v2823_v30 = vmul.f32 %v2820_v24, %v2820_v24 }
0x1067   : > { %v2826_v27 = vsel %vm1046_vm0, %v2823_v30, 0.0  ;;  %v2824_v15 = vmul.f32 %v2821_v26, %v2821_v26 }
0x1068   : > { %2827 = vadd.xlane.f32.xlu0 %v2826_v27  ;;  %v2816_v29 = vpop.xlane.xlu1 %2815 }
0x1069   : > { %v2819_v31 = vmul.f32 0.015625, %v2816_v29  ;;  %v2829_v32 = vsel %vm1046_vm0, %v2824_v15, 0.0 }
0x106a   : > { %2830 = vadd.xlane.f32.xlu1 %v2829_v32 }
0x106b   : > { %v2822_v33 = vsub.f32 %v10093_v10, %v2819_v31 }
0x106d   : > { %v2825_v34 = vmul.f32 %v2822_v33, %v2822_v33 }
0x106f   : > { %v2832_v37 = vsel %vm1046_vm0, %v2825_v34, 0.0 }
0x1070   : > { %2833 = vadd.xlane.f32.xlu0 %v2832_v37 }
0x10f5   : > { %v2828_v53 = vpop.xlane.xlu0 %2827 }
0x10f6   : > { %v2835_v54 = vmul.f32 0.015625, %v2828_v53 }
0x10f7   : > { %v2831_v56 = vpop.xlane.xlu1 %2830 }
0x10f8   : > { %v2838_v59 = vadd.f32 1e-06, %v2835_v54  ;;  %v2836_v61 = vmul.f32 0.015625, %v2831_v56 }
0x10fa   : > { %9381 = vrsqrt.f32 %v2838_v59  ;;  %v2839_v35 = vadd.f32 1e-06, %v2836_v61 }
0x10fc   : > { %9383 = vrsqrt.f32 %v2839_v35 }
0x10fd   : > { %v2834_v45 = vpop.xlane.xlu0 %2833 }
0x10fe   : > { %v2837_v55 = vmul.f32 0.015625, %v2834_v45 }
0x1100   : > { %v2840_v25 = vadd.f32 1e-06, %v2837_v55 }
0x1102   : > { %9385 = vrsqrt.f32 %v2840_v25 }
0x1104   : > { %v9382_v18 = vpop.eup %9381 }
0x1105   : > { %v2844_v41 = vmul.f32 %v9382_v18, %v2820_v24 }
0x1106   : > { %v9384_v46 = vpop.eup %9383 }
0x1107   : > { %v2851_v50 = vmul.f32 %v2850_v63, %v2844_v41  ;;  %v2845_v20 = vmul.f32 %v9384_v46, %v2821_v26 }
0x1109   : > { %v2852_v60 = vmul.f32 %v2850_v63, %v2845_v20  ;;  %v2858_v58 = vadd.f32 %v2857_v48, %v2851_v50 }
0x110b   : > { %v2859_v2 = vadd.f32 %v2857_v48, %v2852_v60 }
0x110c   : > { %v9386_v22 = vpop.eup %9385 }
0x110d   : > { %v2861_v5 = vpack.c.bf16 %v2859_v2, %v2858_v58  ;;  %v2846_v7 = vmul.f32 %v9386_v22, %v2822_v33 }
0x110f   : > { %7508 = vmatmul.mubr.msk.bf16.vlgmr.msra.gmra.mrb[28].mxu0 %vm1046_vm0, %v2861_v5  ;;  %v2853_v8 = vmul.f32 %v2850_v63, %v2846_v7 }
0x1110   : > { %2973 = vmatprep.mubr.bf16.mxu0 %v9509_v1 }
0x1111   : > { %v2860_v9 = vadd.f32 %v2857_v48, %v2853_v8 }
0x1113   : > { %v2862_v12 = vpack.c.bf16 %v2860_v9, %v2860_v9  ;;  %v10201_v9 = vld [vmem:[%s9547_s13] ss:$0 sm:$0xff] }
0x1117   : > { %7509 = vmatmul.mubr.msk.bf16.gmra.mrb[32].mxu0 %vm1046_vm0, %v2862_v12 }
0x1118   : > { %8172 = vmatprep.mubr.msk.f32.mxu0 %vm9512_vm1, %v9513_v43 }
0x11e2   : > { %v2965_v16 = vpop.f32.mrb[28].mxu0 }
0x11e3   : > { %v2967_v21 = vpop.f32.mrb[29].mxu0  ;;  %v2966_v19 = vadd.f32 %v2965_v16, %v2878_v57 }
0x11e4   : > { %v2969_v17 = vpop.f32.mrb[30].mxu0  ;;  %v2968_v26 = vadd.f32 %v2967_v21, %v2882_v13 }
0x11e5   : > { %v2970_v24 = vadd.f32 %v2969_v17, %v2878_v57  ;;  %v2971_v23 = vpop.f32.mrb[31].mxu0 }
0x11e6   : > { %v2972_v30 = vadd.f32 %v2971_v23, %v2882_v13 }
0x11e7   : > { %v9154_v27 = vpack.i.bf16 %v2970_v24, %v2966_v19 }
0x11e8   : > { %v8390_v15 = vpack.c.bf16 %v2972_v30, %v2968_v26  ;;  %v10123_v29 = vpack.i.bf16 %v2972_v30, %v2968_v26 }
0x11e9   : > { %9155 = vrot.lane.b32.xlu1 %v9154_v27, %s11424_s15 }
0x11ea   : > { %v2975_v31 = vpop.f32.mrb[32].mxu0  ;;  %8391 = vmatpush3.bf16.msra.mxu1 %v8390_v15 }
0x11eb   : > { %v2976_v32 = vadd.f32 %v2975_v31, %v2878_v57  ;;  %v2977_v33 = vpop.f32.mrb[33].mxu0  ;;  %8185 = vmatprep.subr.mxu1 %v9513_v43 }
0x11ec   : > { %v10127_v34 = vadd.f32 %v2977_v33, %v2882_v13  ;;  %v2979_v37 = vpop.f32.mrb[34].mxu0 }
0x11ed   : > { %v2980_v38 = vpop.f32.mrb[35].mxu0  ;;  %2989 = vrot.lane.b32.xlu0 %v2976_v32, %s11424_s15  ;;  %9160 = vrot.lane.b32.xlu1 %v9154_v27, %s9514_s16  ;;  %s9522_s15 = smov 104  }
0x11ee   : > { %8186 = vmatpush3.msra.mxu1 %v10127_v34 }
0x11ef   : > { %8396 = vmatprep.subr.bf16.mxu1 %v9510_v28 }
0x11f1   : > { %3211 = vrot.lane.b32.xlu0 %v2966_v19, %s11423_s18  ;;  %3221 = vrot.lane.b32.xlu1 %v2976_v32, %s9514_s16 }
0x11f5   : > { %3215 = vrot.lane.b32.xlu0 %v2976_v32, %s11423_s18  ;;  %9165 = vrot.lane.b32.xlu1 %v9154_v27, %s9516_s22 }
0x11f9   : > { %9170 = vrot.lane.b32.xlu0 %v9154_v27, %s9517_s23  ;;  %3213 = vrot.lane.b32.xlu1 %v2970_v24, %s11423_s18 }
0x11fd   : > { %3457 = vrot.lane.b32.xlu0 %v2970_v24, %s9518_s26  ;;  %3465 = vrot.lane.b32.xlu1 %v2976_v32, %s9516_s22 }
0x1201   : > { %3706 = vrot.lane.b32.xlu0 %v2976_v32, %s9517_s23  ;;  %3455 = vrot.lane.b32.xlu1 %v2966_v19, %s9518_s26 }
0x1205   : > { %3698 = vrot.lane.b32.xlu0 %v2970_v24, %s9519_s28  ;;  %3459 = vrot.lane.b32.xlu1 %v2976_v32, %s9518_s26 }
0x1209   : > { %3696 = vrot.lane.b32.xlu1 %v2966_v19, %s9519_s28 }
0x120d   : > { %3700 = vrot.lane.b32.xlu1 %v2976_v32, %s9519_s28 }
0x125b   : > { %v9156_v39 = vpop.permute.xlu1 %9155 }
0x125c   : > { %v9158_v44 = vunpack.i.h.bf16 %v9156_v39  ;;  %v9157_v47 = vunpack.i.l.bf16 %v9156_v39 }
0x125e   : > { %v8386_v40 = vpack.c.bf16 %v9158_v44, %v9157_v47 }
0x125f   : > { %v9161_v36 = vpop.permute.xlu1 %9160  ;;  %v2990_v53 = vpop.permute.xlu0 %2989 }
0x1260   : > { %8388 = vmatpush3.bf16.xpose.msk.msra.mxu0 %vm9794_vm3, %v8386_v40  ;;  %v9163_v49 = vunpack.i.h.bf16 %v9161_v36  ;;  %v9162_v51 = vunpack.i.l.bf16 %v9161_v36 }
0x1261   : > { %8170 = vmatprep.subr.mxu0 %v9513_v43 }
0x1262   : > { %v8393_v56 = vpack.c.bf16 %v9163_v49, %v9162_v51 }
0x1263   : > { %v3222_v54 = vpop.permute.xlu1 %3221  ;;  %v3212_v59 = vpop.permute.xlu0 %3211 }
0x1267   : > { %v9166_v61 = vpop.permute.xlu1 %9165  ;;  %v3216_v55 = vpop.permute.xlu0 %3215 }
0x1268   : > { %8171 = vmatpush3.xpose.msk.msra.mxu0 %vm1290_vm2, %v2990_v53  ;;  %v9168_v35 = vunpack.i.h.bf16 %v9166_v61  ;;  %v9167_v45 = vunpack.i.l.bf16 %v9166_v61 }
0x1269   : > { %8392 = vmatprep.subr.bf16.mxu0 %v9510_v28 }
0x126a   : > { %v8400_v42 = vpack.c.bf16 %v9168_v35, %v9167_v45 }
0x126b   : > { %8173 = vmatmul.mubr.msk.f32.vlgmr.msra.gmra.mrb[36].mxu0 %vm1290_vm2, %v2966_v19  ;;  %v3214_v25 = vpop.permute.xlu1 %3213  ;;  %v9171_v63 = vpop.permute.xlu0 %9170 }
0x126c   : > { %8395 = vmatpush3.bf16.xpose.msk.msra.mxu0 %vm9794_vm3, %v8393_v56  ;;  %8175 = vmatprep.mubr.msk.f32.mxu0 %vm9512_vm1, %v9513_v43  ;;  %v9173_v41 = vunpack.i.h.bf16 %v9171_v63  ;;  %v9172_v46 = vunpack.i.l.bf16 %v9171_v63 }
0x126d   : > { %8200 = vmatprep.subr.mxu0 %v9513_v43 }
0x126e   : > { %v8407_v48 = vpack.c.bf16 %v9173_v41, %v9172_v46 }
0x126f   : > { %8176 = vmatmul.mubr.msk.f32.gmra.mrb[38].mxu0 %vm1290_vm2, %v2970_v24  ;;  %v3466_v18 = vpop.permute.xlu1 %3465  ;;  %v3458_v20 = vpop.permute.xlu0 %3457 }
0x1270   : > { %8178 = vmatprep.mubr.msk.f32.mxu0 %vm9512_vm1, %v9513_v43 }
0x1273   : > { %8179 = vmatmul.mubr.msk.f32.gmra.mrb[40].mxu0 %vm1290_vm2, %v2976_v32  ;;  %v3456_v50 = vpop.permute.xlu1 %3455  ;;  %v3707_v58 = vpop.permute.xlu0 %3706 }
0x1274   : > { %8201 = vmatpush3.xpose.msk.msra.mxu0 %vm1290_vm2, %v3222_v54  ;;  %8202 = vmatprep.mubr.msk.f32.mxu0 %vm9512_vm1, %v9513_v43 }
0x1275   : > { %8399 = vmatprep.subr.bf16.mxu0 %v9510_v28 }
0x1277   : > { %8203 = vmatmul.mubr.msk.f32.vlgmr.msra.gmra.mrb[42].mxu0 %vm1290_vm2, %v3212_v59  ;;  %v3460_v60 = vpop.permute.xlu1 %3459  ;;  %v3699_v2 = vpop.permute.xlu0 %3698 }
0x1278   : > { %8402 = vmatpush3.bf16.xpose.msk.msra.mxu0 %vm9794_vm3, %v8400_v42  ;;  %8205 = vmatprep.mubr.msk.f32.mxu0 %vm9512_vm1, %v9513_v43 }
0x1279   : > { %8230 = vmatprep.subr.mxu0 %v9513_v43 }
0x127b   : > { %8206 = vmatmul.mubr.msk.f32.gmra.mrb[44].mxu0 %vm1290_vm2, %v3214_v25  ;;  %v3697_v52 = vpop.permute.xlu1 %3696 }
0x127c   : > { %8208 = vmatprep.mubr.msk.f32.mxu0 %vm9512_vm1, %v9513_v43 }
0x127f   : > { %8209 = vmatmul.mubr.msk.f32.gmra.mrb[46].mxu0 %vm1290_vm2, %v3216_v55  ;;  %v3701_v22 = vpop.permute.xlu1 %3700 }
0x1280   : > { %8231 = vmatpush3.xpose.msk.msra.mxu0 %vm1290_vm2, %v3466_v18  ;;  %8232 = vmatprep.mubr.msk.f32.mxu0 %vm9512_vm1, %v9513_v43 }
0x1281   : > { %8406 = vmatprep.subr.bf16.mxu0 %v9510_v28 }
0x1283   : > { %8233 = vmatmul.mubr.msk.f32.vlgmr.msra.gmra.mrb[48].mxu0 %vm1290_vm2, %v3456_v50 }
0x1284   : > { %8409 = vmatpush3.bf16.xpose.msk.msra.mxu0 %vm9794_vm3, %v8407_v48  ;;  %8235 = vmatprep.mubr.msk.f32.mxu0 %vm9512_vm1, %v9513_v43  ;;  %vm5483_vm3 = vcmask 982016  }
0x1285   : > { %8260 = vmatprep.subr.mxu0 %v9513_v43 }
0x1287   : > { %8236 = vmatmul.mubr.msk.f32.gmra.mrb[50].mxu0 %vm1290_vm2, %v3458_v20 }
0x1288   : > { %8238 = vmatprep.mubr.msk.f32.mxu0 %vm9512_vm1, %v9513_v43 }
0x128b   : > { %8239 = vmatmul.mubr.msk.f32.gmra.mrb[52].mxu0 %vm1290_vm2, %v3460_v60 }
0x128c   : > { %8261 = vmatpush3.xpose.msk.msra.mxu0 %vm1290_vm2, %v3707_v58  ;;  %8262 = vmatprep.mubr.msk.f32.mxu0 %vm9512_vm1, %v9513_v43 }
0x128f   : > { %8263 = vmatmul.mubr.msk.f32.vlgmr.msra.gmra.mrb[54].mxu0 %vm1290_vm2, %v3697_v52 }
0x1290   : > { %8265 = vmatprep.mubr.msk.f32.mxu0 %vm9512_vm1, %v9513_v43 }
0x1293   : > { %8266 = vmatmul.mubr.msk.f32.gmra.mrb[56].mxu0 %vm1290_vm2, %v3699_v2 }
0x1294   : > { %8268 = vmatprep.mubr.msk.f32.mxu0 %vm9512_vm1, %v9513_v43 }
0x1297   : > { %8269 = vmatmul.mubr.msk.f32.gmra.mrb[58].mxu0 %vm1290_vm2, %v3701_v22 }
0x133e   : > { %v3069_v5 = vpop.f32.mrb[36].mxu0 }
0x133f   : > { %v3083_v7 = vmul.f32 0.25, %v3069_v5  ;;  %v8174_v8 = vpop.f32.mrb[37].mxu0 }
0x1341   : > { %v10204_v12 = vadd.f32 %v10201_v9, %v3083_v7 }
0x1342   : > { %v3074_v14 = vpop.f32.mrb[38].mxu0 }
0x1343   : > { %v3084_v57 = vmul.f32 0.25, %v3074_v14  ;;  %v8177_v16 = vpop.f32.mrb[39].mxu0  ;;  %v3089_v13 = vsel %vm1395_vm4, %v10204_v12, -inf }
0x1344   : > { %3090 = vmax.xlane.f32.xlu0 %v3089_v13 }
0x1345   : > { %v10209_v21 = vadd.f32 %v10201_v9, %v3084_v57 }
0x1346   : > { %v3079_v17 = vpop.f32.mrb[40].mxu0 }
0x1347   : > { %v3085_v19 = vmul.f32 0.25, %v3079_v17  ;;  %v8180_v24 = vpop.f32.mrb[41].mxu0  ;;  %v3092_v23 = vsel %vm1395_vm4, %v10209_v21, -inf }
0x1348   : > { %3093 = vmax.xlane.f32.xlu1 %v3092_v23 }
0x1349   : > { %v10214_v26 = vadd.f32 %v10201_v9, %v3085_v19 }
0x134a   : > { %v3301_v30 = vpop.f32.mrb[42].mxu0 }
0x134b   : > { %v3315_v27 = vmul.f32 0.25, %v3301_v30  ;;  %v8204_v15 = vpop.f32.mrb[43].mxu0  ;;  %v3095_v31 = vsel %vm1395_vm4, %v10214_v26, -inf }
0x134c   : > { %3096 = vmax.xlane.f32.xlu0 %v3095_v31 }
0x134d   : > { %v10219_v32 = vadd.f32 %v10201_v9, %v3315_v27 }
0x134e   : > { %v3306_v33 = vpop.f32.mrb[44].mxu0 }
0x134f   : > { %v3316_v37 = vmul.f32 0.25, %v3306_v33  ;;  %v8207_v38 = vpop.f32.mrb[45].mxu0  ;;  %v3321_v39 = vsel %vm1395_vm4, %v10219_v32, -inf }
0x1350   : > { %3322 = vmax.xlane.f32.xlu0 %v3321_v39 }
0x1351   : > { %v10224_v44 = vadd.f32 %v10201_v9, %v3316_v37 }
0x1352   : > { %v3311_v47 = vpop.f32.mrb[46].mxu0 }
0x1353   : > { %v3317_v40 = vmul.f32 0.25, %v3311_v47  ;;  %v8210_v36 = vpop.f32.mrb[47].mxu0  ;;  %v3324_v49 = vsel %vm1395_vm4, %v10224_v44, -inf }
0x1354   : > { %3325 = vmax.xlane.f32.xlu0 %v3324_v49 }
0x1355   : > { %v10229_v51 = vadd.f32 %v10201_v9, %v3317_v40 }
0x1356   : > { %v3545_v53 = vpop.f32.mrb[48].mxu0 }
0x1357   : > { %v3559_v54 = vmul.f32 0.25, %v3545_v53  ;;  %v8234_v56 = vpop.f32.mrb[49].mxu0  ;;  %v3327_v59 = vsel %vm1395_vm4, %v10229_v51, -inf }
0x1358   : > { %3328 = vmax.xlane.f32.xlu1 %v3327_v59 }
0x1359   : > { %v10234_v61 = vadd.f32 %v10201_v9, %v3559_v54 }
0x135a   : > { %v3550_v35 = vpop.f32.mrb[50].mxu0 }
0x135b   : > { %v3560_v45 = vmul.f32 0.25, %v3550_v35  ;;  %v8237_v55 = vpop.f32.mrb[51].mxu0  ;;  %v3565_v42 = vsel %vm1395_vm4, %v10234_v61, -inf }
0x135c   : > { %3566 = vmax.xlane.f32.xlu0 %v3565_v42 }
0x135d   : > { %v10239_v25 = vadd.f32 %v10201_v9, %v3560_v45 }
0x135e   : > { %v3555_v63 = vpop.f32.mrb[52].mxu0 }
0x135f   : > { %v3561_v18 = vmul.f32 0.25, %v3555_v63  ;;  %v8240_v41 = vpop.f32.mrb[53].mxu0  ;;  %v3568_v46 = vsel %vm1395_vm4, %v10239_v25, -inf }
0x1360   : > { %3569 = vmax.xlane.f32.xlu1 %v3568_v46 }
0x1361   : > { %v10244_v48 = vadd.f32 %v10201_v9, %v3561_v18 }
0x1362   : > { %v3786_v50 = vpop.f32.mrb[54].mxu0 }
0x1363   : > { %v3800_v20 = vmul.f32 0.25, %v3786_v50  ;;  %v8264_v60 = vpop.f32.mrb[55].mxu0  ;;  %v3571_v58 = vsel %vm1395_vm4, %v10244_v48, -inf }
0x1364   : > { %3572 = vmax.xlane.f32.xlu0 %v3571_v58 }
0x1365   : > { %v10249_v52 = vadd.f32 %v10201_v9, %v3800_v20 }
0x1366   : > { %v3791_v2 = vpop.f32.mrb[56].mxu0 }
0x1367   : > { %v3801_v22 = vmul.f32 0.25, %v3791_v2  ;;  %v8267_v5 = vpop.f32.mrb[57].mxu0  ;;  %v3806_v7 = vsel %vm1395_vm4, %v10249_v52, -inf }
0x1368   : > { %3807 = vmax.xlane.f32.xlu1 %v3806_v7 }
0x1369   : > { %v10254_v8 = vadd.f32 %v10201_v9, %v3801_v22 }
0x136a   : > { %v3796_v14 = vpop.f32.mrb[58].mxu0 }
0x136b   : > { %v8270_v57 = vpop.f32.mrb[59].mxu0  ;;  %v3809_v16 = vsel %vm1395_vm4, %v10254_v8, -inf  ;;  %v3802_v13 = vmul.f32 0.25, %v3796_v14 }
0x136c   : > { %3810 = vmax.xlane.f32.xlu0 %v3809_v16 }
0x136d   : > { %v10263_v17 = vadd.f32 %v10201_v9, %v3802_v13 }
0x136f   : > { %v3812_v19 = vsel %vm1395_vm4, %v10263_v17, -inf }
0x1379   : > { %3361 = vrot.lane.b32.xlu1 %v10127_v34, %s11423_s18 }
0x1382   : > { %9175 = vrot.lane.b32.xlu0 %v10123_v29, %s11423_s18  ;;  %s11450_s18 = sld [smem:[#allocation7_spill]] }
0x139d   : > { %3813 = vmax.xlane.f32.xlu1 %v3812_v19 }
0x13ae   : > { %9180 = vrot.lane.b32.xlu1 %v10123_v29, %s9518_s26 }
0x13d1   : > { %v3091_v24 = vpop.xlane.xlu0 %3090 }
0x13d2   : > { %v3098_v23 = vsub.f32 %v10204_v12, %v3091_v24 }
0x13d4   : > { %v3101_v30 = vmul.f32 1.442695, %v3098_v23 }
0x13d5   : > { %v3094_v27 = vpop.xlane.xlu1 %3093 }
0x13d6   : > { %9387 = vpow2.f32 %v3101_v30  ;;  %v3099_v15 = vsub.f32 %v10209_v21, %v3094_v27 }
0x13d8   : > { %v3103_v31 = vmul.f32 1.442695, %v3099_v15 }
0x13d9   : > { %v3097_v33 = vpop.xlane.xlu0 %3096 }
0x13da   : > { %9389 = vpow2.f32 %v3103_v31  ;;  %v3100_v9 = vsub.f32 %v10214_v26, %v3097_v33 }
0x13dc   : > { %v3105_v37 = vmul.f32 1.442695, %v3100_v9 }
0x13dd   : > { %v3323_v38 = vpop.xlane.xlu0 %3322 }
0x13de   : > { %9391 = vpow2.f32 %v3105_v37  ;;  %v3330_v39 = vsub.f32 %v10219_v32, %v3323_v38 }
0x13e0   : > { %v10273_v47 = vpop.eup %9387  ;;  %v3333_v40 = vmul.f32 1.442695, %v3330_v39 }
0x13e1   : > { %v3326_v36 = vpop.xlane.xlu0 %3325  ;;  %v3107_v12 = vsel %vm1395_vm4, %v10273_v47, 0.0 }
0x13e2   : > { %9393 = vpow2.f32 %v3333_v40  ;;  %v3331_v21 = vsub.f32 %v10224_v44, %v3326_v36  ;;  %3108 = vadd.xlane.f32.xlu0 %v3107_v12 }
0x13e4   : > { %v10278_v49 = vpop.eup %9389  ;;  %v3335_v53 = vmul.f32 1.442695, %v3331_v21 }
0x13e5   : > { %v3329_v26 = vpop.xlane.xlu1 %3328  ;;  %v3110_v54 = vsel %vm1395_vm4, %v10278_v49, 0.0 }
0x13e6   : > { %9395 = vpow2.f32 %v3335_v53  ;;  %v3332_v32 = vsub.f32 %v10229_v51, %v3329_v26  ;;  %3111 = vadd.xlane.f32.xlu1 %v3110_v54 }
0x13e8   : > { %v10283_v56 = vpop.eup %9391  ;;  %v3337_v59 = vmul.f32 1.442695, %v3332_v32 }
0x13e9   : > { %v3567_v35 = vpop.xlane.xlu0 %3566  ;;  %v3113_v45 = vsel %vm1395_vm4, %v10283_v56, 0.0 }
0x13ea   : > { %9397 = vpow2.f32 %v3337_v59  ;;  %v3574_v44 = vsub.f32 %v10234_v61, %v3567_v35  ;;  %3114 = vadd.xlane.f32.xlu0 %v3113_v45 }
0x13ec   : > { %v10288_v55 = vpop.eup %9393  ;;  %v3577_v42 = vmul.f32 1.442695, %v3574_v44 }
0x13ed   : > { %v3570_v63 = vpop.xlane.xlu1 %3569  ;;  %v3339_v18 = vsel %vm1395_vm4, %v10288_v55, 0.0 }
0x13ee   : > { %9399 = vpow2.f32 %v3577_v42  ;;  %v3575_v51 = vsub.f32 %v10239_v25, %v3570_v63  ;;  %3340 = vadd.xlane.f32.xlu1 %v3339_v18 }
0x13f0   : > { %v10293_v41 = vpop.eup %9395  ;;  %v3579_v46 = vmul.f32 1.442695, %v3575_v51 }
0x13f1   : > { %v3573_v50 = vpop.xlane.xlu0 %3572  ;;  %v3342_v20 = vsel %vm1395_vm4, %v10293_v41, 0.0 }
0x13f2   : > { %9401 = vpow2.f32 %v3579_v46  ;;  %v3576_v61 = vsub.f32 %v10244_v48, %v3573_v50  ;;  %3343 = vadd.xlane.f32.xlu0 %v3342_v20 }
0x13f4   : > { %v10298_v60 = vpop.eup %9397  ;;  %v3581_v58 = vmul.f32 1.442695, %v3576_v61 }
0x13f5   : > { %v3808_v2 = vpop.xlane.xlu1 %3807  ;;  %v3345_v22 = vsel %vm1395_vm4, %v10298_v60, 0.0 }
0x13f6   : > { %9403 = vpow2.f32 %v3581_v58  ;;  %v3815_v25 = vsub.f32 %v10249_v52, %v3808_v2  ;;  %3346 = vadd.xlane.f32.xlu1 %v3345_v22 }
0x13f8   : > { %v10303_v5 = vpop.eup %9399  ;;  %v3818_v7 = vmul.f32 1.442695, %v3815_v25 }
0x13f9   : > { %v3583_v14 = vsel %vm1395_vm4, %v10303_v5, 0.0  ;;  %v3811_v24 = vpop.xlane.xlu0 %3810  ;;  %v3362_v27 = vpop.permute.xlu1 %3361 }
0x13fa   : > { %9405 = vpow2.f32 %v3818_v7  ;;  %3584 = vadd.xlane.f32.xlu0 %v3583_v14  ;;  %v3816_v23 = vsub.f32 %v10254_v8, %v3811_v24 }
0x13fc   : > { %v10307_v48 = vpop.eup %9401  ;;  %v3820_v30 = vmul.f32 1.442695, %v3816_v23 }
0x13fd   : > { %v3586_v57 = vsel %vm1395_vm4, %v10307_v48, 0.0  ;;  %v9176_v8 = vpop.permute.xlu0 %9175 }
0x13fe   : > { %3587 = vadd.xlane.f32.xlu1 %v3586_v57  ;;  %9407 = vpow2.f32 %v3820_v30  ;;  %v9178_v21 = vunpack.i.h.bf16 %v9176_v8  ;;  %v9177_v53 = vunpack.i.l.bf16 %v9176_v8 }
0x1400   : > { %v10311_v16 = vpop.eup %9403  ;;  %v8397_v59 = vpack.c.bf16 %v9178_v21, %v9177_v53 }
0x1401   : > { %v3589_v52 = vsel %vm1395_vm4, %v10311_v16, 0.0 }
0x1402   : > { %3590 = vadd.xlane.f32.xlu1 %v3589_v52 }
0x1404   : > { %v10315_v13 = vpop.eup %9405 }
0x1405   : > { %v3824_v19 = vsel %vm1395_vm4, %v10315_v13, 0.0 }
0x1406   : > { %3825 = vadd.xlane.f32.xlu1 %v3824_v19 }
0x1408   : > { %v10322_v31 = vpop.eup %9407 }
0x1409   : > { %v3827_v37 = vsel %vm1395_vm4, %v10322_v31, 0.0 }
0x1410   : > { %3602 = vrot.lane.b32.xlu0 %v10127_v34, %s9518_s26 }
0x142a   : > { %v3814_v15 = vpop.xlane.xlu1 %3813 }
0x142b   : > { %v3817_v33 = vsub.f32 %v10263_v17, %v3814_v15 }
0x142d   : > { %v3822_v9 = vmul.f32 1.442695, %v3817_v33 }
0x142e   : > { %v9181_v17 = vpop.permute.xlu1 %9180 }
0x142f   : > { %9409 = vpow2.f32 %v3822_v9  ;;  %3828 = vadd.xlane.f32.xlu0 %v3827_v37  ;;  %v9183_v42 = vunpack.i.h.bf16 %v9181_v17  ;;  %v9182_v63 = vunpack.i.l.bf16 %v9181_v17 }
0x1431   : > { %v8404_v46 = vpack.c.bf16 %v9183_v42, %v9182_v63 }
0x1439   : > { %v10327_v38 = vpop.eup %9409 }
0x143a   : > { %v3830_v39 = vsel %vm1395_vm4, %v10327_v38, 0.0 }
0x143b   : > { %3831 = vadd.xlane.f32.xlu1 %v3830_v39 }
0x1445   : > { %3843 = vrot.lane.b32.xlu0 %v10127_v34, %s9519_s28 }
0x144c   : > { %9185 = vrot.lane.b32.xlu1 %v10123_v29, %s9519_s28 }
0x146f   : > { %v3109_v40 = vpop.xlane.xlu0 %3108 }
0x1470   : > { %9411 = vrcp.f32 %v3109_v40 }
0x1473   : > { %v3112_v36 = vpop.xlane.xlu1 %3111 }
0x1474   : > { %9413 = vrcp.f32 %v3112_v36 }
0x1477   : > { %v3115_v12 = vpop.xlane.xlu0 %3114 }
0x1478   : > { %9415 = vrcp.f32 %v3115_v12 }
0x147a   : > { %v9412_v26 = vpop.eup %9411 }
0x147b   : > { %v3119_v54 = vmul.f32 %v9412_v26, %v10273_v47  ;;  %v3341_v32 = vpop.xlane.xlu1 %3340 }
0x147c   : > { %9417 = vrcp.f32 %v3341_v32  ;;  %v9278_v32 = vld [vmem:[%s9572_s3 + $0x28] sm:$0xff]  }
0x147d   : > { %8188 = vmatmul.mubr.msk.f32.vlgmr.msra.gmra.mrb[56].mxu1 %vm1395_vm4, %v3119_v54  ;;  %v9277_v54 = vld [vmem:[%s9572_s3 + $0x20] sm:$0xff]  }
0x147e   : > { %v9414_v34 = vpop.eup %9413  ;;  %8398 = vmatpush3.bf16.msra.mxu1 %v8397_v59  ;;  %8190 = vmatprep.mubr.msk.f32.mxu1 %vm9512_vm1, %v9513_v43 }
0x147f   : > { %v3344_v29 = vpop.xlane.xlu0 %3343  ;;  %8215 = vmatprep.subr.mxu1 %v9513_v43  ;;  %v3120_v35 = vmul.f32 %v9414_v34, %v10278_v49  ;;  %8286 = vmatprep.subr.bf16.mxu0 %v9277_v54 }
0x1480   : > { %9419 = vrcp.f32 %v3344_v29  ;;  %8287 = vmatpush3.bf16.msra.mxu0 %v9277_v54  ;;  %v9279_v29 = vld [vmem:[%s9572_s3 + $0x30] sm:$0xff]  }
0x1481   : > { %8191 = vmatmul.mubr.msk.f32.gmra.mrb[58].mxu1 %vm1395_vm4, %v3120_v35  ;;  %8288 = vmatprep.subr.bf16.mxu0 %v9278_v32 }
0x1482   : > { %v9416_v45 = vpop.eup %9415  ;;  %8216 = vmatpush3.msra.mxu1 %v3362_v27  ;;  %8193 = vmatprep.mubr.msk.f32.mxu1 %vm9512_vm1, %v9513_v43 }
0x1483   : > { %v3347_v47 = vpop.xlane.xlu1 %3346  ;;  %v3121_v44 = vmul.f32 %v9416_v45, %v10283_v56  ;;  %8403 = vmatprep.subr.bf16.mxu1 %v9510_v28 }
0x1484   : > { %9421 = vrcp.f32 %v3347_v47  ;;  %8289 = vmatpush3.bf16.msra.mxu0 %v9278_v32 }
0x1485   : > { %8194 = vmatmul.mubr.msk.f32.gmra.mrb[60].mxu1 %vm1395_vm4, %v3121_v44  ;;  %8290 = vmatprep.subr.bf16.mxu0 %v9279_v29 }
0x1486   : > { %v9418_v18 = vpop.eup %9417  ;;  %8217 = vmatprep.mubr.msk.f32.mxu1 %vm9512_vm1, %v9513_v43 }
0x1487   : > { %v3351_v49 = vmul.f32 %v9418_v18, %v10288_v55  ;;  %v3585_v51 = vpop.xlane.xlu0 %3584  ;;  %v9280_v18 = vld [vmem:[%s9572_s3 + $0x38] sm:$0xff]  }
0x1488   : > { %9423 = vrcp.f32 %v3585_v51  ;;  %8291 = vmatpush3.bf16.msra.mxu0 %v9279_v29 }
0x1489   : > { %8218 = vmatmul.mubr.msk.f32.vlgmr.msra.gmra.mrb[62].mxu1 %vm1395_vm4, %v3351_v49  ;;  %8292 = vmatprep.subr.bf16.mxu0 %v9280_v18 }
0x148a   : > { %v9420_v50 = vpop.eup %9419  ;;  %8405 = vmatpush3.bf16.msra.mxu1 %v8404_v46  ;;  %8220 = vmatprep.mubr.msk.f32.mxu1 %vm9512_vm1, %v9513_v43 }
0x148b   : > { %v3603_v56 = vpop.permute.xlu0 %3602  ;;  %v3588_v20 = vpop.xlane.xlu1 %3587  ;;  %8245 = vmatprep.subr.mxu1 %v9513_v43  ;;  %v3352_v61 = vmul.f32 %v9420_v50, %v10293_v41 }
0x148c   : > { %9425 = vrcp.f32 %v3588_v20  ;;  %8293 = vmatpush3.bf16.msra.mxu0 %v9280_v18  ;;  %v9281_v18 = vld [vmem:[%s9587_s19 + $0x40] ss:$8 sps:$4 sm:$0xff]  }
0x148d   : > { %8221 = vmatmul.mubr.msk.f32.gmra.mrb[64].mxu1 %vm1395_vm4, %v3352_v61 }
0x148e   : > { %v9422_v55 = vpop.eup %9421  ;;  %8246 = vmatpush3.msra.mxu1 %v3603_v56  ;;  %8223 = vmatprep.mubr.msk.f32.mxu1 %vm9512_vm1, %v9513_v43 }
0x148f   : > { %v3591_v58 = vpop.xlane.xlu1 %3590  ;;  %v3353_v2 = vmul.f32 %v9422_v55, %v10298_v60  ;;  %8410 = vmatprep.subr.bf16.mxu1 %v9510_v28 }
0x1490   : > { %9427 = vrcp.f32 %v3591_v58 }
0x1491   : > { %8224 = vmatmul.mubr.msk.f32.gmra.mrb[66].mxu1 %vm1395_vm4, %v3353_v2 }
0x1492   : > { %v9424_v22 = vpop.eup %9423  ;;  %8247 = vmatprep.mubr.msk.f32.mxu1 %vm9512_vm1, %v9513_v43 }
0x1493   : > { %v3595_v41 = vmul.f32 %v9424_v22, %v10303_v5  ;;  %v3826_v5 = vpop.xlane.xlu1 %3825 }
0x1494   : > { %9429 = vrcp.f32 %v3826_v5 }
0x1495   : > { %8248 = vmatmul.mubr.msk.f32.vlgmr.msra.gmra.mrb[68].mxu1 %vm1395_vm4, %v3595_v41 }
0x1496   : > { %v9426_v25 = vpop.eup %9425  ;;  %8250 = vmatprep.mubr.msk.f32.mxu1 %vm9512_vm1, %v9513_v43 }
0x1497   : > { %v3596_v7 = vmul.f32 %v9426_v25, %v10307_v48 }
0x1499   : > { %8251 = vmatmul.mubr.msk.f32.gmra.mrb[70].mxu1 %vm1395_vm4, %v3596_v7 }
0x149a   : > { %v9428_v60 = vpop.eup %9427  ;;  %8253 = vmatprep.mubr.msk.f32.mxu1 %vm9512_vm1, %v9513_v43 }
0x149b   : > { %v3597_v14 = vmul.f32 %v9428_v60, %v10311_v16 }
0x149d   : > { %8254 = vmatmul.mubr.msk.f32.gmra.mrb[72].mxu1 %vm1395_vm4, %v3597_v14 }
0x149e   : > { %8277 = vmatprep.mubr.msk.f32.mxu1 %vm9512_vm1, %v9513_v43  ;;  %v9430_v30 = vpop.eup %9429 }
0x149f   : > { %v3836_v16 = vmul.f32 %v9430_v30, %v10315_v13 }
0x14bc   : > { %v3829_v57 = vpop.xlane.xlu0 %3828 }
0x14bd   : > { %9431 = vrcp.f32 %v3829_v57 }
0x14c0   : > { %v3844_v27 = vpop.permute.xlu0 %3843 }
0x14c7   : > { %v9432_v15 = vpop.eup %9431 }
0x14c8   : > { %v3832_v52 = vpop.xlane.xlu1 %3831  ;;  %v3837_v33 = vmul.f32 %v9432_v15, %v10322_v31 }
0x14c9   : > { %9433 = vrcp.f32 %v3832_v52 }
0x14cc   : > { %v9186_v19 = vpop.permute.xlu1 %9185 }
0x14cd   : > { %v9188_v48 = vunpack.i.h.bf16 %v9186_v19  ;;  %v9187_v24 = vunpack.i.l.bf16 %v9186_v19 }
0x14cf   : > { %v8411_v23 = vpack.c.bf16 %v9188_v48, %v9187_v24 }
0x14d1   : > { %8412 = vmatpush3.bf16.msra.mxu1 %v8411_v23 }
0x14d2   : > { %8275 = vmatprep.subr.mxu1 %v9513_v43 }
0x14d3   : > { %v9434_v9 = vpop.eup %9433 }
0x14d4   : > { %v3838_v37 = vmul.f32 %v9434_v9, %v10327_v38 }
0x14d5   : > { %8276 = vmatpush3.msra.mxu1 %v3844_v27 }
0x14d6   : > { %8278 = vmatmul.mubr.msk.f32.vlgmr.msra.gmra.mrb[74].mxu1 %vm1395_vm4, %v3836_v16 }
0x14d7   : > { %8280 = vmatprep.mubr.msk.f32.mxu1 %vm9512_vm1, %v9513_v43 }
0x14da   : > { %8281 = vmatmul.mubr.msk.f32.gmra.mrb[76].mxu1 %vm1395_vm4, %v3837_v33 }
0x14db   : > { %8283 = vmatprep.mubr.msk.f32.mxu1 %vm9512_vm1, %v9513_v43 }
0x14de   : > { %8284 = vmatmul.mubr.msk.f32.gmra.mrb[78].mxu1 %vm1395_vm4, %v3838_v37 }
0x14df   : > { %4239 = vmatprep.mubr.bf16.mxu1 %v9509_v1 }
0x1550   : > { %v3197_v13 = vpop.f32.mrb[56].mxu1 }
0x1551   : > { %v8189_v39 = vpop.f32.mrb[57].mxu1 }
0x1554   : > { %v3202_v8 = vpop.f32.mrb[58].mxu1 }
0x1555   : > { %v8192_v17 = vpop.f32.mrb[59].mxu1 }
0x1558   : > { %v3207_v40 = vpop.f32.mrb[60].mxu1 }
0x1559   : > { %v8195_v31 = vpop.f32.mrb[61].mxu1 }
0x155c   : > { %v3441_v36 = vpop.f32.mrb[62].mxu1 }
0x155d   : > { %v8219_v12 = vpop.f32.mrb[63].mxu1 }
0x1560   : > { %v3446_v21 = vpop.f32.mrb[64].mxu1 }
0x1561   : > { %v9189_v53 = vpack.i.bf16 %v3446_v21, %v3441_v36  ;;  %v8222_v26 = vpop.f32.mrb[65].mxu1 }
0x1563   : > { %9190 = vrot.lane.b32.xlu0 %v9189_v53, %s9517_s23 }
0x1564   : > { %v3451_v38 = vpop.f32.mrb[66].mxu1 }
0x1565   : > { %3944 = vrot.lane.b32.xlu1 %v3451_v38, %s9517_s23  ;;  %v8225_v59 = vpop.f32.mrb[67].mxu1  ;;  %s11445_s23 = sld [smem:[#allocation6_spill]] }
0x1568   : > { %v3682_v34 = vpop.f32.mrb[68].mxu1 }
0x1569   : > { %v8249_v35 = vpop.f32.mrb[69].mxu1 }
0x156c   : > { %v3687_v45 = vpop.f32.mrb[70].mxu1 }
0x156d   : > { %v9194_v47 = vpack.i.bf16 %v3687_v45, %v3682_v34  ;;  %v8252_v44 = vpop.f32.mrb[71].mxu1 }
0x156f   : > { %9195 = vrot.lane.b32.xlu0 %v9194_v47, %s9516_s22 }
0x1570   : > { %v3692_v42 = vpop.f32.mrb[72].mxu1 }
0x1571   : > { %3956 = vrot.lane.b32.xlu1 %v3692_v42, %s9516_s22  ;;  %v8255_v63 = vpop.f32.mrb[73].mxu1 }
0x1572   : > { %v9283_v63 = vld [vmem:[%s9587_s19 + $0x44] ss:$8 sps:$4 sm:$0xff]  }
0x1573   : > { %4207 = vmatprep.subr.bf16.mxu1 %v9283_v63 }
0x1574   : > { %4208 = vmatpush1.bf16.msra.mxu1 %v9281_v18 }
0x15a9   : > { %v3923_v49 = vpop.f32.mrb[74].mxu1 }
0x15aa   : > { %v8279_v51 = vpop.f32.mrb[75].mxu1 }
0x15ab   : > { %v9284_v51 = vld [vmem:[%s9587_s19 + $0x50] ss:$8 sps:$4 sm:$0xff]  }
0x15ad   : > { %v3928_v46 = vpop.f32.mrb[76].mxu1 }
0x15ae   : > { %v9199_v50 = vpack.i.bf16 %v3928_v46, %v3923_v49  ;;  %v8282_v56 = vpop.f32.mrb[77].mxu1  ;;  %v9286_v49 = vld [vmem:[%s9587_s19 + $0x54] ss:$8 sps:$4 sm:$0xff]   ;;  %v9289_v46 = vld [vmem:[%s9587_s19 + $0x64] ss:$8 sps:$4 sm:$0xff]  }
0x15af   : > { %4209 = vmatprep.subr.bf16.mxu1 %v9286_v49  ;;  %v9290_v56 = vld [vmem:[%s9587_s19 + $0x70] ss:$8 sps:$4 sm:$0xff]  }
0x15b0   : > { %9200 = vrot.lane.b32.xlu0 %v9199_v50, %s9514_s16  ;;  %4210 = vmatpush1.bf16.msra.mxu1 %v9284_v51  ;;  %v9287_v50 = vld [vmem:[%s9587_s19 + $0x60] ss:$8 sps:$4 sm:$0xff]  }
0x15b1   : > { %v3933_v20 = vpop.f32.mrb[78].mxu1  ;;  %4211 = vmatprep.subr.bf16.mxu1 %v9289_v46 }
0x15b2   : > { %3968 = vrot.lane.b32.xlu1 %v3933_v20, %s9514_s16  ;;  %v8285_v61 = vpop.f32.mrb[79].mxu1 }
0x15b4   : > { %4212 = vmatpush1.bf16.msra.mxu1 %v9287_v50 }
0x15d5   : > { %v9191_v55 = vpop.permute.xlu0 %9190 }
0x15d6   : > { %v9193_v22 = vunpack.i.h.bf16 %v9191_v55  ;;  %v9192_v41 = vunpack.i.l.bf16 %v9191_v55 }
0x15d7   : > { %v3945_v58 = vpop.permute.xlu1 %3944 }
0x15d8   : > { %v3974_v14 = vsel %vm1290_vm2, %v3202_v8, %v9193_v22  ;;  %v3973_v57 = vsel %vm1290_vm2, %v3197_v13, %v9192_v41  ;;  %v3975_v52 = vsel %vm1290_vm2, %v3207_v40, %v3945_v58  ;;  %v7555_v13 = vld [vmem:[%s9577_s8 + $0x1] ss:$0 sm:$0xff] }
0x15e1   : > { %v9196_v2 = vpop.permute.xlu0 %9195 }
0x15e2   : > { %v9198_v25 = vunpack.i.h.bf16 %v9196_v2  ;;  %v9197_v7 = vunpack.i.l.bf16 %v9196_v2 }
0x15e3   : > { %v3957_v60 = vpop.permute.xlu1 %3956 }
0x15e4   : > { %v3977_v24 = vsel %vm2283_vm5, %v3974_v14, %v9198_v25  ;;  %v3976_v23 = vsel %vm2283_vm5, %v3973_v57, %v9197_v7  ;;  %v3978_v30 = vsel %vm2283_vm5, %v3975_v52, %v3957_v60  ;;  %v7562_v60 = vld [vmem:[%s9582_s14 + $0x2] sm:$0x3] }
0x15e5   : > { %v4126_v52 = vrot.slane %v7562_v60, %v9756_v6 }
0x1622   : > { %v9201_v5 = vpop.permute.xlu0 %9200 }
0x1623   : > { %v9203_v19 = vunpack.i.h.bf16 %v9201_v5  ;;  %v9202_v48 = vunpack.i.l.bf16 %v9201_v5 }
0x1624   : > { %v3969_v16 = vpop.permute.xlu1 %3968 }
0x1625   : > { %v3980_v27 = vsel %vm2287_vm6, %v3977_v24, %v9203_v19  ;;  %v3979_v15 = vsel %vm2287_vm6, %v3976_v23, %v9202_v48  ;;  %v3981_v33 = vsel %vm2287_vm6, %v3978_v30, %v3969_v16  ;;  %v4133_v24 = vrot.slane %v7562_v60, %v9761_v11 }
0x1626   : > { %v3982_v9 = vpack.c.bf16 %v3980_v27, %v3979_v15  ;;  %v3983_v37 = vpack.c.bf16 %v3981_v33, %v3981_v33 }
0x1628   : > { %8294 = vmatprep.mubr.msk.bf16.mxu0 %vm1046_vm0, %v3982_v9  ;;  %v9293_v9 = vld [vmem:[%s9597_s30 + $0xc0] sm:$0xff]  }
0x1629   : > { %8295 = vmatmul.mubr.msk.bf16.vlgmr.msra.gmra.mrb[60].mxu0 %vm1046_vm0, %v3983_v37  ;;  %v9294_v37 = vld [vmem:[%s9597_s30 + $0x80] sm:$0xff]   ;;  %7804 = vmatprep.subr.bf16.mxu0 %v9293_v9 }
0x162a   : > { %7805 = vmatpush3.bf16.msra.mxu0 %v9294_v37 }
0x16fc   : > { %v8296_v39 = vpop.f32.mrb[60].mxu0 }
0x16fd   : > { %v4074_v8 = vadd.f32 %v8296_v39, %v7555_v13  ;;  %v4065_v17 = vpop.f32.mrb[61].mxu0  ;;  %v9296_v39 = vld [vmem:[%s9597_s30 + $0x88] sm:$0xff]  }
0x16fe   : > { %v4066_v40 = vadd.f32 %v7555_v13, %v4065_v17  ;;  %v8297_v31 = vpop.f32.mrb[62].mxu0  ;;  %v9298_v17 = vld [vmem:[%s9597_s30 + $0x90] sm:$0xff]  }
0x16ff   : > { %v4068_v36 = vpop.f32.mrb[63].mxu0  ;;  %v4081_v47 = vadd.f32 %v4074_v8, %v10093_v10  ;;  %v9292_v10 = vld [vmem:[%s9587_s19 + $0x74] ss:$8 sps:$4 sm:$0xff]   ;;  %v9301_v31 = vld [vmem:[%s9597_s30 + $0xe0] sm:$0xff]  }
0x1700   : > { %v10410_v12 = vadd.f32 %v4066_v40, %v10083_v4  ;;  %v4069_v21 = vadd.f32 %v7555_v13, %v4068_v36  ;;  %4213 = vmatprep.subr.bf16.mxu1 %v9292_v10  ;;  %v9295_v13 = vld [vmem:[%s9597_s30 + $0xc8] sm:$0xff]   ;;  %v9297_v8 = vld [vmem:[%s9597_s30 + $0xd0] sm:$0xff]   ;;  %v9299_v40 = vld [vmem:[%s9597_s30 + $0xd8] sm:$0xff]  }
0x1701   : > { %v4090_v42 = vsel %vm1046_vm0, %v4081_v47, 0.0  ;;  %4214 = vmatpush1.bf16.msra.mxu1 %v9290_v56  ;;  %7806 = vmatprep.subr.bf16.mxu0 %v9295_v13  ;;  %v9302_v36 = vld [vmem:[%s9597_s30 + $0xa0] sm:$0xff]  }
0x1702   : > { %v4080_v53 = vadd.f32 %v4069_v21, %v10086_v0  ;;  %v4084_v26 = vsel %vm1046_vm0, %v10410_v12, 0.0  ;;  %8413 = vmatprep.subr.bf16.mxu1 %v9510_v28  ;;  %7807 = vmatpush3.bf16.msra.mxu0 %v9296_v39  ;;  %v9303_v21 = vld [vmem:[%s9597_s30 + $0xe8] sm:$0xff]  }
0x1703   : > { %4085 = vadd.xlane.f32.xlu0 %v4084_v26  ;;  %7808 = vmatprep.subr.bf16.mxu0 %v9297_v8  ;;  %v9305_v26 = vld [vmem:[%s9597_s30 + $0xf0] sm:$0xff]  }
0x1704   : > { %v4087_v38 = vsel %vm1046_vm0, %v4080_v53, 0.0 }
0x1705   : > { %4088 = vadd.xlane.f32.xlu1 %v4087_v38  ;;  %v9306_v38 = vld [vmem:[%s9597_s30 + $0xb0] sm:$0xff]  }
0x1706   : > { %7809 = vmatpush3.bf16.msra.mxu0 %v9298_v17 }
0x1707   : > { %7810 = vmatprep.subr.bf16.mxu0 %v9299_v40 }
0x1790   : > { %v4086_v54 = vpop.xlane.xlu0 %4085 }
0x1791   : > { %v4093_v32 = vmul.f32 0.015625, %v4086_v54  ;;  %v9307_v54 = vld [vmem:[%s9597_s30 + $0xf8] sm:$0xff]  }
0x1792   : > { %v4089_v59 = vpop.xlane.xlu1 %4088 }
0x1793   : > { %v4096_v34 = vsub.f32 %v10410_v12, %v4093_v32  ;;  %v4094_v4 = vmul.f32 0.015625, %v4089_v59  ;;  %v9308_v32 = vld [vmem:[%s9597_s30 + $0xb8] sm:$0xff]  }
0x1795   : > { %v4097_v29 = vsub.f32 %v4080_v53, %v4094_v4  ;;  %v4099_v35 = vmul.f32 %v4096_v34, %v4096_v34  ;;  %v9304_v53 = vld [vmem:[%s9597_s30 + $0xa8] sm:$0xff]  }
0x1797   : > { %v4102_v0 = vsel %vm1046_vm0, %v4099_v35, 0.0  ;;  %v4100_v45 = vmul.f32 %v4097_v29, %v4097_v29 }
0x1798   : > { %4103 = vadd.xlane.f32.xlu0 %v4102_v0 }
0x1799   : > { %v4105_v44 = vsel %vm1046_vm0, %v4100_v45, 0.0 }
0x179c   : > { %4106 = vadd.xlane.f32.xlu0 %v4105_v44  ;;  %v7571_v44 = vld [vmem:[%s9592_s24 + $0x2] sm:$0x3] }
0x179d   : > { %v4158_v63 = vrot.slane %v7571_v44, %v9761_v11 }
0x17a0   : > { %4091 = vadd.xlane.f32.xlu0 %v4090_v42  ;;  %v4154_v42 = vrot.slane %v7571_v44, %v9756_v6 }
0x1825   : > { %v4104_v20 = vpop.xlane.xlu0 %4103 }
0x1826   : > { %v4111_v61 = vmul.f32 0.015625, %v4104_v20 }
0x1828   : > { %v4114_v55 = vadd.f32 1e-06, %v4111_v61 }
0x1829   : > { %v4107_v58 = vpop.xlane.xlu0 %4106 }
0x182a   : > { %9435 = vrsqrt.f32 %v4114_v55  ;;  %v4112_v2 = vmul.f32 0.015625, %v4107_v58 }
0x182c   : > { %v4115_v22 = vadd.f32 1e-06, %v4112_v2 }
0x182d   : > { %v4092_v41 = vpop.xlane.xlu0 %4091 }
0x182e   : > { %9437 = vrsqrt.f32 %v4115_v22  ;;  %v4095_v25 = vmul.f32 0.015625, %v4092_v41 }
0x1830   : > { %v4098_v7 = vsub.f32 %v4081_v47, %v4095_v25 }
0x1832   : > { %v4101_v14 = vmul.f32 %v4098_v7, %v4098_v7 }
0x1834   : > { %v9436_v5 = vpop.eup %9435  ;;  %v4108_v57 = vsel %vm1046_vm0, %v4101_v14, 0.0 }
0x1835   : > { %v4120_v19 = vmul.f32 %v9436_v5, %v4096_v34  ;;  %4109 = vadd.xlane.f32.xlu0 %v4108_v57 }
0x1837   : > { %v4127_v23 = vmul.f32 %v4126_v52, %v4120_v19 }
0x1838   : > { %v9438_v48 = vpop.eup %9437 }
0x1839   : > { %v4121_v30 = vmul.f32 %v9438_v48, %v4097_v29  ;;  %v4134_v27 = vadd.f32 %v4133_v24, %v4127_v23 }
0x183b   : > { %v4128_v16 = vmul.f32 %v4126_v52, %v4121_v30 }
0x183d   : > { %v4135_v15 = vadd.f32 %v4133_v24, %v4128_v16 }
0x183f   : > { %v4137_v33 = vpack.c.bf16 %v4135_v15, %v4134_v27 }
0x1841   : > { %7580 = vmatmul.mubr.msk.bf16.vlgmr.msra.gmra.mrb[80].mxu1 %vm1046_vm0, %v4137_v33 }
0x1842   : > { %4249 = vmatprep.mubr.bf16.mxu1 %v9509_v1  ;;  %v9300_v1 = vld [vmem:[%s9597_s30 + $0x98] sm:$0xff]  }
0x1843   : > { %7811 = vmatpush3.bf16.msra.mxu0 %v9300_v1 }
0x1844   : > { %7812 = vmatprep.subr.bf16.mxu0 %v9301_v31 }
0x1847   : > { %7813 = vmatpush3.bf16.msra.mxu0 %v9302_v36 }
0x1848   : > { %7814 = vmatprep.subr.bf16.mxu0 %v9303_v21 }
0x184b   : > { %7815 = vmatpush3.bf16.msra.mxu0 %v9304_v53 }
0x184c   : > { %7816 = vmatprep.subr.bf16.mxu0 %v9305_v26 }
0x184f   : > { %7817 = vmatpush3.bf16.msra.mxu0 %v9306_v38 }
0x1850   : > { %7818 = vmatprep.subr.bf16.mxu0 %v9307_v54 }
0x1853   : > { %7819 = vmatpush3.bf16.msra.mxu0 %v9308_v32 }
0x1854   : > { %8456 = vmatprep.subr.bf16.mxu0 %v9510_v28 }
0x18c2   : > { %v4110_v59 = vpop.xlane.xlu0 %4109 }
0x18c3   : > { %v4113_v34 = vmul.f32 0.015625, %v4110_v59 }
0x18c5   : > { %v4116_v4 = vadd.f32 1e-06, %v4113_v34 }
0x18c7   : > { %9439 = vrsqrt.f32 %v4116_v4 }
0x18d1   : > { %v9440_v29 = vpop.eup %9439 }
0x18d2   : > { %v4122_v35 = vmul.f32 %v9440_v29, %v4098_v7 }
0x18d4   : > { %v4129_v0 = vmul.f32 %v4126_v52, %v4122_v35 }
0x18d6   : > { %v4136_v45 = vadd.f32 %v4133_v24, %v4129_v0 }
0x18d8   : > { %v4138_v47 = vpack.c.bf16 %v4136_v45, %v4136_v45 }
0x18da   : > { %7581 = vmatmul.mubr.msk.bf16.gmra.mrb[84].mxu1 %vm1046_vm0, %v4138_v47 }
0x18db   : > { %8314 = vmatprep.mubr.msk.f32.mxu1 %vm9512_vm1, %v9513_v43 }
0x1914   : > { %v4241_v18 = vpop.f32.mrb[80].mxu1 }
0x1915   : > { %v4242_v49 = vadd.f32 %v4241_v18, %v4154_v42  ;;  %v4243_v51 = vpop.f32.mrb[81].mxu1 }
0x1916   : > { %v4244_v46 = vadd.f32 %v4243_v51, %v4158_v63  ;;  %v4245_v50 = vpop.f32.mrb[82].mxu1 }
0x1917   : > { %v4258_v10 = vmul.f32 %v4242_v49, %v4242_v49  ;;  %v4246_v56 = vadd.f32 %v4245_v50, %v4154_v42  ;;  %v4247_v20 = vpop.f32.mrb[83].mxu1 }
0x1918   : > { %v4259_v61 = vmul.f32 %v4244_v46, %v4244_v46  ;;  %v4248_v55 = vadd.f32 %v4247_v20, %v4158_v63 }
0x1919   : > { %v4264_v58 = vmul.f32 %v4258_v10, %v4242_v49  ;;  %v4260_v2 = vmul.f32 %v4246_v56, %v4246_v56 }
0x191a   : > { %v4265_v22 = vmul.f32 %v4259_v61, %v4244_v46  ;;  %v4261_v41 = vmul.f32 %v4248_v55, %v4248_v55 }
0x191b   : > { %v4270_v25 = vmul.f32 0.044715, %v4264_v58  ;;  %v4266_v7 = vmul.f32 %v4260_v2, %v4246_v56 }
0x191c   : > { %v4271_v60 = vmul.f32 0.044715, %v4265_v22  ;;  %v4267_v14 = vmul.f32 %v4261_v41, %v4248_v55 }
0x191d   : > { %v4276_v5 = vadd.f32 %v4270_v25, %v4242_v49  ;;  %v4272_v57 = vmul.f32 0.044715, %v4266_v7 }
0x191e   : > { %v4277_v52 = vadd.f32 %v4271_v60, %v4244_v46  ;;  %v4273_v19 = vmul.f32 0.044715, %v4267_v14  ;;  %v7615_v60 = vld [vmem:[%s9602_s6 + $0x1] ss:$0 sm:$0xff] }
0x191f   : > { %v4282_v48 = vmul.f32 0.7978846, %v4276_v5  ;;  %v4278_v24 = vadd.f32 %v4272_v57, %v4246_v56 }
0x1920   : > { %v4283_v23 = vmul.f32 0.7978846, %v4277_v52  ;;  %v4279_v30 = vadd.f32 %v4273_v19, %v4248_v55 }
0x1921   : > { %9441 = vtanh.f32 %v4282_v48  ;;  %v4284_v16 = vmul.f32 0.7978846, %v4278_v24 }
0x1922   : > { %9443 = vtanh.f32 %v4283_v23  ;;  %v4285_v27 = vmul.f32 0.7978846, %v4279_v30 }
0x1923   : > { %9445 = vtanh.f32 %v4284_v16 }
0x1924   : > { %9447 = vtanh.f32 %v4285_v27 }
0x192b   : > { %v9442_v15 = vpop.eup %9441 }
0x192c   : > { %v9444_v33 = vpop.eup %9443  ;;  %v4294_v9 = vadd.f32 1.0, %v9442_v15 }
0x192d   : > { %v9446_v37 = vpop.eup %9445  ;;  %v4295_v13 = vadd.f32 1.0, %v9444_v33 }
0x192e   : > { %v9448_v39 = vpop.eup %9447  ;;  %v4300_v8 = vmul.f32 0.5, %v4294_v9  ;;  %v4296_v17 = vadd.f32 1.0, %v9446_v37 }
0x192f   : > { %v4297_v40 = vadd.f32 1.0, %v9448_v39  ;;  %v4301_v1 = vmul.f32 0.5, %v4295_v13  ;;  %v4520_v39 = vld [vmem:[%s11441_s1] sm:$0xff] }
0x1930   : > { %v4302_v31 = vmul.f32 0.5, %v4296_v17  ;;  %v4306_v21 = vmul.f32 %v4300_v8, %v4242_v49  ;;  %v4522_v17 = vld [vmem:[%s11441_s1 + $0x10] sm:$0xff] }
0x1931   : > { %v4303_v36 = vmul.f32 0.5, %v4297_v40  ;;  %v4307_v26 = vmul.f32 %v4301_v1, %v4244_v46  ;;  %v4523_v40 = vld [vmem:[%s11441_s1 + $0x18] sm:$0xff] }
0x1932   : > { %v4308_v53 = vmul.f32 %v4302_v31, %v4246_v56  ;;  %v8417_v1 = vpack.c.bf16 %v4523_v40, %v4522_v17  ;;  %v4524_v31 = vld [vmem:[%s11441_s1 + $0x20] sm:$0xff] }
0x1933   : > { %v4309_v38 = vmul.f32 %v4303_v36, %v4248_v55  ;;  %v4525_v36 = vld [vmem:[%s11441_s1 + $0x28] sm:$0xff] }
0x1934   : > { %v4312_v54 = vpack.c.bf16 %v4308_v53, %v4306_v21  ;;  %v8420_v21 = vpack.c.bf16 %v4525_v36, %v4524_v31  ;;  %v4526_v53 = vld [vmem:[%s11441_s1 + $0x30] sm:$0xff] }
0x1935   : > { %v4313_v32 = vpack.c.bf16 %v4309_v38, %v4307_v26  ;;  %v4527_v26 = vld [vmem:[%s11441_s1 + $0x38] sm:$0xff] }
0x1936   : > { %v8423_v38 = vpack.c.bf16 %v4527_v26, %v4526_v53 }
0x1937   : > { %4485 = vmatprep.mubr.bf16.mxu0 %v4313_v32 }
0x1938   : > { %4486 = vmatmul.mubr.bf16.vlgmr.msra.gmra.mrb[64].mxu0 %v4312_v54 }
0x19ad   : > { %v4251_v59 = vpop.f32.mrb[84].mxu1 }
0x19ae   : > { %v4252_v34 = vadd.f32 %v4251_v59, %v4154_v42  ;;  %v4253_v4 = vpop.f32.mrb[85].mxu1 }
0x19af   : > { %v4254_v29 = vadd.f32 %v4253_v4, %v4158_v63  ;;  %v4255_v35 = vpop.f32.mrb[86].mxu1 }
0x19b0   : > { %v4262_v0 = vmul.f32 %v4252_v34, %v4252_v34  ;;  %v4256_v45 = vpop.f32.mrb[87].mxu1 }
0x19b1   : > { %v4263_v47 = vmul.f32 %v4254_v29, %v4254_v29  ;;  %v4603_v45 = vld [vmem:[%s11443_s0 + $0x8] sm:$0xff] }
0x19b2   : > { %v4268_v44 = vmul.f32 %v4262_v0, %v4252_v34  ;;  %v4602_v0 = vld [vmem:[%s11443_s0] sm:$0xff] }
0x19b3   : > { %v4269_v18 = vmul.f32 %v4263_v47, %v4254_v29  ;;  %v10479_v47 = vld [vmem:[%s11444_s11] sm:$0x3]  ;;  %s11449_s11 = sld [smem:[#allocation5_spill]] }
0x19b4   : > { %v4274_v51 = vmul.f32 0.044715, %v4268_v44 }
0x19b5   : > { %v4275_v50 = vmul.f32 0.044715, %v4269_v18  ;;  %v10481_v18 = vpack.c.bf16 %v4603_v45, %v4602_v0 }
0x19b6   : > { %v4280_v49 = vadd.f32 %v4274_v51, %v4252_v34  ;;  %v4630_v51 = vrot.slane %v10479_v47, %v9761_v11 }
0x19b7   : > { %v4281_v10 = vadd.f32 %v4275_v50, %v4254_v29 }
0x19b8   : > { %v4286_v46 = vmul.f32 0.7978846, %v4280_v49  ;;  %v4604_v49 = vld [vmem:[%s11443_s0 + $0x10] sm:$0xff] }
0x19b9   : > { %v4287_v56 = vmul.f32 0.7978846, %v4281_v10  ;;  %v4605_v10 = vld [vmem:[%s11443_s0 + $0x18] sm:$0xff]  ;;  %v10576_v53 = vld [vmem:[%s11449_s11] sm:$0x1]  ;;  %s11426_s11 = sshll.u32 %s11459_s10, 1 }
0x19ba   : > { %9449 = vtanh.f32 %v4286_v46  ;;  %v10489_v46 = vpack.c.bf16 %v4605_v10, %v4604_v49 }
0x19bb   : > { %9451 = vtanh.f32 %v4287_v56  ;;  %v4606_v56 = vld [vmem:[%s11443_s0 + $0x20] sm:$0xff] }
0x19c4   : > { %v9450_v20 = vpop.eup %9449 }
0x19c5   : > { %v9452_v61 = vpop.eup %9451  ;;  %v4298_v42 = vadd.f32 1.0, %v9450_v20  ;;  %v4607_v20 = vld [vmem:[%s11443_s0 + $0x28] sm:$0xff] }
0x19c6   : > { %v4299_v55 = vadd.f32 1.0, %v9452_v61  ;;  %v10496_v61 = vpack.c.bf16 %v4607_v20, %v4606_v56 }
0x19c7   : > { %v4304_v63 = vmul.f32 0.5, %v4298_v42  ;;  %v4608_v42 = vld [vmem:[%s11443_s0 + $0x30] sm:$0xff] }
0x19c8   : > { %v4305_v58 = vmul.f32 0.5, %v4299_v55  ;;  %v4609_v55 = vld [vmem:[%s11443_s0 + $0x38] sm:$0xff] }
0x19c9   : > { %v4310_v2 = vmul.f32 %v4304_v63, %v4252_v34  ;;  %v4500_v34 = vld [vmem:[%s11442_s2] sm:$0x3]  ;;  %v10502_v63 = vpack.c.bf16 %v4609_v55, %v4608_v42  ;;  %s11448_s2 = sld [smem:[#allocation8_spill]]  ;;  %v9521_v42 = vmov 1966171168  }
0x19ca   : > { %v4311_v22 = vmul.f32 %v4305_v58, %v4254_v29  ;;  %v4517_v29 = vrot.slane %v4500_v34, 1  ;;  %v4610_v58 = vld [vmem:[%s11443_s0 + $0x40] sm:$0xff]  ;;  %v4878_v55 = vunpack.c.l.s4 %v9521_v42 }
0x19cb   : > { %v4314_v25 = vpack.c.bf16 %v4310_v2, %v4310_v2  ;;  %v4611_v2 = vld [vmem:[%s11443_s0 + $0x48] sm:$0xff] }
0x19cc   : > { %v4315_v41 = vpack.c.bf16 %v4311_v22, %v4311_v22  ;;  %v10508_v22 = vpack.c.bf16 %v4611_v2, %v4610_v58  ;;  %v4879_v58 = vunpack.c.0.s8 %v4878_v55 }
0x19ce   : > { %4492 = vmatprep.mubr.bf16.mxu0 %v4315_v41  ;;  %v4612_v41 = vld [vmem:[%s11443_s0 + $0x50] sm:$0xff] }
0x19cf   : > { %4493 = vmatmul.mubr.bf16.gmra.mrb[68].mxu0 %v4314_v25  ;;  %v4613_v25 = vld [vmem:[%s11443_s0 + $0x58] sm:$0xff]  ;;  %v4793_v17 = vld [vmem:[%s11448_s2 + $0x8] sm:$0xff]  ;;  %v4796_v45 = vld [vmem:[%s11448_s2 + $0x20] sm:$0xff] }
0x19d0   : > { %8325 = vmatprep.mubr.msk.f32.mxu0 %vm9512_vm1, %v9513_v43  ;;  %v4795_v40 = vld [vmem:[%s11448_s2 + $0x18] sm:$0xff] }
0x1a0b   : > { %v7820_v7 = vpop.f32.mrb[64].mxu0 }
0x1a0c   : > { %v7821_v14 = vpop.f32.mrb[65].mxu0 }
0x1a0d   : > { %v7822_v5 = vadd.f32 %v7821_v14, %v7820_v7  ;;  %v7823_v57 = vpop.f32.mrb[66].mxu0  ;;  %v10514_v7 = vpack.c.bf16 %v4613_v25, %v4612_v41  ;;  %v4615_v14 = vld [vmem:[%s11443_s0 + $0x68] sm:$0xff]  ;;  %v10626_v41 = vsub.s32 %v4879_v58, %v9753_v3 }
0x1a0e   : > { %v7824_v52 = vpop.f32.mrb[67].mxu0  ;;  %v4616_v57 = vld [vmem:[%s11443_s0 + $0x70] sm:$0xff] }
0x1a0f   : > { %v4488_v19 = vadd.f32 %v7822_v5, %v7615_v60  ;;  %v4614_v60 = vld [vmem:[%s11443_s0 + $0x60] sm:$0xff]  ;;  %v4617_v52 = vld [vmem:[%s11443_s0 + $0x78] sm:$0xff] }
0x1a10   : > { %v10520_v5 = vpack.c.bf16 %v4615_v14, %v4614_v60 }
0x1a11   : > { %v4499_v48 = vadd.f32 %v4488_v19, %v10410_v12  ;;  %v4521_v12 = vld [vmem:[%s11441_s1 + $0x8] sm:$0xff]  ;;  %v10526_v19 = vpack.c.bf16 %v4617_v52, %v4616_v57 }
0x1a12   : > { %v8414_v8 = vpack.c.bf16 %v4521_v12, %v4520_v39  ;;  %v4715_v39 = vld [vmem:[%s11445_s23 + $0x10] sm:$0xff]  ;;  %v4716_v12 = vld [vmem:[%s11445_s23 + $0x18] sm:$0xff] }
0x1a13   : > { %v4502_v24 = vsel %vm4501_vm7, %v4499_v48, 0.0 }
0x1a14   : > { %4503 = vadd.xlane.f32.xlu1 %v4502_v24  ;;  %8415 = vmatpush3.bf16.msra.mxu1 %v8414_v8  ;;  %v4619_v24 = vld [vmem:[%s11443_s0 + $0x88] sm:$0xff]  ;;  %v10563_v8 = vpack.c.bf16 %v4716_v12, %v4715_v39 }
0x1a15   : > { %8416 = vmatprep.subr.bf16.mxu1 %v9510_v28 }
0x1a18   : > { %8418 = vmatpush3.bf16.msra.mxu1 %v8417_v1  ;;  %v10569_v1 = vpack.c.bf16 %v4795_v40, %v4793_v17 }
0x1a19   : > { %8419 = vmatprep.subr.bf16.mxu1 %v9510_v28 }
0x1a1c   : > { %8421 = vmatpush3.bf16.msra.mxu1 %v8420_v21 }
0x1a1d   : > { %8422 = vmatprep.subr.bf16.mxu1 %v9510_v28 }
0x1a20   : > { %8424 = vmatpush3.bf16.msra.mxu1 %v8423_v38 }
0x1a21   : > { %8425 = vmatprep.subr.bf16.mxu1 %v9510_v28 }
0x1aa1   : > { %v4504_v23 = vpop.xlane.xlu1 %4503 }
0x1aa2   : > { %v4505_v30 = vmul.f32 0.015625, %v4504_v23  ;;  %v7826_v16 = vpop.f32.mrb[68].mxu0 }
0x1aa3   : > { %v7827_v27 = vpop.f32.mrb[69].mxu0  ;;  %v4621_v16 = vld [vmem:[%s11443_s0 + $0x98] sm:$0x1f] }
0x1aa4   : > { %v4506_v15 = vsub.f32 %v4499_v48, %v4505_v30  ;;  %v7829_v33 = vpop.f32.mrb[70].mxu0  ;;  %v4618_v48 = vld [vmem:[%s11443_s0 + $0x80] sm:$0xff]  ;;  %v4620_v30 = vld [vmem:[%s11443_s0 + $0x90] sm:$0xff] }
0x1aa5   : > { %v7830_v9 = vpop.f32.mrb[71].mxu0  ;;  %v10532_v23 = vpack.c.bf16 %v4619_v24, %v4618_v48  ;;  %v10538_v27 = vpack.c.bf16 %v4621_v16, %v4620_v30  ;;  %v4626_v33 = vrot.slane %v10479_v47, %v9756_v6 }
0x1aa6   : > { %v4507_v37 = vmul.f32 %v4506_v15, %v4506_v15  ;;  %v4713_v9 = vld [vmem:[%s11445_s23] sm:$0xff] }
0x1aa8   : > { %v4508_v13 = vsel %vm4501_vm7, %v4507_v37, 0.0  ;;  %v4714_v37 = vld [vmem:[%s11445_s23 + $0x8] sm:$0xff] }
0x1aa9   : > { %4509 = vadd.xlane.f32.xlu1 %v4508_v13  ;;  %v10555_v13 = vpack.c.bf16 %v4714_v37, %v4713_v9 }
0x1aab   : > { %8458 = vmatpush3.bf16.msra.mxu0 %v10555_v13 }
0x1aac   : > { %8459 = vmatprep.subr.bf16.mxu0 %v9510_v28 }
0x1aaf   : > { %8461 = vmatpush3.bf16.msra.mxu0 %v10563_v8 }
0x1ab0   : > { %8463 = vmatprep.subr.bf16.mxu0 %v10569_v1 }
0x1b36   : > { %v4510_v54 = vpop.xlane.xlu1 %4509 }
0x1b37   : > { %v4511_v32 = vmul.f32 0.015625, %v4510_v54  ;;  %v4792_v54 = vld [vmem:[%s11448_s2] sm:$0xff] }
0x1b39   : > { %v4512_v59 = vadd.f32 1e-06, %v4511_v32  ;;  %v4794_v32 = vld [vmem:[%s11448_s2 + $0x10] sm:$0xff] }
0x1b3b   : > { %9453 = vrsqrt.f32 %v4512_v59 }
0x1b45   : > { %v9454_v4 = vpop.eup %9453 }
0x1b46   : > { %v4514_v35 = vmul.f32 %v9454_v4, %v4506_v15 }
0x1b48   : > { %v4515_v44 = vmul.f32 %v4514_v35, %v4500_v34  ;;  %v10582_v34 = vpack.c.bf16 %v4794_v32, %v4792_v54  ;;  %v4799_v35 = vld [vmem:[%s11448_s2 + $0x38] sm:$0xff] }
0x1b4a   : > { %v4519_v50 = vadd.f32 %v4517_v29, %v4515_v44  ;;  %v4797_v29 = vld [vmem:[%s11448_s2 + $0x28] sm:$0xff]  ;;  %v4798_v44 = vld [vmem:[%s11448_s2 + $0x30] sm:$0xff] }
0x1b4b   : > { %v10589_v0 = vpack.c.bf16 %v4799_v35, %v4797_v29 }
0x1b4c   : > { %8315 = vmatmul.mubr.msk.f32.vlgmr.msra.gmra.mrb[88].mxu1 %vm1046_vm0, %v4519_v50  ;;  %v10599_v50 = vld [vmem:[%s11450_s18] sm:$0x1]  ;;  %s11451_s18 = sld [smem:[#allocation9_spill]] }
0x1b4d   : > { %8427 = vmatpush1.bf16.msra.mxu1 %v10481_v18  ;;  %7634 = vmatprep.mubr.msk.f32.mxu1 %vm4632_vm8, %v4630_v51  ;;  %v10593_v51 = vpack.c.bf16 %v4798_v44, %v4796_v45 }
0x1b4e   : > { %8428 = vmatprep.subr.bf16.mxu1 %v9510_v28 }
0x1b51   : > { %8430 = vmatpush1.bf16.msra.mxu1 %v10489_v46 }
0x1b52   : > { %8431 = vmatprep.subr.bf16.mxu1 %v9510_v28  ;;  %v10631_v52 = vld [vmem:[%s11451_s18] sm:$0x3]  ;;  %s918_s18 = scalar_lea.vmem %s9667_s12, %s11426_s11  ;;  %s9525_s11 = smov 24  }
0x1b55   : > { %8433 = vmatpush1.bf16.msra.mxu1 %v10496_v61 }
0x1b56   : > { %8434 = vmatprep.subr.bf16.mxu1 %v9510_v28 }
0x1b59   : > { %8436 = vmatpush1.bf16.msra.mxu1 %v10502_v63 }
0x1b5a   : > { %8437 = vmatprep.subr.bf16.mxu1 %v9510_v28 }
0x1b5d   : > { %8439 = vmatpush1.bf16.msra.mxu1 %v10508_v22 }
0x1b5e   : > { %8440 = vmatprep.subr.bf16.mxu1 %v9510_v28 }
0x1b61   : > { %8442 = vmatpush1.bf16.msra.mxu1 %v10514_v7 }
0x1b62   : > { %8443 = vmatprep.subr.bf16.mxu1 %v9510_v28 }
0x1b65   : > { %8445 = vmatpush1.bf16.msra.mxu1 %v10520_v5 }
0x1b66   : > { %8446 = vmatprep.subr.bf16.mxu1 %v9510_v28 }
0x1b69   : > { %8448 = vmatpush1.bf16.msra.mxu1 %v10526_v19 }
0x1b6a   : > { %8449 = vmatprep.subr.bf16.mxu1 %v9510_v28 }
0x1b6d   : > { %8451 = vmatpush1.bf16.msra.mxu1 %v10532_v23 }
0x1b6e   : > { %8452 = vmatprep.subr.bf16.mxu1 %v9510_v28 }
0x1b71   : > { %8455 = vmatpush1.bf16.msk.msra.mxu1 %vm10541_vm11, %v10538_v27 }
0x1b72   : > { %8501 = vmatprep.subr.bf16.mxu1 %v9510_v28 }
0x1b74   : > { %4704 = vmatmul.mubr.f32.vlgmr.msra.gmra.mrb[90].mxu1 %v4626_v33 }
0x1b75   : > { %8336 = vmatprep.mubr.msk.f32.mxu1 %vm9512_vm1, %v9513_v43  ;;  %8503 = vmatpush3.bf16.msra.mxu1 %v10555_v13 }
0x1b76   : > { %8504 = vmatprep.subr.bf16.mxu1 %v9510_v28 }
0x1b79   : > { %8506 = vmatpush3.bf16.msra.mxu1 %v10563_v8 }
0x1b7a   : > { %8508 = vmatprep.subr.bf16.mxu1 %v10569_v1 }
0x1c1f   : > { %v10573_v31 = vpop.f32.mrb[88].mxu1 }
0x1c20   : > { %v8316_v36 = vpop.f32.mrb[89].mxu1 }
0x1c47   : > { %v4705_v21 = vpop.f32.mrb[90].mxu1 }
0x1c48   : > { %v4709_v26 = vadd.f32 %v4705_v21, %v10573_v31  ;;  %v4707_v38 = vpop.f32.mrb[91].mxu1 }
0x1c4a   : > { %v4711_v59 = vadd.f32 %v10576_v53, %v4709_v26 }
0x1c4c   : > { %v4712_v4 = vmax.f32 %v4711_v59, 0.0 }
0x1c4e   : > { %8326 = vmatmul.mubr.msk.f32.vlgmr.msra.gmra.mrb[72].mxu0 %vm2283_vm5, %v4712_v4 }
0x1c4f   : > { %8465 = vmatpush1.bf16.msra.mxu0 %v10582_v34  ;;  %4867 = vmatprep.mubr.f32.mxu0 %v9513_v43 }
0x1c50   : > { %8467 = vmatprep.subr.bf16.mxu0 %v10589_v0 }
0x1c53   : > { %8469 = vmatpush1.bf16.msra.mxu0 %v10593_v51 }
0x1c54   : > { %8470 = vmatprep.subr.bf16.mxu0 %v9510_v28 }
0x1d21   : > { %v4787_v49 = vpop.f32.mrb[72].mxu0 }
0x1d22   : > { %v4788_v10 = vadd.f32 %v4787_v49, %v10599_v50  ;;  %v8327_v56 = vpop.f32.mrb[73].mxu0 }
0x1d24   : > { %v4791_v20 = vmax.f32 %v4788_v10, 0.0 }
0x1d26   : > { %7636 = vmatmul.mubr.msk.f32.vlgmr.msra.gmra.mrb[74].mxu0 %vm2283_vm5, %v4791_v20 }
0x1d27   : > { %8472 = vmatpush1.bf16.msra.mxu0 %v10481_v18 }
0x1d28   : > { %8473 = vmatprep.subr.bf16.mxu0 %v9510_v28 }
0x1d2b   : > { %8475 = vmatpush1.bf16.msra.mxu0 %v10489_v46 }
0x1d2c   : > { %8476 = vmatprep.subr.bf16.mxu0 %v9510_v28 }
0x1d2f   : > { %8478 = vmatpush1.bf16.msra.mxu0 %v10496_v61 }
0x1d30   : > { %8479 = vmatprep.subr.bf16.mxu0 %v9510_v28 }
0x1d33   : > { %8481 = vmatpush1.bf16.msra.mxu0 %v10502_v63 }
0x1d34   : > { %8482 = vmatprep.subr.bf16.mxu0 %v9510_v28 }
0x1d37   : > { %8484 = vmatpush1.bf16.msra.mxu0 %v10508_v22 }
0x1d38   : > { %8485 = vmatprep.subr.bf16.mxu0 %v9510_v28 }
0x1d3b   : > { %8487 = vmatpush1.bf16.msra.mxu0 %v10514_v7 }
0x1d3c   : > { %8488 = vmatprep.subr.bf16.mxu0 %v9510_v28 }
0x1d3f   : > { %8490 = vmatpush1.bf16.msra.mxu0 %v10520_v5 }
0x1d40   : > { %8491 = vmatprep.subr.bf16.mxu0 %v9510_v28 }
0x1d43   : > { %8493 = vmatpush1.bf16.msra.mxu0 %v10526_v19 }
0x1d44   : > { %8494 = vmatprep.subr.bf16.mxu0 %v9510_v28 }
0x1d47   : > { %8496 = vmatpush1.bf16.msra.mxu0 %v10532_v23 }
0x1d48   : > { %8497 = vmatprep.subr.bf16.mxu0 %v9510_v28 }
0x1d4b   : > { %8500 = vmatpush1.bf16.msk.msra.mxu0 %vm10541_vm11, %v10538_v27 }
0x1d4c   : > { %8546 = vmatprep.subr.bf16.mxu0 %v9510_v28 }
0x1df9   : > { %v4869_v2 = vpop.f32.mrb[74].mxu0 }
0x1dfa   : > { %v4871_v25 = vpop.f32.mrb[75].mxu0 }
0x1dfb   : > { %v4876_v60 = vcombine.low %v4869_v2, %v4871_v25 }
0x1dfd   : > { %v4883_v14 = vrot.slane %v4876_v60, %v10626_v41 }
0x1dff   : > { %v4890_v57 = vrot.slane %v4883_v14, %v10626_v41 }
0x1e01   : > { %v4892_v48 = vadd.f32 %v4890_v57, %v10479_v47 }
0x1e03   : > { %v4894_v24 = vadd.f32 %v10631_v52, %v4892_v48 }
0x1e05   : > { %v4903_v30 = vrot.slane %v4894_v24, %v9761_v11  ;;  %v4899_v16 = vrot.slane %v4894_v24, %v9756_v6 }
0x1e07   : > { %7638 = vmatprep.mubr.msk.f32.mxu0 %vm4632_vm8, %v4903_v30 }
0x1e08   : > { %4972 = vmatmul.mubr.f32.vlgmr.msra.gmra.mrb[76].mxu0 %v4899_v16 }
0x1e09   : > { %8548 = vmatpush3.bf16.msra.mxu0 %v10555_v13  ;;  %8347 = vmatprep.mubr.msk.f32.mxu0 %vm9512_vm1, %v9513_v43 }
0x1e0a   : > { %8549 = vmatprep.subr.bf16.mxu0 %v9510_v28 }
0x1e0d   : > { %8551 = vmatpush3.bf16.msra.mxu0 %v10563_v8 }
0x1e0e   : > { %8553 = vmatprep.subr.bf16.mxu0 %v10569_v1 }
0x1edb   : > { %v4973_v47 = vpop.f32.mrb[76].mxu0 }
0x1edc   : > { %v4977_v33 = vadd.f32 %v4973_v47, %v10573_v31  ;;  %v4975_v9 = vpop.f32.mrb[77].mxu0 }
0x1ede   : > { %v4978_v37 = vadd.f32 %v4977_v33, %v10576_v53 }
0x1ee0   : > { %v4979_v39 = vmax.f32 %v4978_v37, 0.0 }
0x1ee2   : > { %8337 = vmatmul.mubr.msk.f32.vlgmr.msra.gmra.mrb[92].mxu1 %vm2283_vm5, %v4979_v39 }
0x1ee3   : > { %8510 = vmatpush1.bf16.msra.mxu1 %v10582_v34  ;;  %5121 = vmatprep.mubr.f32.mxu1 %v9513_v43 }
0x1ee4   : > { %8512 = vmatprep.subr.bf16.mxu1 %v10589_v0 }
0x1ee7   : > { %8514 = vmatpush1.bf16.msra.mxu1 %v10593_v51 }
0x1ee8   : > { %8515 = vmatprep.subr.bf16.mxu1 %v9510_v28 }
0x1fb5   : > { %v5049_v13 = vpop.f32.mrb[92].mxu1 }
0x1fb6   : > { %v5050_v12 = vadd.f32 %v5049_v13, %v10599_v50  ;;  %v8338_v8 = vpop.f32.mrb[93].mxu1 }
0x1fb8   : > { %v5053_v17 = vmax.f32 %v5050_v12, 0.0 }
0x1fba   : > { %7640 = vmatmul.mubr.msk.f32.vlgmr.msra.gmra.mrb[94].mxu1 %vm2283_vm5, %v5053_v17 }
0x1fbb   : > { %8517 = vmatpush1.bf16.msra.mxu1 %v10481_v18 }
0x1fbc   : > { %8518 = vmatprep.subr.bf16.mxu1 %v9510_v28 }
0x1fbf   : > { %8520 = vmatpush1.bf16.msra.mxu1 %v10489_v46 }
0x1fc0   : > { %8521 = vmatprep.subr.bf16.mxu1 %v9510_v28 }
0x1fc3   : > { %8523 = vmatpush1.bf16.msra.mxu1 %v10496_v61 }
0x1fc4   : > { %8524 = vmatprep.subr.bf16.mxu1 %v9510_v28 }
0x1fc7   : > { %8526 = vmatpush1.bf16.msra.mxu1 %v10502_v63 }
0x1fc8   : > { %8527 = vmatprep.subr.bf16.mxu1 %v9510_v28 }
0x1fcb   : > { %8529 = vmatpush1.bf16.msra.mxu1 %v10508_v22 }
0x1fcc   : > { %8530 = vmatprep.subr.bf16.mxu1 %v9510_v28 }
0x1fcf   : > { %8532 = vmatpush1.bf16.msra.mxu1 %v10514_v7 }
0x1fd0   : > { %8533 = vmatprep.subr.bf16.mxu1 %v9510_v28 }
0x1fd3   : > { %8535 = vmatpush1.bf16.msra.mxu1 %v10520_v5 }
0x1fd4   : > { %8536 = vmatprep.subr.bf16.mxu1 %v9510_v28 }
0x1fd7   : > { %8538 = vmatpush1.bf16.msra.mxu1 %v10526_v19 }
0x1fd8   : > { %8539 = vmatprep.subr.bf16.mxu1 %v9510_v28 }
0x1fdb   : > { %8541 = vmatpush1.bf16.msra.mxu1 %v10532_v23 }
0x1fdc   : > { %8542 = vmatprep.subr.bf16.mxu1 %v9510_v28 }
0x1fdf   : > { %8545 = vmatpush1.bf16.msk.msra.mxu1 %vm10541_vm11, %v10538_v27  ;;  %vm5627_vm11 = vcmask 588800  }
0x208d   : > { %v5123_v18 = vpop.f32.mrb[94].mxu1 }
0x208e   : > { %v5125_v46 = vpop.f32.mrb[95].mxu1 }
0x208f   : > { %v5130_v61 = vcombine.low %v5123_v18, %v5125_v46 }
0x2091   : > { %v5137_v63 = vrot.slane %v5130_v61, %v10626_v41 }
0x2093   : > { %v5144_v22 = vrot.slane %v5137_v63, %v10626_v41 }
0x2095   : > { %v5146_v7 = vadd.f32 %v5144_v22, %v4894_v24 }
0x2097   : > { %v5147_v5 = vadd.f32 %v5146_v7, %v10631_v52 }
0x2099   : > { %v5156_v19 = vrot.slane %v5147_v5, %v9761_v11  ;;  %v5152_v23 = vrot.slane %v5147_v5, %v9756_v6 }
0x209b   : > { %7642 = vmatprep.mubr.msk.f32.mxu1 %vm4632_vm8, %v5156_v19 }
0x209c   : > { %5225 = vmatmul.mubr.f32.vlgmr.msra.gmra.mrb[96].mxu1 %v5152_v23 }
0x216f   : > { %v5226_v40 = vpop.f32.mrb[96].mxu1 }
0x2170   : > { %v5230_v27 = vadd.f32 %v5226_v40, %v10573_v31  ;;  %v5228_v15 = vpop.f32.mrb[97].mxu1 }
0x2172   : > { %v5231_v1 = vadd.f32 %v5230_v27, %v10576_v53 }
0x2174   : > { %v5232_v36 = vmax.f32 %v5231_v1, 0.0 }
0x2176   : > { %8348 = vmatmul.mubr.msk.f32.vlgmr.msra.gmra.mrb[78].mxu0 %vm2283_vm5, %v5232_v36 }
0x2177   : > { %8555 = vmatpush1.bf16.msra.mxu0 %v10582_v34  ;;  %5374 = vmatprep.mubr.f32.mxu0 %v9513_v43 }
0x2178   : > { %8557 = vmatprep.subr.bf16.mxu0 %v10589_v0 }
0x217b   : > { %8559 = vmatpush1.bf16.msra.mxu0 %v10593_v51 }
0x2249   : > { %v5302_v21 = vpop.f32.mrb[78].mxu0 }
0x224a   : > { %v5303_v31 = vadd.f32 %v5302_v21, %v10599_v50  ;;  %v8349_v26 = vpop.f32.mrb[79].mxu0 }
0x224c   : > { %v5306_v38 = vmax.f32 %v5303_v31, 0.0 }
0x224e   : > { %7644 = vmatmul.mubr.msk.f32.vlgmr.msra.gmra.mrb[80].mxu0 %vm2283_vm5, %v5306_v38 }
0x2321   : > { %v5376_v53 = vpop.f32.mrb[80].mxu0 }
0x2322   : > { %v5378_v54 = vpop.f32.mrb[81].mxu0 }
0x2323   : > { %v5383_v32 = vcombine.low %v5376_v53, %v5378_v54 }
0x2325   : > { %v5390_v59 = vrot.slane %v5383_v32, %v10626_v41 }
0x2327   : > { %v5397_v34 = vrot.slane %v5390_v59, %v10626_v41 }
0x2329   : > { %v5399_v4 = vadd.f32 %v5397_v34, %v5147_v5 }
0x232b   : > { %v10698_v29 = vadd.f32 %v5399_v4, %v10631_v52 }
0x232d   : > { %v5406_v35 = vmul.f32 %v10698_v29, %v10698_v29  ;;  %5405 = vst.msk [vmem:[%s918_s18] sm:$0x3] %vm5403_vm12, %v10698_v29  ;;  %s9524_s18 = smov 72   ;;  %vm6022_vm12 = vcmask 1041408  }
0x232f   : > { %5412 = vrot.lane.b32.xlu1 %v5406_v35, %s9516_s22  ;;  %5408 = vrot.lane.b32.xlu0 %v5406_v35, %s9519_s28 }
0x2333   : > { %5438 = vrot.lane.b32.xlu0 %v10698_v29, %s9522_s15  ;;  %s9523_s15 = smov 120  }
0x23a1   : > { %v5409_v0 = vpop.permute.xlu0 %5408  ;;  %v5413_v44 = vpop.permute.xlu1 %5412 }
0x23a2   : > { %v5411_v45 = vadd.f32 %v5409_v0, %v5406_v35 }
0x23a4   : > { %v5415_v51 = vadd.f32 %v5413_v44, %v5411_v45 }
0x23a5   : > { %v5439_v2 = vpop.permute.xlu0 %5438 }
0x23a6   : > { %9455 = vrsqrt.f32 %v5415_v51  ;;  %vm5418_vm13 = vcmp.eq.f32.partialorder %v5415_v51, inf  ;;  %v5421_v10 = vand.u32 2147483648, %v5415_v51  ;;  %vm5420_vm14 = vcmp.eq.f32.partialorder %v5415_v51, 0.0 }
0x23a7   : > { %v5448_v14 = vrot.slane %v5439_v2, 1 }
0x23a9   : > { %v5450_v24 = vsel %vm5449_vm15, %v5439_v2, %v5448_v14 }
0x23b0   : > { %v9456_v50 = vpop.eup %9455 }
0x23b1   : > { %v5417_v49 = vmul.f32 %v9456_v50, %v5415_v51 }
0x23b3   : > { %v5419_v56 = vsel %vm5418_vm13, %v5415_v51, %v5417_v49  ;;  %vm5632_vm13 = vcmask 326656  }
0x23b4   : > { %v5422_v20 = vsel %vm5420_vm14, %v5421_v10, %v5419_v56 }
0x23b5   : > { %v5423_v42 = vadd.f32 1e-08, %v5422_v20 }
0x23b7   : > { %5427 = vrot.lane.b32.xlu1 %v5423_v42, %s9514_s16 }
0x23bb   : > { %5432 = vrot.lane.b32.xlu1 %v5423_v42, %s9518_s26 }
0x2429   : > { %v5428_v55 = vpop.permute.xlu1 %5427 }
0x242a   : > { %9457 = vrcp.f32 %v5428_v55 }
0x242d   : > { %v5433_v58 = vpop.permute.xlu1 %5432 }
0x242e   : > { %9459 = vrcp.f32 %v5433_v58 }
0x242f   : > { %9461 = vrcp.f32 %v5423_v42 }
0x2434   : > { %v9458_v25 = vpop.eup %9457 }
0x2435   : > { %v10709_v60 = vmul.f32 %v9458_v25, %v10698_v29 }
0x2437   : > { %v5442_v57 = vmul.f32 %v5439_v2, %v10709_v60 }
0x2438   : > { %v9460_v52 = vpop.eup %9459 }
0x2439   : > { %v10713_v48 = vmul.f32 %v9460_v52, %v10698_v29  ;;  %5444 = vrot.lane.b32.xlu1 %v5442_v57, %s9519_s28  ;;  %v9462_v16 = vpop.eup %9461 }
0x243a   : > { %v10723_v47 = vmul.f32 %v9462_v16, %v10698_v29 }
0x243b   : > { %v5452_v30 = vmul.f32 %v5450_v24, %v10713_v48 }
0x243c   : > { %v5441_v9 = vmul.f32 %v5439_v2, %v10723_v47 }
0x243d   : > { %5475 = vrot.lane.b32.xlu1 %v10713_v48, %s9516_s22  ;;  %5454 = vrot.lane.b32.xlu0 %v5452_v30, %s9516_s22 }
0x2441   : > { %5465 = vrot.lane.b32.xlu0 %v10709_v60, %s9519_s28 }
0x24ab   : > { %v5445_v33 = vpop.permute.xlu1 %5444 }
0x24ac   : > { %v5447_v37 = vadd.f32 %v5445_v33, %v5441_v9  ;;  %v5577_v33 = vrot.slane %v10709_v60, %v9756_v6 }
0x24af   : > { %v5455_v39 = vpop.permute.xlu0 %5454  ;;  %v5476_v12 = vpop.permute.xlu1 %5475 }
0x24b0   : > { %v5457_v13 = vadd.f32 %v5455_v39, %v5447_v37 }
0x24b2   : > { %v5478_v8 = vmul.f32 %v5476_v12, %v5457_v13  ;;  %v5458_v46 = vmul.f32 %v5457_v13, %v10723_v47  ;;  %v5599_v12 = vrot.slane %v10713_v48, %v9756_v6 }
0x24b3   : > { %v5466_v17 = vpop.permute.xlu0 %5465 }
0x24b4   : > { %v5468_v18 = vmul.f32 %v5466_v17, %v5457_v13  ;;  %5480 = vrot.lane.b32.xlu1 %v5478_v8, %s9523_s15  ;;  %s9527_s15 = smov 8  }
0x24b6   : > { %5470 = vrot.lane.b32.xlu0 %v5468_v18, %s9524_s18 }
0x24b8   : > { %5460 = vrot.lane.b32.xlu1 %v5458_v46, %s9525_s11 }
0x2526   : > { %v5481_v61 = vpop.permute.xlu1 %5480 }
0x2527   : > { %v5482_v63 = vrot.slane %v5481_v61, 7 }
0x2528   : > { %v5471_v22 = vpop.permute.xlu0 %5470 }
0x2529   : > { %v5484_v7 = vsel %vm5483_vm3, %v5482_v63, %v5481_v61  ;;  %v5473_v5 = vsub.f32 %v10698_v29, %v5471_v22 }
0x252a   : > { %v5486_v19 = vsub.f32 %v10698_v29, %v5484_v7  ;;  %v5461_v27 = vpop.permute.xlu1 %5460 }
0x252b   : > { %v5488_v23 = vmul.f32 %v5473_v5, %v5473_v5  ;;  %v5463_v15 = vsub.f32 %v10698_v29, %v5461_v27 }
0x252c   : > { %v5494_v40 = vmul.f32 %v5486_v19, %v5486_v19 }
0x252d   : > { %5490 = vrot.lane.b32.xlu1 %v5488_v23, %s9519_s28  ;;  %v5487_v36 = vmul.f32 %v5463_v15, %v5463_v15 }
0x252e   : > { %5496 = vrot.lane.b32.xlu0 %v5494_v40, %s9516_s22  ;;  %s9526_s22 = smov 56  }
0x259f   : > { %v5491_v1 = vpop.permute.xlu1 %5490 }
0x25a0   : > { %v5497_v21 = vpop.permute.xlu0 %5496  ;;  %v5493_v26 = vadd.f32 %v5491_v1, %v5487_v36 }
0x25a1   : > { %v5498_v31 = vrot.slane %v5497_v21, 1 }
0x25a3   : > { %v5499_v38 = vsel %vm2283_vm5, %v5497_v21, %v5498_v31  ;;  %vm5521_vm5 = vcmask 785408  }
0x25a4   : > { %v5501_v53 = vadd.f32 %v5499_v38, %v5493_v26 }
0x25a6   : > { %9463 = vrsqrt.f32 %v5501_v53  ;;  %vm5504_vm7 = vcmp.eq.f32.partialorder %v5501_v53, inf  ;;  %v5507_v59 = vand.u32 2147483648, %v5501_v53  ;;  %vm5506_vm8 = vcmp.eq.f32.partialorder %v5501_v53, 0.0 }
0x25b0   : > { %v9464_v54 = vpop.eup %9463 }
0x25b1   : > { %v5503_v32 = vmul.f32 %v9464_v54, %v5501_v53 }
0x25b3   : > { %v5505_v34 = vsel %vm5504_vm7, %v5501_v53, %v5503_v32 }
0x25b4   : > { %v5508_v4 = vsel %vm5506_vm8, %v5507_v59, %v5505_v34 }
0x25b5   : > { %v5509_v35 = vadd.f32 1e-08, %v5508_v4 }
0x25b7   : > { %5513 = vrot.lane.b32.xlu1 %v5509_v35, %s9514_s16  ;;  %9465 = vrcp.f32 %v5509_v35  ;;  %5518 = vrot.lane.b32.xlu0 %v5509_v35, %s9518_s26 }
0x25c1   : > { %v9466_v0 = vpop.eup %9465 }
0x25c2   : > { %v10738_v45 = vmul.f32 %v9466_v0, %v5463_v15 }
0x25c4   : > { %5565 = vrot.lane.b32.xlu1 %v10738_v45, %s9525_s11 }
0x2629   : > { %v5514_v44 = vpop.permute.xlu1 %5513  ;;  %v5519_v51 = vpop.permute.xlu0 %5518 }
0x262a   : > { %9467 = vrcp.f32 %v5514_v44  ;;  %v5520_v50 = vrot.slane %v5519_v51, 7 }
0x262c   : > { %v5522_v49 = vsel %vm5521_vm5, %v5520_v50, %v5519_v51 }
0x262d   : > { %9469 = vrcp.f32 %v5522_v49 }
0x2634   : > { %v9468_v10 = vpop.eup %9467 }
0x2635   : > { %v10743_v56 = vmul.f32 %v9468_v10, %v5473_v5 }
0x2636   : > { %v5566_v55 = vpop.permute.xlu1 %5565 }
0x2637   : > { %v9470_v20 = vpop.eup %9469  ;;  %5561 = vrot.lane.b32.xlu1 %v10743_v56, %s9526_s22  ;;  %v5568_v58 = vmul.f32 %v5566_v55, %v10709_v60  ;;  %v7646_v7 = vadd.f32 -1.0, %v10743_v56 }
0x2638   : > { %v5525_v42 = vmul.f32 %v9470_v20, %v5486_v19 }
0x2639   : > { %v5663_v15 = vrot.slane %v7646_v7, %v9756_v6 }
0x263a   : > { %5549 = vrot.lane.b32.xlu0 %v5525_v42, %s9527_s15  ;;  %v5606_v37 = vrot.slane %v5525_v42, %v9756_v6  ;;  %v5610_v17 = vrot.slane %v5525_v42, %v9761_v11  ;;  %s11456_s15 = sld [smem:[#allocation13_spill]] }
0x263e   : > { %5545 = vrot.lane.b32.xlu0 %v10738_v45, %s9524_s18  ;;  %s11454_s18 = smov 112  }
0x2642   : > { %5535 = vrot.lane.b32.xlu0 %v10743_v56, %s9525_s11 }
0x2646   : > { %5570 = vrot.lane.b32.xlu0 %v5568_v58, %s9519_s28 }
0x26a9   : > { %v5562_v16 = vpop.permute.xlu1 %5561 }
0x26aa   : > { %v5564_v39 = vmul.f32 %v5562_v16, %v10723_v47 }
0x26ac   : > { %v5550_v2 = vpop.permute.xlu0 %5549 }
0x26ad   : > { %v5551_v25 = vrot.slane %v5550_v2, 1 }
0x26af   : > { %v5553_v14 = vsel %vm5552_vm9, %v5550_v2, %v5551_v25 }
0x26b0   : > { %v5555_v57 = vmul.f32 %v5553_v14, %v10723_v47  ;;  %v5546_v52 = vpop.permute.xlu0 %5545 }
0x26b1   : > { %v5548_v46 = vmul.f32 %v5546_v52, %v10713_v48 }
0x26b2   : > { %5557 = vrot.lane.b32.xlu1 %v5555_v57, %s9518_s26  ;;  %s11452_s26 = sld [smem:[#allocation12_spill]] }
0x26b4   : > { %v5536_v24 = vpop.permute.xlu0 %5535 }
0x26b5   : > { %v5538_v30 = vmul.f32 %v5536_v24, %v10713_v48 }
0x26b6   : > { %5527 = vrot.lane.b32.xlu1 %v5525_v42, %s9526_s22  ;;  %v5625_v42 = vsel %vm1395_vm4, %v10723_v47, %v10738_v45 }
0x26b7   : > { %5540 = vrot.lane.b32.xlu0 %v5538_v30, %s9519_s28  ;;  %s11453_s28 = smov 64  }
0x26b8   : > { %v5571_v9 = vpop.permute.xlu0 %5570  ;;  %v5701_v23 = vld [vmem:[%s11452_s26 + $0x8] sm:$0xff]  ;;  %v5712_v40 = vld [vmem:[%s11452_s26 + $0x60] sm:$0xff]  ;;  %v5703_v27 = vld [vmem:[%s11452_s26 + $0x18] sm:$0xff] }
0x26b9   : > { %v10762_v13 = vsub.f32 %v5564_v39, %v5571_v9  ;;  %v8560_v1 = vpack.c.bf16 %v5712_v40, %v5701_v23  ;;  %v5714_v36 = vld [vmem:[%s11452_s26 + $0x70] sm:$0xff]  ;;  %v5700_v21 = vld [vmem:[%s11452_s26] sm:$0xff]  ;;  %v5711_v31 = vld [vmem:[%s11452_s26 + $0x58] sm:$0xff] }
0x26ba   : > { %5578 = vrot.lane.b32.xlu1 %v5577_v33, %s9525_s11  ;;  %v8616_v38 = vpack.c.bf16 %v5714_v36, %v5703_v27  ;;  %v8562_v53 = vpack.c.bf16 %v5711_v31, %v5700_v21  ;;  %v5702_v54 = vld [vmem:[%s11452_s26 + $0x10] sm:$0xff]  ;;  %v5713_v32 = vld [vmem:[%s11452_s26 + $0x68] sm:$0xff]  ;;  %v5723_v59 = vld [vmem:[%s11452_s26 + $0xb8] sm:$0xff] }
0x26bb   : > { %5611 = vrot.lane.b32.xlu0 %v5606_v37, %s9514_s16  ;;  %v7647_v8 = vadd.f32 -1.0, %v10762_v13  ;;  %8561 = vmatprep.subr.bf16.mxu0 %v8560_v1  ;;  %v8618_v4 = vpack.c.bf16 %v5713_v32, %v5702_v54  ;;  %v5734_v35 = vld [vmem:[%s11452_s26 + $0x110] sm:$0xff]  ;;  %v5725_v0 = vld [vmem:[%s11452_s26 + $0xc8] sm:$0xff]  ;;  %v5736_v44 = vld [vmem:[%s11452_s26 + $0x120] sm:$0xff] }
0x26bc   : > { %8617 = vmatprep.subr.bf16.mxu1 %v8616_v38  ;;  %8563 = vmatpush1.bf16.msra.mxu0 %v8562_v53  ;;  %v8564_v51 = vpack.c.bf16 %v5734_v35, %v5723_v59  ;;  %v8620_v50 = vpack.c.bf16 %v5736_v44, %v5725_v0  ;;  %v5722_v49 = vld [vmem:[%s11452_s26 + $0xb0] sm:$0xff]  ;;  %v5733_v10 = vld [vmem:[%s11452_s26 + $0x108] sm:$0xff]  ;;  %v5724_v20 = vld [vmem:[%s11452_s26 + $0xc0] sm:$0xff] }
0x26bd   : > { %v5671_v18 = vrot.slane %v7647_v8, %v9756_v6  ;;  %8619 = vmatpush1.bf16.msra.mxu1 %v8618_v4  ;;  %v8566_v55 = vpack.c.bf16 %v5733_v10, %v5722_v49  ;;  %v5735_v58 = vld [vmem:[%s11452_s26 + $0x118] sm:$0xff]  ;;  %v5745_v2 = vld [vmem:[%s11452_s26 + $0x168] sm:$0xff]  ;;  %v5756_v25 = vld [vmem:[%s11452_s26 + $0x1c0] sm:$0xff] }
0x26be   : > { %5600 = vrot.lane.b32.xlu1 %v5599_v12, %s9514_s16  ;;  %8565 = vmatprep.subr.bf16.mxu0 %v8564_v51  ;;  %v8622_v52 = vpack.c.bf16 %v5735_v58, %v5724_v20  ;;  %v5747_v24 = vld [vmem:[%s11452_s26 + $0x178] sm:$0xff]  ;;  %v5758_v30 = vld [vmem:[%s11452_s26 + $0x1d0] sm:$0xff]  ;;  %v5744_v16 = vld [vmem:[%s11452_s26 + $0x160] sm:$0xff]  ;;  %v8568_v9 = vpack.c.bf16 %v5756_v25, %v5745_v2 }
0x26bf   : > { %8621 = vmatprep.subr.bf16.mxu1 %v8620_v50  ;;  %v8624_v37 = vpack.c.bf16 %v5758_v30, %v5747_v24  ;;  %v5755_v39 = vld [vmem:[%s11452_s26 + $0x1b8] sm:$0xff]  ;;  %v5746_v12 = vld [vmem:[%s11452_s26 + $0x170] sm:$0xff]  ;;  %v5757_v8 = vld [vmem:[%s11452_s26 + $0x1c8] sm:$0xff] }
0x26c0   : > { %8567 = vmatpush1.bf16.msra.mxu0 %v8566_v55  ;;  %v5780_v7 = vld [vmem:[%s11452_s26 + $0x280] sm:$0xff]  ;;  %v5779_v27 = vld [vmem:[%s11452_s26 + $0x278] sm:$0xff]  ;;  %v5802_v36 = vld [vmem:[%s11452_s26 + $0x330] sm:$0xff] }
0x26c1   : > { %8623 = vmatpush1.bf16.msra.mxu1 %v8622_v52  ;;  %8569 = vmatprep.subr.bf16.mxu0 %v8568_v9  ;;  %v5768_v40 = vld [vmem:[%s11452_s26 + $0x220] sm:$0xff]  ;;  %v5791_v1 = vld [vmem:[%s11452_s26 + $0x2d8] sm:$0xff]  ;;  %v5790_v54 = vld [vmem:[%s11452_s26 + $0x2d0] sm:$0xff] }
0x26c2   : > { %5613 = vrot.lane.b32.xlu1 %v5610_v17, %s9514_s16  ;;  %v8570_v17 = vpack.c.bf16 %v5755_v39, %v5744_v16  ;;  %8625 = vmatprep.subr.bf16.mxu1 %v8624_v37  ;;  %v8630_v31 = vpack.c.bf16 %v5779_v27, %v5768_v40  ;;  %v5788_v38 = vld [vmem:[%s11452_s26 + $0x2c0] sm:$0xff]  ;;  %v5799_v53 = vld [vmem:[%s11452_s26 + $0x318] sm:$0xff]  ;;  %v8632_v32 = vpack.c.bf16 %v5802_v36, %v5791_v1  ;;  %v5801_v59 = vld [vmem:[%s11452_s26 + $0x328] sm:$0xff]  ;;  %s9528_s16 = smov 10  }
0x26c3   : > { %v5822_v4 = vld [vmem:[%s11452_s26 + $0x3d0] sm:$0xff]  ;;  %v5813_v35 = vld [vmem:[%s11452_s26 + $0x388] sm:$0xff]  ;;  %v5824_v0 = vld [vmem:[%s11452_s26 + $0x3e0] sm:$0xff]  ;;  %v8578_v44 = vpack.c.bf16 %v5799_v53, %v5788_v38  ;;  %v8634_v51 = vpack.c.bf16 %v5801_v59, %v5790_v54 }
0x26c4   : > { %8571 = vmatpush1.bf16.msra.mxu0 %v8570_v17  ;;  %v5810_v49 = vld [vmem:[%s11452_s26 + $0x370] sm:$0xff]  ;;  %v5821_v10 = vld [vmem:[%s11452_s26 + $0x3c8] sm:$0xff]  ;;  %v5812_v20 = vld [vmem:[%s11452_s26 + $0x380] sm:$0xff] }
0x26c5   : > { %v5823_v55 = vld [vmem:[%s11452_s26 + $0x3d8] sm:$0xff]  ;;  %v5833_v58 = vld [vmem:[%s11452_s26 + $0x428] sm:$0xff]  ;;  %v5844_v2 = vld [vmem:[%s11452_s26 + $0x480] sm:$0xff]  ;;  %v8582_v52 = vpack.c.bf16 %v5821_v10, %v5810_v49 }
0x26c6   : > { %5672 = vrot.lane.b32.xlu1 %v5671_v18, %s11453_s28  ;;  %v5767_v18 = vld [vmem:[%s11452_s26 + $0x218] sm:$0xff]  ;;  %v8638_v24 = vpack.c.bf16 %v5823_v55, %v5812_v20  ;;  %v8584_v30 = vpack.c.bf16 %v5844_v2, %v5833_v58  ;;  %v5832_v16 = vld [vmem:[%s11452_s26 + $0x420] sm:$0xff]  ;;  %v5834_v37 = vld [vmem:[%s11452_s26 + $0x430] sm:$0xff] }
0x26c7   : > { %v5835_v25 = vld [vmem:[%s11452_s26 + $0x438] sm:$0xff]  ;;  %v5866_v17 = vld [vmem:[%s11452_s26 + $0x530] sm:$0xff]  ;;  %v5877_v27 = vld [vmem:[%s11452_s26 + $0x588] sm:$0xff] }
0x26c8   : > { %v5843_v9 = vld [vmem:[%s11452_s26 + $0x478] sm:$0xff]  ;;  %v5890_v1 = vld [vmem:[%s11452_s26 + $0x5f0] sm:$0xff]  ;;  %v5909_v49 = vld [vmem:[%s11452_s26 + $0x688] sm:$0xff] }
0x26c9   : > { %v5867_v40 = vld [vmem:[%s11452_s26 + $0x538] sm:$0xff]  ;;  %v5878_v53 = vld [vmem:[%s11452_s26 + $0x590] sm:$0xff]  ;;  %v5900_v10 = vld [vmem:[%s11452_s26 + $0x640] sm:$0xff] }
0x26ca   : > { %v5887_v38 = vld [vmem:[%s11452_s26 + $0x5d8] sm:$0xff]  ;;  %v5921_v55 = vld [vmem:[%s11452_s26 + $0x6e8] sm:$0xff]  ;;  %v5932_v58 = vld [vmem:[%s11452_s26 + $0x740] sm:$0xff] }
0x26cb   : > { %v5899_v59 = vld [vmem:[%s11452_s26 + $0x638] sm:$0xff] }
0x26cc   : > { %v5923_v2 = vld [vmem:[%s11452_s26 + $0x6f8] sm:$0xff] }
0x2724   : > { %v5558_v61 = vpop.permute.xlu1 %5557 }
0x2725   : > { %v5560_v63 = vsub.f32 %v5548_v46, %v5558_v61  ;;  %v5778_v46 = vld [vmem:[%s11452_s26 + $0x270] sm:$0xff]  ;;  %v5769_v61 = vld [vmem:[%s11452_s26 + $0x228] sm:$0xff] }
0x2726   : > { %v8628_v23 = vpack.c.bf16 %v5780_v7, %v5769_v61  ;;  %v8586_v61 = vpack.c.bf16 %v5843_v9, %v5832_v16  ;;  %v5854_v7 = vld [vmem:[%s11452_s26 + $0x4d0] sm:$0xff]  ;;  %v5931_v16 = vld [vmem:[%s11452_s26 + $0x738] sm:$0xff] }
0x2727   : > { %v5592_v22 = vrot.slane %v5560_v63, %v9756_v6  ;;  %v8626_v63 = vpack.c.bf16 %v5757_v8, %v5746_v12  ;;  %v5845_v12 = vld [vmem:[%s11452_s26 + $0x488] sm:$0xff]  ;;  %v5855_v8 = vld [vmem:[%s11452_s26 + $0x4d8] sm:$0xff]  ;;  %v5922_v9 = vld [vmem:[%s11452_s26 + $0x6f0] sm:$0xff] }
0x2728   : > { %v5528_v5 = vpop.permute.xlu1 %5527 }
0x2729   : > { %v5529_v19 = vrot.slane %v5528_v5, 1  ;;  %5593 = vrot.lane.b32.xlu0 %v5592_v22, %s9525_s11  ;;  %v5541_v34 = vpop.permute.xlu0 %5540  ;;  %v8572_v22 = vpack.c.bf16 %v5778_v46, %v5767_v18  ;;  %8627 = vmatpush1.bf16.msra.mxu1 %v8626_v63  ;;  %v5857_v18 = vld [vmem:[%s11452_s26 + $0x4e8] sm:$0xff]  ;;  %v5868_v46 = vld [vmem:[%s11452_s26 + $0x540] sm:$0xff]  ;;  %v8642_v63 = vpack.c.bf16 %v5845_v12, %v5834_v37  ;;  %v5943_v12 = vld [vmem:[%s11452_s26 + $0x798] sm:$0xff] }
0x272a   : > { %8629 = vmatprep.subr.bf16.mxu1 %v8628_v23  ;;  %v8644_v23 = vpack.c.bf16 %v5868_v46, %v5857_v18  ;;  %v5956_v18 = vld [vmem:[%s11452_s26 + $0x800] sm:$0xff] }
0x272b   : > { %v5531_v48 = vsel %vm5530_vm10, %v5528_v5, %v5529_v19  ;;  %v5766_v5 = vld [vmem:[%s11452_s26 + $0x210] sm:$0xff]  ;;  %v5777_v19 = vld [vmem:[%s11452_s26 + $0x268] sm:$0xff]  ;;  %8573 = vmatprep.subr.bf16.mxu0 %v8572_v22  ;;  %v8588_v22 = vpack.c.bf16 %v5866_v17, %v5855_v8 }
0x272c   : > { %v5533_v26 = vmul.f32 %v5531_v48, %v10709_v60  ;;  %v10802_v14 = vpop.permute.xlu1 %5578  ;;  %v5789_v48 = vld [vmem:[%s11452_s26 + $0x2c8] sm:$0xff]  ;;  %v8574_v21 = vpack.c.bf16 %v5777_v19, %v5766_v5  ;;  %v5856_v19 = vld [vmem:[%s11452_s26 + $0x4e0] sm:$0xff]  ;;  %v5954_v8 = vld [vmem:[%s11452_s26 + $0x7f0] sm:$0xff] }
0x272d   : > { %5664 = vrot.lane.b32.xlu0 %v5663_v15, %s9525_s11  ;;  %v5800_v15 = vld [vmem:[%s11452_s26 + $0x320] sm:$0xff]  ;;  %8631 = vmatpush1.bf16.msra.mxu1 %v8630_v31  ;;  %v5865_v5 = vld [vmem:[%s11452_s26 + $0x528] sm:$0xff] }
0x272e   : > { %v10791_v60 = vsub.f32 %v5533_v26, %v5541_v34  ;;  %v8576_v26 = vpack.c.bf16 %v5800_v15, %v5789_v48  ;;  %v5811_v34 = vld [vmem:[%s11452_s26 + $0x378] sm:$0xff]  ;;  %8575 = vmatpush1.bf16.msra.mxu0 %v8574_v21  ;;  %8633 = vmatprep.subr.bf16.mxu1 %v8632_v32  ;;  %v5888_v48 = vld [vmem:[%s11452_s26 + $0x5e0] sm:$0xff]  ;;  %v8590_v36 = vpack.c.bf16 %v5865_v5, %v5854_v7  ;;  %v5889_v32 = vld [vmem:[%s11452_s26 + $0x5e8] sm:$0xff] }
0x272f   : > { %v8580_v50 = vpack.c.bf16 %v5822_v4, %v5811_v34  ;;  %v5879_v15 = vld [vmem:[%s11452_s26 + $0x598] sm:$0xff]  ;;  %v8646_v21 = vpack.c.bf16 %v5867_v40, %v5856_v19  ;;  %v8592_v31 = vpack.c.bf16 %v5888_v48, %v5877_v27  ;;  %v5910_v34 = vld [vmem:[%s11452_s26 + $0x690] sm:$0xff]  ;;  %v5901_v4 = vld [vmem:[%s11452_s26 + $0x648] sm:$0xff] }
0x2730   : > { %v5626_v57 = vsel %vm2287_vm6, %v5625_v42, %v10791_v60  ;;  %8577 = vmatprep.subr.bf16.mxu0 %v8576_v26  ;;  %v8636_v42 = vpack.c.bf16 %v5824_v0, %v5813_v35  ;;  %v5876_v26 = vld [vmem:[%s11452_s26 + $0x580] sm:$0xff]  ;;  %v8648_v54 = vpack.c.bf16 %v5890_v1, %v5879_v15  ;;  %v5945_v17 = vld [vmem:[%s11452_s26 + $0x7a8] sm:$0xff]  ;;  %v5967_v48 = vld [vmem:[%s11452_s26 + $0x858] sm:$0xff] }
0x2731   : > { %v10811_v33 = vsel %vm5627_vm11, %v5626_v57, %v10802_v14  ;;  %v5846_v57 = vld [vmem:[%s11452_s26 + $0x490] sm:$0xff]  ;;  %8635 = vmatpush1.bf16.msra.mxu1 %v8634_v51  ;;  %v5912_v35 = vld [vmem:[%s11452_s26 + $0x6a0] sm:$0xff]  ;;  %v8594_v0 = vpack.c.bf16 %v5887_v38, %v5876_v26  ;;  %v8596_v51 = vpack.c.bf16 %v5910_v34, %v5899_v59  ;;  %v5953_v7 = vld [vmem:[%s11452_s26 + $0x7e8] sm:$0xff]  ;;  %v8660_v19 = vpack.c.bf16 %v5956_v18, %v5945_v17  ;;  %v5601_v34 = vpop.permute.xlu1 %5600 }
0x2732   : > { %8579 = vmatpush1.bf16.msra.mxu0 %v8578_v44  ;;  %8637 = vmatprep.subr.bf16.mxu1 %v8636_v42  ;;  %v8640_v39 = vpack.c.bf16 %v5846_v57, %v5835_v25  ;;  %v8650_v44 = vpack.c.bf16 %v5889_v32, %v5878_v53  ;;  %v8652_v20 = vpack.c.bf16 %v5912_v35, %v5901_v4  ;;  %v5911_v42 = vld [vmem:[%s11452_s26 + $0x698] sm:$0xff]  ;;  %v5934_v25 = vld [vmem:[%s11452_s26 + $0x750] sm:$0xff]  ;;  %v5944_v5 = vld [vmem:[%s11452_s26 + $0x7a0] sm:$0xff] }
0x2733   : > { %8581 = vmatprep.subr.bf16.mxu0 %v8580_v50  ;;  %v5898_v50 = vld [vmem:[%s11452_s26 + $0x630] sm:$0xff]  ;;  %v8656_v37 = vpack.c.bf16 %v5934_v25, %v5923_v2  ;;  %v5965_v40 = vld [vmem:[%s11452_s26 + $0x848] sm:$0xff]  ;;  %v5976_v27 = vld [vmem:[%s11452_s26 + $0x8a0] sm:$0xff] }
0x2734   : > { %v8598_v57 = vpack.c.bf16 %v5909_v49, %v5898_v50  ;;  %v5978_v15 = vld [vmem:[%s11452_s26 + $0x8b0] sm:$0xff]  ;;  %v5975_v26 = vld [vmem:[%s11452_s26 + $0x898] sm:$0xff]  ;;  %v5997_v49 = vld [vmem:[%s11452_s26 + $0x948] sm:$0xff] }
0x2735   : > { %8639 = vmatpush1.bf16.msra.mxu1 %v8638_v24  ;;  %v8600_v24 = vpack.c.bf16 %v5932_v58, %v5921_v55  ;;  %v8664_v38 = vpack.c.bf16 %v5978_v15, %v5967_v48  ;;  %v5966_v53 = vld [vmem:[%s11452_s26 + $0x850] sm:$0xff]  ;;  %v5987_v4 = vld [vmem:[%s11452_s26 + $0x8f8] sm:$0xff]  ;;  %v6009_v2 = vld [vmem:[%s11452_s26 + $0x9a8] sm:$0x3] }
0x2736   : > { %8583 = vmatpush1.bf16.msra.mxu0 %v8582_v52  ;;  %8641 = vmatprep.subr.bf16.mxu1 %v8640_v39  ;;  %v8654_v52 = vpack.c.bf16 %v5911_v42, %v5900_v10  ;;  %v5933_v39 = vld [vmem:[%s11452_s26 + $0x748] sm:$0xff]  ;;  %v5998_v35 = vld [vmem:[%s11452_s26 + $0x950] sm:$0xff]  ;;  %v5988_v42 = vld [vmem:[%s11452_s26 + $0x900] sm:$0xff] }
0x2737   : > { %8585 = vmatprep.subr.bf16.mxu0 %v8584_v30  ;;  %v5920_v30 = vld [vmem:[%s11452_s26 + $0x6e0] sm:$0xff]  ;;  %v5986_v50 = vld [vmem:[%s11452_s26 + $0x8f0] sm:$0xff]  ;;  %v5999_v55 = vld [vmem:[%s11452_s26 + $0x958] sm:$0xff] }
0x2738   : > { %v8602_v46 = vpack.c.bf16 %v5931_v16, %v5920_v30  ;;  %v8670_v58 = vpack.c.bf16 %v5999_v55, %v5988_v42  ;;  %v6011_v25 = vld [vmem:[%s11452_s26 + $0x9b8] sm:$0x3]  ;;  %v6010_v30 = vld [vmem:[%s11452_s26 + $0x9b0] sm:$0x3]  ;;  %v5705_v16 = vld [vmem:[%s11452_s26 + $0x28] sm:$0xff] }
0x2739   : > { %8643 = vmatpush1.bf16.msra.mxu1 %v8642_v63  ;;  %v8604_v63 = vpack.c.bf16 %v5954_v8, %v5943_v12  ;;  %v7645_v12 = vadd.f32 -1.0, %v10723_v47  ;;  %v5762_v42 = vld [vmem:[%s11452_s26 + $0x1f0] sm:$0xff] }
0x273a   : > { %8587 = vmatpush1.bf16.msra.mxu0 %v8586_v61  ;;  %8645 = vmatprep.subr.bf16.mxu1 %v8644_v23  ;;  %v8658_v61 = vpack.c.bf16 %v5933_v39, %v5922_v9  ;;  %v5955_v23 = vld [vmem:[%s11452_s26 + $0x7f8] sm:$0xff]  ;;  %v5716_v9 = vld [vmem:[%s11452_s26 + $0x80] sm:$0xff]  ;;  %v5718_v39 = vld [vmem:[%s11452_s26 + $0x90] sm:$0xff] }
0x273b   : > { %8589 = vmatprep.subr.bf16.mxu0 %v8588_v22  ;;  %v5942_v22 = vld [vmem:[%s11452_s26 + $0x790] sm:$0xff]  ;;  %v8672_v8 = vpack.c.bf16 %v5716_v9, %v5705_v16  ;;  %v5675_v18 = vsel %vm1395_vm4, %v7645_v12, %v10738_v45  ;;  %vm5694_vm4 = vcmask 80896   ;;  %v5761_v16 = vld [vmem:[%s11452_s26 + $0x1e8] sm:$0xff]  ;;  %v5771_v9 = vld [vmem:[%s11452_s26 + $0x238] sm:$0xff] }
0x273c   : > { %v8606_v1 = vpack.c.bf16 %v5953_v7, %v5942_v22  ;;  %v5782_v12 = vld [vmem:[%s11452_s26 + $0x290] sm:$0xff] }
0x273d   : > { %8647 = vmatpush1.bf16.msra.mxu1 %v8646_v21  ;;  %v8608_v21 = vpack.c.bf16 %v5976_v27, %v5965_v40  ;;  %v5584_v40 = vrot.slane %v10743_v56, %v9756_v6  ;;  %v5621_v27 = vrot.slane %v10762_v13, %v9756_v6  ;;  %v5704_v56 = vld [vmem:[%s11452_s26 + $0x20] sm:$0xff]  ;;  %v5727_v13 = vld [vmem:[%s11452_s26 + $0xd8] sm:$0xff] }
0x273e   : > { %8591 = vmatpush1.bf16.msra.mxu0 %v8590_v36  ;;  %8649 = vmatprep.subr.bf16.mxu1 %v8648_v54  ;;  %v8662_v36 = vpack.c.bf16 %v5955_v23, %v5944_v5  ;;  %v5977_v54 = vld [vmem:[%s11452_s26 + $0x8a8] sm:$0xff] }
0x273f   : > { %8593 = vmatprep.subr.bf16.mxu0 %v8592_v31  ;;  %v5964_v31 = vld [vmem:[%s11452_s26 + $0x840] sm:$0xff]  ;;  %v8666_v59 = vpack.c.bf16 %v5977_v54, %v5966_v53 }
0x2740   : > { %v8610_v32 = vpack.c.bf16 %v5975_v26, %v5964_v31  ;;  %v5738_v31 = vld [vmem:[%s11452_s26 + $0x130] sm:$0xff]  ;;  %v5729_v26 = vld [vmem:[%s11452_s26 + $0xe8] sm:$0xff] }
0x2741   : > { %8651 = vmatpush1.bf16.msra.mxu1 %v8650_v44  ;;  %v8612_v44 = vpack.c.bf16 %v5998_v35, %v5987_v4  ;;  %v5728_v35 = vld [vmem:[%s11452_s26 + $0xe0] sm:$0xff] }
0x2742   : > { %8595 = vmatpush1.bf16.msra.mxu0 %v8594_v0  ;;  %8653 = vmatprep.subr.bf16.mxu1 %v8652_v20  ;;  %v5989_v0 = vld [vmem:[%s11452_s26 + $0x908] sm:$0xff]  ;;  %v8614_v20 = vpack.c.bf16 %v5997_v49, %v5986_v50  ;;  %v8676_v50 = vpack.c.bf16 %v5738_v31, %v5727_v13  ;;  %v5794_v13 = vld [vmem:[%s11452_s26 + $0x2f0] sm:$0xff] }
0x2743   : > { %8597 = vmatprep.subr.bf16.mxu0 %v8596_v51  ;;  %v6000_v51 = vld [vmem:[%s11452_s26 + $0x960] sm:$0xff]  ;;  %v5805_v31 = vld [vmem:[%s11452_s26 + $0x348] sm:$0xff] }
0x2744   : > { %v8668_v10 = vpack.c.bf16 %v6000_v51, %v5989_v0  ;;  %v5739_v0 = vld [vmem:[%s11452_s26 + $0x138] sm:$0xff] }
0x2745   : > { %8655 = vmatpush1.bf16.msra.mxu1 %v8654_v52  ;;  %v5614_v52 = vpop.permute.xlu1 %5613 }
0x2746   : > { %8599 = vmatpush1.bf16.msra.mxu0 %v8598_v57  ;;  %8657 = vmatprep.subr.bf16.mxu1 %v8656_v37  ;;  %v5612_v57 = vpop.permute.xlu0 %5611  ;;  %v5707_v37 = vld [vmem:[%s11452_s26 + $0x38] sm:$0xff] }
0x2747   : > { %8601 = vmatprep.subr.bf16.mxu0 %v8600_v24  ;;  %v6008_v24 = vld [vmem:[%s11452_s26 + $0x9a0] sm:$0x3]  ;;  %v8728_v17 = vpack.c.bf16 %v5718_v39, %v5707_v37 }
0x2749   : > { %8659 = vmatpush1.bf16.msra.mxu1 %v8658_v61  ;;  %v5676_v61 = vsel %vm2287_vm6, %v5675_v18, %v10791_v60  ;;  %v5673_v22 = vpop.permute.xlu1 %5672 }
0x274a   : > { %8603 = vmatpush1.bf16.msra.mxu0 %v8602_v46  ;;  %8661 = vmatprep.subr.bf16.mxu1 %v8660_v19  ;;  %v5677_v45 = vsel %vm5627_vm11, %v5676_v61, %v10802_v14  ;;  %v5684_v14 = vrot.slane %v10698_v29, %v9761_v11  ;;  %v5706_v29 = vld [vmem:[%s11452_s26 + $0x30] sm:$0xff] }
0x274b   : > { %8605 = vmatprep.subr.bf16.mxu0 %v8604_v63  ;;  %v5615_v63 = vsel %vm2287_vm6, %v5612_v57, %v5614_v52  ;;  %vm6019_vm6 = vcmask 801792   ;;  %v5759_v57 = vld [vmem:[%s11452_s26 + $0x1d8] sm:$0xff] }
0x274d   : > { %8663 = vmatpush1.bf16.msra.mxu1 %v8662_v36  ;;  %v5717_v36 = vld [vmem:[%s11452_s26 + $0x88] sm:$0xff] }
0x274e   : > { %8607 = vmatpush1.bf16.msra.mxu0 %v8606_v1  ;;  %8665 = vmatprep.subr.bf16.mxu1 %v8664_v38  ;;  %v5715_v1 = vld [vmem:[%s11452_s26 + $0x78] sm:$0xff]  ;;  %v5740_v38 = vld [vmem:[%s11452_s26 + $0x140] sm:$0xff] }
0x274f   : > { %8609 = vmatprep.subr.bf16.mxu0 %v8608_v21  ;;  %v8674_v54 = vpack.c.bf16 %v5715_v1, %v5704_v56  ;;  %v8732_v49 = vpack.c.bf16 %v5740_v38, %v5729_v26  ;;  %v5803_v1 = vld [vmem:[%s11452_s26 + $0x338] sm:$0xff]  ;;  %v5826_v38 = vld [vmem:[%s11452_s26 + $0x3f0] sm:$0xff] }
0x2750   : > { %v5815_v26 = vld [vmem:[%s11452_s26 + $0x398] sm:$0xff] }
0x2751   : > { %8667 = vmatpush1.bf16.msra.mxu1 %v8666_v59  ;;  %v5726_v59 = vld [vmem:[%s11452_s26 + $0xd0] sm:$0xff] }
0x2752   : > { %8611 = vmatpush1.bf16.msra.mxu0 %v8610_v32  ;;  %8669 = vmatprep.subr.bf16.mxu1 %v8668_v10  ;;  %v8730_v32 = vpack.c.bf16 %v5717_v36, %v5706_v29  ;;  %v5760_v10 = vld [vmem:[%s11452_s26 + $0x1e0] sm:$0xff] }
0x2753   : > { %8613 = vmatprep.subr.bf16.mxu0 %v8612_v44  ;;  %v5749_v44 = vld [vmem:[%s11452_s26 + $0x188] sm:$0xff] }
0x2754   : > { %v8680_v52 = vpack.c.bf16 %v5760_v10, %v5749_v44  ;;  %v5816_v44 = vld [vmem:[%s11452_s26 + $0x3a0] sm:$0xff] }
0x2755   : > { %8671 = vmatpush1.bf16.msra.mxu1 %v8670_v58  ;;  %v5848_v10 = vld [vmem:[%s11452_s26 + $0x4a0] sm:$0xff] }
0x2756   : > { %8615 = vmatpush1.bf16.msra.mxu0 %v8614_v20  ;;  %7651 = vmatprep.subr.msk.mxu1 %vm6022_vm12, %v6011_v25  ;;  %v5751_v20 = vld [vmem:[%s11452_s26 + $0x198] sm:$0xff]  ;;  %v5748_v25 = vld [vmem:[%s11452_s26 + $0x180] sm:$0xff] }
0x2757   : > { %7648 = vmatprep.subr.msk.mxu0 %vm6022_vm12, %v6009_v2  ;;  %v8734_v2 = vpack.c.bf16 %v5739_v0, %v5728_v35  ;;  %v8682_v61 = vpack.c.bf16 %v5759_v57, %v5748_v25  ;;  %v8692_v35 = vpack.c.bf16 %v5826_v38, %v5815_v26  ;;  %v5847_v25 = vld [vmem:[%s11452_s26 + $0x498] sm:$0xff]  ;;  %v5913_v26 = vld [vmem:[%s11452_s26 + $0x6a8] sm:$0xff] }
0x2759   : > { %7652 = vmatpush1.msk.msra.mxu1 %vm6022_vm12, %v6010_v30  ;;  %v5750_v30 = vld [vmem:[%s11452_s26 + $0x190] sm:$0xff] }
0x275a   : > { %7649 = vmatpush1.msk.msra.mxu0 %vm6022_vm12, %v6008_v24  ;;  %8729 = vmatprep.subr.bf16.mxu1 %v8728_v17  ;;  %v8736_v24 = vpack.c.bf16 %v5762_v42, %v5751_v20  ;;  %v5784_v17 = vld [vmem:[%s11452_s26 + $0x2a0] sm:$0xff]  ;;  %v5839_v20 = vld [vmem:[%s11452_s26 + $0x458] sm:$0xff]  ;;  %v5850_v42 = vld [vmem:[%s11452_s26 + $0x4b0] sm:$0xff] }
0x275b   : > { %8673 = vmatprep.subr.bf16.mxu0 %v8672_v8  ;;  %v5773_v8 = vld [vmem:[%s11452_s26 + $0x248] sm:$0xff] }
0x279b   : > { %v10919_v46 = vpop.permute.xlu0 %5593 }
0x279c   : > { %v5631_v47 = vsel %vm1290_vm2, %v10919_v46, %v5601_v34  ;;  %v5737_v34 = vld [vmem:[%s11452_s26 + $0x128] sm:$0xff] }
0x279d   : > { %v10926_v7 = vsel %vm5632_vm13, %v5631_v47, %v5615_v63  ;;  %v8678_v58 = vpack.c.bf16 %v5737_v34, %v5726_v59  ;;  %v5770_v63 = vld [vmem:[%s11452_s26 + $0x230] sm:$0xff]  ;;  %v5781_v47 = vld [vmem:[%s11452_s26 + $0x288] sm:$0xff]  ;;  %v8746_v59 = vpack.c.bf16 %v5805_v31, %v5794_v13 }
0x279e   : > { %v5680_v5 = vsel %vm1046_vm0, %v10926_v7, %v5673_v22  ;;  %v5814_v34 = vld [vmem:[%s11452_s26 + $0x390] sm:$0xff] }
0x279f   : > { %v5665_v19 = vpop.permute.xlu0 %5664  ;;  %5692 = vrot.lane.b32.xlu1 %v5680_v5, %s9528_s16  ;;  %v8740_v5 = vpack.c.bf16 %v5784_v17, %v5773_v8  ;;  %v5858_v8 = vld [vmem:[%s11452_s26 + $0x4f0] sm:$0xff]  ;;  %v5869_v17 = vld [vmem:[%s11452_s26 + $0x548] sm:$0xff] }
0x27a0   : > { %v5678_v60 = vsel %vm5521_vm5, %v5677_v45, %v5665_v19  ;;  %v5772_v45 = vld [vmem:[%s11452_s26 + $0x240] sm:$0xff]  ;;  %v5783_v19 = vld [vmem:[%s11452_s26 + $0x298] sm:$0xff]  ;;  %v5902_v31 = vld [vmem:[%s11452_s26 + $0x650] sm:$0xff] }
0x27a1   : > { %v5679_v23 = vsel %vm5483_vm3, %v5678_v60, %v10919_v46  ;;  %v5793_v60 = vld [vmem:[%s11452_s26 + $0x2e8] sm:$0xff]  ;;  %v8742_v56 = vpack.c.bf16 %v5783_v19, %v5772_v45  ;;  %v8702_v45 = vpack.c.bf16 %v5869_v17, %v5858_v8  ;;  %v5980_v8 = vld [vmem:[%s11452_s26 + $0x8c0] sm:$0xff]  ;;  %v5971_v17 = vld [vmem:[%s11452_s26 + $0x878] sm:$0xff] }
0x27a2   : > { %5690 = vrot.lane.b32.xlu0 %v5679_v23, %s9528_s16  ;;  %v5804_v23 = vld [vmem:[%s11452_s26 + $0x340] sm:$0xff]  ;;  %s9046_s16 = smul.u32 11, %s11459_s10 }
0x27a3   : > { %5585 = vrot.lane.b32.xlu1 %v5584_v40, %s9525_s11  ;;  %s11455_s11 = sshll.u32 %s11459_s10, 1  ;;  %v5795_v40 = vld [vmem:[%s11452_s26 + $0x2f8] sm:$0xff]  ;;  %v8688_v29 = vpack.c.bf16 %v5804_v23, %v5793_v60  ;;  %v5880_v60 = vld [vmem:[%s11452_s26 + $0x5a0] sm:$0xff] }
0x27a4   : > { %s922_s22 = scalar_lea.vmem %s9672_s20, %s11455_s11  ;;  %v5891_v23 = vld [vmem:[%s11452_s26 + $0x5f8] sm:$0xff]  ;;  %s929_s11 = scalar_lea.vmem %s9682_s4, %s11459_s10 }
0x27a6   : > { %5685 = vrot.lane.b32.xlu0 %v5684_v14, %s11454_s18  ;;  %v5806_v14 = vld [vmem:[%s11452_s26 + $0x350] sm:$0xff]  ;;  %s11284_s18 = scalar_lea.vmem %s9677_s27, %s9046_s16 }
0x27a7   : > { %v8744_v36 = vpack.c.bf16 %v5806_v14, %v5795_v40 }
0x27aa   : > { %5622 = vrot.lane.b32.xlu0 %v5621_v27, %s11453_s28  ;;  %s11457_s28 = sld [smem:[#allocation11_spill]] }
0x2811   : > { %v5693_v48 = vpop.permute.xlu1 %5692 }
0x2814   : > { %v5691_v15 = vpop.permute.xlu0 %5690 }
0x2815   : > { %v10949_v21 = vsel %vm5694_vm4, %v5691_v15, %v5693_v48  ;;  %v5586_v53 = vpop.permute.xlu1 %5585  ;;  %v8686_v48 = vpack.c.bf16 %v5781_v47, %v5770_v63  ;;  %v5871_v63 = vld [vmem:[%s11452_s26 + $0x558] sm:$0xff]  ;;  %v5881_v47 = vld [vmem:[%s11452_s26 + $0x5a8] sm:$0xff] }
0x2816   : > { %7650 = vmatprep.mubr.msk.f32.mxu0 %vm6019_vm6, %v10949_v21  ;;  %7653 = vmatprep.mubr.msk.f32.mxu1 %vm6019_vm6, %v10949_v21  ;;  %v5629_v55 = vsel %vm5521_vm5, %v10811_v33, %v5586_v53  ;;  %v5817_v53 = vld [vmem:[%s11452_s26 + $0x3a8] sm:$0xff] }
0x2817   : > { %v5630_v37 = vsel %vm5483_vm3, %v5629_v55, %v10919_v46  ;;  %v8738_v46 = vpack.c.bf16 %v5761_v16, %v5750_v30  ;;  %v5859_v30 = vld [vmem:[%s11452_s26 + $0x4f8] sm:$0xff]  ;;  %v5870_v16 = vld [vmem:[%s11452_s26 + $0x550] sm:$0xff] }
0x2818   : > { %v5686_v4 = vpop.permute.xlu0 %5685 }
0x2819   : > { %v10965_v51 = vsel %vm5694_vm4, %v5686_v4, %v5691_v15  ;;  %v5792_v15 = vld [vmem:[%s11452_s26 + $0x2e0] sm:$0xff]  ;;  %v5825_v4 = vld [vmem:[%s11452_s26 + $0x3e8] sm:$0xff] }
0x281a   : > { %6121 = vmatmul.mubr.f32.vlgmr.msra.gmra.mrb[82].mxu0 %v10965_v51  ;;  %6192 = vmatmul.mubr.f32.vlgmr.msra.gmra.mrb[98].mxu1 %v10965_v51  ;;  %v8694_v55 = vpack.c.bf16 %v5825_v4, %v5814_v34  ;;  %v5936_v34 = vld [vmem:[%s11452_s26 + $0x760] sm:$0xff]  ;;  %v5927_v4 = vld [vmem:[%s11452_s26 + $0x718] sm:$0xff] }
0x281b   : > { %8675 = vmatpush1.bf16.msra.mxu0 %v8674_v54  ;;  %8731 = vmatpush1.bf16.msra.mxu1 %v8730_v32  ;;  %v5828_v54 = vld [vmem:[%s11452_s26 + $0x400] sm:$0xff]  ;;  %v8690_v32 = vpack.c.bf16 %v5803_v1, %v5792_v15  ;;  %v5914_v15 = vld [vmem:[%s11452_s26 + $0x6b0] sm:$0xff]  ;;  %v5905_v1 = vld [vmem:[%s11452_s26 + $0x668] sm:$0xff] }
0x281c   : > { %7656 = vmatprep.mubr.msk.f32.mxu0 %vm6019_vm6, %v10949_v21  ;;  %7659 = vmatprep.mubr.msk.f32.mxu1 %vm6019_vm6, %v10949_v21  ;;  %v5623_v33 = vpop.permute.xlu0 %5622  ;;  %v8748_v0 = vpack.c.bf16 %v5828_v54, %v5817_v53  ;;  %v5904_v54 = vld [vmem:[%s11452_s26 + $0x660] sm:$0xff] }
0x281d   : > { %v5634_v39 = vsel %vm1046_vm0, %v10926_v7, %v5623_v33  ;;  %8677 = vmatprep.subr.bf16.mxu0 %v8676_v50  ;;  %8733 = vmatprep.subr.bf16.mxu1 %v8732_v49  ;;  %v8684_v7 = vpack.c.bf16 %v5782_v12, %v5771_v9  ;;  %vm5653_vm0 = vcmp.lt.s32.totalorder %v1148_v62, 216  ;;  %v5827_v50 = vld [vmem:[%s11452_s26 + $0x3f8] sm:$0xff]  ;;  %v5837_v49 = vld [vmem:[%s11452_s26 + $0x448] sm:$0xff]  ;;  %v8752_v33 = vpack.c.bf16 %v5850_v42, %v5839_v20  ;;  %v5926_v42 = vld [vmem:[%s11452_s26 + $0x710] sm:$0xff] }
0x281e   : > { %v5637_v18 = vcombine.low %v5630_v37, %v5634_v39  ;;  %v8696_v57 = vpack.c.bf16 %v5848_v10, %v5837_v49  ;;  %v5861_v9 = vld [vmem:[%s11452_s26 + $0x508] sm:$0xff]  ;;  %v5872_v37 = vld [vmem:[%s11452_s26 + $0x560] sm:$0xff]  ;;  %v5935_v49 = vld [vmem:[%s11452_s26 + $0x758] sm:$0xff] }
0x281f   : > { %8679 = vmatpush1.bf16.msra.mxu0 %v8678_v58  ;;  %8735 = vmatpush1.bf16.msra.mxu1 %v8734_v2  ;;  %v8750_v58 = vpack.c.bf16 %v5827_v50, %v5816_v44  ;;  %v5836_v2 = vld [vmem:[%s11452_s26 + $0x440] sm:$0xff] }
0x2820   : > { %v5644_v22 = vrot.slane %v5637_v18, %v10626_v41  ;;  %8681 = vmatprep.subr.bf16.mxu0 %v8680_v52  ;;  %8737 = vmatprep.subr.bf16.mxu1 %v8736_v24  ;;  %v5838_v52 = vld [vmem:[%s11452_s26 + $0x450] sm:$0xff]  ;;  %v5849_v24 = vld [vmem:[%s11452_s26 + $0x4a8] sm:$0xff]  ;;  %v8698_v39 = vpack.c.bf16 %v5847_v25, %v5836_v2  ;;  %v8700_v18 = vpack.c.bf16 %v5870_v16, %v5859_v30  ;;  %v5924_v50 = vld [vmem:[%s11452_s26 + $0x700] sm:$0xff] }
0x2821   : > { %v8754_v12 = vpack.c.bf16 %v5849_v24, %v5838_v52  ;;  %v5958_v2 = vld [vmem:[%s11452_s26 + $0x810] sm:$0xff]  ;;  %v5949_v25 = vld [vmem:[%s11452_s26 + $0x7c8] sm:$0xff] }
0x2822   : > { %v5651_v27 = vrot.slane %v5644_v22, %v10626_v41  ;;  %v5892_v22 = vld [vmem:[%s11452_s26 + $0x600] sm:$0xff]  ;;  %v5946_v24 = vld [vmem:[%s11452_s26 + $0x7b0] sm:$0xff]  ;;  %v5957_v30 = vld [vmem:[%s11452_s26 + $0x808] sm:$0xff] }
0x2823   : > { %8683 = vmatpush1.bf16.msra.mxu0 %v8682_v61  ;;  %8739 = vmatpush1.bf16.msra.mxu1 %v8738_v46  ;;  %v8756_v61 = vpack.c.bf16 %v5872_v37, %v5861_v9  ;;  %v5860_v46 = vld [vmem:[%s11452_s26 + $0x500] sm:$0xff]  ;;  %v8704_v40 = vpack.c.bf16 %v5892_v22, %v5881_v47  ;;  %v5979_v47 = vld [vmem:[%s11452_s26 + $0x8b8] sm:$0xff] }
0x2824   : > { %5655 = vst.msk [vmem:[%s922_s22] sm:$0x3] %vm5653_vm0, %v5651_v27  ;;  %8685 = vmatprep.subr.bf16.mxu0 %v8684_v7  ;;  %8741 = vmatprep.subr.bf16.mxu1 %v8740_v5  ;;  %v5883_v7 = vld [vmem:[%s11452_s26 + $0x5b8] sm:$0xff]  ;;  %v5894_v5 = vld [vmem:[%s11452_s26 + $0x610] sm:$0xff]  ;;  %v8758_v19 = vpack.c.bf16 %v5871_v63, %v5860_v46  ;;  %v5948_v37 = vld [vmem:[%s11452_s26 + $0x7c0] sm:$0xff] }
0x2825   : > { %v8760_v14 = vpack.c.bf16 %v5894_v5, %v5883_v7  ;;  %v5882_v27 = vld [vmem:[%s11452_s26 + $0x5b0] sm:$0xff]  ;;  %v5968_v63 = vld [vmem:[%s11452_s26 + $0x860] sm:$0xff] }
0x2826   : > { %v5970_v5 = vld [vmem:[%s11452_s26 + $0x870] sm:$0xff] }
0x2827   : > { %8687 = vmatpush1.bf16.msra.mxu0 %v8686_v48  ;;  %8743 = vmatpush1.bf16.msra.mxu1 %v8742_v56  ;;  %v5893_v48 = vld [vmem:[%s11452_s26 + $0x608] sm:$0xff]  ;;  %v5903_v56 = vld [vmem:[%s11452_s26 + $0x658] sm:$0xff] }
0x2828   : > { %8689 = vmatprep.subr.bf16.mxu0 %v8688_v29  ;;  %8745 = vmatprep.subr.bf16.mxu1 %v8744_v36  ;;  %v5916_v29 = vld [vmem:[%s11452_s26 + $0x6c0] sm:$0xff]  ;;  %v8706_v36 = vpack.c.bf16 %v5891_v23, %v5880_v60  ;;  %v8762_v13 = vpack.c.bf16 %v5893_v48, %v5882_v27  ;;  %v8708_v38 = vpack.c.bf16 %v5914_v15, %v5903_v56  ;;  %v6002_v60 = vld [vmem:[%s11452_s26 + $0x970] sm:$0xff]  ;;  %v5993_v23 = vld [vmem:[%s11452_s26 + $0x928] sm:$0xff] }
0x2829   : > { %v8764_v53 = vpack.c.bf16 %v5916_v29, %v5905_v1  ;;  %v5990_v48 = vld [vmem:[%s11452_s26 + $0x910] sm:$0xff]  ;;  %v6001_v1 = vld [vmem:[%s11452_s26 + $0x968] sm:$0xff]  ;;  %v5992_v29 = vld [vmem:[%s11452_s26 + $0x920] sm:$0xff] }
0x282b   : > { %8691 = vmatpush1.bf16.msra.mxu0 %v8690_v32  ;;  %8747 = vmatpush1.bf16.msra.mxu1 %v8746_v59  ;;  %v5915_v32 = vld [vmem:[%s11452_s26 + $0x6b8] sm:$0xff]  ;;  %v5925_v59 = vld [vmem:[%s11452_s26 + $0x708] sm:$0xff] }
0x282c   : > { %8693 = vmatprep.subr.bf16.mxu0 %v8692_v35  ;;  %8749 = vmatprep.subr.bf16.mxu1 %v8748_v0  ;;  %v5938_v35 = vld [vmem:[%s11452_s26 + $0x770] sm:$0xff]  ;;  %v8710_v0 = vpack.c.bf16 %v5913_v26, %v5902_v31  ;;  %v8766_v44 = vpack.c.bf16 %v5915_v32, %v5904_v54  ;;  %v8712_v10 = vpack.c.bf16 %v5936_v34, %v5925_v59  ;;  %v6013_v26 = vld [vmem:[%s11452_s26 + $0x9c8] sm:$0x3]  ;;  %v5720_v54 = vld [vmem:[%s11452_s26 + $0xa0] sm:$0xff] }
0x282d   : > { %v8768_v20 = vpack.c.bf16 %v5938_v35, %v5927_v4  ;;  %v6012_v32 = vld [vmem:[%s11452_s26 + $0x9c0] sm:$0x3]  ;;  %v5719_v34 = vld [vmem:[%s11452_s26 + $0x98] sm:$0xff]  ;;  %v6014_v4 = vld [vmem:[%s11452_s26 + $0x9d0] sm:$0x3] }
0x282e   : > { %v5708_v59 = vld [vmem:[%s11452_s26 + $0x40] sm:$0xff]  ;;  %v5710_v35 = vld [vmem:[%s11452_s26 + $0x50] sm:$0xff] }
0x282f   : > { %8695 = vmatpush1.bf16.msra.mxu0 %v8694_v55  ;;  %8751 = vmatpush1.bf16.msra.mxu1 %v8750_v58  ;;  %v5937_v55 = vld [vmem:[%s11452_s26 + $0x768] sm:$0xff]  ;;  %v5947_v58 = vld [vmem:[%s11452_s26 + $0x7b8] sm:$0xff] }
0x2830   : > { %8697 = vmatprep.subr.bf16.mxu0 %v8696_v57  ;;  %8753 = vmatprep.subr.bf16.mxu1 %v8752_v33  ;;  %v5960_v57 = vld [vmem:[%s11452_s26 + $0x820] sm:$0xff]  ;;  %v8714_v33 = vpack.c.bf16 %v5935_v49, %v5924_v50  ;;  %v8770_v52 = vpack.c.bf16 %v5937_v55, %v5926_v42  ;;  %v8716_v16 = vpack.c.bf16 %v5958_v2, %v5947_v58  ;;  %v5731_v50 = vld [vmem:[%s11452_s26 + $0xf8] sm:$0xff]  ;;  %v5742_v49 = vld [vmem:[%s11452_s26 + $0x150] sm:$0xff] }
0x2831   : > { %v8772_v9 = vpack.c.bf16 %v5960_v57, %v5949_v25  ;;  %v5730_v42 = vld [vmem:[%s11452_s26 + $0xf0] sm:$0xff]  ;;  %v5741_v55 = vld [vmem:[%s11452_s26 + $0x148] sm:$0xff]  ;;  %v5732_v58 = vld [vmem:[%s11452_s26 + $0x100] sm:$0xff]  ;;  %v8788_v2 = vpack.c.bf16 %v5742_v49, %v5731_v50 }
0x2832   : > { %v5743_v25 = vld [vmem:[%s11452_s26 + $0x158] sm:$0xff]  ;;  %v5753_v57 = vld [vmem:[%s11452_s26 + $0x1a8] sm:$0xff] }
0x2833   : > { %8699 = vmatpush1.bf16.msra.mxu0 %v8698_v39  ;;  %8755 = vmatpush1.bf16.msra.mxu1 %v8754_v12  ;;  %v5959_v39 = vld [vmem:[%s11452_s26 + $0x818] sm:$0xff]  ;;  %v5969_v12 = vld [vmem:[%s11452_s26 + $0x868] sm:$0xff] }
0x2834   : > { %8701 = vmatprep.subr.bf16.mxu0 %v8700_v18  ;;  %8757 = vmatprep.subr.bf16.mxu1 %v8756_v61  ;;  %v5982_v18 = vld [vmem:[%s11452_s26 + $0x8d0] sm:$0xff]  ;;  %v8718_v61 = vpack.c.bf16 %v5957_v30, %v5946_v24  ;;  %v8774_v46 = vpack.c.bf16 %v5959_v39, %v5948_v37  ;;  %v8720_v22 = vpack.c.bf16 %v5980_v8, %v5969_v12  ;;  %v5765_v39 = vld [vmem:[%s11452_s26 + $0x208] sm:$0xff]  ;;  %v5775_v12 = vld [vmem:[%s11452_s26 + $0x258] sm:$0xff] }
0x2835   : > { %v8776_v7 = vpack.c.bf16 %v5982_v18, %v5971_v17  ;;  %v8844_v24 = vpack.c.bf16 %v5743_v25, %v5732_v58  ;;  %v5754_v37 = vld [vmem:[%s11452_s26 + $0x1b0] sm:$0xff]  ;;  %v5875_v58 = vld [vmem:[%s11452_s26 + $0x578] sm:$0xff]  ;;  %v5896_v25 = vld [vmem:[%s11452_s26 + $0x620] sm:$0xff] }
0x2836   : > { %v5786_v8 = vld [vmem:[%s11452_s26 + $0x2b0] sm:$0xff] }
0x2837   : > { %8703 = vmatpush1.bf16.msra.mxu0 %v8702_v45  ;;  %8759 = vmatpush1.bf16.msra.mxu1 %v8758_v19  ;;  %v5981_v45 = vld [vmem:[%s11452_s26 + $0x8c8] sm:$0xff]  ;;  %v5991_v19 = vld [vmem:[%s11452_s26 + $0x918] sm:$0xff]  ;;  %v8796_v18 = vpack.c.bf16 %v5786_v8, %v5775_v12 }
0x2838   : > { %8705 = vmatprep.subr.bf16.mxu0 %v8704_v40  ;;  %8761 = vmatprep.subr.bf16.mxu1 %v8760_v14  ;;  %v6004_v40 = vld [vmem:[%s11452_s26 + $0x980] sm:$0xff]  ;;  %v8722_v14 = vpack.c.bf16 %v5979_v47, %v5968_v63  ;;  %v8778_v27 = vpack.c.bf16 %v5981_v45, %v5970_v5  ;;  %v8724_v56 = vpack.c.bf16 %v6002_v60, %v5991_v19  ;;  %v5787_v47 = vld [vmem:[%s11452_s26 + $0x2b8] sm:$0xff] }
0x2839   : > { %v8780_v15 = vpack.c.bf16 %v6004_v40, %v5993_v23  ;;  %v5776_v63 = vld [vmem:[%s11452_s26 + $0x260] sm:$0xff]  ;;  %v5807_v23 = vld [vmem:[%s11452_s26 + $0x358] sm:$0xff]  ;;  %v5798_v40 = vld [vmem:[%s11452_s26 + $0x310] sm:$0xff] }
0x283a   : > { %v8850_v45 = vpack.c.bf16 %v5787_v47, %v5776_v63  ;;  %v5796_v60 = vld [vmem:[%s11452_s26 + $0x300] sm:$0xff]  ;;  %v5929_v63 = vld [vmem:[%s11452_s26 + $0x728] sm:$0xff] }
0x283b   : > { %8707 = vmatpush1.bf16.msra.mxu0 %v8706_v36  ;;  %8763 = vmatpush1.bf16.msra.mxu1 %v8762_v13  ;;  %v6003_v36 = vld [vmem:[%s11452_s26 + $0x978] sm:$0xff]  ;;  %v8726_v13 = vpack.c.bf16 %v6001_v1, %v5990_v48  ;;  %v5830_v48 = vld [vmem:[%s11452_s26 + $0x410] sm:$0xff]  ;;  %v5940_v47 = vld [vmem:[%s11452_s26 + $0x780] sm:$0xff] }
0x283c   : > { %8709 = vmatprep.subr.bf16.mxu0 %v8708_v38  ;;  %8765 = vmatprep.subr.bf16.mxu1 %v8764_v53  ;;  %v8782_v31 = vpack.c.bf16 %v6003_v36, %v5992_v29  ;;  %v6015_v38 = vld [vmem:[%s11452_s26 + $0x9d8] sm:$0x3]  ;;  %v5709_v53 = vld [vmem:[%s11452_s26 + $0x48] sm:$0xff]  ;;  %v5818_v29 = vld [vmem:[%s11452_s26 + $0x3b0] sm:$0xff] }
0x283d   : > { %v5829_v36 = vld [vmem:[%s11452_s26 + $0x408] sm:$0xff] }
0x283f   : > { %8711 = vmatpush1.bf16.msra.mxu0 %v8710_v0  ;;  %8767 = vmatpush1.bf16.msra.mxu1 %v8766_v44  ;;  %v5721_v0 = vld [vmem:[%s11452_s26 + $0xa8] sm:$0xff]  ;;  %v8784_v44 = vpack.c.bf16 %v5720_v54, %v5709_v53  ;;  %v8806_v53 = vpack.c.bf16 %v5829_v36, %v5818_v29  ;;  %v5952_v29 = vld [vmem:[%s11452_s26 + $0x7e0] sm:$0xff]  ;;  %v5963_v36 = vld [vmem:[%s11452_s26 + $0x838] sm:$0xff] }
0x2840   : > { %8713 = vmatprep.subr.bf16.mxu0 %v8712_v10  ;;  %8769 = vmatprep.subr.bf16.mxu1 %v8768_v20  ;;  %v8786_v10 = vpack.c.bf16 %v5719_v34, %v5708_v59  ;;  %v8841_v20 = vpack.c.bf16 %v5721_v0, %v5710_v35  ;;  %v5840_v59 = vld [vmem:[%s11452_s26 + $0x460] sm:$0xff]  ;;  %v5851_v34 = vld [vmem:[%s11452_s26 + $0x4b8] sm:$0xff]  ;;  %v5853_v35 = vld [vmem:[%s11452_s26 + $0x4c8] sm:$0xff] }
0x2841   : > { %v5863_v0 = vld [vmem:[%s11452_s26 + $0x518] sm:$0xff]  ;;  %v8810_v50 = vpack.c.bf16 %v5851_v34, %v5840_v59  ;;  %v5974_v59 = vld [vmem:[%s11452_s26 + $0x890] sm:$0xff]  ;;  %v5985_v34 = vld [vmem:[%s11452_s26 + $0x8e8] sm:$0xff] }
0x2843   : > { %8715 = vmatpush1.bf16.msra.mxu0 %v8714_v33  ;;  %8771 = vmatpush1.bf16.msra.mxu1 %v8770_v52  ;;  %v5764_v33 = vld [vmem:[%s11452_s26 + $0x200] sm:$0xff]  ;;  %v8790_v52 = vpack.c.bf16 %v5741_v55, %v5730_v42  ;;  %v5873_v42 = vld [vmem:[%s11452_s26 + $0x568] sm:$0xff] }
0x2844   : > { %8717 = vmatprep.subr.bf16.mxu0 %v8716_v16  ;;  %8773 = vmatprep.subr.bf16.mxu1 %v8772_v9  ;;  %v8792_v30 = vpack.c.bf16 %v5764_v33, %v5753_v57  ;;  %v5752_v16 = vld [vmem:[%s11452_s26 + $0x1a0] sm:$0xff]  ;;  %v5763_v9 = vld [vmem:[%s11452_s26 + $0x1f8] sm:$0xff] }
0x2845   : > { %v8794_v17 = vpack.c.bf16 %v5763_v9, %v5752_v16  ;;  %v5864_v55 = vld [vmem:[%s11452_s26 + $0x520] sm:$0xff]  ;;  %v5886_v16 = vld [vmem:[%s11452_s26 + $0x5d0] sm:$0xff]  ;;  %v5897_v9 = vld [vmem:[%s11452_s26 + $0x628] sm:$0xff] }
0x2846   : > { %v8862_v33 = vpack.c.bf16 %v5875_v58, %v5864_v55  ;;  %v8865_v8 = vpack.c.bf16 %v5897_v9, %v5886_v16  ;;  %v6573_v16 = vld [vmem:[%s11456_s15 + $0x8] sm:$0xff]  ;;  %v6604_v9 = vld [vmem:[%s11456_s15 + $0x100] sm:$0xff] }
0x2847   : > { %8719 = vmatpush1.bf16.msra.mxu0 %v8718_v61  ;;  %8775 = vmatpush1.bf16.msra.mxu1 %v8774_v46  ;;  %v5774_v61 = vld [vmem:[%s11452_s26 + $0x250] sm:$0xff]  ;;  %v5785_v46 = vld [vmem:[%s11452_s26 + $0x2a8] sm:$0xff] }
0x2848   : > { %8721 = vmatprep.subr.bf16.mxu0 %v8720_v22  ;;  %8777 = vmatprep.subr.bf16.mxu1 %v8776_v7  ;;  %v5797_v22 = vld [vmem:[%s11452_s26 + $0x308] sm:$0xff]  ;;  %v5808_v7 = vld [vmem:[%s11452_s26 + $0x360] sm:$0xff]  ;;  %v8798_v5 = vpack.c.bf16 %v5785_v46, %v5774_v61  ;;  %v5919_v46 = vld [vmem:[%s11452_s26 + $0x6d8] sm:$0xff] }
0x2849   : > { %v8800_v19 = vpack.c.bf16 %v5808_v7, %v5797_v22  ;;  %v5908_v61 = vld [vmem:[%s11452_s26 + $0x680] sm:$0xff] }
0x284a   : > { %v8868_v7 = vpack.c.bf16 %v5919_v46, %v5908_v61 }
0x284b   : > { %8723 = vmatpush1.bf16.msra.mxu0 %v8722_v14  ;;  %8779 = vmatpush1.bf16.msra.mxu1 %v8778_v27  ;;  %v5809_v14 = vld [vmem:[%s11452_s26 + $0x368] sm:$0xff]  ;;  %v5819_v27 = vld [vmem:[%s11452_s26 + $0x3b8] sm:$0xff] }
0x284c   : > { %8725 = vmatprep.subr.bf16.mxu0 %v8724_v56  ;;  %8781 = vmatprep.subr.bf16.mxu1 %v8780_v15  ;;  %v8802_v56 = vpack.c.bf16 %v5807_v23, %v5796_v60  ;;  %v8853_v15 = vpack.c.bf16 %v5809_v14, %v5798_v40  ;;  %v8804_v1 = vpack.c.bf16 %v5830_v48, %v5819_v27  ;;  %v5930_v60 = vld [vmem:[%s11452_s26 + $0x730] sm:$0xff]  ;;  %v5941_v23 = vld [vmem:[%s11452_s26 + $0x788] sm:$0xff]  ;;  %v5951_v40 = vld [vmem:[%s11452_s26 + $0x7d8] sm:$0xff] }
0x284d   : > { %v5962_v14 = vld [vmem:[%s11452_s26 + $0x830] sm:$0xff]  ;;  %v8871_v48 = vpack.c.bf16 %v5941_v23, %v5930_v60  ;;  %v6592_v60 = vld [vmem:[%s11456_s15 + $0xa0] sm:$0xff]  ;;  %v6593_v23 = vld [vmem:[%s11456_s15 + $0xa8] sm:$0xff] }
0x284f   : > { %8727 = vmatpush1.bf16.msra.mxu0 %v8726_v13  ;;  %8783 = vmatpush1.bf16.msra.mxu1 %v8782_v31  ;;  %v5820_v13 = vld [vmem:[%s11452_s26 + $0x3c0] sm:$0xff]  ;;  %v5831_v31 = vld [vmem:[%s11452_s26 + $0x418] sm:$0xff] }
0x2850   : > { %7654 = vmatprep.subr.msk.mxu0 %vm6022_vm12, %v6013_v26  ;;  %7657 = vmatprep.subr.msk.mxu1 %vm6022_vm12, %v6015_v38  ;;  %v5841_v26 = vld [vmem:[%s11452_s26 + $0x468] sm:$0xff]  ;;  %v5852_v38 = vld [vmem:[%s11452_s26 + $0x4c0] sm:$0xff]  ;;  %v8856_v54 = vpack.c.bf16 %v5831_v31, %v5820_v13 }
0x2851   : > { %v5973_v13 = vld [vmem:[%s11452_s26 + $0x888] sm:$0xff]  ;;  %v5984_v31 = vld [vmem:[%s11452_s26 + $0x8e0] sm:$0xff] }
0x2853   : > { %7655 = vmatpush1.msk.msra.mxu0 %vm6022_vm12, %v6012_v32  ;;  %7658 = vmatpush1.msk.msra.mxu1 %vm6022_vm12, %v6014_v4  ;;  %v8808_v32 = vpack.c.bf16 %v5852_v38, %v5841_v26  ;;  %v5842_v4 = vld [vmem:[%s11452_s26 + $0x470] sm:$0xff]  ;;  %v8874_v38 = vpack.c.bf16 %v5963_v36, %v5952_v29  ;;  %v6609_v36 = vld [vmem:[%s11456_s15 + $0x128] sm:$0xff] }
0x2854   : > { %6263 = vmatmul.mubr.f32.vlgmr.msra.gmra.mrb[84].mxu0 %v10965_v51  ;;  %6334 = vmatmul.mubr.f32.vlgmr.msra.gmra.mrb[100].mxu1 %v10965_v51  ;;  %v8859_v49 = vpack.c.bf16 %v5853_v35, %v5842_v4  ;;  %v5995_v4 = vld [vmem:[%s11452_s26 + $0x938] sm:$0xff]  ;;  %v6006_v35 = vld [vmem:[%s11452_s26 + $0x990] sm:$0xff] }
0x2855   : > { %8785 = vmatprep.subr.bf16.mxu0 %v8784_v44  ;;  %8840 = vmatprep.subr.bf16.mxu1 %v9510_v28  ;;  %v5874_v44 = vld [vmem:[%s11452_s26 + $0x570] sm:$0xff] }
0x2856   : > { %8787 = vmatpush1.bf16.msra.mxu0 %v8786_v10  ;;  %7662 = vmatprep.mubr.msk.f32.mxu0 %vm6019_vm6, %v10949_v21  ;;  %v8812_v10 = vpack.c.bf16 %v5874_v44, %v5863_v0  ;;  %v8877_v44 = vpack.c.bf16 %v5985_v34, %v5974_v59  ;;  %v6578_v59 = vld [vmem:[%s11456_s15 + $0x30] sm:$0xff]  ;;  %v6579_v34 = vld [vmem:[%s11456_s15 + $0x38] sm:$0xff] }
0x2857   : > { %8842 = vmatpush1.bf16.msra.mxu1 %v8841_v20  ;;  %7664 = vmatprep.mubr.msk.f32.mxu1 %vm6019_vm6, %v10949_v21  ;;  %v8847_v21 = vpack.c.bf16 %v5765_v39, %v5754_v37  ;;  %v5862_v20 = vld [vmem:[%s11452_s26 + $0x510] sm:$0xff]  ;;  %v5907_v37 = vld [vmem:[%s11452_s26 + $0x678] sm:$0xff] }
0x2858   : > { %8789 = vmatprep.subr.bf16.mxu0 %v8788_v2  ;;  %8843 = vmatprep.subr.bf16.mxu1 %v9510_v28  ;;  %v5885_v2 = vld [vmem:[%s11452_s26 + $0x5c8] sm:$0xff]  ;;  %v8814_v57 = vpack.c.bf16 %v5873_v42, %v5862_v20  ;;  %v5918_v39 = vld [vmem:[%s11452_s26 + $0x6d0] sm:$0xff]  ;;  %v5996_v20 = vld [vmem:[%s11452_s26 + $0x940] sm:$0xff] }
0x2859   : > { %v6007_v42 = vld [vmem:[%s11452_s26 + $0x998] sm:$0xff] }
0x285a   : > { %8791 = vmatpush1.bf16.msra.mxu0 %v8790_v52  ;;  %v8816_v52 = vpack.c.bf16 %v5896_v25, %v5885_v2  ;;  %v8880_v58 = vpack.c.bf16 %v6007_v42, %v5996_v20  ;;  %v6017_v2 = vld [vmem:[%s11452_s26 + $0x9e8] sm:$0x3]  ;;  %v6588_v25 = vld [vmem:[%s11456_s15 + $0x80] sm:$0xff] }
0x285b   : > { %8845 = vmatpush1.bf16.msra.mxu1 %v8844_v24  ;;  %8793 = vmatprep.subr.bf16.mxu0 %v8792_v30  ;;  %v5884_v24 = vld [vmem:[%s11452_s26 + $0x5c0] sm:$0xff]  ;;  %v5895_v30 = vld [vmem:[%s11452_s26 + $0x618] sm:$0xff] }
0x285c   : > { %8846 = vmatprep.subr.bf16.mxu1 %v9510_v28  ;;  %v8818_v12 = vpack.c.bf16 %v5895_v30, %v5884_v24  ;;  %v6621_v24 = vld [vmem:[%s11456_s15 + $0x188] sm:$0xff]  ;;  %v6572_v30 = vld [vmem:[%s11456_s15] sm:$0xff] }
0x285d   : > { %v8884_v46 = vpack.c.bf16 %v6573_v16, %v6572_v30  ;;  %v6628_v20 = vld [vmem:[%s11456_s15 + $0x1c0] sm:$0xff]  ;;  %v6598_v30 = vld [vmem:[%s11456_s15 + $0xd0] sm:$0xff]  ;;  %v6599_v16 = vld [vmem:[%s11456_s15 + $0xd8] sm:$0xff] }
0x285e   : > { %8795 = vmatpush1.bf16.msra.mxu0 %v8794_v17  ;;  %v8820_v17 = vpack.c.bf16 %v5918_v39, %v5907_v37  ;;  %v6605_v37 = vld [vmem:[%s11456_s15 + $0x108] sm:$0xff]  ;;  %v6590_v39 = vld [vmem:[%s11456_s15 + $0x90] sm:$0xff] }
0x285f   : > { %8848 = vmatpush1.bf16.msra.mxu1 %v8847_v21  ;;  %8797 = vmatprep.subr.bf16.mxu0 %v8796_v18  ;;  %v5906_v21 = vld [vmem:[%s11452_s26 + $0x670] sm:$0xff]  ;;  %v5917_v18 = vld [vmem:[%s11452_s26 + $0x6c8] sm:$0xff] }
0x2860   : > { %8849 = vmatprep.subr.bf16.mxu1 %v9510_v28  ;;  %v8822_v22 = vpack.c.bf16 %v5917_v18, %v5906_v21  ;;  %v6622_v21 = vld [vmem:[%s11456_s15 + $0x190] sm:$0xff]  ;;  %v6623_v18 = vld [vmem:[%s11456_s15 + $0x198] sm:$0xff] }
0x2862   : > { %8799 = vmatpush1.bf16.msra.mxu0 %v8798_v5  ;;  %v8824_v5 = vpack.c.bf16 %v5940_v47, %v5929_v63  ;;  %v8916_v63 = vpack.c.bf16 %v6605_v37, %v6604_v9  ;;  %v6630_v9 = vld [vmem:[%s11456_s15 + $0x1d0] sm:$0xff]  ;;  %v8902_v37 = vpack.c.bf16 %v6599_v16, %v6598_v30 }
0x2863   : > { %8851 = vmatpush1.bf16.msra.mxu1 %v8850_v45  ;;  %8801 = vmatprep.subr.bf16.mxu0 %v8800_v19  ;;  %v5928_v45 = vld [vmem:[%s11452_s26 + $0x720] sm:$0xff]  ;;  %v5939_v19 = vld [vmem:[%s11452_s26 + $0x778] sm:$0xff] }
0x2864   : > { %8852 = vmatprep.subr.bf16.mxu1 %v9510_v28  ;;  %v8826_v27 = vpack.c.bf16 %v5939_v19, %v5928_v45  ;;  %v8918_v45 = vpack.c.bf16 %v6623_v18, %v6622_v21  ;;  %v6607_v19 = vld [vmem:[%s11456_s15 + $0x118] sm:$0xff]  ;;  %v6614_v21 = vld [vmem:[%s11456_s15 + $0x150] sm:$0xff] }
0x2865   : > { %v6615_v18 = vld [vmem:[%s11456_s15 + $0x158] sm:$0xff] }
0x2866   : > { %8803 = vmatpush1.bf16.msra.mxu0 %v8802_v56  ;;  %v8828_v56 = vpack.c.bf16 %v5962_v14, %v5951_v40  ;;  %v6624_v40 = vld [vmem:[%s11456_s15 + $0x1a0] sm:$0xff]  ;;  %v6625_v14 = vld [vmem:[%s11456_s15 + $0x1a8] sm:$0xff] }
0x2867   : > { %8854 = vmatpush1.bf16.msra.mxu1 %v8853_v15  ;;  %8805 = vmatprep.subr.bf16.mxu0 %v8804_v1  ;;  %v5950_v15 = vld [vmem:[%s11452_s26 + $0x7d0] sm:$0xff]  ;;  %v5961_v1 = vld [vmem:[%s11452_s26 + $0x828] sm:$0xff]  ;;  %v8922_v29 = vpack.c.bf16 %v6625_v14, %v6624_v40  ;;  %v6616_v40 = vld [vmem:[%s11456_s15 + $0x160] sm:$0xff] }
0x2868   : > { %8855 = vmatprep.subr.bf16.mxu1 %v9510_v28  ;;  %v8830_v26 = vpack.c.bf16 %v5961_v1, %v5950_v15  ;;  %v6576_v15 = vld [vmem:[%s11456_s15 + $0x20] sm:$0xff]  ;;  %v6577_v1 = vld [vmem:[%s11456_s15 + $0x28] sm:$0xff] }
0x2869   : > { %v6617_v14 = vld [vmem:[%s11456_s15 + $0x168] sm:$0xff] }
0x286a   : > { %8807 = vmatpush1.bf16.msra.mxu0 %v8806_v53  ;;  %v8832_v53 = vpack.c.bf16 %v5984_v31, %v5973_v13  ;;  %v6594_v13 = vld [vmem:[%s11456_s15 + $0xb0] sm:$0xff]  ;;  %v6595_v31 = vld [vmem:[%s11456_s15 + $0xb8] sm:$0xff] }
0x286b   : > { %8857 = vmatpush1.bf16.msra.mxu1 %v8856_v54  ;;  %8809 = vmatprep.subr.bf16.mxu0 %v8808_v32  ;;  %v5972_v54 = vld [vmem:[%s11452_s26 + $0x880] sm:$0xff]  ;;  %v5983_v32 = vld [vmem:[%s11452_s26 + $0x8d8] sm:$0xff] }
0x286c   : > { %8858 = vmatprep.subr.bf16.mxu1 %v9510_v28  ;;  %v8834_v0 = vpack.c.bf16 %v5983_v32, %v5972_v54  ;;  %v8894_v32 = vpack.c.bf16 %v6595_v31, %v6594_v13 }
0x286e   : > { %8811 = vmatpush1.bf16.msra.mxu0 %v8810_v50  ;;  %v8836_v50 = vpack.c.bf16 %v6006_v35, %v5995_v4  ;;  %v6610_v35 = vld [vmem:[%s11456_s15 + $0x130] sm:$0xff] }
0x286f   : > { %8860 = vmatpush1.bf16.msra.mxu1 %v8859_v49  ;;  %8813 = vmatprep.subr.bf16.mxu0 %v8812_v10  ;;  %v5994_v49 = vld [vmem:[%s11452_s26 + $0x930] sm:$0xff]  ;;  %v6005_v10 = vld [vmem:[%s11452_s26 + $0x988] sm:$0xff] }
0x2870   : > { %8861 = vmatprep.subr.bf16.mxu1 %v9510_v28  ;;  %v8838_v55 = vpack.c.bf16 %v6005_v10, %v5994_v49  ;;  %v6596_v49 = vld [vmem:[%s11456_s15 + $0xc0] sm:$0xff]  ;;  %v6597_v10 = vld [vmem:[%s11456_s15 + $0xc8] sm:$0xff] }
0x2871   : > { %v8898_v42 = vpack.c.bf16 %v6597_v10, %v6596_v49 }
0x2872   : > { %8815 = vmatpush1.bf16.msra.mxu0 %v8814_v57  ;;  %v6016_v57 = vld [vmem:[%s11452_s26 + $0x9e0] sm:$0x3] }
0x2873   : > { %8863 = vmatpush1.bf16.msra.mxu1 %v8862_v33  ;;  %8817 = vmatprep.subr.bf16.mxu0 %v8816_v52  ;;  %v6589_v33 = vld [vmem:[%s11456_s15 + $0x88] sm:$0xff]  ;;  %v6620_v52 = vld [vmem:[%s11456_s15 + $0x180] sm:$0xff] }
0x2874   : > { %8864 = vmatprep.subr.bf16.mxu1 %v9510_v28  ;;  %v8914_v61 = vpack.c.bf16 %v6621_v24, %v6620_v52  ;;  %v6613_v52 = vld [vmem:[%s11456_s15 + $0x148] sm:$0xff] }
0x2876   : > { %8819 = vmatpush1.bf16.msra.mxu0 %v8818_v12  ;;  %v6591_v12 = vld [vmem:[%s11456_s15 + $0x98] sm:$0xff] }
0x2877   : > { %8866 = vmatpush1.bf16.msra.mxu1 %v8865_v8  ;;  %8821 = vmatprep.subr.bf16.mxu0 %v8820_v17  ;;  %v6018_v8 = vld [vmem:[%s11452_s26 + $0x9f0] sm:$0x3]  ;;  %v8882_v17 = vpack.c.bf16 %v6589_v33, %v6588_v25  ;;  %v8886_v47 = vpack.c.bf16 %v6591_v12, %v6590_v39  ;;  %v6612_v33 = vld [vmem:[%s11456_s15 + $0x140] sm:$0xff]  ;;  %v6631_v39 = vld [vmem:[%s11456_s15 + $0x1d8] sm:$0xff] }
0x2878   : > { %8867 = vmatprep.subr.bf16.mxu1 %v9510_v28  ;;  %v8932_v24 = vpack.c.bf16 %v6613_v52, %v6612_v33  ;;  %v6582_v12 = vld [vmem:[%s11456_s15 + $0x50] sm:$0xff] }
0x287a   : > { %8823 = vmatpush1.bf16.msra.mxu0 %v8822_v22  ;;  %v6574_v22 = vld [vmem:[%s11456_s15 + $0x10] sm:$0xff] }
0x287b   : > { %8869 = vmatpush1.bf16.msra.mxu1 %v8868_v7  ;;  %8825 = vmatprep.subr.bf16.mxu0 %v8824_v5  ;;  %v6575_v7 = vld [vmem:[%s11456_s15 + $0x18] sm:$0xff]  ;;  %v6606_v5 = vld [vmem:[%s11456_s15 + $0x110] sm:$0xff] }
0x287c   : > { %8870 = vmatprep.subr.bf16.mxu1 %v9510_v28 }
0x287e   : > { %8827 = vmatpush1.bf16.msra.mxu0 %v8826_v27  ;;  %v8888_v27 = vpack.c.bf16 %v6575_v7, %v6574_v22  ;;  %v6632_v22 = vld [vmem:[%s11456_s15 + $0x1e0] sm:$0xff] }
0x287f   : > { %8872 = vmatpush1.bf16.msra.mxu1 %v8871_v48  ;;  %8829 = vmatprep.subr.bf16.mxu0 %v8828_v56  ;;  %v8920_v48 = vpack.c.bf16 %v6607_v19, %v6606_v5  ;;  %v8890_v56 = vpack.c.bf16 %v6593_v23, %v6592_v60  ;;  %v6633_v5 = vld [vmem:[%s11456_s15 + $0x1e8] sm:$0xff] }
0x2880   : > { %8873 = vmatprep.subr.bf16.mxu1 %v9510_v28  ;;  %v6585_v19 = vld [vmem:[%s11456_s15 + $0x68] sm:$0xff]  ;;  %v8938_v60 = vpack.c.bf16 %v6633_v5, %v6632_v22  ;;  %v6654_v22 = vld [vmem:[%s11456_s15 + $0x290] sm:$0xff] }
0x2882   : > { %8831 = vmatpush1.bf16.msra.mxu0 %v8830_v26  ;;  %v6626_v26 = vld [vmem:[%s11456_s15 + $0x1b0] sm:$0xff] }
0x2883   : > { %8875 = vmatpush1.bf16.msra.mxu1 %v8874_v38  ;;  %8833 = vmatprep.subr.bf16.mxu0 %v8832_v53  ;;  %v6627_v38 = vld [vmem:[%s11456_s15 + $0x1b8] sm:$0xff]  ;;  %v8892_v53 = vpack.c.bf16 %v6577_v1, %v6576_v15  ;;  %v6634_v15 = vld [vmem:[%s11456_s15 + $0x1f0] sm:$0xff] }
0x2884   : > { %8876 = vmatprep.subr.bf16.mxu1 %v9510_v28  ;;  %v8926_v4 = vpack.c.bf16 %v6627_v38, %v6626_v26  ;;  %v6618_v26 = vld [vmem:[%s11456_s15 + $0x170] sm:$0xff]  ;;  %v6619_v38 = vld [vmem:[%s11456_s15 + $0x178] sm:$0xff] }
0x2886   : > { %8835 = vmatpush1.bf16.msra.mxu0 %v8834_v0  ;;  %v6611_v0 = vld [vmem:[%s11456_s15 + $0x138] sm:$0xff] }
0x2887   : > { %8878 = vmatpush1.bf16.msra.mxu1 %v8877_v44  ;;  %8837 = vmatprep.subr.bf16.mxu0 %v8836_v50  ;;  %v8896_v44 = vpack.c.bf16 %v6579_v34, %v6578_v59  ;;  %v8928_v50 = vpack.c.bf16 %v6611_v0, %v6610_v35  ;;  %v6684_v59 = vld [vmem:[%s11456_s15 + $0x380] sm:$0xff] }
0x2888   : > { %8879 = vmatprep.subr.bf16.mxu1 %v9510_v28 }
0x288a   : > { %8839 = vmatpush1.bf16.msra.mxu0 %v8838_v55  ;;  %v6629_v55 = vld [vmem:[%s11456_s15 + $0x1c8] sm:$0xff] }
0x288b   : > { %8881 = vmatpush1.bf16.msra.mxu1 %v8880_v58  ;;  %7660 = vmatprep.subr.msk.mxu0 %vm6022_vm12, %v6017_v2  ;;  %v6580_v58 = vld [vmem:[%s11456_s15 + $0x40] sm:$0xff]  ;;  %v6581_v2 = vld [vmem:[%s11456_s15 + $0x48] sm:$0xff]  ;;  %v8930_v25 = vpack.c.bf16 %v6629_v55, %v6628_v20 }
0x288c   : > { %6467 = vmatprep.subr.mxu1 %v9513_v43 }
0x288e   : > { %7661 = vmatpush1.msk.msra.mxu0 %vm6022_vm12, %v6016_v57  ;;  %v8900_v57 = vpack.c.bf16 %v6581_v2, %v6580_v58 }
0x288f   : > { %7663 = vmatpush1.msk.msra.mxu1 %vm6022_vm12, %v6018_v8  ;;  %6405 = vmatmul.mubr.f32.vlgmr.msra.gmra.mrb[86].mxu0 %v10965_v51  ;;  %v8934_v8 = vpack.c.bf16 %v6631_v39, %v6630_v9 }
0x2890   : > { %6476 = vmatmul.mubr.f32.vlgmr.msra.gmra.mrb[102].mxu1 %v10965_v51  ;;  %8883 = vmatprep.subr.bf16.mxu0 %v8882_v17  ;;  %v6608_v51 = vld [vmem:[%s11456_s15 + $0x120] sm:$0xff]  ;;  %v6583_v17 = vld [vmem:[%s11456_s15 + $0x58] sm:$0xff] }
0x2891   : > { %8915 = vmatprep.subr.bf16.mxu1 %v8914_v61  ;;  %8885 = vmatpush3.bf16.msra.mxu0 %v8884_v46  ;;  %v8924_v54 = vpack.c.bf16 %v6609_v36, %v6608_v51  ;;  %v8904_v61 = vpack.c.bf16 %v6583_v17, %v6582_v12  ;;  %v8936_v46 = vpack.c.bf16 %v6615_v18, %v6614_v21  ;;  %v6635_v51 = vld [vmem:[%s11456_s15 + $0x1f8] sm:$0xff]  ;;  %v5698_v12 = vld [vmem:[%s11457_s28] sm:$0xff]  ;;  %v6750_v21 = vsub.s32 3, %v9753_v3 }
0x2892   : > { %8917 = vmatpush3.bf16.msra.mxu1 %v8916_v63  ;;  %8887 = vmatprep.subr.bf16.mxu0 %v8886_v47  ;;  %v6600_v63 = vld [vmem:[%s11456_s15 + $0xe0] sm:$0xff]  ;;  %v6601_v47 = vld [vmem:[%s11456_s15 + $0xe8] sm:$0xff]  ;;  %v6587_v36 = vld [vmem:[%s11456_s15 + $0x78] sm:$0xff]  ;;  %v8942_v13 = vpack.c.bf16 %v6635_v51, %v6634_v15  ;;  %v6746_v18 = vsub.s32 2, %v9753_v3 }
0x2893   : > { %8919 = vmatprep.subr.bf16.mxu1 %v8918_v45  ;;  %v8906_v7 = vpack.c.bf16 %v6601_v47, %v6600_v63  ;;  %v6584_v45 = vld [vmem:[%s11456_s15 + $0x60] sm:$0xff]  ;;  %v6669_v63 = vld [vmem:[%s11456_s15 + $0x308] sm:$0xff]  ;;  %v6638_v15 = vld [vmem:[%s11456_s15 + $0x210] sm:$0xff] }
0x2894   : > { %v8908_v23 = vpack.c.bf16 %v6585_v19, %v6584_v45  ;;  %v6758_v45 = vsub.s32 5, %v9753_v3  ;;  %v6766_v19 = vsub.s32 7, %v9753_v3  ;;  %v6670_v51 = vld [vmem:[%s11456_s15 + $0x310] sm:$0xff] }
0x2895   : > { %8889 = vmatpush3.bf16.msra.mxu0 %v8888_v27  ;;  %v8940_v27 = vpack.c.bf16 %v6617_v14, %v6616_v40  ;;  %v6687_v40 = vld [vmem:[%s11456_s15 + $0x398] sm:$0xff] }
0x2896   : > { %8921 = vmatpush3.bf16.msra.mxu1 %v8920_v48  ;;  %8891 = vmatprep.subr.bf16.mxu0 %v8890_v56  ;;  %v6602_v48 = vld [vmem:[%s11456_s15 + $0xf0] sm:$0xff]  ;;  %v6603_v56 = vld [vmem:[%s11456_s15 + $0xf8] sm:$0xff] }
0x2897   : > { %8923 = vmatprep.subr.bf16.mxu1 %v8922_v29  ;;  %v8910_v1 = vpack.c.bf16 %v6603_v56, %v6602_v48  ;;  %v6586_v29 = vld [vmem:[%s11456_s15 + $0x70] sm:$0xff] }
0x2898   : > { %v8912_v31 = vpack.c.bf16 %v6587_v36, %v6586_v29  ;;  %v6671_v29 = vld [vmem:[%s11456_s15 + $0x318] sm:$0xff]  ;;  %v6656_v36 = vld [vmem:[%s11456_s15 + $0x2a0] sm:$0xff] }
0x2899   : > { %8893 = vmatpush3.bf16.msra.mxu0 %v8892_v53  ;;  %v8944_v53 = vpack.c.bf16 %v6619_v38, %v6618_v26  ;;  %v6657_v26 = vld [vmem:[%s11456_s15 + $0x2a8] sm:$0xff]  ;;  %v6688_v38 = vld [vmem:[%s11456_s15 + $0x3a0] sm:$0xff] }
0x289a   : > { %8925 = vmatpush3.bf16.msra.mxu1 %v8924_v54  ;;  %8895 = vmatprep.subr.bf16.mxu0 %v8894_v32  ;;  %v6652_v54 = vld [vmem:[%s11456_s15 + $0x280] sm:$0xff]  ;;  %v6653_v32 = vld [vmem:[%s11456_s15 + $0x288] sm:$0xff] }
0x289b   : > { %8927 = vmatprep.subr.bf16.mxu1 %v8926_v4  ;;  %v8946_v34 = vpack.c.bf16 %v6653_v32, %v6652_v54  ;;  %v6685_v4 = vld [vmem:[%s11456_s15 + $0x388] sm:$0xff] }
0x289c   : > { %v8978_v35 = vpack.c.bf16 %v6685_v4, %v6684_v59  ;;  %v6640_v4 = vld [vmem:[%s11456_s15 + $0x220] sm:$0xff] }
0x289d   : > { %8897 = vmatpush3.bf16.msra.mxu0 %v8896_v44 }
0x289e   : > { %8929 = vmatpush3.bf16.msra.mxu1 %v8928_v50  ;;  %8899 = vmatprep.subr.bf16.mxu0 %v8898_v42 }
0x289f   : > { %8931 = vmatprep.subr.bf16.mxu1 %v8930_v25 }
0x28a1   : > { %8901 = vmatpush3.bf16.msra.mxu0 %v8900_v57 }
0x28a2   : > { %8933 = vmatpush3.bf16.msra.mxu1 %v8932_v24  ;;  %8903 = vmatprep.subr.bf16.mxu0 %v8902_v37 }
0x28a3   : > { %8935 = vmatprep.subr.bf16.mxu1 %v8934_v8  ;;  %v6636_v8 = vld [vmem:[%s11456_s15 + $0x200] sm:$0xff] }
0x28a5   : > { %8905 = vmatpush3.bf16.msra.mxu0 %v8904_v61  ;;  %v6637_v61 = vld [vmem:[%s11456_s15 + $0x208] sm:$0xff] }
0x28a6   : > { %8937 = vmatpush3.bf16.msra.mxu1 %v8936_v46  ;;  %8907 = vmatprep.subr.bf16.mxu0 %v8906_v7  ;;  %v6668_v46 = vld [vmem:[%s11456_s15 + $0x300] sm:$0xff]  ;;  %v8948_v7 = vpack.c.bf16 %v6637_v61, %v6636_v8 }
0x28a7   : > { %8939 = vmatprep.subr.bf16.mxu1 %v8938_v60  ;;  %v8980_v5 = vpack.c.bf16 %v6669_v63, %v6668_v46  ;;  %v6655_v60 = vld [vmem:[%s11456_s15 + $0x298] sm:$0xff]  ;;  %v6676_v63 = vld [vmem:[%s11456_s15 + $0x340] sm:$0xff] }
0x28a9   : > { %8909 = vmatpush3.bf16.msra.mxu0 %v8908_v23  ;;  %v6686_v23 = vld [vmem:[%s11456_s15 + $0x390] sm:$0xff] }
0x28aa   : > { %8941 = vmatpush3.bf16.msra.mxu1 %v8940_v27  ;;  %8911 = vmatprep.subr.bf16.mxu0 %v8910_v1  ;;  %v6639_v1 = vld [vmem:[%s11456_s15 + $0x218] sm:$0xff] }
0x28ab   : > { %8943 = vmatprep.subr.bf16.mxu1 %v8942_v13  ;;  %v8950_v13 = vpack.c.bf16 %v6655_v60, %v6654_v22  ;;  %v8952_v59 = vpack.c.bf16 %v6639_v1, %v6638_v15  ;;  %v6677_v22 = vld [vmem:[%s11456_s15 + $0x348] sm:$0xff]  ;;  %v6679_v15 = vld [vmem:[%s11456_s15 + $0x358] sm:$0xff]  ;;  %v6664_v1 = vld [vmem:[%s11456_s15 + $0x2e0] sm:$0xff] }
0x28ad   : > { %8913 = vmatpush3.bf16.msra.mxu0 %v8912_v31  ;;  %v8982_v31 = vpack.c.bf16 %v6687_v40, %v6686_v23  ;;  %v8996_v23 = vpack.c.bf16 %v6677_v22, %v6676_v63  ;;  %v6646_v40 = vld [vmem:[%s11456_s15 + $0x250] sm:$0xff] }
0x28ae   : > { %8945 = vmatpush3.bf16.msra.mxu1 %v8944_v53  ;;  %8947 = vmatprep.subr.bf16.mxu0 %v8946_v34  ;;  %v6689_v53 = vld [vmem:[%s11456_s15 + $0x3a8] sm:$0xff]  ;;  %v8984_v34 = vpack.c.bf16 %v6671_v29, %v6670_v51  ;;  %v6696_v29 = vld [vmem:[%s11456_s15 + $0x3e0] sm:$0xff]  ;;  %v6702_v22 = vld [vmem:[%s11456_s15 + $0x410] sm:$0xff] }
0x28af   : > { %8979 = vmatprep.subr.bf16.mxu1 %v8978_v35  ;;  %v6641_v35 = vld [vmem:[%s11456_s15 + $0x228] sm:$0xff] }
0x28b0   : > { %v6665_v51 = vld [vmem:[%s11456_s15 + $0x2e8] sm:$0xff] }
0x28ed   : > { %v6122_v0 = vpop.f32.mrb[82].mxu0  ;;  %v6193_v44 = vpop.f32.mrb[98].mxu1 }
0x28ee   : > { %v6124_v50 = vpop.f32.mrb[83].mxu0  ;;  %v6195_v49 = vpop.f32.mrb[99].mxu1 }
0x28ef   : > { %v6492_v10 = vcombine.low %v6122_v0, %v6124_v50  ;;  %v6493_v20 = vcombine.low %v6193_v44, %v6195_v49  ;;  %v8954_v0 = vpack.c.bf16 %v6657_v26, %v6656_v36  ;;  %v8986_v44 = vpack.c.bf16 %v6689_v53, %v6688_v38  ;;  %v6672_v50 = vld [vmem:[%s11456_s15 + $0x320] sm:$0xff]  ;;  %v6673_v49 = vld [vmem:[%s11456_s15 + $0x328] sm:$0xff] }
0x28f0   : > { %v6697_v36 = vld [vmem:[%s11456_s15 + $0x3e8] sm:$0xff]  ;;  %v6648_v26 = vld [vmem:[%s11456_s15 + $0x260] sm:$0xff]  ;;  %v8970_v53 = vpack.c.bf16 %v6665_v51, %v6664_v1 }
0x28f1   : > { %v6502_v42 = vrot.slane %v6492_v10, %v10626_v41  ;;  %v6509_v55 = vrot.slane %v6493_v20, %v10626_v41  ;;  %v6658_v10 = vld [vmem:[%s11456_s15 + $0x2b0] sm:$0xff]  ;;  %v6659_v20 = vld [vmem:[%s11456_s15 + $0x2b8] sm:$0xff]  ;;  %v6649_v38 = vld [vmem:[%s11456_s15 + $0x268] sm:$0xff] }
0x28f2   : > { %v6725_v1 = vld [vmem:[%s11456_s15 + $0x4c8] sm:$0xff] }
0x28f3   : > { %v6524_v58 = vcombine.low %v6502_v42, %v6509_v55  ;;  %v6690_v42 = vld [vmem:[%s11456_s15 + $0x3b0] sm:$0xff]  ;;  %v6691_v55 = vld [vmem:[%s11456_s15 + $0x3b8] sm:$0xff] }
0x28f5   : > { %v6532_v37 = vrot.slane %v6524_v58, %v10626_v41  ;;  %v8956_v58 = vpack.c.bf16 %v6641_v35, %v6640_v4  ;;  %v6667_v4 = vld [vmem:[%s11456_s15 + $0x2f8] sm:$0xff]  ;;  %v6698_v35 = vld [vmem:[%s11456_s15 + $0x3f0] sm:$0xff] }
0x2927   : > { %v6264_v2 = vpop.f32.mrb[84].mxu0  ;;  %v6335_v25 = vpop.f32.mrb[100].mxu1 }
0x2928   : > { %v6266_v57 = vpop.f32.mrb[85].mxu0  ;;  %v6337_v33 = vpop.f32.mrb[101].mxu1 }
0x2929   : > { %v6494_v52 = vcombine.low %v6264_v2, %v6266_v57  ;;  %v6495_v24 = vcombine.low %v6335_v25, %v6337_v33  ;;  %v8988_v2 = vpack.c.bf16 %v6673_v49, %v6672_v50  ;;  %v6642_v25 = vld [vmem:[%s11456_s15 + $0x230] sm:$0xff]  ;;  %v6643_v57 = vld [vmem:[%s11456_s15 + $0x238] sm:$0xff]  ;;  %v8958_v33 = vpack.c.bf16 %v6659_v20, %v6658_v10 }
0x292a   : > { %v6650_v49 = vld [vmem:[%s11456_s15 + $0x270] sm:$0xff] }
0x292b   : > { %v6516_v30 = vrot.slane %v6494_v52, %v10626_v41  ;;  %v6523_v16 = vrot.slane %v6495_v24, %v10626_v41  ;;  %v8990_v52 = vpack.c.bf16 %v6691_v55, %v6690_v42  ;;  %v6674_v24 = vld [vmem:[%s11456_s15 + $0x330] sm:$0xff]  ;;  %v6651_v42 = vld [vmem:[%s11456_s15 + $0x278] sm:$0xff] }
0x292c   : > { %v6682_v55 = vld [vmem:[%s11456_s15 + $0x370] sm:$0xff] }
0x292d   : > { %v6525_v9 = vcombine.low %v6516_v30, %v6523_v16  ;;  %v6675_v30 = vld [vmem:[%s11456_s15 + $0x338] sm:$0xff]  ;;  %v6660_v16 = vld [vmem:[%s11456_s15 + $0x2c0] sm:$0xff] }
0x292e   : > { %v8992_v8 = vpack.c.bf16 %v6675_v30, %v6674_v24  ;;  %v6754_v24 = vsub.s32 4, %v9753_v3  ;;  %v6762_v30 = vsub.s32 6, %v9753_v3 }
0x292f   : > { %v6539_v39 = vrot.slane %v6525_v9, %v10626_v41  ;;  %v6661_v9 = vld [vmem:[%s11456_s15 + $0x2c8] sm:$0xff] }
0x2930   : > { %v8962_v61 = vpack.c.bf16 %v6661_v9, %v6660_v16  ;;  %v6701_v9 = vld [vmem:[%s11456_s15 + $0x408] sm:$0xff] }
0x2931   : > { %v6540_v17 = vcombine.low %v6532_v37, %v6539_v39  ;;  %v6692_v37 = vld [vmem:[%s11456_s15 + $0x3c0] sm:$0xff]  ;;  %v6693_v39 = vld [vmem:[%s11456_s15 + $0x3c8] sm:$0xff] }
0x2932   : > { %v8994_v46 = vpack.c.bf16 %v6693_v39, %v6692_v37  ;;  %v6732_v37 = vld [vmem:[%s11456_s15 + $0x500] sm:$0xff]  ;;  %v6733_v39 = vld [vmem:[%s11456_s15 + $0x508] sm:$0xff] }
0x2933   : > { %v11286_v47 = vadd.f32 %v6540_v17, %v5698_v12  ;;  %v8960_v12 = vpack.c.bf16 %v6643_v57, %v6642_v25  ;;  %v6644_v17 = vld [vmem:[%s11456_s15 + $0x240] sm:$0xff]  ;;  %v6717_v25 = vld [vmem:[%s11456_s15 + $0x488] sm:$0xff]  ;;  %v8976_v57 = vpack.c.bf16 %v6651_v42, %v6650_v49 }
0x2934   : > { %v6729_v49 = vld [vmem:[%s11456_s15 + $0x4e8] sm:$0xff] }
0x2935   : > { %v6743_v14 = vrot.slane %v11286_v47, %v9761_v11  ;;  %v6751_v27 = vrot.slane %v11286_v47, %v6750_v21  ;;  %v6739_v48 = vrot.slane %v11286_v47, %v9756_v6  ;;  %v6747_v56 = vrot.slane %v11286_v47, %v6746_v18  ;;  %6568 = vst [vmem:[%s11284_s18] sm:$0xff] %v11286_v47  ;;  %v6645_v21 = vld [vmem:[%s11456_s15 + $0x248] sm:$0xff] }
0x2936   : > { %v6759_v54 = vrot.slane %v11286_v47, %v6758_v45  ;;  %v6767_v32 = vrot.slane %v11286_v47, %v6766_v19  ;;  %v6694_v45 = vld [vmem:[%s11456_s15 + $0x3d0] sm:$0xff]  ;;  %v6695_v19 = vld [vmem:[%s11456_s15 + $0x3d8] sm:$0xff]  ;;  %v8964_v60 = vpack.c.bf16 %v6645_v21, %v6644_v17  ;;  %v9043_v21 = vpack.c.bf16 %v6733_v39, %v6732_v37 }
0x2937   : > { %6856 = vmatprep.mubr.f32.mxu0 %v6743_v14  ;;  %6926 = vmatprep.mubr.f32.mxu1 %v6751_v27  ;;  %v6647_v14 = vld [vmem:[%s11456_s15 + $0x258] sm:$0xff] }
0x2938   : > { %6857 = vmatmul.mubr.f32.vlgmr.msra.gmra.mrb[88].mxu0 %v6739_v48  ;;  %6927 = vmatmul.mubr.f32.vlgmr.msra.gmra.mrb[104].mxu1 %v6747_v56  ;;  %v8998_v48 = vpack.c.bf16 %v6695_v19, %v6694_v45  ;;  %v6678_v56 = vld [vmem:[%s11456_s15 + $0x350] sm:$0xff]  ;;  %v6721_v45 = vld [vmem:[%s11456_s15 + $0x4a8] sm:$0xff]  ;;  %v6715_v37 = vld [vmem:[%s11456_s15 + $0x478] sm:$0xff] }
0x2939   : > { %8949 = vmatpush3.bf16.msra.mxu0 %v8948_v7  ;;  %8981 = vmatpush3.bf16.msra.mxu1 %v8980_v5  ;;  %v6662_v7 = vld [vmem:[%s11456_s15 + $0x2d0] sm:$0xff]  ;;  %v6663_v5 = vld [vmem:[%s11456_s15 + $0x2d8] sm:$0xff] }
0x293a   : > { %6996 = vmatprep.mubr.f32.mxu0 %v6759_v54  ;;  %7066 = vmatprep.mubr.f32.mxu1 %v6767_v32  ;;  %v8966_v27 = vpack.c.bf16 %v6663_v5, %v6662_v7  ;;  %v9002_v54 = vpack.c.bf16 %v6697_v36, %v6696_v29  ;;  %v6680_v32 = vld [vmem:[%s11456_s15 + $0x360] sm:$0xff]  ;;  %v6703_v7 = vld [vmem:[%s11456_s15 + $0x418] sm:$0xff] }
0x293b   : > { %8951 = vmatprep.subr.bf16.mxu0 %v8950_v13  ;;  %8983 = vmatprep.subr.bf16.mxu1 %v8982_v31  ;;  %v8968_v13 = vpack.c.bf16 %v6647_v14, %v6646_v40  ;;  %v9000_v31 = vpack.c.bf16 %v6679_v15, %v6678_v56  ;;  %v6720_v5 = vld [vmem:[%s11456_s15 + $0x4a0] sm:$0xff]  ;;  %v9016_v19 = vpack.c.bf16 %v6703_v7, %v6702_v22  ;;  %v6723_v40 = vld [vmem:[%s11456_s15 + $0x4b8] sm:$0xff] }
0x293c   : > { %v6707_v56 = vld [vmem:[%s11456_s15 + $0x438] sm:$0xff]  ;;  %v6724_v15 = vld [vmem:[%s11456_s15 + $0x4c0] sm:$0xff] }
0x293d   : > { %8953 = vmatpush3.bf16.msra.mxu0 %v8952_v59  ;;  %8985 = vmatpush3.bf16.msra.mxu1 %v8984_v34  ;;  %v6681_v59 = vld [vmem:[%s11456_s15 + $0x368] sm:$0xff]  ;;  %v6666_v34 = vld [vmem:[%s11456_s15 + $0x2f0] sm:$0xff]  ;;  %v6708_v36 = vld [vmem:[%s11456_s15 + $0x440] sm:$0xff] }
0x293e   : > { %8955 = vmatprep.subr.bf16.mxu0 %v8954_v0  ;;  %8987 = vmatprep.subr.bf16.mxu1 %v8986_v44  ;;  %v6699_v0 = vld [vmem:[%s11456_s15 + $0x3f8] sm:$0xff]  ;;  %v8972_v44 = vpack.c.bf16 %v6649_v38, %v6648_v26  ;;  %v9004_v50 = vpack.c.bf16 %v6681_v59, %v6680_v32  ;;  %v8974_v10 = vpack.c.bf16 %v6667_v4, %v6666_v34  ;;  %v6726_v38 = vld [vmem:[%s11456_s15 + $0x4d0] sm:$0xff] }
0x293f   : > { %v9006_v20 = vpack.c.bf16 %v6699_v0, %v6698_v35  ;;  %v6710_v0 = vld [vmem:[%s11456_s15 + $0x450] sm:$0xff] }
0x2941   : > { %8957 = vmatpush3.bf16.msra.mxu0 %v8956_v58  ;;  %8989 = vmatpush3.bf16.msra.mxu1 %v8988_v2  ;;  %v6683_v58 = vld [vmem:[%s11456_s15 + $0x378] sm:$0xff]  ;;  %v6716_v2 = vld [vmem:[%s11456_s15 + $0x480] sm:$0xff] }
0x2942   : > { %8959 = vmatprep.subr.bf16.mxu0 %v8958_v33  ;;  %8991 = vmatprep.subr.bf16.mxu1 %v8990_v52  ;;  %v9008_v33 = vpack.c.bf16 %v6683_v58, %v6682_v55  ;;  %v6700_v52 = vld [vmem:[%s11456_s15 + $0x400] sm:$0xff]  ;;  %v9010_v16 = vpack.c.bf16 %v6717_v25, %v6716_v2  ;;  %v6713_v25 = vld [vmem:[%s11456_s15 + $0x468] sm:$0xff] }
0x2943   : > { %v9012_v17 = vpack.c.bf16 %v6701_v9, %v6700_v52  ;;  %v6712_v2 = vld [vmem:[%s11456_s15 + $0x460] sm:$0xff]  ;;  %v6714_v9 = vld [vmem:[%s11456_s15 + $0x470] sm:$0xff] }
0x2945   : > { %8961 = vmatpush3.bf16.msra.mxu0 %v8960_v12  ;;  %8993 = vmatpush3.bf16.msra.mxu1 %v8992_v8  ;;  %v6718_v12 = vld [vmem:[%s11456_s15 + $0x490] sm:$0xff]  ;;  %v6719_v8 = vld [vmem:[%s11456_s15 + $0x498] sm:$0xff] }
0x2946   : > { %8963 = vmatprep.subr.bf16.mxu0 %v8962_v61  ;;  %8995 = vmatprep.subr.bf16.mxu1 %v8994_v46  ;;  %v6755_v61 = vrot.slane %v11286_v47, %v6754_v24  ;;  %v6763_v46 = vrot.slane %v11286_v47, %v6762_v30  ;;  %v9014_v63 = vpack.c.bf16 %v6719_v8, %v6718_v12 }
0x2947   : > { %v9018_v47 = vpack.c.bf16 %v6721_v45, %v6720_v5  ;;  %v9036_v24 = vpack.c.bf16 %v6713_v25, %v6712_v2 }
0x2949   : > { %8965 = vmatpush3.bf16.msra.mxu0 %v8964_v60  ;;  %8997 = vmatpush3.bf16.msra.mxu1 %v8996_v23  ;;  %v6704_v60 = vld [vmem:[%s11456_s15 + $0x420] sm:$0xff]  ;;  %v6705_v23 = vld [vmem:[%s11456_s15 + $0x428] sm:$0xff] }
0x294a   : > { %8967 = vmatprep.subr.bf16.mxu0 %v8966_v27  ;;  %8999 = vmatprep.subr.bf16.mxu1 %v8998_v48  ;;  %v9020_v14 = vpack.c.bf16 %v6705_v23, %v6704_v60  ;;  %v6706_v48 = vld [vmem:[%s11456_s15 + $0x430] sm:$0xff] }
0x294b   : > { %v9024_v51 = vpack.c.bf16 %v6707_v56, %v6706_v48 }
0x294d   : > { %8969 = vmatpush3.bf16.msra.mxu0 %v8968_v13  ;;  %9001 = vmatpush3.bf16.msra.mxu1 %v9000_v31  ;;  %v6709_v13 = vld [vmem:[%s11456_s15 + $0x448] sm:$0xff] }
0x294e   : > { %8971 = vmatprep.subr.bf16.mxu0 %v8970_v53  ;;  %9003 = vmatprep.subr.bf16.mxu1 %v9002_v54  ;;  %v6727_v53 = vld [vmem:[%s11456_s15 + $0x4d8] sm:$0xff]  ;;  %v9028_v59 = vpack.c.bf16 %v6709_v13, %v6708_v36 }
0x294f   : > { %v9030_v35 = vpack.c.bf16 %v6727_v53, %v6726_v38 }
0x2951   : > { %8973 = vmatpush3.bf16.msra.mxu0 %v8972_v44  ;;  %9005 = vmatpush3.bf16.msra.mxu1 %v9004_v50  ;;  %v6711_v44 = vld [vmem:[%s11456_s15 + $0x458] sm:$0xff]  ;;  %v6728_v50 = vld [vmem:[%s11456_s15 + $0x4e0] sm:$0xff] }
0x2952   : > { %8975 = vmatprep.subr.bf16.mxu0 %v8974_v10  ;;  %9007 = vmatprep.subr.bf16.mxu1 %v9006_v20  ;;  %v5699_v20 = vld [vmem:[%s11457_s28 + $0x8] sm:$0x7]  ;;  %v9032_v42 = vpack.c.bf16 %v6711_v44, %v6710_v0  ;;  %v9034_v58 = vpack.c.bf16 %v6729_v49, %v6728_v50 }
0x2955   : > { %8977 = vmatpush3.bf16.msra.mxu0 %v8976_v57  ;;  %9009 = vmatpush3.bf16.msra.mxu1 %v9008_v33  ;;  %v6730_v57 = vld [vmem:[%s11456_s15 + $0x4f0] sm:$0xff]  ;;  %v6731_v33 = vld [vmem:[%s11456_s15 + $0x4f8] sm:$0xff] }
0x2956   : > { %9011 = vmatprep.subr.bf16.mxu0 %v9010_v16  ;;  %9042 = vmatprep.subr.bf16.mxu1 %v9510_v28  ;;  %v6722_v28 = vld [vmem:[%s11456_s15 + $0x4b0] sm:$0xff]  ;;  %v9038_v16 = vpack.c.bf16 %v6731_v33, %v6730_v57 }
0x2957   : > { %v9022_v27 = vpack.c.bf16 %v6723_v40, %v6722_v28 }
0x2958   : > { %6997 = vmatmul.mubr.f32.vlgmr.msra.gmra.mrb[90].mxu0 %v6755_v61  ;;  %7067 = vmatmul.mubr.f32.vlgmr.msra.gmra.mrb[106].mxu1 %v6763_v46 }
0x2959   : > { %9013 = vmatpush3.bf16.msra.mxu0 %v9012_v17  ;;  %9044 = vmatpush3.bf16.msra.mxu1 %v9043_v21 }
0x295a   : > { %9015 = vmatprep.subr.bf16.mxu0 %v9014_v63  ;;  %8354 = vmatprep.mubr.msk.f32.mxu1 %vm9512_vm1, %v9513_v43  ;;  %v9026_v43 = vpack.c.bf16 %v6725_v1, %v6724_v15  ;;  %vm6569_vm1 = vcmp.lt.s32.totalorder %v1148_v62, 272  ;;  %v9040_v62 = vpack.c.bf16 %v6715_v37, %v6714_v9 }
0x295d   : > { %9017 = vmatpush3.bf16.msra.mxu0 %v9016_v19 }
0x295e   : > { %9019 = vmatprep.subr.bf16.mxu0 %v9018_v47 }
0x2961   : > { %9021 = vmatpush3.bf16.msra.mxu0 %v9020_v14 }
0x2962   : > { %v6406_v29 = vpop.f32.mrb[86].mxu0  ;;  %9023 = vmatprep.subr.bf16.mxu0 %v9022_v27 }
0x2963   : > { %v6477_v31 = vpop.f32.mrb[102].mxu1  ;;  %v6408_v26 = vpop.f32.mrb[87].mxu0 }
0x2964   : > { %v6541_v54 = vcombine.low %v6406_v29, %v6408_v26  ;;  %v6479_v32 = vpop.f32.mrb[103].mxu1  ;;  %v6555_v34 = vrot.slane %v6477_v31, %v10626_v41 }
0x2965   : > { %9025 = vmatpush3.bf16.msra.mxu0 %v9024_v51 }
0x2966   : > { %v6548_v4 = vrot.slane %v6541_v54, %v10626_v41  ;;  %9027 = vmatprep.subr.bf16.mxu0 %v9026_v43 }
0x2968   : > { %v6556_v10 = vcombine.low %v6548_v4, %v6555_v34 }
0x2969   : > { %9029 = vmatpush3.bf16.msra.mxu0 %v9028_v59 }
0x296a   : > { %v6563_v55 = vrot.slane %v6556_v10, %v10626_v41  ;;  %9031 = vmatprep.subr.bf16.mxu0 %v9030_v35 }
0x296c   : > { %v6567_v52 = vadd.f32 %v6563_v55, %v5699_v20 }
0x296d   : > { %9033 = vmatpush3.bf16.msra.mxu0 %v9032_v42 }
0x296e   : > { %6571 = vst.msk [vmem:[%s11284_s18 + $0x8] sm:$0x7] %vm6569_vm1, %v6567_v52  ;;  %9035 = vmatprep.subr.bf16.mxu0 %v9034_v58  ;;  %v6775_v30 = vrot.slane %v6567_v52, %v9761_v11  ;;  %v6779_v41 = vrot.slane %v6567_v52, %v6746_v18  ;;  %v6771_v39 = vrot.slane %v6567_v52, %v9756_v6 }
0x2970   : > { %7136 = vmatprep.mubr.f32.mxu0 %v6775_v30  ;;  %8355 = vmatmul.mubr.msk.f32.vlgmr.msra.gmra.mrb[108].mxu1 %vm1290_vm2, %v6779_v41  ;;  %vm7212_vm2 = vcmask 581632  }
0x2971   : > { %9037 = vmatpush3.bf16.msra.mxu0 %v9036_v24 }
0x2972   : > { %9039 = vmatprep.subr.bf16.mxu0 %v9038_v16 }
0x2975   : > { %9041 = vmatpush3.bf16.msra.mxu0 %v9040_v62 }
0x2978   : > { %7137 = vmatmul.mubr.f32.vlgmr.msra.gmra.mrb[92].mxu0 %v6771_v39 }
0x2a0b   : > { %v7888_v12 = vpop.f32.mrb[88].mxu0  ;;  %v7923_v8 = vpop.f32.mrb[104].mxu1 }
0x2a0c   : > { %v7889_v17 = vpop.f32.mrb[89].mxu0  ;;  %v7924_v11 = vpop.f32.mrb[105].mxu1 }
0x2a0d   : > { %v7890_v21 = vadd.f32 %v7889_v17, %v7888_v12  ;;  %v7925_v3 = vadd.f32 %v7924_v11, %v7923_v8 }
0x2a0f   : > { %v6929_v18 = vadd.f32 %v7925_v3, %v7890_v21 }
0x2a2b   : > { %v7958_v61 = vpop.f32.mrb[90].mxu0  ;;  %v7993_v46 = vpop.f32.mrb[106].mxu1 }
0x2a2c   : > { %v7959_v63 = vpop.f32.mrb[91].mxu0  ;;  %v7994_v22 = vpop.f32.mrb[107].mxu1 }
0x2a2d   : > { %v7960_v7 = vadd.f32 %v7959_v63, %v7958_v61  ;;  %v7995_v5 = vadd.f32 %v7994_v22, %v7993_v46 }
0x2a2f   : > { %v6999_v45 = vadd.f32 %v7960_v7, %v6929_v18 }
0x2a31   : > { %v7069_v19 = vadd.f32 %v7995_v5, %v6999_v45 }
0x2a43   : > { %v7208_v47 = vpop.f32.mrb[108].mxu1 }
0x2a44   : > { %v8356_v6 = vpop.f32.mrb[109].mxu1 }
0x2a4b   : > { %v8028_v60 = vpop.f32.mrb[92].mxu0 }
0x2a4c   : > { %v8029_v23 = vpop.f32.mrb[93].mxu0 }
0x2a4d   : > { %v8030_v28 = vadd.f32 %v8029_v23, %v8028_v60 }
0x2a4f   : > { %v7139_v40 = vadd.f32 %v8030_v28, %v7069_v19 }
0x2a51   : > { %v7209_v14 = vadd.f32 %v7208_v47, %v7139_v40 }
0x2a53   : > { %7213 = vst.msk [vmem:[%s929_s11] sm:$0x1] %vm7212_vm2, %v7209_v14 }
0x2a54 PF: > { %s70_s7 = sadd.s32 1, %s9478_s7  }
0x2a55   : > { %p67_p4 = scmp.ge.s32.totalorder %s70_s7, 4  }
0x2a57   :  { %69 = sbr.rel (!%p67_p4) target bundleno = 49 (0x31), region = 229 }

</bundles_post_ra>
